<compile_context>
chip_gen: v6e
topology: v6e:2x2x1
jax: 0.10.0
libtpu: 0.0.40
codegen_flags: <defaults>
</compile_context>

<pallas_src>
import functools

import jax
import jax.numpy as jnp
from jax.experimental import pallas as pl
from jax.experimental.pallas import tpu as pltpu

HIDDEN = 256        # fixed by the module definition
NUM_LAYERS = 4
_NEG_INF = -1e30    # bias padding for padded vocab lanes (keeps in-kernel softmax exact)


def _round_up(x, m):
    return ((x + m - 1) // m) * m


# --------------------------- Fused CharRNN kernel ---------------------------
def _char_rnn_kernel(x_ref, mask_ref, wih0_ref, wih_ref, whh_ref, b_ref,
                     wout_ref, bout_ref, out_ref,
                     act_scr, gates_scr,
                     *, T, B, H, num_layers, with_softmax):
    """One grid iteration == one LSTM layer.

    x_ref    : [T*B, Ep]    bf16  time-major embeddings (batch/emb padded)
    mask_ref : [T*B, 1]     bf16  1.0 where t < length_b else 0.0
    wih0_ref : [Ep, 4H]     bf16  layer-0 input weights
    wih_ref  : [1, H, 4H]   bf16  layer-l input weights (l >= 1), layer-indexed block
    whh_ref  : [1, H, 4H]   bf16  layer-l recurrent weights, layer-indexed block
    b_ref    : [1, 1, 4H]   f32   layer-l (b_ih + b_hh), PyTorch gate order i,f,g,o
    wout_ref : [H, Vp]      bf16
    bout_ref : [1, Vp]      f32
    out_ref  : [T*B, Vp]    f32   written only on the last grid iteration
    """
    l = pl.program_id(0)
    bias = b_ref[0]                                            # [1, 4H] f32

    # Hoisted input projection: ONE big MXU matmul over all T timesteps.
    @pl.when(l == 0)
    def _():
        gates_scr[...] = jnp.dot(x_ref[...], wih0_ref[...],
                                 preferred_element_type=jnp.float32) + bias

    @pl.when(l > 0)
    def _():
        # Reads act_scr (layer l-1 outputs) wholesale BEFORE the recurrence below
        # overwrites it in place, so one activation buffer suffices.
        gates_scr[...] = jnp.dot(act_scr[...], wih_ref[0],
                                 preferred_element_type=jnp.float32) + bias

    # Serial recurrence: only h_{t-1} @ W_hh + elementwise gates on the chain.
    # h carried in bf16 (matmul LHS dtype -> no per-step cast), c in f32.
    w_hh = whh_ref[0]                                          # [H, 4H] bf16
    h = jnp.zeros((B, H), jnp.bfloat16)
    c = jnp.zeros((B, H), jnp.float32)
    for t in range(T):                                         # T small & static
        row = t * B                                            # static, sublane aligned
        g = gates_scr[pl.ds(row, B), :] + jnp.dot(
            h, w_hh, preferred_element_type=jnp.float32)       # [B, 4H] f32
        i_g = jax.nn.sigmoid(g[:, 0 * H:1 * H])
        f_g = jax.nn.sigmoid(g[:, 1 * H:2 * H])
        g_g = jnp.tanh(g[:, 2 * H:3 * H])
        o_g = jax.nn.sigmoid(g[:, 3 * H:4 * H])
        c = f_g * c + i_g * g_g
        h = (o_g * jnp.tanh(c)).astype(jnp.bfloat16)
        act_scr[pl.ds(row, B), :] = h

    # Last layer: pack/pad length mask + output Linear (+softmax), lane-dense store.
    @pl.when(l == num_layers - 1)
    def _():
        h_last = act_scr[...] * mask_ref[...]                  # bf16, zeroed at t >= len
        logits = jnp.dot(h_last, wout_ref[...],
                         preferred_element_type=jnp.float32) + bout_ref[...]
        if with_softmax:
            # Padded vocab lanes carry a -1e30 bias -> contribute ~0 to the denominator.
            logits = jax.nn.softmax(logits, axis=-1)
        out_ref[...] = logits.astype(out_ref.dtype)


def _char_rnn_pallas(x_flat, mask, w_ih0, w_ih_rest, w_hh, b, w_out_p, b_out_p,
                     *, T, B, H, num_layers, with_softmax):
    TB, E = x_flat.shape
    Vp = w_out_p.shape[1]
    kernel = functools.partial(_char_rnn_kernel, T=T, B=B, H=H,
                               num_layers=num_layers, with_softmax=with_softmax)
    return pl.pallas_call(
        kernel,
        out_shape=jax.ShapeDtypeStruct((TB, Vp), jnp.float32),
        grid_spec=pltpu.PrefetchScalarGridSpec(
            num_scalar_prefetch=0,
            grid=(num_layers,),                                # layer axis: prefetch l+1 weights
            in_specs=[
                pl.BlockSpec((TB, E), lambda l: (0, 0)),                       # x (layer 0)
                pl.BlockSpec((TB, 1), lambda l: (0, 0)),                       # length mask
                pl.BlockSpec((E, 4 * H), lambda l: (0, 0)),                    # w_ih layer 0
                pl.BlockSpec((1, H, 4 * H),
                             lambda l: (jnp.maximum(l - 1, 0), 0, 0)),         # w_ih layer l>=1
                pl.BlockSpec((1, H, 4 * H), lambda l: (l, 0, 0)),              # w_hh layer l
                pl.BlockSpec((1, 1, 4 * H), lambda l: (l, 0, 0)),              # bias layer l
                pl.BlockSpec((H, Vp), lambda l: (0, 0)),                       # w_out
                pl.BlockSpec((1, Vp), lambda l: (0, 0)),                       # b_out
            ],
            out_specs=pl.BlockSpec((TB, Vp), lambda l: (0, 0)),                # resident, written at last l
            scratch_shapes=[
                pltpu.VMEM((TB, H), jnp.bfloat16),      # inter-layer activations (in-place)
                pltpu.VMEM((TB, 4 * H), jnp.float32),   # hoisted x-projection gates
            ],
        ),
        compiler_params=pltpu.CompilerParams(
            dimension_semantics=("arbitrary",),
            vmem_limit_bytes=32 * 1024 * 1024),
    )(x_flat, mask, w_ih0, w_ih_rest, w_hh, b, w_out_p, b_out_p)


# --------------------------- Parameter init ---------------------------
def init_params(key, vocab_size, emb_size, num_layers=NUM_LAYERS, hidden=HIDDEN):
    params = {}
    k_emb, k_out_w, k_out_b, *k_layers = jax.random.split(key, 3 + 2 * num_layers)
    params["emb"] = jax.random.normal(k_emb, (vocab_size, emb_size), jnp.float32) * 0.1
    scale = 1.0 / jnp.sqrt(hidden)
    w_ih_rest, w_hh_all, b_all = [], [], []
    d_in = emb_size
    for l in range(num_layers):
        kw, kb = k_layers[2 * l], k_layers[2 * l + 1]
        kw1, kw2 = jax.random.split(kw)
        kb1, kb2 = jax.random.split(kb)
        w_ih = jax.random.uniform(kw1, (d_in, 4 * hidden), jnp.float32, -scale, scale)
        w_hh = jax.random.uniform(kw2, (hidden, 4 * hidden), jnp.float32, -scale, scale)
        b_ih = jax.random.uniform(kb1, (4 * hidden,), jnp.float32, -scale, scale)
        b_hh = jax.random.uniform(kb2, (4 * hidden,), jnp.float32, -scale, scale)
        if l == 0:
            params["w_ih0"] = w_ih.astype(jnp.bfloat16)            # [E, 4H]
        else:
            w_ih_rest.append(w_ih.astype(jnp.bfloat16))
        w_hh_all.append(w_hh.astype(jnp.bfloat16))
        b_all.append((b_ih + b_hh).reshape(1, 4 * hidden))
        d_in = hidden
    params["w_ih_rest"] = jnp.stack(w_ih_rest)                     # [L-1, H, 4H] bf16
    params["w_hh"] = jnp.stack(w_hh_all)                           # [L, H, 4H] bf16
    params["b"] = jnp.stack(b_all)                                 # [L, 1, 4H] f32
    params["w_out"] = jax.random.uniform(k_out_w, (hidden, vocab_size), jnp.float32,
                                         -scale, scale).astype(jnp.bfloat16)
    params["b_out"] = jax.random.uniform(k_out_b, (1, vocab_size), jnp.float32,
                                         -scale, scale)
    return params


# --------------------------- Forward ---------------------------
def char_rnn_forward(params, tokens, lengths, max_len, with_softmax=False,
                     num_layers=NUM_LAYERS):
    """tokens: [B, T] int32, lengths: [B] int32. Returns [max_len, B, vocab]."""
    B, T = tokens.shape
    H = HIDDEN
    B_pad = _round_up(max(B, 8), 8)            # fill the f32 sublane tile / MXU rows
    E = params["emb"].shape[1]
    E_pad = _round_up(E, 128)                  # lane-dense / tile-aligned K for layer 0
    V = params["w_out"].shape[1]
    V_pad = _round_up(V, 128)                  # lane-dense output stores

    # Embedding lookup (gather) — glue, plain JAX.
    emb = jnp.take(params["emb"], tokens, axis=0)                 # [B, T, E] f32
    x = jnp.transpose(emb, (1, 0, 2))                             # [T, B, E] time-major
    x = jnp.pad(x, ((0, 0), (0, B_pad - B), (0, E_pad - E)))      # [T, B_pad, E_pad]
    x_flat = x.reshape(T * B_pad, E_pad).astype(jnp.bfloat16)     # [T*B_pad, E_pad]

    # Validity mask (t < length_b); padded batch rows get 0. Tiny array; the mask
    # APPLICATION over [T*B, H] happens inside the kernel on the last layer.
    len_pad = jnp.pad(lengths, (0, B_pad - B))
    t_idx = jnp.arange(T, dtype=jnp.int32)[:, None]
    mask = (t_idx < len_pad[None, :]).astype(jnp.bfloat16).reshape(T * B_pad, 1)

    # Pad layer-0 input weights along K (zeros match zero-padded x columns).
    w_ih0_p = jnp.pad(params["w_ih0"], ((0, E_pad - E), (0, 0)))
    # Lane-pad the output head; padded bias lanes get -inf so the in-kernel softmax
    # over the padded width is exact for the real vocab columns.
    w_out_p = jnp.pad(params["w_out"], ((0, 0), (0, V_pad - V)))
    b_out_p = jnp.pad(params["b_out"], ((0, 0), (0, V_pad - V)),
                      constant_values=_NEG_INF)

    out = _char_rnn_pallas(x_flat, mask, w_ih0_p, params["w_ih_rest"],
                           params["w_hh"], params["b"], w_out_p, b_out_p,
                           T=T, B=B_pad, H=H, num_layers=num_layers,
                           with_softmax=with_softmax)
    out = out.reshape(T, B_pad, V_pad)[:, :B, :V]                 # slice before any cast

    # pad_packed_sequence(total_length=max_len) tail: LSTM output is zero there,
    # so the Linear yields exactly the bias (softmaxed if requested) — no matmul.
    tail = params["b_out"][0].astype(jnp.float32)                 # [V]
    if with_softmax:
        tail = jax.nn.softmax(tail)
    tail = jnp.broadcast_to(tail, (max_len - T, B, V)).astype(out.dtype)
    return jnp.concatenate([out, tail], axis=0)                   # [max_len, B, V]


# --------------------------- Demo ---------------------------
if __name__ == "__main__":
    vocab_size = 64
    emb_size = 32
    max_len = 32
    batch = 2
    seq = 8

    key = jax.random.PRNGKey(0)
    k_params, k_tok = jax.random.split(key)
    params = init_params(k_params, vocab_size, emb_size)

    tokens = jax.random.randint(k_tok, (batch, seq), 0, vocab_size, dtype=jnp.int32)
    lengths = jnp.array([seq, seq - 2], dtype=jnp.int32)   # variable lengths (pack_sequence)

    out = char_rnn_forward(params, tokens, lengths, max_len, with_softmax=False)
    out = jax.block_until_ready(out)
    assert out.shape == (max_len, batch, vocab_size), out.shape
    assert bool(jnp.isfinite(out).all())

    out_sm = char_rnn_forward(params, tokens, lengths, max_len, with_softmax=True)
    out_sm = jax.block_until_ready(out_sm)
    assert out_sm.shape == (max_len, batch, vocab_size), out_sm.shape
    assert bool(jnp.allclose(out_sm.sum(axis=-1), 1.0, atol=1e-3))

    print("KERNEL_OK")
</pallas_src>

<mosaic_0001>
module attributes {stable_mosaic.version = 11 : i64} {
  func.func @_char_rnn_kernel(%arg0: i32, %arg1: memref<64x128xbf16, #tpu.memory_space<vmem>>, %arg2: memref<64x1xbf16, #tpu.memory_space<vmem>>, %arg3: memref<128x1024xbf16, #tpu.memory_space<vmem>>, %arg4: memref<1x256x1024xbf16, #tpu.memory_space<vmem>>, %arg5: memref<1x256x1024xbf16, #tpu.memory_space<vmem>>, %arg6: memref<1x1x1024xf32, #tpu.memory_space<vmem>>, %arg7: memref<256x128xbf16, #tpu.memory_space<vmem>>, %arg8: memref<1x128xf32, #tpu.memory_space<vmem>>, %arg9: memref<64x128xf32, #tpu.memory_space<vmem>>, %arg10: memref<64x256xbf16, #tpu.memory_space<vmem>>, %arg11: memref<64x1024xf32, #tpu.memory_space<vmem>>) attributes {dimension_semantics = [#tpu.dimension_semantics<arbitrary>], iteration_bounds = array<i64: 4>, scalar_prefetch = 0 : i64, scratch_operands = 2 : i64, tpu.core_type = #tpu.core_type<tc>, window_params = [{pipeline_mode = #tpu.pipeline_mode<synchronous>, transform_indices = @transform_0, window_bounds = array<i64: 64, 128>}, {pipeline_mode = #tpu.pipeline_mode<synchronous>, transform_indices = @transform_1, window_bounds = array<i64: 64, 1>}, {pipeline_mode = #tpu.pipeline_mode<synchronous>, transform_indices = @transform_2, window_bounds = array<i64: 128, 1024>}, {transform_indices = @transform_3, window_bounds = array<i64: 1, 256, 1024>}, {transform_indices = @transform_4, window_bounds = array<i64: 1, 256, 1024>}, {transform_indices = @transform_5, window_bounds = array<i64: 1, 1, 1024>}, {pipeline_mode = #tpu.pipeline_mode<synchronous>, transform_indices = @transform_6, window_bounds = array<i64: 256, 128>}, {pipeline_mode = #tpu.pipeline_mode<synchronous>, transform_indices = @transform_7, window_bounds = array<i64: 1, 128>}, {pipeline_mode = #tpu.pipeline_mode<synchronous>, transform_indices = @transform_8, window_bounds = array<i64: 64, 128>}]} {
    %c0 = arith.constant 0 : index
    %c0_0 = arith.constant 0 : index
    %c0_1 = arith.constant 0 : index
    %0 = vector.load %arg6[%c0, %c0_0, %c0_1] : memref<1x1x1024xf32, #tpu.memory_space<vmem>>, vector<1x1x1024xf32>
    %1 = vector.shape_cast %0 : vector<1x1x1024xf32> to vector<1x1024xf32>
    %c0_i32 = arith.constant 0 : i32
    %2 = arith.cmpi eq, %arg0, %c0_i32 : i32
    %3 = arith.extui %2 : i1 to i32
    %c0_i32_2 = arith.constant 0 : i32
    %4 = arith.cmpi ne, %3, %c0_i32_2 : i32
    scf.if %4 {
      %c0_67 = arith.constant 0 : index
      %c0_68 = arith.constant 0 : index
      %255 = vector.load %arg1[%c0_67, %c0_68] : memref<64x128xbf16, #tpu.memory_space<vmem>>, vector<64x128xbf16>
      %c0_69 = arith.constant 0 : index
      %c0_70 = arith.constant 0 : index
      %256 = vector.load %arg3[%c0_69, %c0_70] : memref<128x1024xbf16, #tpu.memory_space<vmem>>, vector<128x1024xbf16>
      %cst_71 = arith.constant dense<0.000000e+00> : vector<64x1024xf32>
      %257 = tpu.matmul %255, %256, %cst_71 {dimension_numbers = #tpu.dot_dimension_numbers<[1], [0], [0], [1], [0, 0, 1, 1], [], []>} : vector<64x128xbf16>, vector<128x1024xbf16>, vector<64x1024xf32> -> vector<64x1024xf32>
      %258 = vector.broadcast %1 : vector<1x1024xf32> to vector<64x1024xf32>
      %259 = arith.addf %257, %258 : vector<64x1024xf32>
      %c0_72 = arith.constant 0 : index
      %c0_73 = arith.constant 0 : index
      %260 = vector.load %arg11[%c0_72, %c0_73] : memref<64x1024xf32, #tpu.memory_space<vmem>>, vector<64x1024xf32>
      tpu.vector_store %arg11[%c0_72, %c0_73], %259 {strides = array<i32>} : memref<64x1024xf32, #tpu.memory_space<vmem>>, vector<64x1024xf32>,
    } else {
    }
    %c0_i32_3 = arith.constant 0 : i32
    %5 = arith.cmpi sgt, %arg0, %c0_i32_3 : i32
    %6 = arith.extui %5 : i1 to i32
    %c0_i32_4 = arith.constant 0 : i32
    %7 = arith.cmpi ne, %6, %c0_i32_4 : i32
    scf.if %7 {
      %c0_67 = arith.constant 0 : index
      %c0_68 = arith.constant 0 : index
      %255 = vector.load %arg10[%c0_67, %c0_68] : memref<64x256xbf16, #tpu.memory_space<vmem>>, vector<64x256xbf16>
      %c0_69 = arith.constant 0 : index
      %c0_70 = arith.constant 0 : index
      %c0_71 = arith.constant 0 : index
      %256 = vector.load %arg4[%c0_69, %c0_70, %c0_71] : memref<1x256x1024xbf16, #tpu.memory_space<vmem>>, vector<1x256x1024xbf16>
      %257 = vector.shape_cast %256 : vector<1x256x1024xbf16> to vector<256x1024xbf16>
      %cst_72 = arith.constant dense<0.000000e+00> : vector<64x1024xf32>
      %258 = tpu.matmul %255, %257, %cst_72 {dimension_numbers = #tpu.dot_dimension_numbers<[1], [0], [0], [1], [0, 0, 1, 1], [], []>} : vector<64x256xbf16>, vector<256x1024xbf16>, vector<64x1024xf32> -> vector<64x1024xf32>
      %259 = vector.broadcast %1 : vector<1x1024xf32> to vector<64x1024xf32>
      %260 = arith.addf %258, %259 : vector<64x1024xf32>
      %c0_73 = arith.constant 0 : index
      %c0_74 = arith.constant 0 : index
      %261 = vector.load %arg11[%c0_73, %c0_74] : memref<64x1024xf32, #tpu.memory_space<vmem>>, vector<64x1024xf32>
      tpu.vector_store %arg11[%c0_73, %c0_74], %260 {strides = array<i32>} : memref<64x1024xf32, #tpu.memory_space<vmem>>, vector<64x1024xf32>,
    } else {
    }
    %c0_5 = arith.constant 0 : index
    %c0_6 = arith.constant 0 : index
    %c0_7 = arith.constant 0 : index
    %8 = vector.load %arg5[%c0_5, %c0_6, %c0_7] : memref<1x256x1024xbf16, #tpu.memory_space<vmem>>, vector<1x256x1024xbf16>
    %9 = vector.shape_cast %8 : vector<1x256x1024xbf16> to vector<256x1024xbf16>
    %cst = arith.constant 0.000000e+00 : bf16
    %10 = vector.broadcast %cst : bf16 to vector<8x256xbf16>
    %cst_8 = arith.constant 0.000000e+00 : f32
    %11 = vector.broadcast %cst_8 : f32 to vector<8x256xf32>
    %c0_9 = arith.constant 0 : index
    %c0_10 = arith.constant 0 : index
    %12 = vector.load %arg11[%c0_9, %c0_10] : memref<64x1024xf32, #tpu.memory_space<vmem>>, vector<8x1024xf32>
    %cst_11 = arith.constant dense<0.000000e+00> : vector<8x1024xf32>
    %13 = tpu.matmul %10, %9, %cst_11 {dimension_numbers = #tpu.dot_dimension_numbers<[1], [0], [0], [1], [0, 0, 1, 1], [], []>} : vector<8x256xbf16>, vector<256x1024xbf16>, vector<8x1024xf32> -> vector<8x1024xf32>
    %14 = arith.addf %12, %13 : vector<8x1024xf32>
    %15 = vector.extract_strided_slice %14 {offsets = [0, 0], sizes = [8, 256], strides = [1, 1]} : vector<8x1024xf32> to vector<8x256xf32>
    %16 = arith.negf %15 : vector<8x256xf32>
    %17 = math.exp %16 : vector<8x256xf32>
    %cst_12 = arith.constant 1.000000e+00 : f32
    %18 = vector.broadcast %cst_12 : f32 to vector<8x256xf32>
    %19 = arith.addf %18, %17 : vector<8x256xf32>
    %20 = arith.divf %18, %19 : vector<8x256xf32>
    %21 = vector.extract_strided_slice %14 {offsets = [0, 256], sizes = [8, 256], strides = [1, 1]} : vector<8x1024xf32> to vector<8x256xf32>
    %22 = arith.negf %21 : vector<8x256xf32>
    %23 = math.exp %22 : vector<8x256xf32>
    %cst_13 = arith.constant 1.000000e+00 : f32
    %24 = vector.broadcast %cst_13 : f32 to vector<8x256xf32>
    %25 = arith.addf %24, %23 : vector<8x256xf32>
    %26 = arith.divf %24, %25 : vector<8x256xf32>
    %27 = vector.extract_strided_slice %14 {offsets = [0, 512], sizes = [8, 256], strides = [1, 1]} : vector<8x1024xf32> to vector<8x256xf32>
    %28 = math.tanh %27 : vector<8x256xf32>
    %29 = vector.extract_strided_slice %14 {offsets = [0, 768], sizes = [8, 256], strides = [1, 1]} : vector<8x1024xf32> to vector<8x256xf32>
    %30 = arith.negf %29 : vector<8x256xf32>
    %31 = math.exp %30 : vector<8x256xf32>
    %cst_14 = arith.constant 1.000000e+00 : f32
    %32 = vector.broadcast %cst_14 : f32 to vector<8x256xf32>
    %33 = arith.addf %32, %31 : vector<8x256xf32>
    %34 = arith.divf %32, %33 : vector<8x256xf32>
    %35 = arith.mulf %26, %11 : vector<8x256xf32>
    %36 = arith.mulf %20, %28 : vector<8x256xf32>
    %37 = arith.addf %35, %36 : vector<8x256xf32>
    %38 = math.tanh %37 : vector<8x256xf32>
    %39 = arith.mulf %34, %38 : vector<8x256xf32>
    %40 = arith.truncf %39 : vector<8x256xf32> to vector<8x256xbf16>
    %c0_15 = arith.constant 0 : index
    %c0_16 = arith.constant 0 : index
    %41 = vector.load %arg10[%c0_15, %c0_16] : memref<64x256xbf16, #tpu.memory_space<vmem>>, vector<8x256xbf16>
    tpu.vector_store %arg10[%c0_15, %c0_16], %40 {strides = array<i32>} : memref<64x256xbf16, #tpu.memory_space<vmem>>, vector<8x256xbf16>,
    %c8 = arith.constant 8 : index
    %c0_17 = arith.constant 0 : index
    %42 = vector.load %arg11[%c8, %c0_17] : memref<64x1024xf32, #tpu.memory_space<vmem>>, vector<8x1024xf32>
    %cst_18 = arith.constant dense<0.000000e+00> : vector<8x1024xf32>
    %43 = tpu.matmul %40, %9, %cst_18 {dimension_numbers = #tpu.dot_dimension_numbers<[1], [0], [0], [1], [0, 0, 1, 1], [], []>} : vector<8x256xbf16>, vector<256x1024xbf16>, vector<8x1024xf32> -> vector<8x1024xf32>
    %44 = arith.addf %42, %43 : vector<8x1024xf32>
    %45 = vector.extract_strided_slice %44 {offsets = [0, 0], sizes = [8, 256], strides = [1, 1]} : vector<8x1024xf32> to vector<8x256xf32>
    %46 = arith.negf %45 : vector<8x256xf32>
    %47 = math.exp %46 : vector<8x256xf32>
    %cst_19 = arith.constant 1.000000e+00 : f32
    %48 = vector.broadcast %cst_19 : f32 to vector<8x256xf32>
    %49 = arith.addf %48, %47 : vector<8x256xf32>
    %50 = arith.divf %48, %49 : vector<8x256xf32>
    %51 = vector.extract_strided_slice %44 {offsets = [0, 256], sizes = [8, 256], strides = [1, 1]} : vector<8x1024xf32> to vector<8x256xf32>
    %52 = arith.negf %51 : vector<8x256xf32>
    %53 = math.exp %52 : vector<8x256xf32>
    %cst_20 = arith.constant 1.000000e+00 : f32
    %54 = vector.broadcast %cst_20 : f32 to vector<8x256xf32>
    %55 = arith.addf %54, %53 : vector<8x256xf32>
    %56 = arith.divf %54, %55 : vector<8x256xf32>
    %57 = vector.extract_strided_slice %44 {offsets = [0, 512], sizes = [8, 256], strides = [1, 1]} : vector<8x1024xf32> to vector<8x256xf32>
    %58 = math.tanh %57 : vector<8x256xf32>
    %59 = vector.extract_strided_slice %44 {offsets = [0, 768], sizes = [8, 256], strides = [1, 1]} : vector<8x1024xf32> to vector<8x256xf32>
    %60 = arith.negf %59 : vector<8x256xf32>
    %61 = math.exp %60 : vector<8x256xf32>
    %cst_21 = arith.constant 1.000000e+00 : f32
    %62 = vector.broadcast %cst_21 : f32 to vector<8x256xf32>
    %63 = arith.addf %62, %61 : vector<8x256xf32>
    %64 = arith.divf %62, %63 : vector<8x256xf32>
    %65 = arith.mulf %56, %37 : vector<8x256xf32>
    %66 = arith.mulf %50, %58 : vector<8x256xf32>
    %67 = arith.addf %65, %66 : vector<8x256xf32>
    %68 = math.tanh %67 : vector<8x256xf32>
    %69 = arith.mulf %64, %68 : vector<8x256xf32>
    %70 = arith.truncf %69 : vector<8x256xf32> to vector<8x256xbf16>
    %c8_22 = arith.constant 8 : index
    %c0_23 = arith.constant 0 : index
    %71 = vector.load %arg10[%c8_22, %c0_23] : memref<64x256xbf16, #tpu.memory_space<vmem>>, vector<8x256xbf16>
    tpu.vector_store %arg10[%c8_22, %c0_23], %70 {strides = array<i32>} : memref<64x256xbf16, #tpu.memory_space<vmem>>, vector<8x256xbf16>,
    %c16 = arith.constant 16 : index
    %c0_24 = arith.constant 0 : index
    %72 = vector.load %arg11[%c16, %c0_24] : memref<64x1024xf32, #tpu.memory_space<vmem>>, vector<8x1024xf32>
    %cst_25 = arith.constant dense<0.000000e+00> : vector<8x1024xf32>
    %73 = tpu.matmul %70, %9, %cst_25 {dimension_numbers = #tpu.dot_dimension_numbers<[1], [0], [0], [1], [0, 0, 1, 1], [], []>} : vector<8x256xbf16>, vector<256x1024xbf16>, vector<8x1024xf32> -> vector<8x1024xf32>
    %74 = arith.addf %72, %73 : vector<8x1024xf32>
    %75 = vector.extract_strided_slice %74 {offsets = [0, 0], sizes = [8, 256], strides = [1, 1]} : vector<8x1024xf32> to vector<8x256xf32>
    %76 = arith.negf %75 : vector<8x256xf32>
    %77 = math.exp %76 : vector<8x256xf32>
    %cst_26 = arith.constant 1.000000e+00 : f32
    %78 = vector.broadcast %cst_26 : f32 to vector<8x256xf32>
    %79 = arith.addf %78, %77 : vector<8x256xf32>
    %80 = arith.divf %78, %79 : vector<8x256xf32>
    %81 = vector.extract_strided_slice %74 {offsets = [0, 256], sizes = [8, 256], strides = [1, 1]} : vector<8x1024xf32> to vector<8x256xf32>
    %82 = arith.negf %81 : vector<8x256xf32>
    %83 = math.exp %82 : vector<8x256xf32>
    %cst_27 = arith.constant 1.000000e+00 : f32
    %84 = vector.broadcast %cst_27 : f32 to vector<8x256xf32>
    %85 = arith.addf %84, %83 : vector<8x256xf32>
    %86 = arith.divf %84, %85 : vector<8x256xf32>
    %87 = vector.extract_strided_slice %74 {offsets = [0, 512], sizes = [8, 256], strides = [1, 1]} : vector<8x1024xf32> to vector<8x256xf32>
    %88 = math.tanh %87 : vector<8x256xf32>
    %89 = vector.extract_strided_slice %74 {offsets = [0, 768], sizes = [8, 256], strides = [1, 1]} : vector<8x1024xf32> to vector<8x256xf32>
    %90 = arith.negf %89 : vector<8x256xf32>
    %91 = math.exp %90 : vector<8x256xf32>
    %cst_28 = arith.constant 1.000000e+00 : f32
    %92 = vector.broadcast %cst_28 : f32 to vector<8x256xf32>
    %93 = arith.addf %92, %91 : vector<8x256xf32>
    %94 = arith.divf %92, %93 : vector<8x256xf32>
    %95 = arith.mulf %86, %67 : vector<8x256xf32>
    %96 = arith.mulf %80, %88 : vector<8x256xf32>
    %97 = arith.addf %95, %96 : vector<8x256xf32>
    %98 = math.tanh %97 : vector<8x256xf32>
    %99 = arith.mulf %94, %98 : vector<8x256xf32>
    %100 = arith.truncf %99 : vector<8x256xf32> to vector<8x256xbf16>
    %c16_29 = arith.constant 16 : index
    %c0_30 = arith.constant 0 : index
    %101 = vector.load %arg10[%c16_29, %c0_30] : memref<64x256xbf16, #tpu.memory_space<vmem>>, vector<8x256xbf16>
    tpu.vector_store %arg10[%c16_29, %c0_30], %100 {strides = array<i32>} : memref<64x256xbf16, #tpu.memory_space<vmem>>, vector<8x256xbf16>,
    %c24 = arith.constant 24 : index
    %c0_31 = arith.constant 0 : index
    %102 = vector.load %arg11[%c24, %c0_31] : memref<64x1024xf32, #tpu.memory_space<vmem>>, vector<8x1024xf32>
    %cst_32 = arith.constant dense<0.000000e+00> : vector<8x1024xf32>
    %103 = tpu.matmul %100, %9, %cst_32 {dimension_numbers = #tpu.dot_dimension_numbers<[1], [0], [0], [1], [0, 0, 1, 1], [], []>} : vector<8x256xbf16>, vector<256x1024xbf16>, vector<8x1024xf32> -> vector<8x1024xf32>
    %104 = arith.addf %102, %103 : vector<8x1024xf32>
    %105 = vector.extract_strided_slice %104 {offsets = [0, 0], sizes = [8, 256], strides = [1, 1]} : vector<8x1024xf32> to vector<8x256xf32>
    %106 = arith.negf %105 : vector<8x256xf32>
    %107 = math.exp %106 : vector<8x256xf32>
    %cst_33 = arith.constant 1.000000e+00 : f32
    %108 = vector.broadcast %cst_33 : f32 to vector<8x256xf32>
    %109 = arith.addf %108, %107 : vector<8x256xf32>
    %110 = arith.divf %108, %109 : vector<8x256xf32>
    %111 = vector.extract_strided_slice %104 {offsets = [0, 256], sizes = [8, 256], strides = [1, 1]} : vector<8x1024xf32> to vector<8x256xf32>
    %112 = arith.negf %111 : vector<8x256xf32>
    %113 = math.exp %112 : vector<8x256xf32>
    %cst_34 = arith.constant 1.000000e+00 : f32
    %114 = vector.broadcast %cst_34 : f32 to vector<8x256xf32>
    %115 = arith.addf %114, %113 : vector<8x256xf32>
    %116 = arith.divf %114, %115 : vector<8x256xf32>
    %117 = vector.extract_strided_slice %104 {offsets = [0, 512], sizes = [8, 256], strides = [1, 1]} : vector<8x1024xf32> to vector<8x256xf32>
    %118 = math.tanh %117 : vector<8x256xf32>
    %119 = vector.extract_strided_slice %104 {offsets = [0, 768], sizes = [8, 256], strides = [1, 1]} : vector<8x1024xf32> to vector<8x256xf32>
    %120 = arith.negf %119 : vector<8x256xf32>
    %121 = math.exp %120 : vector<8x256xf32>
    %cst_35 = arith.constant 1.000000e+00 : f32
    %122 = vector.broadcast %cst_35 : f32 to vector<8x256xf32>
    %123 = arith.addf %122, %121 : vector<8x256xf32>
    %124 = arith.divf %122, %123 : vector<8x256xf32>
    %125 = arith.mulf %116, %97 : vector<8x256xf32>
    %126 = arith.mulf %110, %118 : vector<8x256xf32>
    %127 = arith.addf %125, %126 : vector<8x256xf32>
    %128 = math.tanh %127 : vector<8x256xf32>
    %129 = arith.mulf %124, %128 : vector<8x256xf32>
    %130 = arith.truncf %129 : vector<8x256xf32> to vector<8x256xbf16>
    %c24_36 = arith.constant 24 : index
    %c0_37 = arith.constant 0 : index
    %131 = vector.load %arg10[%c24_36, %c0_37] : memref<64x256xbf16, #tpu.memory_space<vmem>>, vector<8x256xbf16>
    tpu.vector_store %arg10[%c24_36, %c0_37], %130 {strides = array<i32>} : memref<64x256xbf16, #tpu.memory_space<vmem>>, vector<8x256xbf16>,
    %c32 = arith.constant 32 : index
    %c0_38 = arith.constant 0 : index
    %132 = vector.load %arg11[%c32, %c0_38] : memref<64x1024xf32, #tpu.memory_space<vmem>>, vector<8x1024xf32>
    %cst_39 = arith.constant dense<0.000000e+00> : vector<8x1024xf32>
    %133 = tpu.matmul %130, %9, %cst_39 {dimension_numbers = #tpu.dot_dimension_numbers<[1], [0], [0], [1], [0, 0, 1, 1], [], []>} : vector<8x256xbf16>, vector<256x1024xbf16>, vector<8x1024xf32> -> vector<8x1024xf32>
    %134 = arith.addf %132, %133 : vector<8x1024xf32>
    %135 = vector.extract_strided_slice %134 {offsets = [0, 0], sizes = [8, 256], strides = [1, 1]} : vector<8x1024xf32> to vector<8x256xf32>
    %136 = arith.negf %135 : vector<8x256xf32>
    %137 = math.exp %136 : vector<8x256xf32>
    %cst_40 = arith.constant 1.000000e+00 : f32
    %138 = vector.broadcast %cst_40 : f32 to vector<8x256xf32>
    %139 = arith.addf %138, %137 : vector<8x256xf32>
    %140 = arith.divf %138, %139 : vector<8x256xf32>
    %141 = vector.extract_strided_slice %134 {offsets = [0, 256], sizes = [8, 256], strides = [1, 1]} : vector<8x1024xf32> to vector<8x256xf32>
    %142 = arith.negf %141 : vector<8x256xf32>
    %143 = math.exp %142 : vector<8x256xf32>
    %cst_41 = arith.constant 1.000000e+00 : f32
    %144 = vector.broadcast %cst_41 : f32 to vector<8x256xf32>
    %145 = arith.addf %144, %143 : vector<8x256xf32>
    %146 = arith.divf %144, %145 : vector<8x256xf32>
    %147 = vector.extract_strided_slice %134 {offsets = [0, 512], sizes = [8, 256], strides = [1, 1]} : vector<8x1024xf32> to vector<8x256xf32>
    %148 = math.tanh %147 : vector<8x256xf32>
    %149 = vector.extract_strided_slice %134 {offsets = [0, 768], sizes = [8, 256], strides = [1, 1]} : vector<8x1024xf32> to vector<8x256xf32>
    %150 = arith.negf %149 : vector<8x256xf32>
    %151 = math.exp %150 : vector<8x256xf32>
    %cst_42 = arith.constant 1.000000e+00 : f32
    %152 = vector.broadcast %cst_42 : f32 to vector<8x256xf32>
    %153 = arith.addf %152, %151 : vector<8x256xf32>
    %154 = arith.divf %152, %153 : vector<8x256xf32>
    %155 = arith.mulf %146, %127 : vector<8x256xf32>
    %156 = arith.mulf %140, %148 : vector<8x256xf32>
    %157 = arith.addf %155, %156 : vector<8x256xf32>
    %158 = math.tanh %157 : vector<8x256xf32>
    %159 = arith.mulf %154, %158 : vector<8x256xf32>
    %160 = arith.truncf %159 : vector<8x256xf32> to vector<8x256xbf16>
    %c32_43 = arith.constant 32 : index
    %c0_44 = arith.constant 0 : index
    %161 = vector.load %arg10[%c32_43, %c0_44] : memref<64x256xbf16, #tpu.memory_space<vmem>>, vector<8x256xbf16>
    tpu.vector_store %arg10[%c32_43, %c0_44], %160 {strides = array<i32>} : memref<64x256xbf16, #tpu.memory_space<vmem>>, vector<8x256xbf16>,
    %c40 = arith.constant 40 : index
    %c0_45 = arith.constant 0 : index
    %162 = vector.load %arg11[%c40, %c0_45] : memref<64x1024xf32, #tpu.memory_space<vmem>>, vector<8x1024xf32>
    %cst_46 = arith.constant dense<0.000000e+00> : vector<8x1024xf32>
    %163 = tpu.matmul %160, %9, %cst_46 {dimension_numbers = #tpu.dot_dimension_numbers<[1], [0], [0], [1], [0, 0, 1, 1], [], []>} : vector<8x256xbf16>, vector<256x1024xbf16>, vector<8x1024xf32> -> vector<8x1024xf32>
    %164 = arith.addf %162, %163 : vector<8x1024xf32>
    %165 = vector.extract_strided_slice %164 {offsets = [0, 0], sizes = [8, 256], strides = [1, 1]} : vector<8x1024xf32> to vector<8x256xf32>
    %166 = arith.negf %165 : vector<8x256xf32>
    %167 = math.exp %166 : vector<8x256xf32>
    %cst_47 = arith.constant 1.000000e+00 : f32
    %168 = vector.broadcast %cst_47 : f32 to vector<8x256xf32>
    %169 = arith.addf %168, %167 : vector<8x256xf32>
    %170 = arith.divf %168, %169 : vector<8x256xf32>
    %171 = vector.extract_strided_slice %164 {offsets = [0, 256], sizes = [8, 256], strides = [1, 1]} : vector<8x1024xf32> to vector<8x256xf32>
    %172 = arith.negf %171 : vector<8x256xf32>
    %173 = math.exp %172 : vector<8x256xf32>
    %cst_48 = arith.constant 1.000000e+00 : f32
    %174 = vector.broadcast %cst_48 : f32 to vector<8x256xf32>
    %175 = arith.addf %174, %173 : vector<8x256xf32>
    %176 = arith.divf %174, %175 : vector<8x256xf32>
    %177 = vector.extract_strided_slice %164 {offsets = [0, 512], sizes = [8, 256], strides = [1, 1]} : vector<8x1024xf32> to vector<8x256xf32>
    %178 = math.tanh %177 : vector<8x256xf32>
    %179 = vector.extract_strided_slice %164 {offsets = [0, 768], sizes = [8, 256], strides = [1, 1]} : vector<8x1024xf32> to vector<8x256xf32>
    %180 = arith.negf %179 : vector<8x256xf32>
    %181 = math.exp %180 : vector<8x256xf32>
    %cst_49 = arith.constant 1.000000e+00 : f32
    %182 = vector.broadcast %cst_49 : f32 to vector<8x256xf32>
    %183 = arith.addf %182, %181 : vector<8x256xf32>
    %184 = arith.divf %182, %183 : vector<8x256xf32>
    %185 = arith.mulf %176, %157 : vector<8x256xf32>
    %186 = arith.mulf %170, %178 : vector<8x256xf32>
    %187 = arith.addf %185, %186 : vector<8x256xf32>
    %188 = math.tanh %187 : vector<8x256xf32>
    %189 = arith.mulf %184, %188 : vector<8x256xf32>
    %190 = arith.truncf %189 : vector<8x256xf32> to vector<8x256xbf16>
    %c40_50 = arith.constant 40 : index
    %c0_51 = arith.constant 0 : index
    %191 = vector.load %arg10[%c40_50, %c0_51] : memref<64x256xbf16, #tpu.memory_space<vmem>>, vector<8x256xbf16>
    tpu.vector_store %arg10[%c40_50, %c0_51], %190 {strides = array<i32>} : memref<64x256xbf16, #tpu.memory_space<vmem>>, vector<8x256xbf16>,
    %c48 = arith.constant 48 : index
    %c0_52 = arith.constant 0 : index
    %192 = vector.load %arg11[%c48, %c0_52] : memref<64x1024xf32, #tpu.memory_space<vmem>>, vector<8x1024xf32>
    %cst_53 = arith.constant dense<0.000000e+00> : vector<8x1024xf32>
    %193 = tpu.matmul %190, %9, %cst_53 {dimension_numbers = #tpu.dot_dimension_numbers<[1], [0], [0], [1], [0, 0, 1, 1], [], []>} : vector<8x256xbf16>, vector<256x1024xbf16>, vector<8x1024xf32> -> vector<8x1024xf32>
    %194 = arith.addf %192, %193 : vector<8x1024xf32>
    %195 = vector.extract_strided_slice %194 {offsets = [0, 0], sizes = [8, 256], strides = [1, 1]} : vector<8x1024xf32> to vector<8x256xf32>
    %196 = arith.negf %195 : vector<8x256xf32>
    %197 = math.exp %196 : vector<8x256xf32>
    %cst_54 = arith.constant 1.000000e+00 : f32
    %198 = vector.broadcast %cst_54 : f32 to vector<8x256xf32>
    %199 = arith.addf %198, %197 : vector<8x256xf32>
    %200 = arith.divf %198, %199 : vector<8x256xf32>
    %201 = vector.extract_strided_slice %194 {offsets = [0, 256], sizes = [8, 256], strides = [1, 1]} : vector<8x1024xf32> to vector<8x256xf32>
    %202 = arith.negf %201 : vector<8x256xf32>
    %203 = math.exp %202 : vector<8x256xf32>
    %cst_55 = arith.constant 1.000000e+00 : f32
    %204 = vector.broadcast %cst_55 : f32 to vector<8x256xf32>
    %205 = arith.addf %204, %203 : vector<8x256xf32>
    %206 = arith.divf %204, %205 : vector<8x256xf32>
    %207 = vector.extract_strided_slice %194 {offsets = [0, 512], sizes = [8, 256], strides = [1, 1]} : vector<8x1024xf32> to vector<8x256xf32>
    %208 = math.tanh %207 : vector<8x256xf32>
    %209 = vector.extract_strided_slice %194 {offsets = [0, 768], sizes = [8, 256], strides = [1, 1]} : vector<8x1024xf32> to vector<8x256xf32>
    %210 = arith.negf %209 : vector<8x256xf32>
    %211 = math.exp %210 : vector<8x256xf32>
    %cst_56 = arith.constant 1.000000e+00 : f32
    %212 = vector.broadcast %cst_56 : f32 to vector<8x256xf32>
    %213 = arith.addf %212, %211 : vector<8x256xf32>
    %214 = arith.divf %212, %213 : vector<8x256xf32>
    %215 = arith.mulf %206, %187 : vector<8x256xf32>
    %216 = arith.mulf %200, %208 : vector<8x256xf32>
    %217 = arith.addf %215, %216 : vector<8x256xf32>
    %218 = math.tanh %217 : vector<8x256xf32>
    %219 = arith.mulf %214, %218 : vector<8x256xf32>
    %220 = arith.truncf %219 : vector<8x256xf32> to vector<8x256xbf16>
    %c48_57 = arith.constant 48 : index
    %c0_58 = arith.constant 0 : index
    %221 = vector.load %arg10[%c48_57, %c0_58] : memref<64x256xbf16, #tpu.memory_space<vmem>>, vector<8x256xbf16>
    tpu.vector_store %arg10[%c48_57, %c0_58], %220 {strides = array<i32>} : memref<64x256xbf16, #tpu.memory_space<vmem>>, vector<8x256xbf16>,
    %c56 = arith.constant 56 : index
    %c0_59 = arith.constant 0 : index
    %222 = vector.load %arg11[%c56, %c0_59] : memref<64x1024xf32, #tpu.memory_space<vmem>>, vector<8x1024xf32>
    %cst_60 = arith.constant dense<0.000000e+00> : vector<8x1024xf32>
    %223 = tpu.matmul %220, %9, %cst_60 {dimension_numbers = #tpu.dot_dimension_numbers<[1], [0], [0], [1], [0, 0, 1, 1], [], []>} : vector<8x256xbf16>, vector<256x1024xbf16>, vector<8x1024xf32> -> vector<8x1024xf32>
    %224 = arith.addf %222, %223 : vector<8x1024xf32>
    %225 = vector.extract_strided_slice %224 {offsets = [0, 0], sizes = [8, 256], strides = [1, 1]} : vector<8x1024xf32> to vector<8x256xf32>
    %226 = arith.negf %225 : vector<8x256xf32>
    %227 = math.exp %226 : vector<8x256xf32>
    %cst_61 = arith.constant 1.000000e+00 : f32
    %228 = vector.broadcast %cst_61 : f32 to vector<8x256xf32>
    %229 = arith.addf %228, %227 : vector<8x256xf32>
    %230 = arith.divf %228, %229 : vector<8x256xf32>
    %231 = vector.extract_strided_slice %224 {offsets = [0, 256], sizes = [8, 256], strides = [1, 1]} : vector<8x1024xf32> to vector<8x256xf32>
    %232 = arith.negf %231 : vector<8x256xf32>
    %233 = math.exp %232 : vector<8x256xf32>
    %cst_62 = arith.constant 1.000000e+00 : f32
    %234 = vector.broadcast %cst_62 : f32 to vector<8x256xf32>
    %235 = arith.addf %234, %233 : vector<8x256xf32>
    %236 = arith.divf %234, %235 : vector<8x256xf32>
    %237 = vector.extract_strided_slice %224 {offsets = [0, 512], sizes = [8, 256], strides = [1, 1]} : vector<8x1024xf32> to vector<8x256xf32>
    %238 = math.tanh %237 : vector<8x256xf32>
    %239 = vector.extract_strided_slice %224 {offsets = [0, 768], sizes = [8, 256], strides = [1, 1]} : vector<8x1024xf32> to vector<8x256xf32>
    %240 = arith.negf %239 : vector<8x256xf32>
    %241 = math.exp %240 : vector<8x256xf32>
    %cst_63 = arith.constant 1.000000e+00 : f32
    %242 = vector.broadcast %cst_63 : f32 to vector<8x256xf32>
    %243 = arith.addf %242, %241 : vector<8x256xf32>
    %244 = arith.divf %242, %243 : vector<8x256xf32>
    %245 = arith.mulf %236, %217 : vector<8x256xf32>
    %246 = arith.mulf %230, %238 : vector<8x256xf32>
    %247 = arith.addf %245, %246 : vector<8x256xf32>
    %248 = math.tanh %247 : vector<8x256xf32>
    %249 = arith.mulf %244, %248 : vector<8x256xf32>
    %250 = arith.truncf %249 : vector<8x256xf32> to vector<8x256xbf16>
    %c56_64 = arith.constant 56 : index
    %c0_65 = arith.constant 0 : index
    %251 = vector.load %arg10[%c56_64, %c0_65] : memref<64x256xbf16, #tpu.memory_space<vmem>>, vector<8x256xbf16>
    tpu.vector_store %arg10[%c56_64, %c0_65], %250 {strides = array<i32>} : memref<64x256xbf16, #tpu.memory_space<vmem>>, vector<8x256xbf16>,
    %c3_i32 = arith.constant 3 : i32
    %252 = arith.cmpi eq, %arg0, %c3_i32 : i32
    %253 = arith.extui %252 : i1 to i32
    %c0_i32_66 = arith.constant 0 : i32
    %254 = arith.cmpi ne, %253, %c0_i32_66 : i32
    scf.if %254 {
      %c0_67 = arith.constant 0 : index
      %c0_68 = arith.constant 0 : index
      %255 = vector.load %arg10[%c0_67, %c0_68] : memref<64x256xbf16, #tpu.memory_space<vmem>>, vector<64x256xbf16>
      %c0_69 = arith.constant 0 : index
      %c0_70 = arith.constant 0 : index
      %256 = vector.load %arg2[%c0_69, %c0_70] : memref<64x1xbf16, #tpu.memory_space<vmem>>, vector<64x1xbf16>
      %257 = vector.broadcast %256 : vector<64x1xbf16> to vector<64x256xbf16>
      %258 = arith.mulf %255, %257 : vector<64x256xbf16>
      %c0_71 = arith.constant 0 : index
      %c0_72 = arith.constant 0 : index
      %259 = vector.load %arg7[%c0_71, %c0_72] : memref<256x128xbf16, #tpu.memory_space<vmem>>, vector<256x128xbf16>
      %cst_73 = arith.constant dense<0.000000e+00> : vector<64x128xf32>
      %260 = tpu.matmul %258, %259, %cst_73 {dimension_numbers = #tpu.dot_dimension_numbers<[1], [0], [0], [1], [0, 0, 1, 1], [], []>} : vector<64x256xbf16>, vector<256x128xbf16>, vector<64x128xf32> -> vector<64x128xf32>
      %c0_74 = arith.constant 0 : index
      %c0_75 = arith.constant 0 : index
      %261 = vector.load %arg8[%c0_74, %c0_75] : memref<1x128xf32, #tpu.memory_space<vmem>>, vector<1x128xf32>
      %262 = vector.broadcast %261 : vector<1x128xf32> to vector<64x128xf32>
      %263 = arith.addf %260, %262 : vector<64x128xf32>
      %c0_76 = arith.constant 0 : index
      %c0_77 = arith.constant 0 : index
      %264 = vector.load %arg9[%c0_76, %c0_77] : memref<64x128xf32, #tpu.memory_space<vmem>>, vector<64x128xf32>
      tpu.vector_store %arg9[%c0_76, %c0_77], %263 {strides = array<i32>} : memref<64x128xf32, #tpu.memory_space<vmem>>, vector<64x128xf32>,
    } else {
    }
    return
  }
  func.func @transform_0(%arg0: i32) -> (i32, i32) {
    %c0_i32 = arith.constant 0 : i32
    %c0_i32_0 = arith.constant 0 : i32
    %c0_i32_1 = arith.constant 0 : i32
    return %c0_i32, %c0_i32_0 : i32, i32
  }
  func.func @transform_1(%arg0: i32) -> (i32, i32) {
    %c0_i32 = arith.constant 0 : i32
    %c0_i32_0 = arith.constant 0 : i32
    %c0_i32_1 = arith.constant 0 : i32
    return %c0_i32, %c0_i32_0 : i32, i32
  }
  func.func @transform_2(%arg0: i32) -> (i32, i32) {
    %c0_i32 = arith.constant 0 : i32
    %c0_i32_0 = arith.constant 0 : i32
    %c0_i32_1 = arith.constant 0 : i32
    return %c0_i32, %c0_i32_0 : i32, i32
  }
  func.func @transform_3(%arg0: i32) -> (i32, i32, i32) {
    %c1_i32 = arith.constant 1 : i32
    %0 = arith.subi %arg0, %c1_i32 : i32
    %c0_i32 = arith.constant 0 : i32
    %1 = arith.maxsi %0, %c0_i32 : i32
    %c0_i32_0 = arith.constant 0 : i32
    %c0_i32_1 = arith.constant 0 : i32
    %c0_i32_2 = arith.constant 0 : i32
    return %1, %c0_i32_0, %c0_i32_1 : i32, i32, i32
  }
  func.func @transform_4(%arg0: i32) -> (i32, i32, i32) {
    %c0_i32 = arith.constant 0 : i32
    %c0_i32_0 = arith.constant 0 : i32
    %c0_i32_1 = arith.constant 0 : i32
    return %arg0, %c0_i32, %c0_i32_0 : i32, i32, i32
  }
  func.func @transform_5(%arg0: i32) -> (i32, i32, i32) {
    %c0_i32 = arith.constant 0 : i32
    %c0_i32_0 = arith.constant 0 : i32
    %c0_i32_1 = arith.constant 0 : i32
    return %arg0, %c0_i32, %c0_i32_0 : i32, i32, i32
  }
  func.func @transform_6(%arg0: i32) -> (i32, i32) {
    %c0_i32 = arith.constant 0 : i32
    %c0_i32_0 = arith.constant 0 : i32
    %c0_i32_1 = arith.constant 0 : i32
    return %c0_i32, %c0_i32_0 : i32, i32
  }
  func.func @transform_7(%arg0: i32) -> (i32, i32) {
    %c0_i32 = arith.constant 0 : i32
    %c0_i32_0 = arith.constant 0 : i32
    %c0_i32_1 = arith.constant 0 : i32
    return %c0_i32, %c0_i32_0 : i32, i32
  }
  func.func @transform_8(%arg0: i32) -> (i32, i32) {
    %c0_i32 = arith.constant 0 : i32
    %c0_i32_0 = arith.constant 0 : i32
    %c0_i32_1 = arith.constant 0 : i32
    return %c0_i32, %c0_i32_0 : i32, i32
  }
}

</mosaic_0001>

<bundles_post_ra>
// kernel: tpu_custom_call.1
= control target key start
LH: loop header
LB: loop body
LE: loop exit
PB: predicated region body
PF: predicated region fallthrough
CT: control target
= control target key end

     0   :  { %s9214_s0 = inlined_call_operand.hbm [shape: bf16[64,128], index: 0, kind: input, shape index: {}]   ;;  %s9215_s1 = inlined_call_operand.vmem [shape: bf16[64,1], index: 1, kind: input, shape index: {}]   ;;  %s9216_s2 = inlined_call_operand.hbm [shape: bf16[128,1024], index: 2, kind: input, shape index: {}]   ;;  %s9217_s3 = inlined_call_operand.hbm [shape: bf16[3,256,1024], index: 3, kind: input, shape index: {}]   ;;  %s9218_s4 = inlined_call_operand.hbm [shape: bf16[4,256,1024], index: 4, kind: input, shape index: {}]   ;;  %s9219_s5 = inlined_call_operand.hbm [shape: f32[4,1,1024], index: 5, kind: input, shape index: {}]   ;;  %s9220_s6 = inlined_call_operand.hbm [shape: bf16[256,128], index: 6, kind: input, shape index: {}]   ;;  %s9221_s7 = inlined_call_operand.hbm [shape: f32[1,128], index: 7, kind: input, shape index: {}]   ;;  %s9222_s8 = inlined_call_operand.hbm [shape: f32[64,128], index: 8, kind: output, shape index: {}]  }
   0x1   :  { %9506 = sst [smem:[#allocation153_spill]] %s9214_s0 }
   0x2   :  { %9507 = sst [smem:[#allocation154_spill]] %s9215_s1 }
   0x3   :  { %9508 = sst [smem:[#allocation155_spill]] %s9222_s8 }
   0x4   :  { %13 = vsyncpa [#allocation5], 0 }
   0x5   :  { %14 = vsyncpa [#allocation8], 0 }
   0x6   :  { %15 = vsyncpa [#allocation14], 0 }
   0x7   :  { %16 = vsyncpa [#allocation6], 0  ;;  %s6953_s27 = smov 0   ;;  %s6955_s28 = smov 0  }
   0x8   :  { %s6957_s29 = smov 0   ;;  %s6959_s30 = smov 0  }
   0x9   :  { %s6961_s9 = smov 0   ;;  %s6963_s10 = smov 0  }
   0xa   :  { %s6965_s11 = smov 0  }
   0xb LB: > { %9509 = sst [smem:[#allocation23_spill]] %s6884_s10  ;;  %s6985_s12 = sadd.s32 4294967295, %s6888_s11   ;;  %s6888_s11 = sphi %s6965_s11, %s10258_s11   ;;  %s6884_s10 = sphi %s6963_s10, %s10252_s10   ;;  %s6880_s9 = sphi %s6961_s9, %s10257_s9   ;;  %s6876_s30 = sphi %s6959_s30, %s10256_s30   ;;  %s6872_s29 = sphi %s6957_s29, %s10255_s29   ;;  %s6868_s28 = sphi %s6955_s28, %s10254_s28   ;;  %s6864_s27 = sphi %s6953_s27, %s10253_s27  }
   0xc   : > { %p111_p0 = scmp.ne.s32.totalorder %s6880_s9, %s6876_s30  ;;  %p9226_p1 = scmp.eq.s32.totalorder %s6985_s12, 0 }
   0xd   : > { %p137_p2 = scmp.ne.s32.totalorder %s6868_s28, %s6864_s27  ;;  %p5662_p3 = scmp.ge.s32.totalorder %s6888_s11, 1 }
   0xe   : > { %p237_p4 = scmp.lt.s32.totalorder %s6888_s11, 5  ;;  %p6994_p5 = por %p9226_p1, %p111_p0 }
   0xf   : > { %p7000_p6 = por %p137_p2, %p9226_p1  ;;  %s6890_s16 = smov [#allocation4]  }
  0x10   : > { %s9510_s13 = scalar_select %p6994_p5, 1, 0 }
  0x11   : > { %s9511_s14 = scalar_select %p7000_p6, 1, 0 }
  0x12   : > { %p7004_p7 = pnand %p5662_p3, %p237_p4  ;;  %s249_s17 = sshll.u32 %s6890_s16, 4  ;;  %s250_s17 = int_to_ptr.vmem [resolvable:$true] %s249_s17 }
  0x13   : > { %s7018_s19 = sadd.s32 1, %s6888_s11   ;;  %s6605_s20 = scalar_lea.vmem %s250_s17, 512 }
  0x14   : > { %s9512_s15 = scalar_select %p7004_p7, 1, 0 }
  0x15   : > { %p6199_p9 = pneg %p7004_p7  ;;  %p6606_p12 = scmp.ne.s32.totalorder %s250_s17, %s6605_s20 }
  0x16   : > { %p6613_p2 = scmp.lt.s32.totalorder %s250_s17, %s250_s17  ;;  %p6614_p3 = scmp.lt.s32.totalorder %s6605_s20, %s6605_s20 }
  0x17   : > { %p7013_p10 = pnand %p6199_p9, %p9226_p1 }
  0x18   : > { %p6615_p4 = por %p6614_p3, %p6613_p2 }
  0x19   : > { %s9513_s18 = scalar_select %p7013_p10, 1, 0 }
  0x1a   : > { %p9229_p11 = pneg %p7013_p10 }
  0x1c   : > { %p6608_p13 = pnand %p6606_p12, %p9229_p11 }
  0x1e   : > { %p6609_p0 = pneg %p6608_p13 }
  0x20   : > { %p6616_p8 = pnand %p6615_p4, %p6609_p0 }
  0x22   : > { %6619 = shalt.err (!%p6616_p8)
}
  0x23   : > { %s9223_s21 = smov 64   ;;  %s9224_s22 = smov 4  }
  0x24   : > { %s9514_s0 = sld [smem:[#allocation153_spill]]  ;;  %p90_p8 = scmp.gt.s32.totalorder %s6985_s12, 0 }
  0x25   : > { %s5661_s25 = sadd.s32 4294967295, %s7018_s19  ;;  %s98_s26 = sadd.s32 1, %s6884_s10 }
  0x26   : > { %p93_p9 = scmp.gt.s32.totalorder %s5661_s25, 0  ;;  %p105_p12 = scmp.ne.s32.totalorder %s6884_s10, %s6880_s9 }
  0x27   : > { %s91_s27 = scalar_select %p90_p8, %s6985_s12, 0 }
  0x28   : > { %s10260_s25 = smov (!%p93_p9, %s5661_s25), 0  ;;  %p9228_p13 = scmp.eq.s32.totalorder %s6888_s11, 0 }
  0x29   : > { %s95_s30 = ssub.s32 %s91_s27, %s10260_s25  ;;  %s121_s16 = ssub.s32 %s6888_s11, %s7018_s19 }
  0x2a   : > { %6202 = dma.hbm_to_vmem [thread:$0]  (!%p7013_p10), %s9514_s0, 512, %s250_s17, [#allocation5], %s9223_s21, %s9223_s21, %s9224_s22  }
  0x2b   : > { %p96_p0 = scmp.eq.s32.totalorder %s95_s30, 0  ;;  %p107_p2 = por %p9228_p13, %p105_p12 }
  0x2c   : > { %p7044_p3 = scmp.eq.s32.totalorder %s121_s16, 0  ;;  %p9227_p4 = scmp.lt.s32.totalorder %s6888_s11, 4 }
  0x2d   : > { %s7049_s17 = scalar_select %p96_p0, %s6884_s10, %s98_s26  }
  0x2e   : > { %s9515_s20 = scalar_select %p7044_p3, 1, 0 }
  0x2f   : > { %9516 = sst [smem:[#allocation24_spill]] %s7049_s17  ;;  %s303_s23 = sand.u32 1, %s6888_s11  }
  0x30   : > { %s305_s24 = sand.u32 1, %s6884_s10   ;;  %s6106_s22 = sshll.u32 %s91_s27, 14 }
  0x31   : > { %s5668_s21 = sshll.u32 %s305_s24, 10  ;;  %s7057_s1 = scalar_lea.hbm %s9217_s3, %s6106_s22 }
  0x32   : > { %s307_s25 = scalar_lea.vmem [#allocation9], %s5668_s21  ;;  %p7063_p8 = pnand %p9227_p4, %p107_p2 }
  0x33   : > { %s317_s30 = sshll.u32 %s307_s25, 4  ;;  %s6893_s16 = smov [#allocation7]   ;;  %s7059_s30 = int_to_ptr.vmem [resolvable:$true] %s317_s30 }
  0x34   : > { %s7067_s27 = sshll.u32 %s6893_s16, 4  ;;  %s7069_s24 = scalar_lea.sflag [#allocation5], %s303_s23  ;;  %s266_s27 = int_to_ptr.vmem [resolvable:$true] %s7067_s27 }
  0x35   : > { %s6620_s0 = scalar_lea.hbm %s7057_s1, 16384  ;;  %p6622_p12 = pneg %p7063_p8 }
  0x36   : > { %p6621_p9 = scmp.ne.s32.totalorder %s7057_s1, %s6620_s0  ;;  %s6625_s22 = scalar_lea.hbm %s9217_s3, 49152 }
  0x37   : > { %p6626_p2 = scmp.lt.s32.totalorder %s7057_s1, %s9217_s3  ;;  %p6627_p4 = scmp.lt.s32.totalorder %s6625_s22, %s6620_s0 }
  0x38   : > { %p6623_p0 = pnand %p6622_p12, %p6621_p9 }
  0x39   : > { %p6628_p13 = por %p6627_p4, %p6626_p2 }
  0x3a   : > { %p6624_p1 = pneg %p6623_p0 }
  0x3c   : > { %p6629_p11 = pnand %p6628_p13, %p6624_p1 }
  0x3e   : > { %6632 = shalt.err (!%p6629_p11)
}
  0x3f   : > { %s6633_s23 = scalar_lea.vmem %s7059_s30, 16384  ;;  %s6894_s16 = smov [#allocation9]  }
  0x40   : > { %p6634_p6 = scmp.ne.s32.totalorder %s7059_s30, %s6633_s23  ;;  %s6638_s10 = sshll.u32 %s6894_s16, 4  ;;  %s6639_s10 = int_to_ptr.vmem [resolvable:$false] %s6638_s10 }
  0x41   : > { %s6640_s8 = scalar_lea.vmem %s6639_s10, 32768  ;;  %p6641_p0 = scmp.lt.s32.totalorder %s7059_s30, %s6639_s10 }
  0x42   : > { %p6636_p5 = pnand %p6634_p6, %p6622_p12  ;;  %p6642_p7 = scmp.lt.s32.totalorder %s6640_s8, %s6633_s23 }
  0x44   : > { %p6637_p9 = pneg %p6636_p5  ;;  %p6643_p3 = por %p6642_p7, %p6641_p0 }
  0x46   : > { %p6644_p10 = pnand %p6643_p3, %p6637_p9 }
  0x48   : > { %6647 = shalt.err (!%p6644_p10)
}
  0x49   : > { %s9237_s17 = smov 512   ;;  %s6896_s0 = smov 32  }
  0x4a   : > { %6215 = dma.hbm_to_vmem [thread:$0]  (!%p7063_p8), %s7057_s1, 16384, %s7059_s30, %s7069_s24, %s9237_s17, %s9237_s17, %s6896_s0  }
  0x4b   : > { %s6659_s21 = scalar_lea.vmem %s266_s27, 8192  ;;  %p9518_p5 = scmp.ne.s32.totalorder %s9513_s18, 0 }
  0x4c   : > { %p6660_p1 = scmp.ne.s32.totalorder %s266_s27, %s6659_s21  ;;  %p6667_p11 = scmp.lt.s32.totalorder %s266_s27, %s266_s27 }
  0x4d   : > { %p9519_p6 = pneg %p9518_p5  ;;  %p6668_p13 = scmp.lt.s32.totalorder %s6659_s21, %s6659_s21 }
  0x4f   : > { %p6662_p7 = pnand %p6660_p1, %p9519_p6  ;;  %p6669_p3 = por %p6668_p13, %p6667_p11 }
  0x51   : > { %p6663_p10 = pneg %p6662_p7 }
  0x53   : > { %p6670_p4 = pnand %p6669_p3, %p6663_p10 }
  0x55   : > { %6673 = shalt.err (!%p6670_p4)
}
  0x56   : > { %6205 = dma.hbm_to_vmem [thread:$0]  (!%p9518_p5), %s9216_s2, 8192, %s266_s27, [#allocation8], %s9237_s17, %s9237_s17, %s6896_s0  }
  0x57   : > { %s124_s1 = sadd.s32 1, %s6872_s29  ;;  %p131_p8 = scmp.ne.s32.totalorder %s6872_s29, %s6868_s28 }
  0x58   : > { %p9520_p12 = scmp.ne.s32.totalorder %s9515_s20, 0  ;;  %p9521_p2 = scmp.eq.s32.totalorder %s6888_s11, 0 }
  0x59   : > { %s9236_s22 = sand.u32 1, %s6872_s29   ;;  %s6107_s23 = sshll.u32 %s6888_s11, 14 }
  0x5a   : > { %s7111_s30 = scalar_select %p9520_p12, %s6872_s29, %s124_s1  }
  0x5b   : > { %p133_p9 = por %p131_p8, %p9521_p2  ;;  %s5672_s25 = sshll.u32 %s9236_s22, 10 }
  0x5c   : > { %s7122_s21 = scalar_lea.hbm %s9218_s4, %s6107_s23  ;;  %s331_s27 = scalar_lea.vmem [#allocation10], %s5672_s25 }
  0x5d   : > { %s338_s10 = sshll.u32 %s331_s27, 4  ;;  %p9522_p0 = scmp.lt.s32.totalorder %s6888_s11, 4  ;;  %s7130_s10 = int_to_ptr.vmem [resolvable:$true] %s338_s10 }
  0x5e   : > { %s6897_s26 = smov [#allocation12]   ;;  %s6674_s16 = scalar_lea.hbm %s7122_s21, 16384 }
  0x5f   : > { %p7126_p1 = pnand %p9522_p0, %p133_p9  ;;  %s7132_s1 = sshll.u32 %s6897_s26, 4  ;;  %s279_s1 = int_to_ptr.vmem [resolvable:$true] %s7132_s1 }
  0x60   : > { %p6675_p6 = scmp.ne.s32.totalorder %s7122_s21, %s6674_s16  ;;  %s6679_s8 = scalar_lea.hbm %s9218_s4, 65536 }
  0x61   : > { %p6676_p7 = pneg %p7126_p1  ;;  %p6680_p13 = scmp.lt.s32.totalorder %s7122_s21, %s9218_s4 }
  0x62   : > { %p6681_p3 = scmp.lt.s32.totalorder %s6679_s8, %s6674_s16 }
  0x63   : > { %p6677_p10 = pnand %p6676_p7, %p6675_p6 }
  0x64   : > { %p6682_p4 = por %p6681_p3, %p6680_p13 }
  0x65   : > { %p6678_p11 = pneg %p6677_p10 }
  0x67   : > { %p6683_p8 = pnand %p6682_p4, %p6678_p11 }
  0x69   : > { %6686 = shalt.err (!%p6683_p8)
}
  0x6a   : > { %s6687_s26 = scalar_lea.vmem %s7130_s10, 16384  ;;  %s6898_s25 = smov [#allocation10]  }
  0x6b   : > { %p6688_p12 = scmp.ne.s32.totalorder %s7130_s10, %s6687_s26  ;;  %s6692_s23 = sshll.u32 %s6898_s25, 4  ;;  %s6693_s23 = int_to_ptr.vmem [resolvable:$false] %s6692_s23 }
  0x6c   : > { %s6694_s17 = scalar_lea.vmem %s6693_s23, 32768  ;;  %p6695_p0 = scmp.lt.s32.totalorder %s7130_s10, %s6693_s23 }
  0x6d   : > { %p6690_p2 = pnand %p6688_p12, %p6676_p7  ;;  %p6696_p6 = scmp.lt.s32.totalorder %s6694_s17, %s6687_s26 }
  0x6f   : > { %p6691_p9 = pneg %p6690_p2  ;;  %p6697_p10 = por %p6696_p6, %p6695_p0 }
  0x71   : > { %p6698_p13 = pnand %p6697_p10, %p6691_p9 }
  0x73   : > { %6701 = shalt.err (!%p6698_p13)
}
  0x74   : > { %s9524_s22 = smov 512   ;;  %s6713_s16 = scalar_lea.vmem %s279_s1, 2048 }
  0x75   : > { %6218 = dma.hbm_to_vmem [thread:$0]  (!%p7126_p1), %s7122_s21, 16384, %s7130_s10, %s7069_s24, %s9524_s22, %s9524_s22, %s6896_s0  }
  0x76   : > { %p6714_p11 = scmp.ne.s32.totalorder %s279_s1, %s6713_s16  ;;  %p9525_p3 = pneg %p9518_p5 }
  0x77   : > { %p6721_p12 = scmp.lt.s32.totalorder %s279_s1, %s279_s1  ;;  %p6722_p2 = scmp.lt.s32.totalorder %s6713_s16, %s6713_s16 }
  0x78   : > { %p6716_p4 = pnand %p6714_p11, %p9525_p3 }
  0x79   : > { %p6723_p9 = por %p6722_p2, %p6721_p12 }
  0x7a   : > { %p6717_p8 = pneg %p6716_p4 }
  0x7c   : > { %p6724_p0 = pnand %p6723_p9, %p6717_p8 }
  0x7e   : > { %6727 = shalt.err (!%p6724_p0)
}
  0x7f   : > { %s9526_s17 = smov 4   ;;  %s9527_s8 = smov 64  }
  0x80   : > { %6208 = dma.hbm_to_vmem [thread:$0]  (!%p9518_p5), %s9220_s6, 2048, %s279_s1, [#allocation8], %s9527_s8, %s9527_s8, %s9526_s17  }
  0x81   : > { %s6899_s0 = smov [#allocation13]   ;;  %s9528_s10 = sand.u32 1, %s6872_s29  }
  0x82   : > { %s292_s21 = sshll.u32 %s6899_s0, 4  ;;  %s5675_s25 = sshll.u32 %s9528_s10, 3  ;;  %s293_s21 = int_to_ptr.vmem [resolvable:$true] %s292_s21 }
  0x83   : > { %s6739_s23 = scalar_lea.vmem %s293_s21, 16  ;;  %p9529_p10 = pmov %p9525_p3 }
  0x84   : > { %p6740_p6 = scmp.ne.s32.totalorder %s293_s21, %s6739_s23  ;;  %s6746_s22 = scalar_lea.vmem %s293_s21, 32 }
  0x85   : > { %p6747_p3 = scmp.lt.s32.totalorder %s293_s21, %s293_s21  ;;  %p6748_p4 = scmp.lt.s32.totalorder %s6746_s22, %s6739_s23 }
  0x86   : > { %p6742_p13 = pnand %p6740_p6, %p9529_p10 }
  0x87   : > { %p6749_p8 = por %p6748_p4, %p6747_p3 }
  0x88   : > { %p6743_p11 = pneg %p6742_p13 }
  0x8a   : > { %p6750_p12 = pnand %p6749_p8, %p6743_p11 }
  0x8c   : > { %6753 = shalt.err (!%p6750_p12)
}
  0x8d   : > { %6211 = dma.hbm_to_vmem [thread:$0]  (!%p9518_p5), %s9221_s7, 16, %s293_s21, [#allocation14]  }
  0x8e   : > { %s6108_s17 = sshll.u32 %s6888_s11, 7  ;;  %s352_s8 = scalar_lea.vmem [#allocation11], %s5675_s25 }
  0x8f   : > { %s360_s27 = sshll.u32 %s352_s8, 4  ;;  %s358_s10 = scalar_lea.hbm %s9219_s5, %s6108_s17  ;;  %s361_s27 = int_to_ptr.vmem [resolvable:$true] %s360_s27 }
  0x90   : > { %s6754_s23 = scalar_lea.hbm %s358_s10, 128  ;;  %s6759_s1 = scalar_lea.hbm %s9219_s5, 512 }
  0x91   : > { %p6755_p2 = scmp.ne.s32.totalorder %s358_s10, %s6754_s23  ;;  %p6760_p5 = scmp.lt.s32.totalorder %s358_s10, %s9219_s5 }
  0x92   : > { %p6761_p6 = scmp.lt.s32.totalorder %s6759_s1, %s6754_s23 }
  0x93   : > { %p6757_p9 = pnand %p6755_p2, %p6676_p7 }
  0x94   : > { %p6762_p10 = por %p6761_p6, %p6760_p5 }
  0x95   : > { %p6758_p0 = pneg %p6757_p9 }
  0x97   : > { %p6763_p13 = pnand %p6762_p10, %p6758_p0 }
  0x99   : > { %6766 = shalt.err (!%p6763_p13)
}
  0x9a   : > { %s6767_s11 = scalar_lea.vmem %s361_s27, 128  ;;  %s6900_s25 = smov [#allocation11]  }
  0x9b   : > { %p6768_p11 = scmp.ne.s32.totalorder %s361_s27, %s6767_s11  ;;  %s6772_s17 = sshll.u32 %s6900_s25, 4  ;;  %s6773_s17 = int_to_ptr.vmem [resolvable:$false] %s6772_s17 }
  0x9c   : > { %s6774_s8 = scalar_lea.vmem %s6773_s17, 256  ;;  %p6775_p8 = scmp.lt.s32.totalorder %s361_s27, %s6773_s17 }
  0x9d   : > { %p6770_p3 = pnand %p6768_p11, %p6676_p7  ;;  %p6776_p12 = scmp.lt.s32.totalorder %s6774_s8, %s6767_s11 }
  0x9f   : > { %p6771_p4 = pneg %p6770_p3  ;;  %p6777_p2 = por %p6776_p12, %p6775_p8 }
  0xa1   : > { %p6778_p9 = pnand %p6777_p2, %p6771_p4 }
  0xa3   : > { %6781 = shalt.err (!%p6778_p9)
}
  0xa4   : > { %6221 = dma.hbm_to_vmem [thread:$0]  (!%p7126_p1), %s358_s10, 128, %s361_s27, %s7069_s24  }
  0xa5   : > { %p9530_p0 = scmp.ne.s32.totalorder %s9512_s15, 0 }
  0xa7   : > { %369 = sbr.rel (%p9530_p0) target bundleno = 3691 (0xe6b), region = 52 }
  0xac   : > { %p9531_p5 = scmp.eq.s32.totalorder %s6985_s12, 0 }
  0xae   : > { %6835 = dma.done.wait (%p9531_p5), [#allocation5], 512   ;;  %p9532_p7 = pmov %p9531_p5 }
  0xaf   : > { %p9533_p6 = pmov %p9531_p5 }
  0xb0   : > { %6837 = vsyncadd (%p9532_p7), [#allocation5], 4294966784 }
  0xb1   : > { %6839 = dma.done.wait (%p9533_p6), [#allocation8], 8192   ;;  %p9534_p10 = pmov %p9531_p5 }
  0xb2   : > { %s379_s20 = sand.u32 1, %s6985_s12   ;;  %s381_s24 = sand.u32 1, %s6880_s9  }
  0xb3   : > { %6841 = vsyncadd (%p9534_p10), [#allocation8], 4294959104  ;;  %s5681_s27 = sshll.u32 %s381_s24, 10  ;;  %s380_s15 = scalar_lea.sflag [#allocation5], %s379_s20 }
  0xb4   : > { %s7215_s26 = scalar_lea.vmem [#allocation9], %s5681_s27  ;;  %p9535_p1 = scmp.ne.s32.totalorder %s9510_s13, 0 }
  0xb6   : > { %6843 = dma.done.wait (%p9535_p1), %s380_s15, 16384  }
  0xb7   : > { %6845 = vsyncadd (%p9535_p1), %s380_s15, 4294950912  ;;  %s390_s0 = sand.u32 1, %s6868_s28   ;;  %p9536_p13 = scmp.ne.s32.totalorder %s9511_s14, 0 }
  0xb8   : > { %s5682_s10 = sshll.u32 %s390_s0, 10 }
  0xb9   : > { %s7222_s23 = scalar_lea.vmem [#allocation10], %s5682_s10 }
  0xba   : > { %6847 = dma.done.wait (%p9536_p13), %s380_s15, 16512  }
  0xbb   : > { %6849 = vsyncadd (%p9536_p13), %s380_s15, 4294950784  ;;  %s5683_s18 = sshll.u32 %s390_s0, 3  ;;  %p9537_p11 = pmov %p9531_p5 }
  0xbc   : > { %s401_s22 = scalar_lea.vmem [#allocation11], %s5683_s18 }
  0xbd   : > { %6851 = dma.done.wait (%p9537_p11), [#allocation8], 2048   ;;  %p9538_p3 = pmov %p9531_p5 }
  0xbf   : > { %6853 = vsyncadd (%p9538_p3), [#allocation8], 4294965248  ;;  %p9539_p4 = pmov %p9538_p3 }
  0xc0   : > { %p9540_p8 = pmov %p9538_p3 }
  0xc1   : > { %6855 = dma.done.wait (%p9539_p4), [#allocation14], 16  }
  0xc2   : > { %6857 = vsyncadd (%p9540_p8), [#allocation14], 4294967280  ;;  %v7236_v0 = vld [vmem:[%s401_s22] sm:$0xff]  ;;  %p9541_p12 = scmp.ne.s32.totalorder %s6985_s12, 0 }
  0xc4   : > { %455 = sbr.rel (%p9541_p12) target bundleno = 495 (0x1ef), region = 84 }
  0xc9   : > { %v520_v1 = vld [vmem:[#allocation7 + $0x1c0] sm:$0xff]  ;;  %v521_v3 = vld [vmem:[#allocation7 + $0x1c8] sm:$0xff]  ;;  %v6901_v9 = vmov 0  }
  0xca   : > { %v524_v2 = vld [vmem:[#allocation7 + $0x1e0] sm:$0xff]  ;;  %v525_v5 = vld [vmem:[#allocation7 + $0x1e8] sm:$0xff]  ;;  %945 = vmatprep.mubr.bf16.mxu0 %v6901_v9  ;;  %1018 = vmatprep.mubr.bf16.mxu1 %v6901_v9 }
  0xcb   : > { %v5748_v4 = vcombine.high %v520_v1, %v524_v2  ;;  %v5747_v6 = vcombine.low %v520_v1, %v524_v2  ;;  %v512_v7 = vld [vmem:[#allocation7 + $0x180] sm:$0xff]  ;;  %v5750_v10 = vcombine.high %v521_v3, %v525_v5  ;;  %v5749_v11 = vcombine.low %v521_v3, %v525_v5  ;;  %v513_v13 = vld [vmem:[#allocation7 + $0x188] sm:$0xff]  ;;  %v522_v1 = vld [vmem:[#allocation7 + $0x1d0] sm:$0xff] }
  0xcc   : > { %v516_v8 = vld [vmem:[#allocation7 + $0x1a0] sm:$0xff]  ;;  %v517_v14 = vld [vmem:[#allocation7 + $0x1a8] sm:$0xff]  ;;  %v526_v2 = vld [vmem:[#allocation7 + $0x1f0] sm:$0xff] }
  0xcd   : > { %v5740_v12 = vcombine.high %v512_v7, %v516_v8  ;;  %v504_v15 = vld [vmem:[#allocation7 + $0x140] sm:$0xff]  ;;  %913 = vmatprep.subr.bf16.mxu0 %v5748_v4  ;;  %v5742_v16 = vcombine.high %v513_v13, %v517_v14  ;;  %v505_v18 = vld [vmem:[#allocation7 + $0x148] sm:$0xff]  ;;  %986 = vmatprep.subr.bf16.mxu1 %v5750_v10  ;;  %v5739_v20 = vcombine.low %v512_v7, %v516_v8  ;;  %v523_v3 = vld [vmem:[#allocation7 + $0x1d8] sm:$0xff] }
  0xce   : > { %v508_v17 = vld [vmem:[#allocation7 + $0x160] sm:$0xff]  ;;  %v509_v19 = vld [vmem:[#allocation7 + $0x168] sm:$0xff]  ;;  %914 = vmatpush1.bf16.msra.mxu0 %v5747_v6  ;;  %987 = vmatpush1.bf16.msra.mxu1 %v5749_v11  ;;  %v5741_v21 = vcombine.low %v513_v13, %v517_v14  ;;  %v527_v4 = vld [vmem:[#allocation7 + $0x1f8] sm:$0xff]  ;;  %v5752_v7 = vcombine.high %v522_v1, %v526_v2 }
  0xcf   : > { %915 = vmatprep.subr.bf16.mxu0 %v5740_v12  ;;  %v5732_v22 = vcombine.high %v504_v15, %v508_v17  ;;  %988 = vmatprep.subr.bf16.mxu1 %v5742_v16  ;;  %v5734_v23 = vcombine.high %v505_v18, %v509_v19  ;;  %v496_v24 = vld [vmem:[#allocation7 + $0x100] sm:$0xff]  ;;  %v497_v26 = vld [vmem:[#allocation7 + $0x108] sm:$0xff]  ;;  %v5731_v28 = vcombine.low %v504_v15, %v508_v17  ;;  %v514_v10 = vld [vmem:[#allocation7 + $0x190] sm:$0xff] }
  0xd0   : > { %v500_v25 = vld [vmem:[#allocation7 + $0x120] sm:$0xff]  ;;  %v501_v27 = vld [vmem:[#allocation7 + $0x128] sm:$0xff]  ;;  %v5733_v29 = vcombine.low %v505_v18, %v509_v19  ;;  %v5754_v8 = vcombine.high %v523_v3, %v527_v4  ;;  %v518_v11 = vld [vmem:[#allocation7 + $0x1b0] sm:$0xff]  ;;  %v5751_v15 = vcombine.low %v522_v1, %v526_v2  ;;  %v5753_v16 = vcombine.low %v523_v3, %v527_v4 }
  0xd1   : > { %v5724_v30 = vcombine.high %v496_v24, %v500_v25  ;;  %v5726_v31 = vcombine.high %v497_v26, %v501_v27  ;;  %v488_v32 = vld [vmem:[#allocation7 + $0xc0] sm:$0xff]  ;;  %v489_v34 = vld [vmem:[#allocation7 + $0xc8] sm:$0xff]  ;;  %v5723_v36 = vcombine.low %v496_v24, %v500_v25  ;;  %v5725_v37 = vcombine.low %v497_v26, %v501_v27  ;;  %v515_v13 = vld [vmem:[#allocation7 + $0x198] sm:$0xff] }
  0xd2   : > { %916 = vmatpush1.bf16.msra.mxu0 %v5739_v20  ;;  %989 = vmatpush1.bf16.msra.mxu1 %v5741_v21  ;;  %v492_v33 = vld [vmem:[#allocation7 + $0xe0] sm:$0xff]  ;;  %v493_v35 = vld [vmem:[#allocation7 + $0xe8] sm:$0xff]  ;;  %v519_v14 = vld [vmem:[#allocation7 + $0x1b8] sm:$0xff]  ;;  %v5744_v17 = vcombine.high %v514_v10, %v518_v11 }
  0xd3   : > { %917 = vmatprep.subr.bf16.mxu0 %v5732_v22  ;;  %990 = vmatprep.subr.bf16.mxu1 %v5734_v23  ;;  %v5716_v38 = vcombine.high %v488_v32, %v492_v33  ;;  %v480_v39 = vld [vmem:[#allocation7 + $0x80] sm:$0xff]  ;;  %v5718_v40 = vcombine.high %v489_v34, %v493_v35  ;;  %v481_v42 = vld [vmem:[#allocation7 + $0x88] sm:$0xff]  ;;  %v5715_v44 = vcombine.low %v488_v32, %v492_v33  ;;  %v506_v19 = vld [vmem:[#allocation7 + $0x150] sm:$0xff] }
  0xd4   : > { %v484_v41 = vld [vmem:[#allocation7 + $0xa0] sm:$0xff]  ;;  %v485_v43 = vld [vmem:[#allocation7 + $0xa8] sm:$0xff]  ;;  %v5717_v45 = vcombine.low %v489_v34, %v493_v35  ;;  %v5746_v18 = vcombine.high %v515_v13, %v519_v14  ;;  %v510_v20 = vld [vmem:[#allocation7 + $0x170] sm:$0xff]  ;;  %v5743_v23 = vcombine.low %v514_v10, %v518_v11  ;;  %v5745_v24 = vcombine.low %v515_v13, %v519_v14 }
  0xd5   : > { %v5708_v46 = vcombine.high %v480_v39, %v484_v41  ;;  %v472_v47 = vld [vmem:[#allocation7 + $0x40] sm:$0xff]  ;;  %v5710_v48 = vcombine.high %v481_v42, %v485_v43  ;;  %v473_v50 = vld [vmem:[#allocation7 + $0x48] sm:$0xff]  ;;  %v5707_v52 = vcombine.low %v480_v39, %v484_v41  ;;  %v5709_v53 = vcombine.low %v481_v42, %v485_v43  ;;  %v507_v21 = vld [vmem:[#allocation7 + $0x158] sm:$0xff] }
  0xd6   : > { %918 = vmatpush1.bf16.msra.mxu0 %v5731_v28  ;;  %991 = vmatpush1.bf16.msra.mxu1 %v5733_v29  ;;  %v476_v49 = vld [vmem:[#allocation7 + $0x60] sm:$0xff]  ;;  %v477_v51 = vld [vmem:[#allocation7 + $0x68] sm:$0xff]  ;;  %v511_v22 = vld [vmem:[#allocation7 + $0x178] sm:$0xff]  ;;  %v5736_v25 = vcombine.high %v506_v19, %v510_v20  ;;  %v5735_v32 = vcombine.low %v506_v19, %v510_v20  ;;  %v529_v10 = vlaneseq }
  0xd7   : > { %919 = vmatprep.subr.bf16.mxu0 %v5724_v30  ;;  %992 = vmatprep.subr.bf16.mxu1 %v5726_v31  ;;  %v5700_v54 = vcombine.high %v472_v47, %v476_v49  ;;  %v5702_v55 = vcombine.high %v473_v50, %v477_v51  ;;  %v464_v56 = vld [vmem:[#allocation7] sm:$0xff]  ;;  %v465_v58 = vld [vmem:[#allocation7 + $0x8] sm:$0xff]  ;;  %v5699_v60 = vcombine.low %v472_v47, %v476_v49  ;;  %v498_v27 = vld [vmem:[#allocation7 + $0x110] sm:$0xff] }
  0xd8   : > { %v468_v57 = vld [vmem:[#allocation7 + $0x20] sm:$0xff]  ;;  %v469_v59 = vld [vmem:[#allocation7 + $0x28] sm:$0xff]  ;;  %v5701_v61 = vcombine.low %v473_v50, %v477_v51  ;;  %v5738_v26 = vcombine.high %v507_v21, %v511_v22  ;;  %v502_v28 = vld [vmem:[#allocation7 + $0x130] sm:$0xff]  ;;  %v5737_v33 = vcombine.low %v507_v21, %v511_v22  ;;  %v7268_v11 = vshrl.u32 %v529_v10, 7 }
  0xd9   : > { %v5692_v62 = vcombine.high %v464_v56, %v468_v57  ;;  %v5694_v63 = vcombine.high %v465_v58, %v469_v59  ;;  %v5691_v5 = vcombine.low %v464_v56, %v468_v57  ;;  %v5693_v6 = vcombine.low %v465_v58, %v469_v59  ;;  %v7242_v12 = vld [vmem:[#allocation4] sm:$0xff]   ;;  %v7248_v29 = vld [vmem:[#allocation4 + $0x8] sm:$0xff]   ;;  %v499_v30 = vld [vmem:[#allocation7 + $0x118] sm:$0xff] }
  0xda   : > { %920 = vmatpush1.bf16.msra.mxu0 %v5723_v36  ;;  %993 = vmatpush1.bf16.msra.mxu1 %v5725_v37  ;;  %v503_v31 = vld [vmem:[#allocation7 + $0x138] sm:$0xff]  ;;  %v5728_v34 = vcombine.high %v498_v27, %v502_v28  ;;  %v490_v36 = vld [vmem:[#allocation7 + $0xd0] sm:$0xff]  ;;  %v539_v13 = vsub.s32 2, %v7268_v11  ;;  %v535_v14 = vsub.s32 1, %v7268_v11 }
  0xdb   : > { %921 = vmatprep.subr.bf16.mxu0 %v5716_v38  ;;  %994 = vmatprep.subr.bf16.mxu1 %v5718_v40  ;;  %v5730_v35 = vcombine.high %v499_v30, %v503_v31  ;;  %v494_v37 = vld [vmem:[#allocation7 + $0xf0] sm:$0xff]  ;;  %v491_v38 = vld [vmem:[#allocation7 + $0xd8] sm:$0xff]  ;;  %v5727_v40 = vcombine.low %v498_v27, %v502_v28  ;;  %v5729_v41 = vcombine.low %v499_v30, %v503_v31 }
  0xdc   : > { %v495_v39 = vld [vmem:[#allocation7 + $0xf8] sm:$0xff]  ;;  %v5720_v42 = vcombine.high %v490_v36, %v494_v37  ;;  %v5719_v49 = vcombine.low %v490_v36, %v494_v37 }
  0xdd   : > { %v5722_v43 = vcombine.high %v491_v38, %v495_v39  ;;  %v483_v47 = vld [vmem:[#allocation7 + $0x98] sm:$0xff]  ;;  %v5721_v50 = vcombine.low %v491_v38, %v495_v39 }
  0xde   : > { %922 = vmatpush1.bf16.msra.mxu0 %v5715_v44  ;;  %995 = vmatpush1.bf16.msra.mxu1 %v5717_v45  ;;  %v482_v44 = vld [vmem:[#allocation7 + $0x90] sm:$0xff]  ;;  %v479_v56 = vld [vmem:[#allocation7 + $0x78] sm:$0xff] }
  0xdf   : > { %923 = vmatprep.subr.bf16.mxu0 %v5708_v46  ;;  %996 = vmatprep.subr.bf16.mxu1 %v5710_v48  ;;  %v486_v45 = vld [vmem:[#allocation7 + $0xb0] sm:$0xff]  ;;  %v487_v48 = vld [vmem:[#allocation7 + $0xb8] sm:$0xff] }
  0xe0   : > { %v6306_v46 = vld [vmem:[#allocation4 + $0x10] sm:$0xff]   ;;  %v5712_v51 = vcombine.high %v482_v44, %v486_v45  ;;  %v5711_v57 = vcombine.low %v482_v44, %v486_v45  ;;  %v5713_v58 = vcombine.low %v483_v47, %v487_v48  ;;  %v467_v1 = vld [vmem:[#allocation7 + $0x18] sm:$0xff] }
  0xe1   : > { %v471_v2 = vld [vmem:[#allocation7 + $0x38] sm:$0xff] }
  0xe2   : > { %924 = vmatpush1.bf16.msra.mxu0 %v5707_v52  ;;  %997 = vmatpush1.bf16.msra.mxu1 %v5709_v53  ;;  %v5714_v52 = vcombine.high %v483_v47, %v487_v48  ;;  %v474_v53 = vld [vmem:[#allocation7 + $0x50] sm:$0xff] }
  0xe3   : > { %925 = vmatprep.subr.bf16.mxu0 %v5700_v54  ;;  %998 = vmatprep.subr.bf16.mxu1 %v5702_v55  ;;  %v478_v54 = vld [vmem:[#allocation7 + $0x70] sm:$0xff]  ;;  %v475_v55 = vld [vmem:[#allocation7 + $0x58] sm:$0xff] }
  0xe4   : > { %v5704_v59 = vcombine.high %v474_v53, %v478_v54  ;;  %v5703_v3 = vcombine.low %v474_v53, %v478_v54  ;;  %v5705_v4 = vcombine.low %v475_v55, %v479_v56 }
  0xe6   : > { %926 = vmatpush1.bf16.msra.mxu0 %v5699_v60  ;;  %999 = vmatpush1.bf16.msra.mxu1 %v5701_v61  ;;  %v5706_v60 = vcombine.high %v475_v55, %v479_v56  ;;  %v466_v61 = vld [vmem:[#allocation7 + $0x10] sm:$0xff] }
  0xe7   : > { %927 = vmatprep.subr.bf16.mxu0 %v5692_v62  ;;  %1000 = vmatprep.subr.bf16.mxu1 %v5694_v63  ;;  %v470_v62 = vld [vmem:[#allocation7 + $0x30] sm:$0xff]  ;;  %v6307_v63 = vld [vmem:[#allocation4 + $0x18] sm:$0xff]  }
  0xea   : > { %928 = vmatpush1.bf16.msra.mxu0 %v5691_v5  ;;  %1001 = vmatpush1.bf16.msra.mxu1 %v5693_v6  ;;  %v5696_v5 = vcombine.high %v466_v61, %v470_v62  ;;  %v5698_v6 = vcombine.high %v467_v1, %v471_v2 }
  0xeb   : > { %1059 = vmatprep.subr.bf16.mxu0 %v5752_v7  ;;  %1132 = vmatprep.subr.bf16.mxu1 %v5754_v8  ;;  %v5695_v7 = vcombine.low %v466_v61, %v470_v62  ;;  %v5697_v8 = vcombine.low %v467_v1, %v471_v2 }
  0xed   : > { %946 = vmatmul.mubr.bf16.vlgmr.msra.gmra.mxu0 %v7242_v12  ;;  %1019 = vmatmul.mubr.bf16.vlgmr.msra.gmra.mxu1 %v7242_v12 }
  0xee   : > { %1060 = vmatpush1.bf16.msra.mxu0 %v5751_v15  ;;  %1133 = vmatpush1.bf16.msra.mxu1 %v5753_v16  ;;  %v543_v15 = vsub.s32 3, %v7268_v11 }
  0xef   : > { %1061 = vmatprep.subr.bf16.mxu0 %v5744_v17  ;;  %1134 = vmatprep.subr.bf16.mxu1 %v5746_v18  ;;  %v7278_v17 = vrot.slane %v7236_v0, %v539_v13 }
  0xf0   : > { %955 = vmatprep.mubr.bf16.mxu0 %v6901_v9  ;;  %1028 = vmatprep.mubr.bf16.mxu1 %v6901_v9  ;;  %v7284_v19 = vrot.slane %v7236_v0, %v543_v15  ;;  %v551_v15 = vsub.s32 5, %v7268_v11 }
  0xf2   : > { %1062 = vmatpush1.bf16.msra.mxu0 %v5743_v23  ;;  %1135 = vmatpush1.bf16.msra.mxu1 %v5745_v24 }
  0xf3   : > { %1063 = vmatprep.subr.bf16.mxu0 %v5736_v25  ;;  %1136 = vmatprep.subr.bf16.mxu1 %v5738_v26 }
  0xf5   : > { %956 = vmatmul.mubr.bf16.gmra.mxu0 %v7248_v29  ;;  %1029 = vmatmul.mubr.bf16.gmra.mxu1 %v7248_v29 }
  0xf6   : > { %1064 = vmatpush1.bf16.msra.mxu0 %v5735_v32  ;;  %1137 = vmatpush1.bf16.msra.mxu1 %v5737_v33 }
  0xf7   : > { %1065 = vmatprep.subr.bf16.mxu0 %v5728_v34  ;;  %1138 = vmatprep.subr.bf16.mxu1 %v5730_v35 }
  0xf8   : > { %965 = vmatprep.mubr.bf16.mxu0 %v6901_v9  ;;  %1038 = vmatprep.mubr.bf16.mxu1 %v6901_v9 }
  0xfa   : > { %1066 = vmatpush1.bf16.msra.mxu0 %v5727_v40  ;;  %1139 = vmatpush1.bf16.msra.mxu1 %v5729_v41 }
  0xfb   : > { %1067 = vmatprep.subr.bf16.mxu0 %v5720_v42  ;;  %1140 = vmatprep.subr.bf16.mxu1 %v5722_v43 }
  0xfd   : > { %966 = vmatmul.mubr.bf16.gmra.mxu0 %v6306_v46  ;;  %1039 = vmatmul.mubr.bf16.gmra.mxu1 %v6306_v46 }
  0xfe   : > { %1068 = vmatpush1.bf16.msra.mxu0 %v5719_v49  ;;  %1141 = vmatpush1.bf16.msra.mxu1 %v5721_v50 }
  0xff   : > { %1069 = vmatprep.subr.bf16.mxu0 %v5712_v51  ;;  %1142 = vmatprep.subr.bf16.mxu1 %v5714_v52 }
 0x100   : > { %975 = vmatprep.mubr.bf16.mxu0 %v6901_v9  ;;  %1048 = vmatprep.mubr.bf16.mxu1 %v6901_v9 }
 0x102   : > { %1070 = vmatpush1.bf16.msra.mxu0 %v5711_v57  ;;  %1143 = vmatpush1.bf16.msra.mxu1 %v5713_v58 }
 0x103   : > { %1071 = vmatprep.subr.bf16.mxu0 %v5704_v59  ;;  %1144 = vmatprep.subr.bf16.mxu1 %v5706_v60 }
 0x105   : > { %976 = vmatmul.mubr.bf16.gmra.mxu0 %v6307_v63  ;;  %1049 = vmatmul.mubr.bf16.gmra.mxu1 %v6307_v63 }
 0x106   : > { %1072 = vmatpush1.bf16.msra.mxu0 %v5703_v3  ;;  %1145 = vmatpush1.bf16.msra.mxu1 %v5705_v4 }
 0x107   : > { %1073 = vmatprep.subr.bf16.mxu0 %v5696_v5  ;;  %1146 = vmatprep.subr.bf16.mxu1 %v5698_v6 }
 0x108   : > { %1091 = vmatprep.mubr.bf16.mxu0 %v6901_v9  ;;  %1164 = vmatprep.mubr.bf16.mxu1 %v6901_v9 }
 0x10a   : > { %1074 = vmatpush1.bf16.msra.mxu0 %v5695_v7  ;;  %1147 = vmatpush1.bf16.msra.mxu1 %v5697_v8  ;;  %v547_v7 = vsub.s32 4, %v7268_v11 }
 0x10d   : > { %1092 = vmatmul.mubr.bf16.vlgmr.msra.gmra.mxu0 %v7242_v12  ;;  %1165 = vmatmul.mubr.bf16.vlgmr.msra.gmra.mxu1 %v7242_v12  ;;  %v531_v12 = vsub.s32 0, %v7268_v11 }
 0x10e   : > { %1101 = vmatprep.mubr.bf16.mxu0 %v6901_v9  ;;  %1174 = vmatprep.mubr.bf16.mxu1 %v6901_v9 }
 0x10f   : > { %v7275_v16 = vrot.slane %v7236_v0, %v531_v12  ;;  %v555_v12 = vsub.s32 6, %v7268_v11 }
 0x115   : > { %1102 = vmatmul.mubr.bf16.gmra.mxu0 %v7248_v29  ;;  %1175 = vmatmul.mubr.bf16.gmra.mxu1 %v7248_v29 }
 0x116   : > { %1111 = vmatprep.mubr.bf16.mxu0 %v6901_v9  ;;  %1184 = vmatprep.mubr.bf16.mxu1 %v6901_v9 }
 0x11d   : > { %1112 = vmatmul.mubr.bf16.gmra.mxu0 %v6306_v46  ;;  %1185 = vmatmul.mubr.bf16.gmra.mxu1 %v6306_v46 }
 0x11e   : > { %1121 = vmatprep.mubr.bf16.mxu0 %v6901_v9  ;;  %1194 = vmatprep.mubr.bf16.mxu1 %v6901_v9  ;;  %v7281_v9 = vrot.slane %v7236_v0, %v535_v14 }
 0x125   : > { %1122 = vmatmul.mubr.bf16.gmra.mxu0 %v6307_v63  ;;  %1195 = vmatmul.mubr.bf16.gmra.mxu1 %v6307_v63 }
 0x1ad   : > { %v947_v18 = vpop.f32.mrf.mxu0  ;;  %v1020_v21 = vpop.f32.mrf.mxu1 }
 0x1ae   : > { %v948_v20 = vadd.f32 %v947_v18, %v7275_v16  ;;  %v1021_v22 = vadd.f32 %v1020_v21, %v7278_v17  ;;  %v559_v21 = vsub.s32 7, %v7268_v11  ;;  %v7328_v11 = vrot.slane %v7236_v0, %v551_v15 }
 0x1af   : > { %v949_v23 = vpop.f32.mrf.mxu0  ;;  %v1022_v25 = vpop.f32.mrf.mxu1 }
 0x1b0   : > { %1205 = vst [vmem:[#allocation3 + $0x100] sm:$0xff] %v948_v20  ;;  %v950_v24 = vadd.f32 %v949_v23, %v7281_v9  ;;  %1207 = vst [vmem:[#allocation3 + $0x150] sm:$0xff] %v1021_v22  ;;  %v1023_v26 = vadd.f32 %v1022_v25, %v7284_v19 }
 0x1b1   : > { %v951_v27 = vpop.f32.mrf.mxu0  ;;  %v1024_v29 = vpop.f32.mrf.mxu1 }
 0x1b2   : > { %1206 = vst [vmem:[#allocation3 + $0x18] sm:$0xff] %v950_v24  ;;  %v952_v28 = vadd.f32 %v951_v27, %v7275_v16  ;;  %1208 = vst [vmem:[#allocation3 + $0xe0] sm:$0xff] %v1023_v26  ;;  %v1025_v30 = vadd.f32 %v1024_v29, %v7278_v17  ;;  %v7320_v24 = vrot.slane %v7236_v0, %v547_v7 }
 0x1b3   : > { %v953_v31 = vpop.f32.mrf.mxu0  ;;  %v1026_v33 = vpop.f32.mrf.mxu1  ;;  %v7324_v27 = vrot.slane %v7236_v0, %v555_v12 }
 0x1b4   : > { %1213 = vst [vmem:[#allocation3 + $0xd8] sm:$0xff] %v952_v28  ;;  %v954_v32 = vadd.f32 %v953_v31, %v7281_v9  ;;  %1215 = vst [vmem:[#allocation3 + $0xb0] sm:$0xff] %v1025_v30  ;;  %v1027_v34 = vadd.f32 %v1026_v33, %v7284_v19  ;;  %v7332_v31 = vrot.slane %v7236_v0, %v559_v21 }
 0x1b5   : > { %v957_v35 = vpop.f32.mrf.mxu0  ;;  %v1030_v37 = vpop.f32.mrf.mxu1 }
 0x1b6   : > { %1214 = vst [vmem:[#allocation3 + $0x30] sm:$0xff] %v954_v32  ;;  %v958_v36 = vadd.f32 %v957_v35, %v7275_v16  ;;  %1216 = vst [vmem:[#allocation3 + $0x158] sm:$0xff] %v1027_v34  ;;  %v1031_v38 = vadd.f32 %v1030_v37, %v7278_v17 }
 0x1b7   : > { %v959_v39 = vpop.f32.mrf.mxu0  ;;  %v1032_v41 = vpop.f32.mrf.mxu1 }
 0x1b8   : > { %1221 = vst [vmem:[#allocation3 + $0x180] sm:$0xff] %v958_v36  ;;  %v960_v40 = vadd.f32 %v959_v39, %v7281_v9  ;;  %1223 = vst [vmem:[#allocation3 + $0x140] sm:$0xff] %v1031_v38  ;;  %v1033_v42 = vadd.f32 %v1032_v41, %v7284_v19 }
 0x1b9   : > { %v961_v43 = vpop.f32.mrf.mxu0  ;;  %v1034_v45 = vpop.f32.mrf.mxu1 }
 0x1ba   : > { %1222 = vst [vmem:[#allocation3 + $0x190] sm:$0xff] %v960_v40  ;;  %v962_v44 = vadd.f32 %v961_v43, %v7275_v16  ;;  %1224 = vst [vmem:[#allocation3 + $0x1c0] sm:$0xff] %v1033_v42  ;;  %v1035_v46 = vadd.f32 %v1034_v45, %v7278_v17 }
 0x1bb   : > { %v963_v47 = vpop.f32.mrf.mxu0  ;;  %v1036_v49 = vpop.f32.mrf.mxu1 }
 0x1bc   : > { %1229 = vst [vmem:[#allocation3 + $0x88] sm:$0xff] %v962_v44  ;;  %v964_v48 = vadd.f32 %v963_v47, %v7281_v9  ;;  %1231 = vst [vmem:[#allocation3 + $0x188] sm:$0xff] %v1035_v46  ;;  %v1037_v50 = vadd.f32 %v1036_v49, %v7284_v19 }
 0x1bd   : > { %v967_v51 = vpop.f32.mrf.mxu0  ;;  %v1040_v53 = vpop.f32.mrf.mxu1 }
 0x1be   : > { %1230 = vst [vmem:[#allocation3 + $0xc8] sm:$0xff] %v964_v48  ;;  %v968_v52 = vadd.f32 %v967_v51, %v7275_v16  ;;  %1232 = vst [vmem:[#allocation3 + $0x38] sm:$0xff] %v1037_v50  ;;  %v1041_v54 = vadd.f32 %v1040_v53, %v7278_v17 }
 0x1bf   : > { %v969_v55 = vpop.f32.mrf.mxu0  ;;  %v1042_v57 = vpop.f32.mrf.mxu1 }
 0x1c0   : > { %1237 = vst [vmem:[#allocation3 + $0x48] sm:$0xff] %v968_v52  ;;  %v970_v56 = vadd.f32 %v969_v55, %v7281_v9  ;;  %1239 = vst [vmem:[#allocation3 + $0x170] sm:$0xff] %v1041_v54  ;;  %v1043_v58 = vadd.f32 %v1042_v57, %v7284_v19 }
 0x1c1   : > { %v971_v59 = vpop.f32.mrf.mxu0  ;;  %v1044_v61 = vpop.f32.mrf.mxu1 }
 0x1c2   : > { %1238 = vst [vmem:[#allocation3 + $0x20] sm:$0xff] %v970_v56  ;;  %v972_v60 = vadd.f32 %v971_v59, %v7275_v16  ;;  %1240 = vst [vmem:[#allocation3] sm:$0xff] %v1043_v58  ;;  %v1045_v62 = vadd.f32 %v1044_v61, %v7278_v17 }
 0x1c3   : > { %v973_v63 = vpop.f32.mrf.mxu0  ;;  %v1046_v2 = vpop.f32.mrf.mxu1 }
 0x1c4   : > { %1245 = vst [vmem:[#allocation3 + $0x8] sm:$0xff] %v972_v60  ;;  %v974_v1 = vadd.f32 %v973_v63, %v7281_v9  ;;  %1247 = vst [vmem:[#allocation3 + $0xa8] sm:$0xff] %v1045_v62  ;;  %v1047_v3 = vadd.f32 %v1046_v2, %v7284_v19 }
 0x1c5   : > { %v977_v4 = vpop.f32.mrf.mxu0  ;;  %v1050_v6 = vpop.f32.mrf.mxu1 }
 0x1c6   : > { %1246 = vst [vmem:[#allocation3 + $0x130] sm:$0xff] %v974_v1  ;;  %v978_v5 = vadd.f32 %v977_v4, %v7275_v16  ;;  %1248 = vst [vmem:[#allocation3 + $0x1d8] sm:$0xff] %v1047_v3  ;;  %v1051_v8 = vadd.f32 %v1050_v6, %v7278_v17 }
 0x1c7   : > { %v979_v10 = vpop.f32.mrf.mxu0  ;;  %v1052_v14 = vpop.f32.mrf.mxu1 }
 0x1c8   : > { %1253 = vst [vmem:[#allocation3 + $0x1e8] sm:$0xff] %v978_v5  ;;  %v980_v13 = vadd.f32 %v979_v10, %v7281_v9  ;;  %1255 = vst [vmem:[#allocation3 + $0x90] sm:$0xff] %v1051_v8  ;;  %v1053_v18 = vadd.f32 %v1052_v14, %v7284_v19 }
 0x1c9   : > { %v981_v20 = vpop.f32.mrf.mxu0  ;;  %v1054_v23 = vpop.f32.mrf.mxu1 }
 0x1ca   : > { %1254 = vst [vmem:[#allocation3 + $0x28] sm:$0xff] %v980_v13  ;;  %v982_v22 = vadd.f32 %v981_v20, %v7275_v16  ;;  %1256 = vst [vmem:[#allocation3 + $0x148] sm:$0xff] %v1053_v18  ;;  %v1055_v25 = vadd.f32 %v1054_v23, %v7278_v17 }
 0x1cb   : > { %v983_v26 = vpop.f32.mrf.mxu0  ;;  %v1056_v29 = vpop.f32.mrf.mxu1 }
 0x1cc   : > { %1261 = vst [vmem:[#allocation3 + $0x40] sm:$0xff] %v982_v22  ;;  %v984_v28 = vadd.f32 %v983_v26, %v7281_v9  ;;  %1263 = vst [vmem:[#allocation3 + $0x160] sm:$0xff] %v1055_v25  ;;  %v1057_v16 = vadd.f32 %v1056_v29, %v7284_v19 }
 0x1cd   : > { %v1093_v30 = vpop.f32.mrf.mxu0  ;;  %v1166_v32 = vpop.f32.mrf.mxu1 }
 0x1ce   : > { %1262 = vst [vmem:[#allocation3 + $0x1b0] sm:$0xff] %v984_v28  ;;  %v1094_v17 = vadd.f32 %v1093_v30, %v7320_v24  ;;  %1264 = vst [vmem:[#allocation3 + $0x118] sm:$0xff] %v1057_v16  ;;  %v1167_v33 = vadd.f32 %v1166_v32, %v7324_v27 }
 0x1cf   : > { %v1095_v34 = vpop.f32.mrf.mxu0  ;;  %v1168_v35 = vpop.f32.mrf.mxu1 }
 0x1d0   : > { %1209 = vst [vmem:[#allocation3 + $0xe8] sm:$0xff] %v1094_v17  ;;  %v1096_v9 = vadd.f32 %v1095_v34, %v7328_v11  ;;  %1211 = vst [vmem:[#allocation3 + $0xf0] sm:$0xff] %v1167_v33  ;;  %v1169_v36 = vadd.f32 %v1168_v35, %v7332_v31 }
 0x1d1   : > { %v1097_v19 = vpop.f32.mrf.mxu0  ;;  %v1170_v38 = vpop.f32.mrf.mxu1 }
 0x1d2   : > { %1210 = vst [vmem:[#allocation3 + $0x68] sm:$0xff] %v1096_v9  ;;  %v1098_v37 = vadd.f32 %v1097_v19, %v7320_v24  ;;  %1212 = vst [vmem:[#allocation3 + $0x120] sm:$0xff] %v1169_v36  ;;  %v1171_v39 = vadd.f32 %v1170_v38, %v7324_v27 }
 0x1d3   : > { %v1099_v40 = vpop.f32.mrf.mxu0  ;;  %v1172_v42 = vpop.f32.mrf.mxu1 }
 0x1d4   : > { %1217 = vst [vmem:[#allocation3 + $0x108] sm:$0xff] %v1098_v37  ;;  %v1100_v41 = vadd.f32 %v1099_v40, %v7328_v11  ;;  %1219 = vst [vmem:[#allocation3 + $0x1f8] sm:$0xff] %v1171_v39  ;;  %v1173_v43 = vadd.f32 %v1172_v42, %v7332_v31 }
 0x1d5   : > { %v1103_v44 = vpop.f32.mrf.mxu0  ;;  %v1176_v46 = vpop.f32.mrf.mxu1 }
 0x1d6   : > { %1218 = vst [vmem:[#allocation3 + $0x110] sm:$0xff] %v1100_v41  ;;  %v1104_v45 = vadd.f32 %v1103_v44, %v7320_v24  ;;  %1220 = vst [vmem:[#allocation3 + $0xb8] sm:$0xff] %v1173_v43  ;;  %v1177_v47 = vadd.f32 %v1176_v46, %v7324_v27 }
 0x1d7   : > { %v1105_v48 = vpop.f32.mrf.mxu0  ;;  %v1178_v50 = vpop.f32.mrf.mxu1 }
 0x1d8   : > { %1225 = vst [vmem:[#allocation3 + $0xd0] sm:$0xff] %v1104_v45  ;;  %v1106_v49 = vadd.f32 %v1105_v48, %v7328_v11  ;;  %1227 = vst [vmem:[#allocation3 + $0x60] sm:$0xff] %v1177_v47  ;;  %v1179_v51 = vadd.f32 %v1178_v50, %v7332_v31 }
 0x1d9   : > { %v1107_v52 = vpop.f32.mrf.mxu0  ;;  %v1180_v54 = vpop.f32.mrf.mxu1 }
 0x1da   : > { %1226 = vst [vmem:[#allocation3 + $0x138] sm:$0xff] %v1106_v49  ;;  %v1108_v53 = vadd.f32 %v1107_v52, %v7320_v24  ;;  %1228 = vst [vmem:[#allocation3 + $0x1b8] sm:$0xff] %v1179_v51  ;;  %v1181_v55 = vadd.f32 %v1180_v54, %v7324_v27 }
 0x1db   : > { %v1109_v56 = vpop.f32.mrf.mxu0  ;;  %v1182_v58 = vpop.f32.mrf.mxu1 }
 0x1dc   : > { %1233 = vst [vmem:[#allocation3 + $0x1a8] sm:$0xff] %v1108_v53  ;;  %v1110_v57 = vadd.f32 %v1109_v56, %v7328_v11  ;;  %1235 = vst [vmem:[#allocation3 + $0x98] sm:$0xff] %v1181_v55  ;;  %v1183_v59 = vadd.f32 %v1182_v58, %v7332_v31 }
 0x1dd   : > { %v1113_v60 = vpop.f32.mrf.mxu0  ;;  %v1186_v62 = vpop.f32.mrf.mxu1 }
 0x1de   : > { %1234 = vst [vmem:[#allocation3 + $0x1e0] sm:$0xff] %v1110_v57  ;;  %v1114_v61 = vadd.f32 %v1113_v60, %v7320_v24  ;;  %1236 = vst [vmem:[#allocation3 + $0x178] sm:$0xff] %v1183_v59  ;;  %v1187_v63 = vadd.f32 %v1186_v62, %v7324_v27 }
 0x1df   : > { %v1115_v1 = vpop.f32.mrf.mxu0  ;;  %v1188_v3 = vpop.f32.mrf.mxu1 }
 0x1e0   : > { %1241 = vst [vmem:[#allocation3 + $0xa0] sm:$0xff] %v1114_v61  ;;  %v1116_v2 = vadd.f32 %v1115_v1, %v7328_v11  ;;  %1243 = vst [vmem:[#allocation3 + $0x1a0] sm:$0xff] %v1187_v63  ;;  %v1189_v4 = vadd.f32 %v1188_v3, %v7332_v31 }
 0x1e1   : > { %v1117_v5 = vpop.f32.mrf.mxu0  ;;  %v1190_v7 = vpop.f32.mrf.mxu1 }
 0x1e2   : > { %1242 = vst [vmem:[#allocation3 + $0x10] sm:$0xff] %v1116_v2  ;;  %v1118_v6 = vadd.f32 %v1117_v5, %v7320_v24  ;;  %1244 = vst [vmem:[#allocation3 + $0x1c8] sm:$0xff] %v1189_v4  ;;  %v1191_v8 = vadd.f32 %v1190_v7, %v7324_v27 }
 0x1e3   : > { %v1119_v10 = vpop.f32.mrf.mxu0  ;;  %v1192_v13 = vpop.f32.mrf.mxu1 }
 0x1e4   : > { %1249 = vst [vmem:[#allocation3 + $0x70] sm:$0xff] %v1118_v6  ;;  %v1120_v12 = vadd.f32 %v1119_v10, %v7328_v11  ;;  %1251 = vst [vmem:[#allocation3 + $0xf8] sm:$0xff] %v1191_v8  ;;  %v1193_v14 = vadd.f32 %v1192_v13, %v7332_v31 }
 0x1e5   : > { %v1123_v15 = vpop.f32.mrf.mxu0  ;;  %v1196_v20 = vpop.f32.mrf.mxu1 }
 0x1e6   : > { %1250 = vst [vmem:[#allocation3 + $0x50] sm:$0xff] %v1120_v12  ;;  %v1124_v18 = vadd.f32 %v1123_v15, %v7320_v24  ;;  %1252 = vst [vmem:[#allocation3 + $0x168] sm:$0xff] %v1193_v14  ;;  %v1197_v21 = vadd.f32 %v1196_v20, %v7324_v27 }
 0x1e7   : > { %v1125_v22 = vpop.f32.mrf.mxu0  ;;  %v1198_v25 = vpop.f32.mrf.mxu1 }
 0x1e8   : > { %1257 = vst [vmem:[#allocation3 + $0x58] sm:$0xff] %v1124_v18  ;;  %v1126_v23 = vadd.f32 %v1125_v22, %v7328_v11  ;;  %1259 = vst [vmem:[#allocation3 + $0x128] sm:$0xff] %v1197_v21  ;;  %v1199_v26 = vadd.f32 %v1198_v25, %v7332_v31 }
 0x1e9   : > { %v1127_v28 = vpop.f32.mrf.mxu0  ;;  %v1200_v16 = vpop.f32.mrf.mxu1 }
 0x1ea   : > { %1258 = vst [vmem:[#allocation3 + $0x1d0] sm:$0xff] %v1126_v23  ;;  %v1128_v29 = vadd.f32 %v1127_v28, %v7320_v24  ;;  %1260 = vst [vmem:[#allocation3 + $0x1f0] sm:$0xff] %v1199_v26  ;;  %v1201_v30 = vadd.f32 %v1200_v16, %v7324_v27 }
 0x1eb   : > { %v1129_v17 = vpop.f32.mrf.mxu0  ;;  %v1202_v33 = vpop.f32.mrf.mxu1 }
 0x1ec   : > { %1265 = vst [vmem:[#allocation3 + $0x78] sm:$0xff] %v1128_v29  ;;  %v1130_v32 = vadd.f32 %v1129_v17, %v7328_v11  ;;  %1267 = vst [vmem:[#allocation3 + $0xc0] sm:$0xff] %v1201_v30  ;;  %v1203_v34 = vadd.f32 %v1202_v33, %v7332_v31 }
 0x1ee   : > { %1266 = vst [vmem:[#allocation3 + $0x80] sm:$0xff] %v1130_v32  ;;  %1268 = vst [vmem:[#allocation3 + $0x198] sm:$0xff] %v1203_v34 }
 0x1ef PF: > { %p5755_p2 = scmp.le.s32.totalorder %s6985_s12, 0 }
 0x1f1   : > { %1272 = sbr.rel (%p5755_p2) target bundleno = 860 (0x35c), region = 88 }
 0x1f6   : > { %v1337_v24 = vld [vmem:[%s7215_s26 + $0x1c0] sm:$0xff]  ;;  %v1338_v11 = vld [vmem:[%s7215_s26 + $0x1c8] sm:$0xff] }
 0x1f7   : > { %v1341_v27 = vld [vmem:[%s7215_s26 + $0x1e0] sm:$0xff]  ;;  %v1342_v9 = vld [vmem:[%s7215_s26 + $0x1e8] sm:$0xff] }
 0x1f8   : > { %v5821_v31 = vcombine.high %v1337_v24, %v1341_v27  ;;  %v5820_v35 = vcombine.low %v1337_v24, %v1341_v27  ;;  %v1329_v36 = vld [vmem:[%s7215_s26 + $0x180] sm:$0xff]  ;;  %v5823_v37 = vcombine.high %v1338_v11, %v1342_v9  ;;  %v5822_v38 = vcombine.low %v1338_v11, %v1342_v9  ;;  %v1330_v40 = vld [vmem:[%s7215_s26 + $0x188] sm:$0xff] }
 0x1f9   : > { %v1333_v19 = vld [vmem:[%s7215_s26 + $0x1a0] sm:$0xff]  ;;  %v1334_v41 = vld [vmem:[%s7215_s26 + $0x1a8] sm:$0xff] }
 0x1fa   : > { %v5813_v39 = vcombine.high %v1329_v36, %v1333_v19  ;;  %v1321_v42 = vld [vmem:[%s7215_s26 + $0x140] sm:$0xff]  ;;  %2130 = vmatprep.subr.bf16.mxu0 %v5821_v31  ;;  %v5815_v43 = vcombine.high %v1330_v40, %v1334_v41  ;;  %v1322_v45 = vld [vmem:[%s7215_s26 + $0x148] sm:$0xff]  ;;  %2203 = vmatprep.subr.bf16.mxu1 %v5823_v37  ;;  %v5812_v47 = vcombine.low %v1329_v36, %v1333_v19 }
 0x1fb   : > { %v1325_v44 = vld [vmem:[%s7215_s26 + $0x160] sm:$0xff]  ;;  %v1326_v46 = vld [vmem:[%s7215_s26 + $0x168] sm:$0xff]  ;;  %2131 = vmatpush1.bf16.msra.mxu0 %v5820_v35  ;;  %2204 = vmatpush1.bf16.msra.mxu1 %v5822_v38  ;;  %v5814_v48 = vcombine.low %v1330_v40, %v1334_v41 }
 0x1fc   : > { %2132 = vmatprep.subr.bf16.mxu0 %v5813_v39  ;;  %v5805_v49 = vcombine.high %v1321_v42, %v1325_v44  ;;  %2205 = vmatprep.subr.bf16.mxu1 %v5815_v43  ;;  %v5807_v50 = vcombine.high %v1322_v45, %v1326_v46  ;;  %v1313_v51 = vld [vmem:[%s7215_s26 + $0x100] sm:$0xff]  ;;  %v1314_v53 = vld [vmem:[%s7215_s26 + $0x108] sm:$0xff]  ;;  %v5804_v55 = vcombine.low %v1321_v42, %v1325_v44 }
 0x1fd   : > { %v1317_v52 = vld [vmem:[%s7215_s26 + $0x120] sm:$0xff]  ;;  %v1318_v54 = vld [vmem:[%s7215_s26 + $0x128] sm:$0xff]  ;;  %v5806_v56 = vcombine.low %v1322_v45, %v1326_v46 }
 0x1fe   : > { %v5797_v57 = vcombine.high %v1313_v51, %v1317_v52  ;;  %v5799_v58 = vcombine.high %v1314_v53, %v1318_v54  ;;  %v1305_v59 = vld [vmem:[%s7215_s26 + $0xc0] sm:$0xff]  ;;  %v1306_v61 = vld [vmem:[%s7215_s26 + $0xc8] sm:$0xff]  ;;  %v5796_v63 = vcombine.low %v1313_v51, %v1317_v52  ;;  %v5798_v1 = vcombine.low %v1314_v53, %v1318_v54 }
 0x1ff   : > { %2133 = vmatpush1.bf16.msra.mxu0 %v5812_v47  ;;  %2206 = vmatpush1.bf16.msra.mxu1 %v5814_v48  ;;  %v1309_v60 = vld [vmem:[%s7215_s26 + $0xe0] sm:$0xff]  ;;  %v1310_v62 = vld [vmem:[%s7215_s26 + $0xe8] sm:$0xff] }
 0x200   : > { %2134 = vmatprep.subr.bf16.mxu0 %v5805_v49  ;;  %2207 = vmatprep.subr.bf16.mxu1 %v5807_v50  ;;  %v5789_v2 = vcombine.high %v1305_v59, %v1309_v60  ;;  %v5791_v3 = vcombine.high %v1306_v61, %v1310_v62  ;;  %v1297_v4 = vld [vmem:[%s7215_s26 + $0x80] sm:$0xff]  ;;  %v1298_v6 = vld [vmem:[%s7215_s26 + $0x88] sm:$0xff]  ;;  %v5788_v8 = vcombine.low %v1305_v59, %v1309_v60 }
 0x201   : > { %v1301_v5 = vld [vmem:[%s7215_s26 + $0xa0] sm:$0xff]  ;;  %v1302_v7 = vld [vmem:[%s7215_s26 + $0xa8] sm:$0xff]  ;;  %v5790_v10 = vcombine.low %v1306_v61, %v1310_v62 }
 0x202   : > { %v5781_v12 = vcombine.high %v1297_v4, %v1301_v5  ;;  %v5783_v13 = vcombine.high %v1298_v6, %v1302_v7  ;;  %v1289_v14 = vld [vmem:[%s7215_s26 + $0x40] sm:$0xff]  ;;  %v1290_v18 = vld [vmem:[%s7215_s26 + $0x48] sm:$0xff]  ;;  %v5780_v21 = vcombine.low %v1297_v4, %v1301_v5  ;;  %v5782_v22 = vcombine.low %v1298_v6, %v1302_v7 }
 0x203   : > { %2135 = vmatpush1.bf16.msra.mxu0 %v5804_v55  ;;  %2208 = vmatpush1.bf16.msra.mxu1 %v5806_v56  ;;  %v1293_v15 = vld [vmem:[%s7215_s26 + $0x60] sm:$0xff]  ;;  %v1294_v20 = vld [vmem:[%s7215_s26 + $0x68] sm:$0xff] }
 0x204   : > { %2136 = vmatprep.subr.bf16.mxu0 %v5797_v57  ;;  %2209 = vmatprep.subr.bf16.mxu1 %v5799_v58  ;;  %v5773_v23 = vcombine.high %v1289_v14, %v1293_v15  ;;  %v5775_v25 = vcombine.high %v1290_v18, %v1294_v20  ;;  %v1281_v26 = vld [vmem:[%s7215_s26] sm:$0xff]  ;;  %v1282_v16 = vld [vmem:[%s7215_s26 + $0x8] sm:$0xff]  ;;  %v5772_v17 = vcombine.low %v1289_v14, %v1293_v15 }
 0x205   : > { %v1285_v28 = vld [vmem:[%s7215_s26 + $0x20] sm:$0xff]  ;;  %v1286_v30 = vld [vmem:[%s7215_s26 + $0x28] sm:$0xff]  ;;  %v5774_v32 = vcombine.low %v1290_v18, %v1294_v20 }
 0x206   : > { %v7397_v29 = vld [vmem:[#allocation2 + $0x34] ss:$-48 sps:$4 sm:$0xff]   ;;  %v5765_v33 = vcombine.high %v1281_v26, %v1285_v28  ;;  %v5767_v34 = vcombine.high %v1282_v16, %v1286_v30  ;;  %v1402_v11 = vld [vmem:[%s7215_s26 + $0x3c8] sm:$0xff]  ;;  %v5764_v9 = vcombine.low %v1281_v26, %v1285_v28  ;;  %v5766_v35 = vcombine.low %v1282_v16, %v1286_v30 }
 0x207   : > { %2137 = vmatpush1.bf16.msra.mxu0 %v5796_v63  ;;  %2210 = vmatpush1.bf16.msra.mxu1 %v5798_v1  ;;  %v1401_v24 = vld [vmem:[%s7215_s26 + $0x3c0] sm:$0xff]  ;;  %v1406_v31 = vld [vmem:[%s7215_s26 + $0x3e8] sm:$0xff] }
 0x208   : > { %2138 = vmatprep.subr.bf16.mxu0 %v5789_v2  ;;  %2211 = vmatprep.subr.bf16.mxu1 %v5791_v3  ;;  %v1405_v27 = vld [vmem:[%s7215_s26 + $0x3e0] sm:$0xff]  ;;  %v5887_v19 = vcombine.high %v1402_v11, %v1406_v31  ;;  %v1394_v39 = vld [vmem:[%s7215_s26 + $0x388] sm:$0xff]  ;;  %v5886_v42 = vcombine.low %v1402_v11, %v1406_v31  ;;  %v1339_v11 = vld [vmem:[%s7215_s26 + $0x1d0] sm:$0xff] }
 0x209   : > { %2162 = vmatprep.mubr.bf16.mxu0 %v7397_v29  ;;  %2235 = vmatprep.mubr.bf16.mxu1 %v7397_v29  ;;  %v5885_v36 = vcombine.high %v1401_v24, %v1405_v27  ;;  %v1393_v37 = vld [vmem:[%s7215_s26 + $0x380] sm:$0xff]  ;;  %v1398_v40 = vld [vmem:[%s7215_s26 + $0x3a8] sm:$0xff]  ;;  %v5884_v41 = vcombine.low %v1401_v24, %v1405_v27  ;;  %v1343_v31 = vld [vmem:[%s7215_s26 + $0x1f0] sm:$0xff] }
 0x20a   : > { %v1397_v38 = vld [vmem:[%s7215_s26 + $0x3a0] sm:$0xff]  ;;  %v5879_v44 = vcombine.high %v1394_v39, %v1398_v40  ;;  %v1386_v47 = vld [vmem:[%s7215_s26 + $0x348] sm:$0xff]  ;;  %v5878_v50 = vcombine.low %v1394_v39, %v1398_v40  ;;  %v1331_v39 = vld [vmem:[%s7215_s26 + $0x190] sm:$0xff] }
 0x20b   : > { %2139 = vmatpush1.bf16.msra.mxu0 %v5788_v8  ;;  %2212 = vmatpush1.bf16.msra.mxu1 %v5790_v10  ;;  %v5877_v43 = vcombine.high %v1393_v37, %v1397_v38  ;;  %v1385_v45 = vld [vmem:[%s7215_s26 + $0x340] sm:$0xff]  ;;  %v1390_v48 = vld [vmem:[%s7215_s26 + $0x368] sm:$0xff]  ;;  %v5876_v49 = vcombine.low %v1393_v37, %v1397_v38  ;;  %v5825_v37 = vcombine.high %v1339_v11, %v1343_v31  ;;  %v1335_v40 = vld [vmem:[%s7215_s26 + $0x1b0] sm:$0xff] }
 0x20c   : > { %2140 = vmatprep.subr.bf16.mxu0 %v5781_v12  ;;  %2213 = vmatprep.subr.bf16.mxu1 %v5783_v13  ;;  %v1389_v46 = vld [vmem:[%s7215_s26 + $0x360] sm:$0xff]  ;;  %v5871_v52 = vcombine.high %v1386_v47, %v1390_v48  ;;  %v1378_v55 = vld [vmem:[%s7215_s26 + $0x308] sm:$0xff]  ;;  %v5870_v58 = vcombine.low %v1386_v47, %v1390_v48  ;;  %v1323_v48 = vld [vmem:[%s7215_s26 + $0x150] sm:$0xff] }
 0x20d   : > { %v5869_v51 = vcombine.high %v1385_v45, %v1389_v46  ;;  %v1377_v53 = vld [vmem:[%s7215_s26 + $0x300] sm:$0xff]  ;;  %v1382_v56 = vld [vmem:[%s7215_s26 + $0x328] sm:$0xff]  ;;  %v5868_v57 = vcombine.low %v1385_v45, %v1389_v46  ;;  %v5817_v46 = vcombine.high %v1331_v39, %v1335_v40 }
 0x20e   : > { %v1381_v54 = vld [vmem:[%s7215_s26 + $0x320] sm:$0xff]  ;;  %v5863_v60 = vcombine.high %v1378_v55, %v1382_v56  ;;  %v1370_v63 = vld [vmem:[%s7215_s26 + $0x2c8] sm:$0xff]  ;;  %v5862_v3 = vcombine.low %v1378_v55, %v1382_v56 }
 0x20f   : > { %2141 = vmatpush1.bf16.msra.mxu0 %v5780_v21  ;;  %2214 = vmatpush1.bf16.msra.mxu1 %v5782_v22  ;;  %v5861_v59 = vcombine.high %v1377_v53, %v1381_v54  ;;  %v1369_v61 = vld [vmem:[%s7215_s26 + $0x2c0] sm:$0xff]  ;;  %v1374_v1 = vld [vmem:[%s7215_s26 + $0x2e8] sm:$0xff]  ;;  %v5860_v2 = vcombine.low %v1377_v53, %v1381_v54  ;;  %v5816_v53 = vcombine.low %v1331_v39, %v1335_v40  ;;  %v1403_v40 = vld [vmem:[%s7215_s26 + $0x3d0] sm:$0xff] }
 0x210   : > { %2142 = vmatprep.subr.bf16.mxu0 %v5773_v23  ;;  %2215 = vmatprep.subr.bf16.mxu1 %v5775_v25  ;;  %v1373_v62 = vld [vmem:[%s7215_s26 + $0x2e0] sm:$0xff]  ;;  %v5855_v5 = vcombine.high %v1370_v63, %v1374_v1  ;;  %v1362_v8 = vld [vmem:[%s7215_s26 + $0x288] sm:$0xff]  ;;  %v5854_v13 = vcombine.low %v1370_v63, %v1374_v1 }
 0x211   : > { %v5853_v4 = vcombine.high %v1369_v61, %v1373_v62  ;;  %v1361_v6 = vld [vmem:[%s7215_s26 + $0x280] sm:$0xff]  ;;  %v1366_v10 = vld [vmem:[%s7215_s26 + $0x2a8] sm:$0xff]  ;;  %v5852_v12 = vcombine.low %v1369_v61, %v1373_v62  ;;  %v7459_v61 = vld [vmem:[#allocation2 + $0x18] ss:$-8 sps:$4 sm:$0xff]  }
 0x212   : > { %v1365_v7 = vld [vmem:[%s7215_s26 + $0x2a0] sm:$0xff]  ;;  %v5847_v15 = vcombine.high %v1362_v8, %v1366_v10  ;;  %v1354_v21 = vld [vmem:[%s7215_s26 + $0x248] sm:$0xff]  ;;  %v5846_v25 = vcombine.low %v1362_v8, %v1366_v10 }
 0x213   : > { %2143 = vmatpush1.bf16.msra.mxu0 %v5772_v17  ;;  %2216 = vmatpush1.bf16.msra.mxu1 %v5774_v32  ;;  %v5845_v14 = vcombine.high %v1361_v6, %v1365_v7  ;;  %v1353_v18 = vld [vmem:[%s7215_s26 + $0x240] sm:$0xff]  ;;  %v1358_v22 = vld [vmem:[%s7215_s26 + $0x268] sm:$0xff]  ;;  %v5844_v23 = vcombine.low %v1361_v6, %v1365_v7  ;;  %v1308_v6 = vld [vmem:[%s7215_s26 + $0xd8] sm:$0xff] }
 0x214   : > { %2144 = vmatprep.subr.bf16.mxu0 %v5765_v33  ;;  %2217 = vmatprep.subr.bf16.mxu1 %v5767_v34  ;;  %v1357_v20 = vld [vmem:[%s7215_s26 + $0x260] sm:$0xff]  ;;  %v5839_v28 = vcombine.high %v1354_v21, %v1358_v22  ;;  %v1346_v17 = vld [vmem:[%s7215_s26 + $0x208] sm:$0xff]  ;;  %v5838_v34 = vcombine.low %v1354_v21, %v1358_v22  ;;  %v1312_v7 = vld [vmem:[%s7215_s26 + $0xf8] sm:$0xff] }
 0x215   : > { %v5837_v26 = vcombine.high %v1353_v18, %v1357_v20  ;;  %v1345_v16 = vld [vmem:[%s7215_s26 + $0x200] sm:$0xff]  ;;  %v1350_v32 = vld [vmem:[%s7215_s26 + $0x228] sm:$0xff]  ;;  %v5836_v33 = vcombine.low %v1353_v18, %v1357_v20  ;;  %v1300_v18 = vld [vmem:[%s7215_s26 + $0x98] sm:$0xff] }
 0x216   : > { %v1349_v30 = vld [vmem:[%s7215_s26 + $0x220] sm:$0xff]  ;;  %v5831_v27 = vcombine.high %v1346_v17, %v1350_v32  ;;  %v1304_v20 = vld [vmem:[%s7215_s26 + $0xb8] sm:$0xff] }
 0x217   : > { %2145 = vmatpush1.bf16.msra.mxu0 %v5764_v9  ;;  %2218 = vmatpush1.bf16.msra.mxu1 %v5766_v35  ;;  %v5829_v24 = vcombine.high %v1345_v16, %v1349_v30  ;;  %v1340_v9 = vld [vmem:[%s7215_s26 + $0x1d8] sm:$0xff]  ;;  %v7475_v21 = vld [vmem:[#allocation2 + $0x8] ss:$24 sps:$4 sm:$0xff]  }
 0x218   : > { %2146 = vmatprep.subr.bf16.mxu0 %v5885_v36  ;;  %2219 = vmatprep.subr.bf16.mxu1 %v5887_v19  ;;  %v1344_v35 = vld [vmem:[%s7215_s26 + $0x1f8] sm:$0xff]  ;;  %v5828_v36 = vcombine.low %v1345_v16, %v1349_v30  ;;  %v5830_v19 = vcombine.low %v1346_v17, %v1350_v32  ;;  %v1295_v16 = vld [vmem:[%s7215_s26 + $0x70] sm:$0xff] }
 0x219   : > { %v5827_v38 = vcombine.high %v1340_v9, %v1344_v35  ;;  %v5826_v45 = vcombine.low %v1340_v9, %v1344_v35  ;;  %v7479_v30 = vld [vmem:[#allocation2 + $0x2c] ss:$16 sps:$4 sm:$0xff]  }
 0x21a   : > { %v1292_v17 = vld [vmem:[%s7215_s26 + $0x58] sm:$0xff] }
 0x21b   : > { %2147 = vmatpush2.bf16.msra.mxu0 %v5884_v41  ;;  %2220 = vmatpush2.bf16.msra.mxu1 %v5886_v42  ;;  %v7441_v41 = vld [vmem:[#allocation2 + $0x30] ss:$-48 sps:$4 sm:$0xff]   ;;  %v1332_v42 = vld [vmem:[%s7215_s26 + $0x198] sm:$0xff] }
 0x21c   : > { %2148 = vmatprep.subr.bf16.mxu0 %v5877_v43  ;;  %2221 = vmatprep.subr.bf16.mxu1 %v5879_v44  ;;  %v1336_v43 = vld [vmem:[%s7215_s26 + $0x1b8] sm:$0xff]  ;;  %v5824_v44 = vcombine.low %v1339_v11, %v1343_v31  ;;  %v1283_v11 = vld [vmem:[%s7215_s26 + $0x10] sm:$0xff] }
 0x21d   : > { %v5819_v47 = vcombine.high %v1332_v42, %v1336_v43  ;;  %v5818_v54 = vcombine.low %v1332_v42, %v1336_v43  ;;  %v1296_v32 = vld [vmem:[%s7215_s26 + $0x78] sm:$0xff]  ;;  %v1287_v31 = vld [vmem:[%s7215_s26 + $0x30] sm:$0xff] }
 0x21e   : > { %v1284_v9 = vld [vmem:[%s7215_s26 + $0x18] sm:$0xff]  ;;  %v1407_v42 = vld [vmem:[%s7215_s26 + $0x3f0] sm:$0xff] }
 0x21f   : > { %2149 = vmatpush2.bf16.msra.mxu0 %v5876_v49  ;;  %2222 = vmatpush2.bf16.msra.mxu1 %v5878_v50  ;;  %v1327_v49 = vld [vmem:[%s7215_s26 + $0x170] sm:$0xff]  ;;  %v1288_v35 = vld [vmem:[%s7215_s26 + $0x38] sm:$0xff] }
 0x220   : > { %2150 = vmatprep.subr.bf16.mxu0 %v5869_v51  ;;  %2223 = vmatprep.subr.bf16.mxu1 %v5871_v52  ;;  %v7447_v50 = vld [vmem:[#allocation2 + $0x1c] ss:$-8 sps:$4 sm:$0xff]   ;;  %v5809_v55 = vcombine.high %v1323_v48, %v1327_v49  ;;  %v5808_v62 = vcombine.low %v1323_v48, %v1327_v49  ;;  %v5771_v39 = vcombine.high %v1284_v9, %v1288_v35 }
 0x221   : > { %v1324_v51 = vld [vmem:[%s7215_s26 + $0x158] sm:$0xff]  ;;  %v1395_v49 = vld [vmem:[%s7215_s26 + $0x390] sm:$0xff] }
 0x222   : > { %v1328_v52 = vld [vmem:[%s7215_s26 + $0x178] sm:$0xff] }
 0x223   : > { %2151 = vmatpush2.bf16.msra.mxu0 %v5868_v57  ;;  %2224 = vmatpush2.bf16.msra.mxu1 %v5870_v58  ;;  %v5811_v56 = vcombine.high %v1324_v51, %v1328_v52  ;;  %v1315_v57 = vld [vmem:[%s7215_s26 + $0x110] sm:$0xff]  ;;  %v5810_v63 = vcombine.low %v1324_v51, %v1328_v52  ;;  %v1404_v43 = vld [vmem:[%s7215_s26 + $0x3d8] sm:$0xff] }
 0x224   : > { %2152 = vmatprep.subr.bf16.mxu0 %v5861_v59  ;;  %2225 = vmatprep.subr.bf16.mxu1 %v5863_v60  ;;  %v1319_v58 = vld [vmem:[%s7215_s26 + $0x130] sm:$0xff]  ;;  %v1316_v59 = vld [vmem:[%s7215_s26 + $0x118] sm:$0xff] }
 0x225   : > { %v1320_v60 = vld [vmem:[%s7215_s26 + $0x138] sm:$0xff]  ;;  %v5801_v1 = vcombine.high %v1315_v57, %v1319_v58  ;;  %v5800_v8 = vcombine.low %v1315_v57, %v1319_v58  ;;  %v1399_v51 = vld [vmem:[%s7215_s26 + $0x3b0] sm:$0xff] }
 0x226   : > { %v5802_v10 = vcombine.low %v1316_v59, %v1320_v60  ;;  %v1396_v52 = vld [vmem:[%s7215_s26 + $0x398] sm:$0xff]  ;;  %v1387_v58 = vld [vmem:[%s7215_s26 + $0x350] sm:$0xff] }
 0x227   : > { %2153 = vmatpush2.bf16.msra.mxu0 %v5860_v2  ;;  %2226 = vmatpush2.bf16.msra.mxu1 %v5862_v3  ;;  %v5803_v2 = vcombine.high %v1316_v59, %v1320_v60  ;;  %v1307_v3 = vld [vmem:[%s7215_s26 + $0xd0] sm:$0xff]  ;;  %v1388_v60 = vld [vmem:[%s7215_s26 + $0x358] sm:$0xff] }
 0x228   : > { %2154 = vmatprep.subr.bf16.mxu0 %v5853_v4  ;;  %2227 = vmatprep.subr.bf16.mxu1 %v5855_v5  ;;  %v1311_v4 = vld [vmem:[%s7215_s26 + $0xf0] sm:$0xff]  ;;  %v7463_v5 = vld [vmem:[#allocation2 + $0xc] ss:$24 sps:$4 sm:$0xff]  }
 0x229   : > { %v5792_v22 = vcombine.low %v1307_v3, %v1311_v4  ;;  %v1391_v59 = vld [vmem:[%s7215_s26 + $0x370] sm:$0xff] }
 0x22b   : > { %2155 = vmatpush2.bf16.msra.mxu0 %v5852_v12  ;;  %2228 = vmatpush2.bf16.msra.mxu1 %v5854_v13  ;;  %v5793_v12 = vcombine.high %v1307_v3, %v1311_v4  ;;  %v5795_v13 = vcombine.high %v1308_v6, %v1312_v7  ;;  %v1379_v3 = vld [vmem:[%s7215_s26 + $0x310] sm:$0xff] }
 0x22c   : > { %2156 = vmatprep.subr.bf16.mxu0 %v5845_v14  ;;  %2229 = vmatprep.subr.bf16.mxu1 %v5847_v15  ;;  %v1299_v14 = vld [vmem:[%s7215_s26 + $0x90] sm:$0xff] }
 0x22d   : > { %v1303_v15 = vld [vmem:[%s7215_s26 + $0xb0] sm:$0xff] }
 0x22e   : > { %v1383_v4 = vld [vmem:[%s7215_s26 + $0x330] sm:$0xff] }
 0x22f   : > { %2157 = vmatpush2.bf16.msra.mxu0 %v5844_v23  ;;  %2230 = vmatpush2.bf16.msra.mxu1 %v5846_v25  ;;  %v5794_v23 = vcombine.low %v1308_v6, %v1312_v7  ;;  %v5785_v25 = vcombine.high %v1299_v14, %v1303_v15  ;;  %v1380_v6 = vld [vmem:[%s7215_s26 + $0x318] sm:$0xff] }
 0x230   : > { %2158 = vmatprep.subr.bf16.mxu0 %v5837_v26  ;;  %2231 = vmatprep.subr.bf16.mxu1 %v5839_v28  ;;  %v5787_v26 = vcombine.high %v1300_v18, %v1304_v20  ;;  %v1291_v28 = vld [vmem:[%s7215_s26 + $0x50] sm:$0xff]  ;;  %v1384_v7 = vld [vmem:[%s7215_s26 + $0x338] sm:$0xff] }
 0x233   : > { %2159 = vmatpush2.bf16.msra.mxu0 %v5836_v33  ;;  %2232 = vmatpush2.bf16.msra.mxu1 %v5838_v34  ;;  %v5784_v33 = vcombine.low %v1299_v14, %v1303_v15  ;;  %v5786_v34 = vcombine.low %v1300_v18, %v1304_v20  ;;  %v1371_v14 = vld [vmem:[%s7215_s26 + $0x2d0] sm:$0xff]  ;;  %v1372_v18 = vld [vmem:[%s7215_s26 + $0x2d8] sm:$0xff] }
 0x234   : > { %2160 = vmatprep.subr.bf16.mxu0 %v5829_v24  ;;  %2233 = vmatprep.subr.bf16.mxu1 %v5831_v27  ;;  %v5777_v24 = vcombine.high %v1291_v28, %v1295_v16  ;;  %v5779_v27 = vcombine.high %v1292_v17, %v1296_v32  ;;  %v1375_v15 = vld [vmem:[%s7215_s26 + $0x2f0] sm:$0xff]  ;;  %v1376_v20 = vld [vmem:[%s7215_s26 + $0x2f8] sm:$0xff] }
 0x237   : > { %2161 = vmatpush2.bf16.msra.mxu0 %v5828_v36  ;;  %2234 = vmatpush2.bf16.msra.mxu1 %v5830_v19  ;;  %v7491_v36 = vld [vmem:[#allocation2 + $0x28] ss:$16 sps:$4 sm:$0xff]   ;;  %v5776_v19 = vcombine.low %v1291_v28, %v1295_v16  ;;  %v1363_v28 = vld [vmem:[%s7215_s26 + $0x290] sm:$0xff] }
 0x238   : > { %2276 = vmatprep.subr.bf16.mxu0 %v5825_v37  ;;  %2349 = vmatprep.subr.bf16.mxu1 %v5827_v38  ;;  %v5778_v37 = vcombine.low %v1292_v17, %v1296_v32  ;;  %v5769_v38 = vcombine.high %v1283_v11, %v1287_v31  ;;  %v1367_v16 = vld [vmem:[%s7215_s26 + $0x2b0] sm:$0xff]  ;;  %v1364_v17 = vld [vmem:[%s7215_s26 + $0x298] sm:$0xff] }
 0x239   : > { %v1368_v32 = vld [vmem:[%s7215_s26 + $0x2b8] sm:$0xff] }
 0x23a   : > { %2163 = vmatmul.mubr.bf16.vlgmr.msra.gmra.mxu0 %v7441_v41  ;;  %2236 = vmatmul.mubr.bf16.vlgmr.msra.gmra.mxu1 %v7441_v41 }
 0x23b   : > { %2277 = vmatpush1.bf16.msra.mxu0 %v5824_v44  ;;  %2350 = vmatpush1.bf16.msra.mxu1 %v5826_v45  ;;  %v1408_v44 = vld [vmem:[%s7215_s26 + $0x3f8] sm:$0xff]  ;;  %v5768_v45 = vcombine.low %v1283_v11, %v1287_v31  ;;  %v1355_v11 = vld [vmem:[%s7215_s26 + $0x250] sm:$0xff] }
 0x23c   : > { %2278 = vmatprep.subr.bf16.mxu0 %v5817_v46  ;;  %2351 = vmatprep.subr.bf16.mxu1 %v5819_v47  ;;  %v5770_v46 = vcombine.low %v1284_v9, %v1288_v35  ;;  %v5889_v47 = vcombine.high %v1403_v40, %v1407_v42  ;;  %v5891_v48 = vcombine.high %v1404_v43, %v1408_v44  ;;  %v1359_v31 = vld [vmem:[%s7215_s26 + $0x270] sm:$0xff]  ;;  %v1356_v9 = vld [vmem:[%s7215_s26 + $0x258] sm:$0xff] }
 0x23d   : > { %2172 = vmatprep.mubr.bf16.mxu0 %v7447_v50  ;;  %2245 = vmatprep.mubr.bf16.mxu1 %v7447_v50  ;;  %v1360_v35 = vld [vmem:[%s7215_s26 + $0x278] sm:$0xff] }
 0x23f   : > { %2279 = vmatpush1.bf16.msra.mxu0 %v5816_v53  ;;  %2352 = vmatpush1.bf16.msra.mxu1 %v5818_v54  ;;  %v1400_v53 = vld [vmem:[%s7215_s26 + $0x3b8] sm:$0xff]  ;;  %v5888_v54 = vcombine.low %v1403_v40, %v1407_v42  ;;  %v1347_v40 = vld [vmem:[%s7215_s26 + $0x210] sm:$0xff] }
 0x240   : > { %2280 = vmatprep.subr.bf16.mxu0 %v5809_v55  ;;  %2353 = vmatprep.subr.bf16.mxu1 %v5811_v56  ;;  %v5890_v55 = vcombine.low %v1404_v43, %v1408_v44  ;;  %v5881_v56 = vcombine.high %v1395_v49, %v1399_v51  ;;  %v5883_v57 = vcombine.high %v1396_v52, %v1400_v53  ;;  %v1351_v42 = vld [vmem:[%s7215_s26 + $0x230] sm:$0xff]  ;;  %v1348_v43 = vld [vmem:[%s7215_s26 + $0x218] sm:$0xff] }
 0x241   : > { %v1352_v44 = vld [vmem:[%s7215_s26 + $0x238] sm:$0xff] }
 0x242   : > { %2173 = vmatmul.mubr.bf16.gmra.mxu0 %v7459_v61  ;;  %2246 = vmatmul.mubr.bf16.gmra.mxu1 %v7459_v61 }
 0x243   : > { %2281 = vmatpush1.bf16.msra.mxu0 %v5808_v62  ;;  %2354 = vmatpush1.bf16.msra.mxu1 %v5810_v63  ;;  %v1392_v62 = vld [vmem:[%s7215_s26 + $0x378] sm:$0xff]  ;;  %v5880_v63 = vcombine.low %v1395_v49, %v1399_v51  ;;  %v5832_v49 = vcombine.low %v1347_v40, %v1351_v42  ;;  %v5834_v51 = vcombine.low %v1348_v43, %v1352_v44 }
 0x244   : > { %2282 = vmatprep.subr.bf16.mxu0 %v5801_v1  ;;  %2355 = vmatprep.subr.bf16.mxu1 %v5803_v2  ;;  %v5873_v1 = vcombine.high %v1387_v58, %v1391_v59  ;;  %v5875_v2 = vcombine.high %v1388_v60, %v1392_v62 }
 0x245   : > { %2182 = vmatprep.mubr.bf16.mxu0 %v7463_v5  ;;  %2255 = vmatprep.mubr.bf16.mxu1 %v7463_v5 }
 0x247   : > { %2283 = vmatpush1.bf16.msra.mxu0 %v5800_v8  ;;  %2356 = vmatpush1.bf16.msra.mxu1 %v5802_v10  ;;  %v5872_v8 = vcombine.low %v1387_v58, %v1391_v59  ;;  %v5874_v10 = vcombine.low %v1388_v60, %v1392_v62 }
 0x248   : > { %2284 = vmatprep.subr.bf16.mxu0 %v5793_v12  ;;  %2357 = vmatprep.subr.bf16.mxu1 %v5795_v13  ;;  %v5865_v12 = vcombine.high %v1379_v3, %v1383_v4  ;;  %v5867_v13 = vcombine.high %v1380_v6, %v1384_v7 }
 0x24a   : > { %2183 = vmatmul.mubr.bf16.gmra.mxu0 %v7475_v21  ;;  %2256 = vmatmul.mubr.bf16.gmra.mxu1 %v7475_v21 }
 0x24b   : > { %2285 = vmatpush1.bf16.msra.mxu0 %v5792_v22  ;;  %2358 = vmatpush1.bf16.msra.mxu1 %v5794_v23  ;;  %v5864_v22 = vcombine.low %v1379_v3, %v1383_v4  ;;  %v5866_v23 = vcombine.low %v1380_v6, %v1384_v7 }
 0x24c   : > { %2286 = vmatprep.subr.bf16.mxu0 %v5785_v25  ;;  %2359 = vmatprep.subr.bf16.mxu1 %v5787_v26  ;;  %v5857_v25 = vcombine.high %v1371_v14, %v1375_v15  ;;  %v5859_v26 = vcombine.high %v1372_v18, %v1376_v20 }
 0x24d   : > { %2192 = vmatprep.mubr.bf16.mxu0 %v7479_v30  ;;  %2265 = vmatprep.mubr.bf16.mxu1 %v7479_v30 }
 0x24f   : > { %2287 = vmatpush1.bf16.msra.mxu0 %v5784_v33  ;;  %2360 = vmatpush1.bf16.msra.mxu1 %v5786_v34  ;;  %v5856_v33 = vcombine.low %v1371_v14, %v1375_v15  ;;  %v5858_v34 = vcombine.low %v1372_v18, %v1376_v20 }
 0x250   : > { %2288 = vmatprep.subr.bf16.mxu0 %v5777_v24  ;;  %2361 = vmatprep.subr.bf16.mxu1 %v5779_v27  ;;  %v5849_v24 = vcombine.high %v1363_v28, %v1367_v16  ;;  %v5851_v27 = vcombine.high %v1364_v17, %v1368_v32 }
 0x252   : > { %2193 = vmatmul.mubr.bf16.gmra.mxu0 %v7491_v36  ;;  %2266 = vmatmul.mubr.bf16.gmra.mxu1 %v7491_v36 }
 0x253   : > { %2289 = vmatpush1.bf16.msra.mxu0 %v5776_v19  ;;  %2362 = vmatpush1.bf16.msra.mxu1 %v5778_v37  ;;  %v5848_v19 = vcombine.low %v1363_v28, %v1367_v16  ;;  %v5850_v37 = vcombine.low %v1364_v17, %v1368_v32 }
 0x254   : > { %2290 = vmatprep.subr.bf16.mxu0 %v5769_v38  ;;  %2363 = vmatprep.subr.bf16.mxu1 %v5771_v39  ;;  %v5841_v38 = vcombine.high %v1355_v11, %v1359_v31  ;;  %v5843_v39 = vcombine.high %v1356_v9, %v1360_v35 }
 0x255   : > { %2308 = vmatprep.mubr.bf16.mxu0 %v7397_v29  ;;  %2381 = vmatprep.mubr.bf16.mxu1 %v7397_v29  ;;  %v5882_v29 = vcombine.low %v1396_v52, %v1400_v53 }
 0x257   : > { %2291 = vmatpush1.bf16.msra.mxu0 %v5768_v45  ;;  %2364 = vmatpush1.bf16.msra.mxu1 %v5770_v46  ;;  %v5840_v45 = vcombine.low %v1355_v11, %v1359_v31  ;;  %v5842_v46 = vcombine.low %v1356_v9, %v1360_v35 }
 0x258   : > { %2292 = vmatprep.subr.bf16.mxu0 %v5889_v47  ;;  %2365 = vmatprep.subr.bf16.mxu1 %v5891_v48  ;;  %v5833_v47 = vcombine.high %v1347_v40, %v1351_v42  ;;  %v5835_v48 = vcombine.high %v1348_v43, %v1352_v44 }
 0x25b   : > { %2293 = vmatpush2.bf16.msra.mxu0 %v5888_v54  ;;  %2366 = vmatpush2.bf16.msra.mxu1 %v5890_v55 }
 0x25c   : > { %2294 = vmatprep.subr.bf16.mxu0 %v5881_v56  ;;  %2367 = vmatprep.subr.bf16.mxu1 %v5883_v57 }
 0x25f   : > { %2295 = vmatpush2.bf16.msra.mxu0 %v5880_v63  ;;  %2368 = vmatpush2.bf16.msra.mxu1 %v5882_v29 }
 0x260   : > { %2296 = vmatprep.subr.bf16.mxu0 %v5873_v1  ;;  %2369 = vmatprep.subr.bf16.mxu1 %v5875_v2 }
 0x263   : > { %2297 = vmatpush2.bf16.msra.mxu0 %v5872_v8  ;;  %2370 = vmatpush2.bf16.msra.mxu1 %v5874_v10 }
 0x264   : > { %2298 = vmatprep.subr.bf16.mxu0 %v5865_v12  ;;  %2371 = vmatprep.subr.bf16.mxu1 %v5867_v13 }
 0x267   : > { %2299 = vmatpush2.bf16.msra.mxu0 %v5864_v22  ;;  %2372 = vmatpush2.bf16.msra.mxu1 %v5866_v23 }
 0x268   : > { %2300 = vmatprep.subr.bf16.mxu0 %v5857_v25  ;;  %2373 = vmatprep.subr.bf16.mxu1 %v5859_v26 }
 0x26b   : > { %2301 = vmatpush2.bf16.msra.mxu0 %v5856_v33  ;;  %2374 = vmatpush2.bf16.msra.mxu1 %v5858_v34 }
 0x26c   : > { %2302 = vmatprep.subr.bf16.mxu0 %v5849_v24  ;;  %2375 = vmatprep.subr.bf16.mxu1 %v5851_v27 }
 0x26f   : > { %2303 = vmatpush2.bf16.msra.mxu0 %v5848_v19  ;;  %2376 = vmatpush2.bf16.msra.mxu1 %v5850_v37 }
 0x270   : > { %2304 = vmatprep.subr.bf16.mxu0 %v5841_v38  ;;  %2377 = vmatprep.subr.bf16.mxu1 %v5843_v39 }
 0x273   : > { %2305 = vmatpush2.bf16.msra.mxu0 %v5840_v45  ;;  %2378 = vmatpush2.bf16.msra.mxu1 %v5842_v46 }
 0x274   : > { %2306 = vmatprep.subr.bf16.mxu0 %v5833_v47  ;;  %2379 = vmatprep.subr.bf16.mxu1 %v5835_v48 }
 0x277   : > { %2307 = vmatpush2.bf16.msra.mxu0 %v5832_v49  ;;  %2380 = vmatpush2.bf16.msra.mxu1 %v5834_v51 }
 0x27a   : > { %2309 = vmatmul.mubr.bf16.vlgmr.msra.gmra.mxu0 %v7441_v41  ;;  %2382 = vmatmul.mubr.bf16.vlgmr.msra.gmra.mxu1 %v7441_v41  ;;  %v1410_v41 = vlaneseq }
 0x27b   : > { %2318 = vmatprep.mubr.bf16.mxu0 %v7447_v50  ;;  %2391 = vmatprep.mubr.bf16.mxu1 %v7447_v50 }
 0x27c   : > { %v7543_v50 = vshrl.u32 %v1410_v41, 7 }
 0x27e   : > { %v1420_v52 = vsub.s32 2, %v7543_v50  ;;  %v1424_v53 = vsub.s32 3, %v7543_v50 }
 0x280   : > { %v7559_v55 = vrot.slane %v7236_v0, %v1424_v53 }
 0x282   : > { %2319 = vmatmul.mubr.bf16.gmra.mxu0 %v7459_v61  ;;  %2392 = vmatmul.mubr.bf16.gmra.mxu1 %v7459_v61  ;;  %v1412_v61 = vsub.s32 0, %v7543_v50 }
 0x283   : > { %2328 = vmatprep.mubr.bf16.mxu0 %v7463_v5  ;;  %2401 = vmatprep.mubr.bf16.mxu1 %v7463_v5  ;;  %v1416_v5 = vsub.s32 1, %v7543_v50 }
 0x285   : > { %v7556_v54 = vrot.slane %v7236_v0, %v1416_v5 }
 0x28a   : > { %2329 = vmatmul.mubr.bf16.gmra.mxu0 %v7475_v21  ;;  %2402 = vmatmul.mubr.bf16.gmra.mxu1 %v7475_v21  ;;  %v7550_v21 = vrot.slane %v7236_v0, %v1412_v61 }
 0x28b   : > { %2338 = vmatprep.mubr.bf16.mxu0 %v7479_v30  ;;  %2411 = vmatprep.mubr.bf16.mxu1 %v7479_v30  ;;  %v7553_v30 = vrot.slane %v7236_v0, %v1420_v52 }
 0x292   : > { %2339 = vmatmul.mubr.bf16.gmra.mxu0 %v7491_v36  ;;  %2412 = vmatmul.mubr.bf16.gmra.mxu1 %v7491_v36 }
 0x2fa   : > { %v2164_v36 = vpop.f32.mrf.mxu0  ;;  %v2237_v57 = vpop.f32.mrf.mxu1 }
 0x2fb   : > { %v2165_v56 = vadd.f32 %v2164_v36, %v7550_v21  ;;  %v2238_v58 = vadd.f32 %v2237_v57, %v7553_v30 }
 0x2fc   : > { %v2166_v59 = vpop.f32.mrf.mxu0  ;;  %v2239_v62 = vpop.f32.mrf.mxu1 }
 0x2fd   : > { %2422 = vst [vmem:[#allocation3 + $0x100] sm:$0xff] %v2165_v56  ;;  %v2167_v60 = vadd.f32 %v2166_v59, %v7556_v54  ;;  %2424 = vst [vmem:[#allocation3 + $0x150] sm:$0xff] %v2238_v58  ;;  %v2240_v63 = vadd.f32 %v2239_v62, %v7559_v55  ;;  %v1428_v62 = vsub.s32 4, %v7543_v50 }
 0x2fe   : > { %v2168_v29 = vpop.f32.mrf.mxu0  ;;  %v2241_v2 = vpop.f32.mrf.mxu1 }
 0x2ff   : > { %2423 = vst [vmem:[#allocation3 + $0x18] sm:$0xff] %v2167_v60  ;;  %v2169_v1 = vadd.f32 %v2168_v29, %v7550_v21  ;;  %2425 = vst [vmem:[#allocation3 + $0xe0] sm:$0xff] %v2240_v63  ;;  %v2242_v3 = vadd.f32 %v2241_v2, %v7553_v30  ;;  %v1436_v63 = vsub.s32 6, %v7543_v50  ;;  %v1440_v29 = vsub.s32 7, %v7543_v50 }
 0x300   : > { %v2170_v4 = vpop.f32.mrf.mxu0  ;;  %v2243_v7 = vpop.f32.mrf.mxu1 }
 0x301   : > { %2430 = vst [vmem:[#allocation3 + $0xd8] sm:$0xff] %v2169_v1  ;;  %v2171_v6 = vadd.f32 %v2170_v4, %v7556_v54  ;;  %2432 = vst [vmem:[#allocation3 + $0xb0] sm:$0xff] %v2242_v3  ;;  %v2244_v8 = vadd.f32 %v2243_v7, %v7559_v55  ;;  %v7601_v1 = vrot.slane %v7236_v0, %v1436_v63 }
 0x302   : > { %v2174_v10 = vpop.f32.mrf.mxu0  ;;  %v2247_v13 = vpop.f32.mrf.mxu1  ;;  %v7607_v2 = vrot.slane %v7236_v0, %v1440_v29 }
 0x303   : > { %2431 = vst [vmem:[#allocation3 + $0x30] sm:$0xff] %v2171_v6  ;;  %v2175_v12 = vadd.f32 %v2174_v10, %v7550_v21  ;;  %2433 = vst [vmem:[#allocation3 + $0x158] sm:$0xff] %v2244_v8  ;;  %v2248_v14 = vadd.f32 %v2247_v13, %v7553_v30 }
 0x304   : > { %v2176_v15 = vpop.f32.mrf.mxu0  ;;  %v2249_v20 = vpop.f32.mrf.mxu1 }
 0x305   : > { %2438 = vst [vmem:[#allocation3 + $0x180] sm:$0xff] %v2175_v12  ;;  %v2177_v18 = vadd.f32 %v2176_v15, %v7556_v54  ;;  %2440 = vst [vmem:[#allocation3 + $0x140] sm:$0xff] %v2248_v14  ;;  %v2250_v22 = vadd.f32 %v2249_v20, %v7559_v55 }
 0x306   : > { %v2178_v23 = vpop.f32.mrf.mxu0  ;;  %v2251_v26 = vpop.f32.mrf.mxu1 }
 0x307   : > { %2439 = vst [vmem:[#allocation3 + $0x190] sm:$0xff] %v2177_v18  ;;  %v2179_v25 = vadd.f32 %v2178_v23, %v7550_v21  ;;  %2441 = vst [vmem:[#allocation3 + $0x1c0] sm:$0xff] %v2250_v22  ;;  %v2252_v28 = vadd.f32 %v2251_v26, %v7553_v30 }
 0x308   : > { %v2180_v16 = vpop.f32.mrf.mxu0  ;;  %v2253_v32 = vpop.f32.mrf.mxu1 }
 0x309   : > { %2446 = vst [vmem:[#allocation3 + $0x88] sm:$0xff] %v2179_v25  ;;  %v2181_v17 = vadd.f32 %v2180_v16, %v7556_v54  ;;  %2448 = vst [vmem:[#allocation3 + $0x188] sm:$0xff] %v2252_v28  ;;  %v2254_v33 = vadd.f32 %v2253_v32, %v7559_v55 }
 0x30a   : > { %v2184_v34 = vpop.f32.mrf.mxu0  ;;  %v2257_v27 = vpop.f32.mrf.mxu1 }
 0x30b   : > { %2447 = vst [vmem:[#allocation3 + $0xc8] sm:$0xff] %v2181_v17  ;;  %v2185_v24 = vadd.f32 %v2184_v34, %v7550_v21  ;;  %2449 = vst [vmem:[#allocation3 + $0x38] sm:$0xff] %v2254_v33  ;;  %v2258_v11 = vadd.f32 %v2257_v27, %v7553_v30 }
 0x30c   : > { %v2186_v31 = vpop.f32.mrf.mxu0  ;;  %v2259_v35 = vpop.f32.mrf.mxu1 }
 0x30d   : > { %2454 = vst [vmem:[#allocation3 + $0x48] sm:$0xff] %v2185_v24  ;;  %v2187_v9 = vadd.f32 %v2186_v31, %v7556_v54  ;;  %2456 = vst [vmem:[#allocation3 + $0x170] sm:$0xff] %v2258_v11  ;;  %v2260_v19 = vadd.f32 %v2259_v35, %v7559_v55 }
 0x30e   : > { %v2188_v37 = vpop.f32.mrf.mxu0  ;;  %v2261_v39 = vpop.f32.mrf.mxu1 }
 0x30f   : > { %2455 = vst [vmem:[#allocation3 + $0x20] sm:$0xff] %v2187_v9  ;;  %v2189_v38 = vadd.f32 %v2188_v37, %v7550_v21  ;;  %2457 = vst [vmem:[#allocation3] sm:$0xff] %v2260_v19  ;;  %v2262_v40 = vadd.f32 %v2261_v39, %v7553_v30 }
 0x310   : > { %v2190_v42 = vpop.f32.mrf.mxu0  ;;  %v2263_v44 = vpop.f32.mrf.mxu1 }
 0x311   : > { %2462 = vst [vmem:[#allocation3 + $0x8] sm:$0xff] %v2189_v38  ;;  %v2191_v43 = vadd.f32 %v2190_v42, %v7556_v54  ;;  %2464 = vst [vmem:[#allocation3 + $0xa8] sm:$0xff] %v2262_v40  ;;  %v2264_v45 = vadd.f32 %v2263_v44, %v7559_v55 }
 0x312   : > { %v2194_v46 = vpop.f32.mrf.mxu0  ;;  %v2267_v48 = vpop.f32.mrf.mxu1 }
 0x313   : > { %2463 = vst [vmem:[#allocation3 + $0x130] sm:$0xff] %v2191_v43  ;;  %v2195_v47 = vadd.f32 %v2194_v46, %v7550_v21  ;;  %2465 = vst [vmem:[#allocation3 + $0x1d8] sm:$0xff] %v2264_v45  ;;  %v2268_v49 = vadd.f32 %v2267_v48, %v7553_v30 }
 0x314   : > { %v2196_v51 = vpop.f32.mrf.mxu0  ;;  %v2269_v61 = vpop.f32.mrf.mxu1 }
 0x315   : > { %2470 = vst [vmem:[#allocation3 + $0x1e8] sm:$0xff] %v2195_v47  ;;  %v2197_v41 = vadd.f32 %v2196_v51, %v7556_v54  ;;  %2472 = vst [vmem:[#allocation3 + $0x90] sm:$0xff] %v2268_v49  ;;  %v2270_v52 = vadd.f32 %v2269_v61, %v7559_v55 }
 0x316   : > { %v2198_v5 = vpop.f32.mrf.mxu0  ;;  %v2271_v36 = vpop.f32.mrf.mxu1 }
 0x317   : > { %2471 = vst [vmem:[#allocation3 + $0x28] sm:$0xff] %v2197_v41  ;;  %v2199_v53 = vadd.f32 %v2198_v5, %v7550_v21  ;;  %2473 = vst [vmem:[#allocation3 + $0x148] sm:$0xff] %v2270_v52  ;;  %v2272_v56 = vadd.f32 %v2271_v36, %v7553_v30  ;;  %v1432_v21 = vsub.s32 5, %v7543_v50  ;;  %v7598_v30 = vrot.slane %v7236_v0, %v1428_v62 }
 0x318   : > { %v2200_v57 = vpop.f32.mrf.mxu0  ;;  %v2273_v59 = vpop.f32.mrf.mxu1 }
 0x319   : > { %2478 = vst [vmem:[#allocation3 + $0x40] sm:$0xff] %v2199_v53  ;;  %v2201_v58 = vadd.f32 %v2200_v57, %v7556_v54  ;;  %2480 = vst [vmem:[#allocation3 + $0x160] sm:$0xff] %v2272_v56  ;;  %v2274_v60 = vadd.f32 %v2273_v59, %v7559_v55  ;;  %v7604_v54 = vrot.slane %v7236_v0, %v1432_v21 }
 0x31b   : > { %2479 = vst [vmem:[#allocation3 + $0x1b0] sm:$0xff] %v2201_v58  ;;  %2481 = vst [vmem:[#allocation3 + $0x118] sm:$0xff] %v2274_v60 }
 0x33a   : > { %v2310_v55 = vpop.f32.mrf.mxu0  ;;  %v2383_v4 = vpop.f32.mrf.mxu1 }
 0x33b   : > { %v2311_v3 = vadd.f32 %v2310_v55, %v7598_v30  ;;  %v2384_v6 = vadd.f32 %v2383_v4, %v7601_v1 }
 0x33c   : > { %v2312_v7 = vpop.f32.mrf.mxu0  ;;  %v2385_v8 = vpop.f32.mrf.mxu1 }
 0x33d   : > { %2426 = vst [vmem:[#allocation3 + $0xe8] sm:$0xff] %v2311_v3  ;;  %v2313_v50 = vadd.f32 %v2312_v7, %v7604_v54  ;;  %2428 = vst [vmem:[#allocation3 + $0xf0] sm:$0xff] %v2384_v6  ;;  %v2386_v10 = vadd.f32 %v2385_v8, %v7607_v2 }
 0x33e   : > { %v2314_v12 = vpop.f32.mrf.mxu0  ;;  %v2387_v14 = vpop.f32.mrf.mxu1 }
 0x33f   : > { %2427 = vst [vmem:[#allocation3 + $0x68] sm:$0xff] %v2313_v50  ;;  %v2315_v13 = vadd.f32 %v2314_v12, %v7598_v30  ;;  %2429 = vst [vmem:[#allocation3 + $0x120] sm:$0xff] %v2386_v10  ;;  %v2388_v0 = vadd.f32 %v2387_v14, %v7601_v1 }
 0x340   : > { %v2316_v15 = vpop.f32.mrf.mxu0  ;;  %v2389_v20 = vpop.f32.mrf.mxu1 }
 0x341   : > { %2434 = vst [vmem:[#allocation3 + $0x108] sm:$0xff] %v2315_v13  ;;  %v2317_v18 = vadd.f32 %v2316_v15, %v7604_v54  ;;  %2436 = vst [vmem:[#allocation3 + $0x1f8] sm:$0xff] %v2388_v0  ;;  %v2390_v22 = vadd.f32 %v2389_v20, %v7607_v2 }
 0x342   : > { %v2320_v23 = vpop.f32.mrf.mxu0  ;;  %v2393_v26 = vpop.f32.mrf.mxu1 }
 0x343   : > { %2435 = vst [vmem:[#allocation3 + $0x110] sm:$0xff] %v2317_v18  ;;  %v2321_v25 = vadd.f32 %v2320_v23, %v7598_v30  ;;  %2437 = vst [vmem:[#allocation3 + $0xb8] sm:$0xff] %v2390_v22  ;;  %v2394_v28 = vadd.f32 %v2393_v26, %v7601_v1 }
 0x344   : > { %v2322_v16 = vpop.f32.mrf.mxu0  ;;  %v2395_v32 = vpop.f32.mrf.mxu1 }
 0x345   : > { %2442 = vst [vmem:[#allocation3 + $0xd0] sm:$0xff] %v2321_v25  ;;  %v2323_v17 = vadd.f32 %v2322_v16, %v7604_v54  ;;  %2444 = vst [vmem:[#allocation3 + $0x60] sm:$0xff] %v2394_v28  ;;  %v2396_v33 = vadd.f32 %v2395_v32, %v7607_v2 }
 0x346   : > { %v2324_v34 = vpop.f32.mrf.mxu0  ;;  %v2397_v27 = vpop.f32.mrf.mxu1 }
 0x347   : > { %2443 = vst [vmem:[#allocation3 + $0x138] sm:$0xff] %v2323_v17  ;;  %v2325_v24 = vadd.f32 %v2324_v34, %v7598_v30  ;;  %2445 = vst [vmem:[#allocation3 + $0x1b8] sm:$0xff] %v2396_v33  ;;  %v2398_v11 = vadd.f32 %v2397_v27, %v7601_v1 }
 0x348   : > { %v2326_v31 = vpop.f32.mrf.mxu0  ;;  %v2399_v35 = vpop.f32.mrf.mxu1 }
 0x349   : > { %2450 = vst [vmem:[#allocation3 + $0x1a8] sm:$0xff] %v2325_v24  ;;  %v2327_v9 = vadd.f32 %v2326_v31, %v7604_v54  ;;  %2452 = vst [vmem:[#allocation3 + $0x98] sm:$0xff] %v2398_v11  ;;  %v2400_v19 = vadd.f32 %v2399_v35, %v7607_v2 }
 0x34a   : > { %v2330_v37 = vpop.f32.mrf.mxu0  ;;  %v2403_v39 = vpop.f32.mrf.mxu1 }
 0x34b   : > { %2451 = vst [vmem:[#allocation3 + $0x1e0] sm:$0xff] %v2327_v9  ;;  %v2331_v38 = vadd.f32 %v2330_v37, %v7598_v30  ;;  %2453 = vst [vmem:[#allocation3 + $0x178] sm:$0xff] %v2400_v19  ;;  %v2404_v40 = vadd.f32 %v2403_v39, %v7601_v1 }
 0x34c   : > { %v2332_v42 = vpop.f32.mrf.mxu0  ;;  %v2405_v44 = vpop.f32.mrf.mxu1 }
 0x34d   : > { %2458 = vst [vmem:[#allocation3 + $0xa0] sm:$0xff] %v2331_v38  ;;  %v2333_v43 = vadd.f32 %v2332_v42, %v7604_v54  ;;  %2460 = vst [vmem:[#allocation3 + $0x1a0] sm:$0xff] %v2404_v40  ;;  %v2406_v45 = vadd.f32 %v2405_v44, %v7607_v2 }
 0x34e   : > { %v2334_v46 = vpop.f32.mrf.mxu0  ;;  %v2407_v48 = vpop.f32.mrf.mxu1 }
 0x34f   : > { %2459 = vst [vmem:[#allocation3 + $0x10] sm:$0xff] %v2333_v43  ;;  %v2335_v47 = vadd.f32 %v2334_v46, %v7598_v30  ;;  %2461 = vst [vmem:[#allocation3 + $0x1c8] sm:$0xff] %v2406_v45  ;;  %v2408_v49 = vadd.f32 %v2407_v48, %v7601_v1 }
 0x350   : > { %v2336_v51 = vpop.f32.mrf.mxu0  ;;  %v2409_v61 = vpop.f32.mrf.mxu1 }
 0x351   : > { %2466 = vst [vmem:[#allocation3 + $0x70] sm:$0xff] %v2335_v47  ;;  %v2337_v41 = vadd.f32 %v2336_v51, %v7604_v54  ;;  %2468 = vst [vmem:[#allocation3 + $0xf8] sm:$0xff] %v2408_v49  ;;  %v2410_v52 = vadd.f32 %v2409_v61, %v7607_v2 }
 0x352   : > { %v2340_v5 = vpop.f32.mrf.mxu0  ;;  %v2413_v36 = vpop.f32.mrf.mxu1 }
 0x353   : > { %2467 = vst [vmem:[#allocation3 + $0x50] sm:$0xff] %v2337_v41  ;;  %v2341_v53 = vadd.f32 %v2340_v5, %v7598_v30  ;;  %2469 = vst [vmem:[#allocation3 + $0x168] sm:$0xff] %v2410_v52  ;;  %v2414_v56 = vadd.f32 %v2413_v36, %v7601_v1 }
 0x354   : > { %v2342_v57 = vpop.f32.mrf.mxu0  ;;  %v2415_v59 = vpop.f32.mrf.mxu1 }
 0x355   : > { %2474 = vst [vmem:[#allocation3 + $0x58] sm:$0xff] %v2341_v53  ;;  %v2343_v58 = vadd.f32 %v2342_v57, %v7604_v54  ;;  %2476 = vst [vmem:[#allocation3 + $0x128] sm:$0xff] %v2414_v56  ;;  %v2416_v60 = vadd.f32 %v2415_v59, %v7607_v2 }
 0x356   : > { %v2344_v62 = vpop.f32.mrf.mxu0  ;;  %v2417_v21 = vpop.f32.mrf.mxu1 }
 0x357   : > { %2475 = vst [vmem:[#allocation3 + $0x1d0] sm:$0xff] %v2343_v58  ;;  %v2345_v63 = vadd.f32 %v2344_v62, %v7598_v30  ;;  %2477 = vst [vmem:[#allocation3 + $0x1f0] sm:$0xff] %v2416_v60  ;;  %v2418_v29 = vadd.f32 %v2417_v21, %v7601_v1 }
 0x358   : > { %v2346_v55 = vpop.f32.mrf.mxu0  ;;  %v2419_v4 = vpop.f32.mrf.mxu1 }
 0x359   : > { %2482 = vst [vmem:[#allocation3 + $0x78] sm:$0xff] %v2345_v63  ;;  %v2347_v3 = vadd.f32 %v2346_v55, %v7604_v54  ;;  %2484 = vst [vmem:[#allocation3 + $0xc0] sm:$0xff] %v2418_v29  ;;  %v2420_v6 = vadd.f32 %v2419_v4, %v7607_v2 }
 0x35b   : > { %2483 = vst [vmem:[#allocation3 + $0x80] sm:$0xff] %v2347_v3  ;;  %2485 = vst [vmem:[#allocation3 + $0x198] sm:$0xff] %v2420_v6 }
 0x35c PF: > { %v2542_v30 = vld [vmem:[%s7222_s23 + $0x1c0] sm:$0xff]  ;;  %v2543_v7 = vld [vmem:[%s7222_s23 + $0x1c8] sm:$0xff]  ;;  %v9238_v12 = vmov 0   ;;  %p6076_p9 = scmp.ne.s32.totalorder %s6985_s12, 3 }
 0x35d   : > { %v2546_v1 = vld [vmem:[%s7222_s23 + $0x1e0] sm:$0xff]  ;;  %v2547_v50 = vld [vmem:[%s7222_s23 + $0x1e8] sm:$0xff]  ;;  %3294 = vmatprep.mubr.bf16.mxu0 %v9238_v12  ;;  %3335 = vmatprep.mubr.bf16.mxu1 %v9238_v12  ;;  %s10249_s1 = sld [smem:[#allocation154_spill]] (!%p6076_p9) }
 0x35e   : > { %v7644_v54 = vcombine.high %v2542_v30, %v2546_v1  ;;  %v7647_v2 = vcombine.low %v2542_v30, %v2546_v1  ;;  %v2534_v8 = vld [vmem:[%s7222_s23 + $0x180] sm:$0xff]  ;;  %v7653_v13 = vcombine.high %v2543_v7, %v2547_v50  ;;  %v7655_v14 = vcombine.low %v2543_v7, %v2547_v50  ;;  %v2535_v15 = vld [vmem:[%s7222_s23 + $0x188] sm:$0xff] }
 0x35f   : > { %v2538_v10 = vld [vmem:[%s7222_s23 + $0x1a0] sm:$0xff]  ;;  %v2539_v18 = vld [vmem:[%s7222_s23 + $0x1a8] sm:$0xff] }
 0x360   : > { %9542 = vst [vmem:[#allocation25_spill] sm:$0xff] %v7644_v54  ;;  %9543 = vst [vmem:[#allocation26_spill] sm:$0xff] %v7647_v2  ;;  %v7657_v0 = vcombine.high %v2534_v8, %v2538_v10  ;;  %v2526_v20 = vld [vmem:[%s7222_s23 + $0x140] sm:$0xff]  ;;  %3262 = vmatprep.subr.bf16.mxu0 %v7644_v54  ;;  %v7663_v22 = vcombine.high %v2535_v15, %v2539_v18  ;;  %v2527_v25 = vld [vmem:[%s7222_s23 + $0x148] sm:$0xff]  ;;  %3303 = vmatprep.subr.bf16.mxu1 %v7653_v13 }
 0x361   : > { %9544 = vst [vmem:[#allocation27_spill] sm:$0xff] %v7653_v13  ;;  %9545 = vst [vmem:[#allocation28_spill] sm:$0xff] %v7655_v14  ;;  %v2530_v23 = vld [vmem:[%s7222_s23 + $0x160] sm:$0xff]  ;;  %v2531_v26 = vld [vmem:[%s7222_s23 + $0x168] sm:$0xff]  ;;  %3263 = vmatpush1.bf16.msra.mxu0 %v7647_v2  ;;  %v7670_v28 = vcombine.low %v2534_v8, %v2538_v10  ;;  %3304 = vmatpush1.bf16.msra.mxu1 %v7655_v14  ;;  %v7674_v16 = vcombine.low %v2535_v15, %v2539_v18 }
 0x362   : > { %9546 = vst [vmem:[#allocation29_spill] sm:$0xff] %v7657_v0  ;;  %9547 = vst [vmem:[#allocation30_spill] sm:$0xff] %v7663_v22  ;;  %3264 = vmatprep.subr.bf16.mxu0 %v7657_v0  ;;  %v7676_v17 = vcombine.high %v2526_v20, %v2530_v23  ;;  %3305 = vmatprep.subr.bf16.mxu1 %v7663_v22  ;;  %v7679_v32 = vcombine.high %v2527_v25, %v2531_v26  ;;  %v2518_v33 = vld [vmem:[%s7222_s23 + $0x100] sm:$0xff]  ;;  %v2519_v24 = vld [vmem:[%s7222_s23 + $0x108] sm:$0xff] }
 0x363   : > { %9548 = vst [vmem:[#allocation31_spill] sm:$0xff] %v7670_v28  ;;  %9549 = vst [vmem:[#allocation32_spill] sm:$0xff] %v7674_v16  ;;  %v2522_v34 = vld [vmem:[%s7222_s23 + $0x120] sm:$0xff]  ;;  %v2523_v27 = vld [vmem:[%s7222_s23 + $0x128] sm:$0xff]  ;;  %v7686_v11 = vcombine.low %v2526_v20, %v2530_v23  ;;  %v7690_v31 = vcombine.low %v2527_v25, %v2531_v26 }
 0x364   : > { %9550 = vst [vmem:[#allocation33_spill] sm:$0xff] %v7676_v17  ;;  %9551 = vst [vmem:[#allocation34_spill] sm:$0xff] %v7679_v32  ;;  %v7692_v9 = vcombine.high %v2518_v33, %v2522_v34  ;;  %v7695_v35 = vcombine.high %v2519_v24, %v2523_v27  ;;  %v2510_v19 = vld [vmem:[%s7222_s23 + $0xc0] sm:$0xff]  ;;  %v2511_v38 = vld [vmem:[%s7222_s23 + $0xc8] sm:$0xff]  ;;  %v7702_v40 = vcombine.low %v2518_v33, %v2522_v34 }
 0x365   : > { %3265 = vmatpush1.bf16.msra.mxu0 %v7670_v28  ;;  %9552 = vst [vmem:[#allocation35_spill] sm:$0xff] %v7686_v11  ;;  %3306 = vmatpush1.bf16.msra.mxu1 %v7674_v16  ;;  %9553 = vst [vmem:[#allocation36_spill] sm:$0xff] %v7690_v31  ;;  %v2514_v37 = vld [vmem:[%s7222_s23 + $0xe0] sm:$0xff]  ;;  %v2515_v39 = vld [vmem:[%s7222_s23 + $0xe8] sm:$0xff]  ;;  %v7706_v42 = vcombine.low %v2519_v24, %v2523_v27 }
 0x366   : > { %3266 = vmatprep.subr.bf16.mxu0 %v7676_v17  ;;  %9554 = vst [vmem:[#allocation37_spill] sm:$0xff] %v7692_v9  ;;  %3307 = vmatprep.subr.bf16.mxu1 %v7679_v32  ;;  %9555 = vst [vmem:[#allocation38_spill] sm:$0xff] %v7695_v35  ;;  %v7708_v43 = vcombine.high %v2510_v19, %v2514_v37  ;;  %v7711_v44 = vcombine.high %v2511_v38, %v2515_v39  ;;  %v2502_v45 = vld [vmem:[%s7222_s23 + $0x80] sm:$0xff]  ;;  %v2503_v47 = vld [vmem:[%s7222_s23 + $0x88] sm:$0xff] }
 0x367   : > { %9556 = vst [vmem:[#allocation39_spill] sm:$0xff] %v7702_v40  ;;  %9557 = vst [vmem:[#allocation40_spill] sm:$0xff] %v7706_v42  ;;  %v2506_v46 = vld [vmem:[%s7222_s23 + $0xa0] sm:$0xff]  ;;  %v2507_v48 = vld [vmem:[%s7222_s23 + $0xa8] sm:$0xff]  ;;  %v7718_v49 = vcombine.low %v2510_v19, %v2514_v37  ;;  %v7722_v51 = vcombine.low %v2511_v38, %v2515_v39 }
 0x368   : > { %9558 = vst [vmem:[#allocation41_spill] sm:$0xff] %v7708_v43  ;;  %9559 = vst [vmem:[#allocation42_spill] sm:$0xff] %v7711_v44  ;;  %v7724_v41 = vcombine.high %v2502_v45, %v2506_v46  ;;  %v7727_v61 = vcombine.high %v2503_v47, %v2507_v48  ;;  %v2494_v52 = vld [vmem:[%s7222_s23 + $0x40] sm:$0xff]  ;;  %v2495_v53 = vld [vmem:[%s7222_s23 + $0x48] sm:$0xff]  ;;  %v7734_v56 = vcombine.low %v2502_v45, %v2506_v46 }
 0x369   : > { %3267 = vmatpush1.bf16.msra.mxu0 %v7686_v11  ;;  %3308 = vmatpush1.bf16.msra.mxu1 %v7690_v31  ;;  %9560 = vst [vmem:[#allocation43_spill] sm:$0xff] %v7718_v49  ;;  %9561 = vst [vmem:[#allocation44_spill] sm:$0xff] %v7722_v51  ;;  %v2498_v5 = vld [vmem:[%s7222_s23 + $0x60] sm:$0xff]  ;;  %v2499_v36 = vld [vmem:[%s7222_s23 + $0x68] sm:$0xff]  ;;  %v7738_v57 = vcombine.low %v2503_v47, %v2507_v48 }
 0x36a   : > { %3268 = vmatprep.subr.bf16.mxu0 %v7692_v9  ;;  %3309 = vmatprep.subr.bf16.mxu1 %v7695_v35  ;;  %9562 = vst [vmem:[#allocation45_spill] sm:$0xff] %v7724_v41  ;;  %9563 = vst [vmem:[#allocation46_spill] sm:$0xff] %v7727_v61  ;;  %v7740_v58 = vcombine.high %v2494_v52, %v2498_v5  ;;  %v7743_v59 = vcombine.high %v2495_v53, %v2499_v36  ;;  %v2486_v60 = vld [vmem:[%s7222_s23] sm:$0xff]  ;;  %v2487_v63 = vld [vmem:[%s7222_s23 + $0x8] sm:$0xff] }
 0x36b   : > { %9564 = vst [vmem:[#allocation47_spill] sm:$0xff] %v7734_v56  ;;  %9565 = vst [vmem:[#allocation48_spill] sm:$0xff] %v7738_v57  ;;  %v2490_v62 = vld [vmem:[%s7222_s23 + $0x20] sm:$0xff]  ;;  %v2491_v21 = vld [vmem:[%s7222_s23 + $0x28] sm:$0xff]  ;;  %v7750_v29 = vcombine.low %v2494_v52, %v2498_v5  ;;  %v7754_v55 = vcombine.low %v2495_v53, %v2499_v36 }
 0x36c   : > { %9566 = vst [vmem:[#allocation49_spill] sm:$0xff] %v7740_v58  ;;  %9567 = vst [vmem:[#allocation50_spill] sm:$0xff] %v7743_v59  ;;  %v7756_v3 = vcombine.high %v2486_v60, %v2490_v62  ;;  %v7759_v4 = vcombine.high %v2487_v63, %v2491_v21  ;;  %v2606_v6 = vld [vmem:[%s7222_s23 + $0x3c0] sm:$0xff]  ;;  %v2607_v1 = vld [vmem:[%s7222_s23 + $0x3c8] sm:$0xff]  ;;  %v7766_v50 = vcombine.low %v2486_v60, %v2490_v62 }
 0x36d   : > { %3269 = vmatpush1.bf16.msra.mxu0 %v7702_v40  ;;  %3310 = vmatpush1.bf16.msra.mxu1 %v7706_v42  ;;  %9568 = vst [vmem:[#allocation51_spill] sm:$0xff] %v7750_v29  ;;  %9569 = vst [vmem:[#allocation52_spill] sm:$0xff] %v7754_v55  ;;  %v2610_v30 = vld [vmem:[%s7222_s23 + $0x3e0] sm:$0xff]  ;;  %v2611_v7 = vld [vmem:[%s7222_s23 + $0x3e8] sm:$0xff]  ;;  %v7770_v8 = vcombine.low %v2487_v63, %v2491_v21 }
 0x36e   : > { %3270 = vmatprep.subr.bf16.mxu0 %v7708_v43  ;;  %3311 = vmatprep.subr.bf16.mxu1 %v7711_v44  ;;  %9570 = vst [vmem:[#allocation53_spill] sm:$0xff] %v7756_v3  ;;  %9571 = vst [vmem:[#allocation54_spill] sm:$0xff] %v7759_v4  ;;  %v7772_v10 = vcombine.high %v2606_v6, %v2610_v30  ;;  %v7775_v15 = vcombine.high %v2607_v1, %v2611_v7  ;;  %v2598_v18 = vld [vmem:[%s7222_s23 + $0x380] sm:$0xff]  ;;  %v2599_v23 = vld [vmem:[%s7222_s23 + $0x388] sm:$0xff] }
 0x36f   : > { %9572 = vst [vmem:[#allocation55_spill] sm:$0xff] %v7766_v50  ;;  %9573 = vst [vmem:[#allocation56_spill] sm:$0xff] %v7770_v8  ;;  %v2602_v20 = vld [vmem:[%s7222_s23 + $0x3a0] sm:$0xff]  ;;  %v2603_v25 = vld [vmem:[%s7222_s23 + $0x3a8] sm:$0xff]  ;;  %v7782_v26 = vcombine.low %v2606_v6, %v2610_v30  ;;  %v7786_v33 = vcombine.low %v2607_v1, %v2611_v7 }
 0x370   : > { %9574 = vst [vmem:[#allocation57_spill] sm:$0xff] %v7772_v10  ;;  %9575 = vst [vmem:[#allocation58_spill] sm:$0xff] %v7775_v15  ;;  %v7788_v34 = vcombine.high %v2598_v18, %v2602_v20  ;;  %v7791_v24 = vcombine.high %v2599_v23, %v2603_v25  ;;  %v2590_v27 = vld [vmem:[%s7222_s23 + $0x340] sm:$0xff]  ;;  %v2591_v37 = vld [vmem:[%s7222_s23 + $0x348] sm:$0xff]  ;;  %v7798_v39 = vcombine.low %v2598_v18, %v2602_v20 }
 0x371   : > { %3271 = vmatpush1.bf16.msra.mxu0 %v7718_v49  ;;  %3312 = vmatpush1.bf16.msra.mxu1 %v7722_v51  ;;  %9576 = vst [vmem:[#allocation59_spill] sm:$0xff] %v7782_v26  ;;  %9577 = vst [vmem:[#allocation60_spill] sm:$0xff] %v7786_v33  ;;  %v2594_v19 = vld [vmem:[%s7222_s23 + $0x360] sm:$0xff]  ;;  %v2595_v38 = vld [vmem:[%s7222_s23 + $0x368] sm:$0xff]  ;;  %v7802_v45 = vcombine.low %v2599_v23, %v2603_v25 }
 0x372   : > { %3272 = vmatprep.subr.bf16.mxu0 %v7724_v41  ;;  %3313 = vmatprep.subr.bf16.mxu1 %v7727_v61  ;;  %9578 = vst [vmem:[#allocation61_spill] sm:$0xff] %v7788_v34  ;;  %9579 = vst [vmem:[#allocation62_spill] sm:$0xff] %v7791_v24  ;;  %v7804_v46 = vcombine.high %v2590_v27, %v2594_v19  ;;  %v7807_v47 = vcombine.high %v2591_v37, %v2595_v38  ;;  %v2582_v48 = vld [vmem:[%s7222_s23 + $0x300] sm:$0xff]  ;;  %v2583_v5 = vld [vmem:[%s7222_s23 + $0x308] sm:$0xff] }
 0x373   : > { %9580 = vst [vmem:[#allocation63_spill] sm:$0xff] %v7798_v39  ;;  %9581 = vst [vmem:[#allocation64_spill] sm:$0xff] %v7802_v45  ;;  %v2586_v52 = vld [vmem:[%s7222_s23 + $0x320] sm:$0xff]  ;;  %v2587_v53 = vld [vmem:[%s7222_s23 + $0x328] sm:$0xff]  ;;  %v7814_v36 = vcombine.low %v2590_v27, %v2594_v19  ;;  %v7818_v60 = vcombine.low %v2591_v37, %v2595_v38 }
 0x374   : > { %9582 = vst [vmem:[#allocation65_spill] sm:$0xff] %v7804_v46  ;;  %9583 = vst [vmem:[#allocation66_spill] sm:$0xff] %v7807_v47  ;;  %v7820_v62 = vcombine.high %v2582_v48, %v2586_v52  ;;  %v7823_v63 = vcombine.high %v2583_v5, %v2587_v53  ;;  %v2574_v21 = vld [vmem:[%s7222_s23 + $0x2c0] sm:$0xff]  ;;  %v2575_v30 = vld [vmem:[%s7222_s23 + $0x2c8] sm:$0xff]  ;;  %v7830_v7 = vcombine.low %v2582_v48, %v2586_v52 }
 0x375   : > { %3273 = vmatpush1.bf16.msra.mxu0 %v7734_v56  ;;  %3314 = vmatpush1.bf16.msra.mxu1 %v7738_v57  ;;  %9584 = vst [vmem:[#allocation67_spill] sm:$0xff] %v7814_v36  ;;  %9585 = vst [vmem:[#allocation68_spill] sm:$0xff] %v7818_v60  ;;  %v2578_v6 = vld [vmem:[%s7222_s23 + $0x2e0] sm:$0xff]  ;;  %v2579_v1 = vld [vmem:[%s7222_s23 + $0x2e8] sm:$0xff]  ;;  %v7834_v18 = vcombine.low %v2583_v5, %v2587_v53 }
 0x376   : > { %3274 = vmatprep.subr.bf16.mxu0 %v7740_v58  ;;  %3315 = vmatprep.subr.bf16.mxu1 %v7743_v59  ;;  %9586 = vst [vmem:[#allocation69_spill] sm:$0xff] %v7820_v62  ;;  %9587 = vst [vmem:[#allocation70_spill] sm:$0xff] %v7823_v63  ;;  %v7836_v20 = vcombine.high %v2574_v21, %v2578_v6  ;;  %v7839_v23 = vcombine.high %v2575_v30, %v2579_v1  ;;  %v2566_v25 = vld [vmem:[%s7222_s23 + $0x280] sm:$0xff]  ;;  %v2567_v19 = vld [vmem:[%s7222_s23 + $0x288] sm:$0xff] }
 0x377   : > { %9588 = vst [vmem:[#allocation71_spill] sm:$0xff] %v7830_v7  ;;  %9589 = vst [vmem:[#allocation72_spill] sm:$0xff] %v7834_v18  ;;  %v2570_v27 = vld [vmem:[%s7222_s23 + $0x2a0] sm:$0xff]  ;;  %v2571_v37 = vld [vmem:[%s7222_s23 + $0x2a8] sm:$0xff]  ;;  %v7846_v38 = vcombine.low %v2574_v21, %v2578_v6  ;;  %v7850_v48 = vcombine.low %v2575_v30, %v2579_v1 }
 0x378   : > { %9590 = vst [vmem:[#allocation73_spill] sm:$0xff] %v7836_v20  ;;  %9591 = vst [vmem:[#allocation74_spill] sm:$0xff] %v7839_v23  ;;  %v7852_v52 = vcombine.high %v2566_v25, %v2570_v27  ;;  %v7855_v5 = vcombine.high %v2567_v19, %v2571_v37  ;;  %v2558_v53 = vld [vmem:[%s7222_s23 + $0x240] sm:$0xff]  ;;  %v2559_v21 = vld [vmem:[%s7222_s23 + $0x248] sm:$0xff]  ;;  %v7866_v30 = vcombine.low %v2567_v19, %v2571_v37 }
 0x379   : > { %3275 = vmatpush1.bf16.msra.mxu0 %v7750_v29  ;;  %3316 = vmatpush1.bf16.msra.mxu1 %v7754_v55  ;;  %9592 = vst [vmem:[#allocation75_spill] sm:$0xff] %v7846_v38  ;;  %9593 = vst [vmem:[#allocation76_spill] sm:$0xff] %v7850_v48  ;;  %v2562_v12 = vld [vmem:[%s7222_s23 + $0x260] sm:$0xff]  ;;  %v2563_v6 = vld [vmem:[%s7222_s23 + $0x268] sm:$0xff] }
 0x37a   : > { %3276 = vmatprep.subr.bf16.mxu0 %v7756_v3  ;;  %3317 = vmatprep.subr.bf16.mxu1 %v7759_v4  ;;  %9594 = vst [vmem:[#allocation77_spill] sm:$0xff] %v7852_v52  ;;  %9595 = vst [vmem:[#allocation78_spill] sm:$0xff] %v7855_v5  ;;  %v7868_v1 = vcombine.high %v2558_v53, %v2562_v12  ;;  %v7882_v19 = vcombine.low %v2559_v21, %v2563_v6 }
 0x37b   : > { %9597 = vst [vmem:[#allocation80_spill] sm:$0xff] %v7866_v30 }
 0x37c   : > { %9598 = vst [vmem:[#allocation81_spill] sm:$0xff] %v7868_v1  ;;  %9601 = vst [vmem:[#allocation84_spill] sm:$0xff] %v7882_v19 }
 0x37d   : > { %3277 = vmatpush1.bf16.msra.mxu0 %v7766_v50  ;;  %3318 = vmatpush1.bf16.msra.mxu1 %v7770_v8 }
 0x37e   : > { %3278 = vmatprep.subr.bf16.mxu0 %v7772_v10  ;;  %3319 = vmatprep.subr.bf16.mxu1 %v7775_v15 }
 0x381   : > { %3279 = vmatpush2.bf16.msra.mxu0 %v7782_v26  ;;  %3320 = vmatpush2.bf16.msra.mxu1 %v7786_v33 }
 0x382   : > { %3280 = vmatprep.subr.bf16.mxu0 %v7788_v34  ;;  %3321 = vmatprep.subr.bf16.mxu1 %v7791_v24 }
 0x385   : > { %3281 = vmatpush2.bf16.msra.mxu0 %v7798_v39  ;;  %3322 = vmatpush2.bf16.msra.mxu1 %v7802_v45 }
 0x386   : > { %3282 = vmatprep.subr.bf16.mxu0 %v7804_v46  ;;  %3323 = vmatprep.subr.bf16.mxu1 %v7807_v47 }
 0x389   : > { %3283 = vmatpush2.bf16.msra.mxu0 %v7814_v36  ;;  %3324 = vmatpush2.bf16.msra.mxu1 %v7818_v60  ;;  %v2557_v60 = vld [vmem:[%s7222_s23 + $0x238] sm:$0xff] }
 0x38a   : > { %3284 = vmatprep.subr.bf16.mxu0 %v7820_v62  ;;  %3325 = vmatprep.subr.bf16.mxu1 %v7823_v63  ;;  %v9612_v63 = vmov 0   ;;  %v2553_v62 = vld [vmem:[%s7222_s23 + $0x218] sm:$0xff] }
 0x38d   : > { %3285 = vmatpush2.bf16.msra.mxu0 %v7830_v7  ;;  %3326 = vmatpush2.bf16.msra.mxu1 %v7834_v18  ;;  %v7862_v18 = vcombine.low %v2566_v25, %v2570_v27  ;;  %v2551_v25 = vld [vmem:[%s7222_s23 + $0x208] sm:$0xff]  ;;  %v2532_v7 = vld [vmem:[%s7222_s23 + $0x170] sm:$0xff] }
 0x38e   : > { %3286 = vmatprep.subr.bf16.mxu0 %v7836_v20  ;;  %3327 = vmatprep.subr.bf16.mxu1 %v7839_v23  ;;  %v7871_v23 = vcombine.high %v2559_v21, %v2563_v6  ;;  %v2550_v20 = vld [vmem:[%s7222_s23 + $0x200] sm:$0xff]  ;;  %v2555_v27 = vld [vmem:[%s7222_s23 + $0x228] sm:$0xff] }
 0x38f   : > { %9596 = vst [vmem:[#allocation79_spill] sm:$0xff] %v7862_v18  ;;  %v7898_v21 = vcombine.low %v2551_v25, %v2555_v27 }
 0x390   : > { %9599 = vst [vmem:[#allocation82_spill] sm:$0xff] %v7871_v23 }
 0x391   : > { %3287 = vmatpush2.bf16.msra.mxu0 %v7846_v38  ;;  %3328 = vmatpush2.bf16.msra.mxu1 %v7850_v48  ;;  %v2554_v38 = vld [vmem:[%s7222_s23 + $0x220] sm:$0xff]  ;;  %v7878_v48 = vcombine.low %v2558_v53, %v2562_v12  ;;  %v2545_v12 = vld [vmem:[%s7222_s23 + $0x1d8] sm:$0xff]  ;;  %9605 = vst [vmem:[#allocation88_spill] sm:$0xff] %v7898_v21 }
 0x392   : > { %3288 = vmatprep.subr.bf16.mxu0 %v7852_v52  ;;  %3329 = vmatprep.subr.bf16.mxu1 %v7855_v5  ;;  %v7884_v37 = vcombine.high %v2550_v20, %v2554_v38  ;;  %v7887_v5 = vcombine.high %v2551_v25, %v2555_v27  ;;  %v2544_v52 = vld [vmem:[%s7222_s23 + $0x1d0] sm:$0xff]  ;;  %v2549_v53 = vld [vmem:[%s7222_s23 + $0x1f8] sm:$0xff] }
 0x393   : > { %9600 = vst [vmem:[#allocation83_spill] sm:$0xff] %v7878_v48  ;;  %v7914_v25 = vcombine.low %v2545_v12, %v2549_v53 }
 0x394   : > { %9602 = vst [vmem:[#allocation85_spill] sm:$0xff] %v7884_v37  ;;  %9603 = vst [vmem:[#allocation86_spill] sm:$0xff] %v7887_v5 }
 0x395   : > { %3289 = vmatpush2.bf16.msra.mxu0 %v7862_v18  ;;  %3330 = vmatpush2.bf16.msra.mxu1 %v7866_v30  ;;  %v2548_v18 = vld [vmem:[%s7222_s23 + $0x1f0] sm:$0xff]  ;;  %v7894_v30 = vcombine.low %v2550_v20, %v2554_v38  ;;  %v2537_v20 = vld [vmem:[%s7222_s23 + $0x198] sm:$0xff]  ;;  %9609 = vst [vmem:[#allocation92_spill] sm:$0xff] %v7914_v25 }
 0x396   : > { %3290 = vmatprep.subr.bf16.mxu0 %v7868_v1  ;;  %3331 = vmatprep.subr.bf16.mxu1 %v7871_v23  ;;  %v7900_v6 = vcombine.high %v2544_v52, %v2548_v18  ;;  %v7903_v23 = vcombine.high %v2545_v12, %v2549_v53  ;;  %v2536_v1 = vld [vmem:[%s7222_s23 + $0x190] sm:$0xff]  ;;  %v2541_v38 = vld [vmem:[%s7222_s23 + $0x1b8] sm:$0xff] }
 0x397   : > { %9604 = vst [vmem:[#allocation87_spill] sm:$0xff] %v7894_v30  ;;  %v7932_v53 = vcombine.low %v2537_v20, %v2541_v38 }
 0x398   : > { %9606 = vst [vmem:[#allocation89_spill] sm:$0xff] %v7900_v6  ;;  %9607 = vst [vmem:[#allocation90_spill] sm:$0xff] %v7903_v23 }
 0x399   : > { %3291 = vmatpush2.bf16.msra.mxu0 %v7878_v48  ;;  %3332 = vmatpush2.bf16.msra.mxu1 %v7882_v19  ;;  %v2540_v48 = vld [vmem:[%s7222_s23 + $0x1b0] sm:$0xff]  ;;  %v7910_v19 = vcombine.low %v2544_v52, %v2548_v18  ;;  %v2529_v18 = vld [vmem:[%s7222_s23 + $0x158] sm:$0xff]  ;;  %9614 = vst [vmem:[#allocation96_spill] sm:$0xff] %v7932_v53 }
 0x39a   : > { %3292 = vmatprep.subr.bf16.mxu0 %v7884_v37  ;;  %3333 = vmatprep.subr.bf16.mxu1 %v7887_v5  ;;  %v7916_v27 = vcombine.high %v2536_v1, %v2540_v48  ;;  %v7919_v5 = vcombine.high %v2537_v20, %v2541_v38  ;;  %v2528_v37 = vld [vmem:[%s7222_s23 + $0x150] sm:$0xff]  ;;  %v2533_v52 = vld [vmem:[%s7222_s23 + $0x178] sm:$0xff]  ;;  %v7928_v12 = vcombine.low %v2536_v1, %v2540_v48 }
 0x39b   : > { %9608 = vst [vmem:[#allocation91_spill] sm:$0xff] %v7910_v19  ;;  %v2521_v48 = vld [vmem:[%s7222_s23 + $0x118] sm:$0xff]  ;;  %v7946_v20 = vcombine.low %v2528_v37, %v2532_v7  ;;  %v7950_v38 = vcombine.low %v2529_v18, %v2533_v52 }
 0x39c   : > { %9610 = vst [vmem:[#allocation93_spill] sm:$0xff] %v7916_v27  ;;  %9611 = vst [vmem:[#allocation94_spill] sm:$0xff] %v7919_v5  ;;  %v2525_v1 = vld [vmem:[%s7222_s23 + $0x138] sm:$0xff] }
 0x39d   : > { %3293 = vmatpush2.bf16.msra.mxu0 %v7894_v30  ;;  %3334 = vmatpush2.bf16.msra.mxu1 %v7898_v21  ;;  %9613 = vst [vmem:[#allocation95_spill] sm:$0xff] %v7928_v12  ;;  %v2520_v21 = vld [vmem:[%s7222_s23 + $0x110] sm:$0xff]  ;;  %9617 = vst [vmem:[#allocation99_spill] sm:$0xff] %v7946_v20 }
 0x39e   : > { %3344 = vmatprep.subr.bf16.mxu0 %v7900_v6  ;;  %3385 = vmatprep.subr.bf16.mxu1 %v7903_v23  ;;  %v7934_v23 = vcombine.high %v2528_v37, %v2532_v7  ;;  %v7937_v6 = vcombine.high %v2529_v18, %v2533_v52  ;;  %v2524_v30 = vld [vmem:[%s7222_s23 + $0x130] sm:$0xff]  ;;  %9618 = vst [vmem:[#allocation100_spill] sm:$0xff] %v7950_v38  ;;  %v2513_v7 = vld [vmem:[%s7222_s23 + $0xd8] sm:$0xff] }
 0x39f   : > { %v2517_v37 = vld [vmem:[%s7222_s23 + $0xf8] sm:$0xff]  ;;  %v7966_v18 = vcombine.low %v2521_v48, %v2525_v1 }
 0x3a0   : > { %3295 = vmatmul.mubr.bf16.vlgmr.msra.gmra.mxu0 %v9612_v63  ;;  %3336 = vmatmul.mubr.bf16.vlgmr.msra.gmra.mxu1 %v9612_v63  ;;  %9615 = vst [vmem:[#allocation97_spill] sm:$0xff] %v7934_v23  ;;  %9616 = vst [vmem:[#allocation98_spill] sm:$0xff] %v7937_v6 }
 0x3a1   : > { %3345 = vmatpush1.bf16.msra.mxu0 %v7910_v19  ;;  %3386 = vmatpush1.bf16.msra.mxu1 %v7914_v25  ;;  %v2512_v25 = vld [vmem:[%s7222_s23 + $0xd0] sm:$0xff]  ;;  %9622 = vst [vmem:[#allocation104_spill] sm:$0xff] %v7966_v18 }
 0x3a2   : > { %3346 = vmatprep.subr.bf16.mxu0 %v7916_v27  ;;  %3387 = vmatprep.subr.bf16.mxu1 %v7919_v5  ;;  %v7952_v5 = vcombine.high %v2520_v21, %v2524_v30  ;;  %v7955_v27 = vcombine.high %v2521_v48, %v2525_v1  ;;  %v7982_v48 = vcombine.low %v2513_v7, %v2517_v37  ;;  %v2556_v19 = vld [vmem:[%s7222_s23 + $0x230] sm:$0xff] }
 0x3a3   : > { %3376 = vmatprep.mubr.bf16.mxu0 %v9612_v63  ;;  %3417 = vmatprep.mubr.bf16.mxu1 %v9612_v63 }
 0x3a4   : > { %9619 = vst [vmem:[#allocation101_spill] sm:$0xff] %v7952_v5  ;;  %9620 = vst [vmem:[#allocation102_spill] sm:$0xff] %v7955_v27 }
 0x3a5   : > { %3347 = vmatpush1.bf16.msra.mxu0 %v7928_v12  ;;  %3388 = vmatpush1.bf16.msra.mxu1 %v7932_v53  ;;  %v2516_v12 = vld [vmem:[%s7222_s23 + $0xf0] sm:$0xff]  ;;  %v7962_v53 = vcombine.low %v2520_v21, %v2524_v30  ;;  %v2505_v30 = vld [vmem:[%s7222_s23 + $0x98] sm:$0xff]  ;;  %9626 = vst [vmem:[#allocation108_spill] sm:$0xff] %v7982_v48 }
 0x3a6   : > { %3348 = vmatprep.subr.bf16.mxu0 %v7934_v23  ;;  %3389 = vmatprep.subr.bf16.mxu1 %v7937_v6  ;;  %v7968_v52 = vcombine.high %v2512_v25, %v2516_v12  ;;  %v7971_v6 = vcombine.high %v2513_v7, %v2517_v37  ;;  %v2504_v23 = vld [vmem:[%s7222_s23 + $0x90] sm:$0xff]  ;;  %v2509_v21 = vld [vmem:[%s7222_s23 + $0xb8] sm:$0xff] }
 0x3a7   : > { %9621 = vst [vmem:[#allocation103_spill] sm:$0xff] %v7962_v53  ;;  %v7998_v7 = vcombine.low %v2505_v30, %v2509_v21 }
 0x3a8   : > { %9623 = vst [vmem:[#allocation105_spill] sm:$0xff] %v7968_v52  ;;  %9624 = vst [vmem:[#allocation106_spill] sm:$0xff] %v7971_v6 }
 0x3a9   : > { %3349 = vmatpush1.bf16.msra.mxu0 %v7946_v20  ;;  %3390 = vmatpush1.bf16.msra.mxu1 %v7950_v38  ;;  %v2508_v20 = vld [vmem:[%s7222_s23 + $0xb0] sm:$0xff]  ;;  %v7978_v38 = vcombine.low %v2512_v25, %v2516_v12  ;;  %v2497_v25 = vld [vmem:[%s7222_s23 + $0x58] sm:$0xff]  ;;  %9630 = vst [vmem:[#allocation112_spill] sm:$0xff] %v7998_v7 }
 0x3aa   : > { %3350 = vmatprep.subr.bf16.mxu0 %v7952_v5  ;;  %3391 = vmatprep.subr.bf16.mxu1 %v7955_v27  ;;  %v7984_v1 = vcombine.high %v2504_v23, %v2508_v20  ;;  %v7987_v27 = vcombine.high %v2505_v30, %v2509_v21  ;;  %v2496_v5 = vld [vmem:[%s7222_s23 + $0x50] sm:$0xff]  ;;  %v2501_v12 = vld [vmem:[%s7222_s23 + $0x78] sm:$0xff] }
 0x3ab   : > { %9625 = vst [vmem:[#allocation107_spill] sm:$0xff] %v7978_v38  ;;  %v8014_v30 = vcombine.low %v2497_v25, %v2501_v12 }
 0x3ac   : > { %9627 = vst [vmem:[#allocation109_spill] sm:$0xff] %v7984_v1  ;;  %9628 = vst [vmem:[#allocation110_spill] sm:$0xff] %v7987_v27 }
 0x3ad   : > { %3351 = vmatpush1.bf16.msra.mxu0 %v7962_v53  ;;  %3392 = vmatpush1.bf16.msra.mxu1 %v7966_v18  ;;  %v2500_v53 = vld [vmem:[%s7222_s23 + $0x70] sm:$0xff]  ;;  %v7994_v18 = vcombine.low %v2504_v23, %v2508_v20  ;;  %v2489_v23 = vld [vmem:[%s7222_s23 + $0x18] sm:$0xff]  ;;  %9634 = vst [vmem:[#allocation116_spill] sm:$0xff] %v8014_v30 }
 0x3ae   : > { %3352 = vmatprep.subr.bf16.mxu0 %v7968_v52  ;;  %3393 = vmatprep.subr.bf16.mxu1 %v7971_v6  ;;  %v8000_v37 = vcombine.high %v2496_v5, %v2500_v53  ;;  %v8003_v6 = vcombine.high %v2497_v25, %v2501_v12  ;;  %v2488_v52 = vld [vmem:[%s7222_s23 + $0x10] sm:$0xff]  ;;  %v2493_v20 = vld [vmem:[%s7222_s23 + $0x38] sm:$0xff] }
 0x3af   : > { %9629 = vst [vmem:[#allocation111_spill] sm:$0xff] %v7994_v18  ;;  %v8030_v25 = vcombine.low %v2489_v23, %v2493_v20 }
 0x3b0   : > { %9631 = vst [vmem:[#allocation113_spill] sm:$0xff] %v8000_v37  ;;  %9632 = vst [vmem:[#allocation114_spill] sm:$0xff] %v8003_v6 }
 0x3b1   : > { %3353 = vmatpush1.bf16.msra.mxu0 %v7978_v38  ;;  %3394 = vmatpush1.bf16.msra.mxu1 %v7982_v48  ;;  %v2492_v38 = vld [vmem:[%s7222_s23 + $0x30] sm:$0xff]  ;;  %v8010_v48 = vcombine.low %v2496_v5, %v2500_v53  ;;  %v2609_v5 = vld [vmem:[%s7222_s23 + $0x3d8] sm:$0xff]  ;;  %9638 = vst [vmem:[#allocation120_spill] sm:$0xff] %v8030_v25 }
 0x3b2   : > { %3354 = vmatprep.subr.bf16.mxu0 %v7984_v1  ;;  %3395 = vmatprep.subr.bf16.mxu1 %v7987_v27  ;;  %v8016_v21 = vcombine.high %v2488_v52, %v2492_v38  ;;  %v8019_v27 = vcombine.high %v2489_v23, %v2493_v20  ;;  %v2608_v1 = vld [vmem:[%s7222_s23 + $0x3d0] sm:$0xff]  ;;  %v2613_v53 = vld [vmem:[%s7222_s23 + $0x3f8] sm:$0xff] }
 0x3b3   : > { %9633 = vst [vmem:[#allocation115_spill] sm:$0xff] %v8010_v48  ;;  %v8046_v23 = vcombine.low %v2609_v5, %v2613_v53 }
 0x3b4   : > { %9635 = vst [vmem:[#allocation117_spill] sm:$0xff] %v8016_v21  ;;  %9636 = vst [vmem:[#allocation118_spill] sm:$0xff] %v8019_v27 }
 0x3b5   : > { %3355 = vmatpush1.bf16.msra.mxu0 %v7994_v18  ;;  %3396 = vmatpush1.bf16.msra.mxu1 %v7998_v7  ;;  %v2612_v18 = vld [vmem:[%s7222_s23 + $0x3f0] sm:$0xff]  ;;  %v8026_v7 = vcombine.low %v2488_v52, %v2492_v38  ;;  %v2601_v38 = vld [vmem:[%s7222_s23 + $0x398] sm:$0xff]  ;;  %9642 = vst [vmem:[#allocation124_spill] sm:$0xff] %v8046_v23 }
 0x3b6   : > { %3356 = vmatprep.subr.bf16.mxu0 %v8000_v37  ;;  %3397 = vmatprep.subr.bf16.mxu1 %v8003_v6  ;;  %v8032_v12 = vcombine.high %v2608_v1, %v2612_v18  ;;  %v8035_v6 = vcombine.high %v2609_v5, %v2613_v53  ;;  %v2600_v37 = vld [vmem:[%s7222_s23 + $0x390] sm:$0xff]  ;;  %v2605_v52 = vld [vmem:[%s7222_s23 + $0x3b8] sm:$0xff] }
 0x3b7   : > { %9637 = vst [vmem:[#allocation119_spill] sm:$0xff] %v8026_v7  ;;  %v8062_v5 = vcombine.low %v2601_v38, %v2605_v52 }
 0x3b8   : > { %9639 = vst [vmem:[#allocation121_spill] sm:$0xff] %v8032_v12  ;;  %9640 = vst [vmem:[#allocation122_spill] sm:$0xff] %v8035_v6 }
 0x3b9   : > { %3357 = vmatpush1.bf16.msra.mxu0 %v8010_v48  ;;  %3398 = vmatpush1.bf16.msra.mxu1 %v8014_v30  ;;  %v2604_v48 = vld [vmem:[%s7222_s23 + $0x3b0] sm:$0xff]  ;;  %v8042_v30 = vcombine.low %v2608_v1, %v2612_v18  ;;  %v2593_v18 = vld [vmem:[%s7222_s23 + $0x358] sm:$0xff]  ;;  %9646 = vst [vmem:[#allocation128_spill] sm:$0xff] %v8062_v5 }
 0x3ba   : > { %3358 = vmatprep.subr.bf16.mxu0 %v8016_v21  ;;  %3399 = vmatprep.subr.bf16.mxu1 %v8019_v27  ;;  %v8048_v20 = vcombine.high %v2600_v37, %v2604_v48  ;;  %v8051_v27 = vcombine.high %v2601_v38, %v2605_v52  ;;  %v2592_v21 = vld [vmem:[%s7222_s23 + $0x350] sm:$0xff]  ;;  %v2597_v1 = vld [vmem:[%s7222_s23 + $0x378] sm:$0xff] }
 0x3bb   : > { %9641 = vst [vmem:[#allocation123_spill] sm:$0xff] %v8042_v30  ;;  %v8078_v38 = vcombine.low %v2593_v18, %v2597_v1 }
 0x3bc   : > { %9643 = vst [vmem:[#allocation125_spill] sm:$0xff] %v8048_v20  ;;  %9644 = vst [vmem:[#allocation126_spill] sm:$0xff] %v8051_v27 }
 0x3bd   : > { %3359 = vmatpush1.bf16.msra.mxu0 %v8026_v7  ;;  %3400 = vmatpush1.bf16.msra.mxu1 %v8030_v25  ;;  %v2596_v7 = vld [vmem:[%s7222_s23 + $0x370] sm:$0xff]  ;;  %v8058_v25 = vcombine.low %v2600_v37, %v2604_v48  ;;  %v2585_v48 = vld [vmem:[%s7222_s23 + $0x318] sm:$0xff]  ;;  %9650 = vst [vmem:[#allocation132_spill] sm:$0xff] %v8078_v38 }
 0x3be   : > { %3360 = vmatprep.subr.bf16.mxu0 %v8032_v12  ;;  %3401 = vmatprep.subr.bf16.mxu1 %v8035_v6  ;;  %v8064_v53 = vcombine.high %v2592_v21, %v2596_v7  ;;  %v8067_v6 = vcombine.high %v2593_v18, %v2597_v1  ;;  %v2584_v12 = vld [vmem:[%s7222_s23 + $0x310] sm:$0xff]  ;;  %v2589_v37 = vld [vmem:[%s7222_s23 + $0x338] sm:$0xff] }
 0x3bf   : > { %9645 = vst [vmem:[#allocation127_spill] sm:$0xff] %v8058_v25  ;;  %v8094_v18 = vcombine.low %v2585_v48, %v2589_v37 }
 0x3c0   : > { %9647 = vst [vmem:[#allocation129_spill] sm:$0xff] %v8064_v53  ;;  %9648 = vst [vmem:[#allocation130_spill] sm:$0xff] %v8067_v6 }
 0x3c1   : > { %3361 = vmatpush2.bf16.msra.mxu0 %v8042_v30  ;;  %3402 = vmatpush2.bf16.msra.mxu1 %v8046_v23  ;;  %v2588_v30 = vld [vmem:[%s7222_s23 + $0x330] sm:$0xff]  ;;  %v8074_v23 = vcombine.low %v2592_v21, %v2596_v7  ;;  %v2577_v7 = vld [vmem:[%s7222_s23 + $0x2d8] sm:$0xff]  ;;  %9654 = vst [vmem:[#allocation136_spill] sm:$0xff] %v8094_v18 }
 0x3c2   : > { %3362 = vmatprep.subr.bf16.mxu0 %v8048_v20  ;;  %3403 = vmatprep.subr.bf16.mxu1 %v8051_v27  ;;  %v8080_v52 = vcombine.high %v2584_v12, %v2588_v30  ;;  %v8083_v27 = vcombine.high %v2585_v48, %v2589_v37  ;;  %v2576_v20 = vld [vmem:[%s7222_s23 + $0x2d0] sm:$0xff]  ;;  %v2581_v21 = vld [vmem:[%s7222_s23 + $0x2f8] sm:$0xff] }
 0x3c3   : > { %9649 = vst [vmem:[#allocation131_spill] sm:$0xff] %v8074_v23  ;;  %v8110_v48 = vcombine.low %v2577_v7, %v2581_v21 }
 0x3c4   : > { %9651 = vst [vmem:[#allocation133_spill] sm:$0xff] %v8080_v52  ;;  %9652 = vst [vmem:[#allocation134_spill] sm:$0xff] %v8083_v27 }
 0x3c5   : > { %3363 = vmatpush2.bf16.msra.mxu0 %v8058_v25  ;;  %3404 = vmatpush2.bf16.msra.mxu1 %v8062_v5  ;;  %v2580_v25 = vld [vmem:[%s7222_s23 + $0x2f0] sm:$0xff]  ;;  %v8090_v5 = vcombine.low %v2584_v12, %v2588_v30  ;;  %v2569_v30 = vld [vmem:[%s7222_s23 + $0x298] sm:$0xff]  ;;  %9658 = vst [vmem:[#allocation140_spill] sm:$0xff] %v8110_v48 }
 0x3c6   : > { %3364 = vmatprep.subr.bf16.mxu0 %v8064_v53  ;;  %3405 = vmatprep.subr.bf16.mxu1 %v8067_v6  ;;  %v8096_v1 = vcombine.high %v2576_v20, %v2580_v25  ;;  %v8099_v6 = vcombine.high %v2577_v7, %v2581_v21  ;;  %v2568_v53 = vld [vmem:[%s7222_s23 + $0x290] sm:$0xff]  ;;  %v2573_v12 = vld [vmem:[%s7222_s23 + $0x2b8] sm:$0xff] }
 0x3c7   : > { %9653 = vst [vmem:[#allocation135_spill] sm:$0xff] %v8090_v5  ;;  %v8126_v7 = vcombine.low %v2569_v30, %v2573_v12 }
 0x3c8   : > { %9655 = vst [vmem:[#allocation137_spill] sm:$0xff] %v8096_v1  ;;  %9656 = vst [vmem:[#allocation138_spill] sm:$0xff] %v8099_v6 }
 0x3c9   : > { %3365 = vmatpush2.bf16.msra.mxu0 %v8074_v23  ;;  %3406 = vmatpush2.bf16.msra.mxu1 %v8078_v38  ;;  %v2572_v23 = vld [vmem:[%s7222_s23 + $0x2b0] sm:$0xff]  ;;  %v8106_v38 = vcombine.low %v2576_v20, %v2580_v25  ;;  %v2561_v25 = vld [vmem:[%s7222_s23 + $0x258] sm:$0xff]  ;;  %9662 = vst [vmem:[#allocation144_spill] sm:$0xff] %v8126_v7 }
 0x3ca   : > { %3366 = vmatprep.subr.bf16.mxu0 %v8080_v52  ;;  %3407 = vmatprep.subr.bf16.mxu1 %v8083_v27  ;;  %v8112_v37 = vcombine.high %v2568_v53, %v2572_v23  ;;  %v8115_v27 = vcombine.high %v2569_v30, %v2573_v12  ;;  %v2560_v52 = vld [vmem:[%s7222_s23 + $0x250] sm:$0xff]  ;;  %v2565_v20 = vld [vmem:[%s7222_s23 + $0x278] sm:$0xff]  ;;  %v8147_v12 = vcombine.high %v2553_v62, %v2557_v60 }
 0x3cb   : > { %9657 = vst [vmem:[#allocation139_spill] sm:$0xff] %v8106_v38 }
 0x3cc   : > { %9659 = vst [vmem:[#allocation141_spill] sm:$0xff] %v8112_v37  ;;  %9660 = vst [vmem:[#allocation142_spill] sm:$0xff] %v8115_v27 }
 0x3cd   : > { %3367 = vmatpush2.bf16.msra.mxu0 %v8090_v5  ;;  %3408 = vmatpush2.bf16.msra.mxu1 %v8094_v18  ;;  %v2564_v5 = vld [vmem:[%s7222_s23 + $0x270] sm:$0xff]  ;;  %v8122_v18 = vcombine.low %v2568_v53, %v2572_v23  ;;  %v8142_v53 = vcombine.low %v2561_v25, %v2565_v20  ;;  %9668 = vst [vmem:[#allocation150_spill] sm:$0xff] %v8147_v12 }
 0x3ce   : > { %3368 = vmatprep.subr.bf16.mxu0 %v8096_v1  ;;  %3409 = vmatprep.subr.bf16.mxu1 %v8099_v6  ;;  %v8128_v21 = vcombine.high %v2560_v52, %v2564_v5  ;;  %v8131_v6 = vcombine.high %v2561_v25, %v2565_v20  ;;  %v2552_v1 = vld [vmem:[%s7222_s23 + $0x210] sm:$0xff]  ;;  %v8138_v23 = vcombine.low %v2560_v52, %v2564_v5  ;;  %v9677_v25 = vld [vmem:[#allocation74_spill] sm:$0xff]  ;;  %v9678_v20 = vld [vmem:[#allocation75_spill] sm:$0xff] }
 0x3cf   : > { %9661 = vst [vmem:[#allocation143_spill] sm:$0xff] %v8122_v18  ;;  %9666 = vst [vmem:[#allocation148_spill] sm:$0xff] %v8142_v53  ;;  %v8144_v30 = vcombine.high %v2552_v1, %v2556_v19  ;;  %v8154_v5 = vcombine.low %v2553_v62, %v2557_v60  ;;  %v9671_v60 = vld [vmem:[#allocation68_spill] sm:$0xff]  ;;  %v9672_v62 = vld [vmem:[#allocation69_spill] sm:$0xff] }
 0x3d0   : > { %9663 = vst [vmem:[#allocation145_spill] sm:$0xff] %v8128_v21  ;;  %9664 = vst [vmem:[#allocation146_spill] sm:$0xff] %v8131_v6  ;;  %v9675_v52 = vld [vmem:[#allocation72_spill] sm:$0xff] }
 0x3d1   : > { %3369 = vmatpush2.bf16.msra.mxu0 %v8106_v38  ;;  %3410 = vmatpush2.bf16.msra.mxu1 %v8110_v48  ;;  %9665 = vst [vmem:[#allocation147_spill] sm:$0xff] %v8138_v23  ;;  %9667 = vst [vmem:[#allocation149_spill] sm:$0xff] %v8144_v30 }
 0x3d2   : > { %3370 = vmatprep.subr.bf16.mxu0 %v8112_v37  ;;  %3411 = vmatprep.subr.bf16.mxu1 %v8115_v27  ;;  %v8150_v27 = vcombine.low %v2552_v1, %v2556_v19  ;;  %9670 = vst [vmem:[#allocation152_spill] sm:$0xff] %v8154_v5  ;;  %v9674_v19 = vld [vmem:[#allocation71_spill] sm:$0xff]  ;;  %v9676_v1 = vld [vmem:[#allocation73_spill] sm:$0xff] }
 0x3d4   : > { %9669 = vst [vmem:[#allocation151_spill] sm:$0xff] %v8150_v27 }
 0x3d5   : > { %3371 = vmatpush2.bf16.msra.mxu0 %v8122_v18  ;;  %3412 = vmatpush2.bf16.msra.mxu1 %v8126_v7 }
 0x3d6   : > { %3372 = vmatprep.subr.bf16.mxu0 %v8128_v21  ;;  %3413 = vmatprep.subr.bf16.mxu1 %v8131_v6 }
 0x3d9   : > { %3373 = vmatpush2.bf16.msra.mxu0 %v8138_v23  ;;  %3414 = vmatpush2.bf16.msra.mxu1 %v8142_v53 }
 0x3da   : > { %3374 = vmatprep.subr.bf16.mxu0 %v8144_v30  ;;  %3415 = vmatprep.subr.bf16.mxu1 %v8147_v12 }
 0x3dd   : > { %3375 = vmatpush2.bf16.msra.mxu0 %v8150_v27  ;;  %3416 = vmatpush2.bf16.msra.mxu1 %v8154_v5 }
 0x3de   : > { %3499 = vmatprep.subr.bf16.mxu0 %v7644_v54  ;;  %3540 = vmatprep.subr.bf16.mxu1 %v7653_v13 }
 0x3e0   : > { %3377 = vmatmul.mubr.bf16.vlgmr.msra.gmra.mxu0 %v9612_v63  ;;  %3418 = vmatmul.mubr.bf16.vlgmr.msra.gmra.mxu1 %v9612_v63  ;;  %v9673_v63 = vld [vmem:[#allocation70_spill] sm:$0xff] }
 0x3e1   : > { %3500 = vmatpush1.bf16.msra.mxu0 %v7647_v2  ;;  %3541 = vmatpush1.bf16.msra.mxu1 %v7655_v14 }
 0x3e2   : > { %3501 = vmatprep.subr.bf16.mxu0 %v7657_v0  ;;  %3542 = vmatprep.subr.bf16.mxu1 %v7663_v22 }
 0x3e5   : > { %3502 = vmatpush1.bf16.msra.mxu0 %v7670_v28  ;;  %3543 = vmatpush1.bf16.msra.mxu1 %v7674_v16 }
 0x3e6   : > { %3503 = vmatprep.subr.bf16.mxu0 %v7676_v17  ;;  %3544 = vmatprep.subr.bf16.mxu1 %v7679_v32 }
 0x3e9   : > { %3504 = vmatpush1.bf16.msra.mxu0 %v7686_v11  ;;  %3545 = vmatpush1.bf16.msra.mxu1 %v7690_v31 }
 0x3ea   : > { %3505 = vmatprep.subr.bf16.mxu0 %v7692_v9  ;;  %3546 = vmatprep.subr.bf16.mxu1 %v7695_v35 }
 0x3ed   : > { %3506 = vmatpush1.bf16.msra.mxu0 %v7702_v40  ;;  %3547 = vmatpush1.bf16.msra.mxu1 %v7706_v42 }
 0x3ee   : > { %3507 = vmatprep.subr.bf16.mxu0 %v7708_v43  ;;  %3548 = vmatprep.subr.bf16.mxu1 %v7711_v44 }
 0x3f1   : > { %3508 = vmatpush1.bf16.msra.mxu0 %v7718_v49  ;;  %3549 = vmatpush1.bf16.msra.mxu1 %v7722_v51 }
 0x3f2   : > { %3509 = vmatprep.subr.bf16.mxu0 %v7724_v41  ;;  %3550 = vmatprep.subr.bf16.mxu1 %v7727_v61 }
 0x3f5   : > { %3510 = vmatpush1.bf16.msra.mxu0 %v7734_v56  ;;  %3551 = vmatpush1.bf16.msra.mxu1 %v7738_v57 }
 0x3f6   : > { %3511 = vmatprep.subr.bf16.mxu0 %v7740_v58  ;;  %3552 = vmatprep.subr.bf16.mxu1 %v7743_v59 }
 0x3f9   : > { %3512 = vmatpush1.bf16.msra.mxu0 %v7750_v29  ;;  %3553 = vmatpush1.bf16.msra.mxu1 %v7754_v55 }
 0x3fa   : > { %3513 = vmatprep.subr.bf16.mxu0 %v7756_v3  ;;  %3554 = vmatprep.subr.bf16.mxu1 %v7759_v4 }
 0x3fd   : > { %3514 = vmatpush1.bf16.msra.mxu0 %v7766_v50  ;;  %3555 = vmatpush1.bf16.msra.mxu1 %v7770_v8 }
 0x3fe   : > { %3515 = vmatprep.subr.bf16.mxu0 %v7772_v10  ;;  %3556 = vmatprep.subr.bf16.mxu1 %v7775_v15 }
 0x401   : > { %3516 = vmatpush2.bf16.msra.mxu0 %v7782_v26  ;;  %3557 = vmatpush2.bf16.msra.mxu1 %v7786_v33  ;;  %v2617_v33 = vld [vmem:[#allocation3 + $0xe0] sm:$0xff] }
 0x402   : > { %3517 = vmatprep.subr.bf16.mxu0 %v7788_v34  ;;  %3558 = vmatprep.subr.bf16.mxu1 %v7791_v24  ;;  %v2614_v34 = vld [vmem:[#allocation3 + $0x100] sm:$0xff] }
 0x405   : > { %3518 = vmatpush2.bf16.msra.mxu0 %v7798_v39  ;;  %3559 = vmatpush2.bf16.msra.mxu1 %v7802_v45 }
 0x406   : > { %3519 = vmatprep.subr.bf16.mxu0 %v7804_v46  ;;  %3560 = vmatprep.subr.bf16.mxu1 %v7807_v47  ;;  %v9679_v46 = vld [vmem:[#allocation76_spill] sm:$0xff]  ;;  %v9680_v47 = vld [vmem:[#allocation77_spill] sm:$0xff] }
 0x409   : > { %3520 = vmatpush2.bf16.msra.mxu0 %v7814_v36  ;;  %3561 = vmatpush2.bf16.msra.mxu1 %v9671_v60  ;;  %v9681_v36 = vld [vmem:[#allocation78_spill] sm:$0xff]  ;;  %v9682_v60 = vld [vmem:[#allocation79_spill] sm:$0xff] }
 0x40a   : > { %3521 = vmatprep.subr.bf16.mxu0 %v9672_v62  ;;  %3562 = vmatprep.subr.bf16.mxu1 %v9673_v63  ;;  %v9683_v62 = vld [vmem:[#allocation80_spill] sm:$0xff]  ;;  %v9684_v63 = vld [vmem:[#allocation81_spill] sm:$0xff] }
 0x40d   : > { %3522 = vmatpush2.bf16.msra.mxu0 %v9674_v19  ;;  %3563 = vmatpush2.bf16.msra.mxu1 %v9675_v52  ;;  %v9685_v19 = vld [vmem:[#allocation82_spill] sm:$0xff]  ;;  %v9686_v52 = vld [vmem:[#allocation83_spill] sm:$0xff] }
 0x40e   : > { %3523 = vmatprep.subr.bf16.mxu0 %v9676_v1  ;;  %3564 = vmatprep.subr.bf16.mxu1 %v9677_v25  ;;  %v9687_v1 = vld [vmem:[#allocation84_spill] sm:$0xff]  ;;  %v9688_v25 = vld [vmem:[#allocation85_spill] sm:$0xff] }
 0x411   : > { %3524 = vmatpush2.bf16.msra.mxu0 %v9678_v20  ;;  %3565 = vmatpush2.bf16.msra.mxu1 %v9679_v46  ;;  %v9689_v20 = vld [vmem:[#allocation86_spill] sm:$0xff]  ;;  %v9690_v46 = vld [vmem:[#allocation87_spill] sm:$0xff] }
 0x412   : > { %3525 = vmatprep.subr.bf16.mxu0 %v9680_v47  ;;  %3566 = vmatprep.subr.bf16.mxu1 %v9681_v36  ;;  %v9691_v47 = vld [vmem:[#allocation88_spill] sm:$0xff]  ;;  %v9692_v36 = vld [vmem:[#allocation89_spill] sm:$0xff] }
 0x415   : > { %3526 = vmatpush2.bf16.msra.mxu0 %v9682_v60  ;;  %3567 = vmatpush2.bf16.msra.mxu1 %v9683_v62  ;;  %v9693_v60 = vld [vmem:[#allocation90_spill] sm:$0xff] }
 0x416   : > { %3527 = vmatprep.subr.bf16.mxu0 %v9684_v63  ;;  %3568 = vmatprep.subr.bf16.mxu1 %v9685_v19 }
 0x419   : > { %3528 = vmatpush2.bf16.msra.mxu0 %v9686_v52  ;;  %3569 = vmatpush2.bf16.msra.mxu1 %v9687_v1 }
 0x41a   : > { %3529 = vmatprep.subr.bf16.mxu0 %v9688_v25  ;;  %3570 = vmatprep.subr.bf16.mxu1 %v9689_v20  ;;  %v2616_v25 = vld [vmem:[#allocation3 + $0x150] sm:$0xff] }
 0x41d   : > { %3530 = vmatpush2.bf16.msra.mxu0 %v9690_v46  ;;  %3571 = vmatpush2.bf16.msra.mxu1 %v9691_v47  ;;  %v2615_v46 = vld [vmem:[#allocation3 + $0x18] sm:$0xff] }
 0x41e   : > { %3581 = vmatprep.subr.bf16.mxu0 %v9692_v36  ;;  %3622 = vmatprep.subr.bf16.mxu1 %v9693_v60 }
 0x460   : > { %v3296_v62 = vpop.f32.mrf.mxu0  ;;  %v3337_v63 = vpop.f32.mrf.mxu1 }
 0x461   : > { %v3426_v20 = vadd.f32 %v3296_v62, %v2614_v34  ;;  %v3428_v26 = vadd.f32 %v3337_v63, %v2616_v25  ;;  %v2618_v34 = vld [vmem:[#allocation3 + $0xe8] sm:$0xff]  ;;  %v2620_v62 = vld [vmem:[#allocation3 + $0xf0] sm:$0xff] }
 0x462   : > { %v3298_v45 = vpop.f32.mrf.mxu0  ;;  %v3339_v19 = vpop.f32.mrf.mxu1 }
 0x463   : > { %v3429_v15 = vadd.f32 %v3339_v19, %v2617_v33  ;;  %v6020_v47 = vmul.f32 -1.442695, %v3426_v20  ;;  %v3427_v10 = vadd.f32 %v3298_v45, %v2615_v46  ;;  %v6022_v36 = vmul.f32 -1.442695, %v3428_v26  ;;  %v2619_v45 = vld [vmem:[#allocation3 + $0x68] sm:$0xff] }
 0x464   : > { %v3300_v39 = vpop.f32.mrf.mxu0  ;;  %v3341_v52 = vpop.f32.mrf.mxu1 }
 0x465   : > { %v6023_v8 = vmul.f32 -1.442695, %v3429_v15  ;;  %6320 = vpow2.f32 %v6020_v47  ;;  %v6021_v60 = vmul.f32 -1.442695, %v3427_v10  ;;  %v2621_v10 = vld [vmem:[#allocation3 + $0x120] sm:$0xff] }
 0x466   : > { %v3301_v24 = vpop.f32.mrf.mxu0  ;;  %v3342_v1 = vpop.f32.mrf.mxu1  ;;  %6322 = vpow2.f32 %v6022_v36 }
 0x467   : > { %6324 = vpow2.f32 %v6023_v8 }
 0x468   : > { %6326 = vpow2.f32 %v6021_v60 }
 0x472   : > { %v6321_v39 = vpop.eup %6320 }
 0x473   : > { %v6323_v52 = vpop.eup %6322  ;;  %v3440_v1 = vadd.f32 1.0, %v6321_v39 }
 0x474   : > { %v6325_v24 = vpop.eup %6324  ;;  %v3452_v4 = vadd.f32 1.0, %v6323_v52 }
 0x475   : > { %v6327_v50 = vpop.eup %6326  ;;  %v3453_v3 = vadd.f32 1.0, %v6325_v24  ;;  %6328 = vrcp.f32 %v3440_v1 }
 0x476   : > { %v3441_v33 = vadd.f32 1.0, %v6327_v50  ;;  %6330 = vrcp.f32 %v3452_v4 }
 0x477   : > { %6332 = vrcp.f32 %v3453_v3 }
 0x482   : > { %v6329_v4 = vpop.eup %6328 }
 0x483   : > { %v6331_v24 = vpop.eup %6330 }
 0x484   : > { %v6333_v1 = vpop.eup %6332 }
 0x4a0   : > { %v3378_v63 = vpop.f32.mrf.mxu0  ;;  %v3419_v26 = vpop.f32.mrf.mxu1 }
 0x4a1   : > { %v3430_v15 = vadd.f32 %v3378_v63, %v2618_v34  ;;  %v3432_v8 = vadd.f32 %v3419_v26, %v2620_v62  ;;  %v3472_v62 = vmul.f32 0.0, %v6331_v24 }
 0x4a2   : > { %v3380_v46 = vpop.f32.mrf.mxu0  ;;  %v3421_v36 = vpop.f32.mrf.mxu1 }
 0x4a3   : > { %6334 = vtanh.f32 %v3430_v15  ;;  %v3431_v47 = vadd.f32 %v3380_v46, %v2619_v45  ;;  %v6024_v60 = vmul.f32 -1.442695, %v3432_v8  ;;  %v3433_v19 = vadd.f32 %v3421_v36, %v2621_v10 }
 0x4a4   : > { %6336 = vrcp.f32 %v3441_v33  ;;  %v3382_v25 = vpop.f32.mrf.mxu0  ;;  %v3423_v20 = vpop.f32.mrf.mxu1  ;;  %v3473_v33 = vmul.f32 0.0, %v6333_v1  ;;  %v9694_v1 = vld [vmem:[#allocation91_spill] sm:$0xff] }
 0x4a5   : > { %6338 = vtanh.f32 %v3431_v47  ;;  %v6025_v50 = vmul.f32 -1.442695, %v3433_v19 }
 0x4a6   : > { %6340 = vpow2.f32 %v6024_v60  ;;  %v3383_v39 = vpop.f32.mrf.mxu0  ;;  %v3424_v52 = vpop.f32.mrf.mxu1 }
 0x4a7   : > { %6342 = vpow2.f32 %v6025_v50 }
 0x4b0   : > { %v6335_v3 = vpop.eup %6334 }
 0x4b1   : > { %v6337_v34 = vpop.eup %6336  ;;  %v3474_v63 = vmul.f32 %v6335_v3, %v6329_v4  ;;  %v9695_v3 = vld [vmem:[#allocation92_spill] sm:$0xff] }
 0x4b2   : > { %v6339_v45 = vpop.eup %6338 }
 0x4b3   : > { %v6341_v15 = vpop.eup %6340  ;;  %v8227_v26 = vadd.f32 %v3474_v63, %v3472_v62  ;;  %v3475_v10 = vmul.f32 %v6339_v45, %v6337_v34  ;;  %v9696_v34 = vld [vmem:[#allocation93_spill] sm:$0xff]  ;;  %v9697_v62 = vld [vmem:[#allocation94_spill] sm:$0xff]  ;;  %v9698_v63 = vld [vmem:[#allocation95_spill] sm:$0xff] }
 0x4b4   : > { %v3466_v8 = vadd.f32 1.0, %v6341_v15  ;;  %v6343_v46 = vpop.eup %6342  ;;  %v9699_v45 = vld [vmem:[#allocation96_spill] sm:$0xff]  ;;  %v9700_v15 = vld [vmem:[#allocation97_spill] sm:$0xff] }
 0x4b5   : > { %6344 = vtanh.f32 %v8227_v26  ;;  %v8230_v47 = vadd.f32 %v3475_v10, %v3473_v33  ;;  %v3467_v36 = vadd.f32 1.0, %v6343_v46  ;;  %v9701_v33 = vld [vmem:[#allocation98_spill] sm:$0xff]  ;;  %v9702_v10 = vld [vmem:[#allocation99_spill] sm:$0xff]  ;;  %v9704_v46 = vld [vmem:[#allocation101_spill] sm:$0xff] }
 0x4b6   : > { %6346 = vrcp.f32 %v3466_v8  ;;  %v9703_v8 = vld [vmem:[#allocation100_spill] sm:$0xff] }
 0x4b7   : > { %6348 = vtanh.f32 %v8230_v47 }
 0x4b8   : > { %6350 = vrcp.f32 %v3467_v36  ;;  %v9705_v36 = vld [vmem:[#allocation102_spill] sm:$0xff] }
 0x4c2   : > { %v6345_v60 = vpop.eup %6344 }
 0x4c3   : > { %v6347_v19 = vpop.eup %6346 }
 0x4c4   : > { %v6349_v25 = vpop.eup %6348  ;;  %v3480_v50 = vmul.f32 %v6347_v19, %v6345_v60  ;;  %v9706_v60 = vld [vmem:[#allocation103_spill] sm:$0xff]  ;;  %v9707_v19 = vld [vmem:[#allocation104_spill] sm:$0xff] }
 0x4c5   : > { %v6351_v20 = vpop.eup %6350 }
 0x4c6   : > { %v3481_v39 = vmul.f32 %v6351_v20, %v6349_v25  ;;  %v8233_v24 = vpack.c.bf16 %v3480_v50, %v3480_v50  ;;  %v9708_v25 = vld [vmem:[#allocation105_spill] sm:$0xff]  ;;  %v9709_v20 = vld [vmem:[#allocation106_spill] sm:$0xff] }
 0x4c8   : > { %v3483_v52 = vpack.c.bf16 %v3481_v39, %v3481_v39  ;;  %v6109_v4 = vpack.c.bf16 %v3481_v39, %v3480_v50  ;;  %v9710_v50 = vld [vmem:[#allocation107_spill] sm:$0xff]  ;;  %v9711_v39 = vld [vmem:[#allocation108_spill] sm:$0xff] }
 0x4ca   : > { %3531 = vmatprep.mubr.bf16.mxu0 %v3483_v52  ;;  %3572 = vmatprep.mubr.bf16.mxu1 %v3483_v52  ;;  %3490 = vst [vmem:[#allocation2 + $0x30] sm:$0xff] %v6109_v4  ;;  %v9713_v4 = vld [vmem:[#allocation110_spill] sm:$0xff] }
 0x4cb   : > { %3532 = vmatmul.mubr.bf16.vlgmr.msra.gmra.mxu0 %v8233_v24  ;;  %3573 = vmatmul.mubr.bf16.vlgmr.msra.gmra.mxu1 %v8233_v24 }
 0x4cc   : > { %3582 = vmatpush1.bf16.msra.mxu0 %v9694_v1  ;;  %3623 = vmatpush1.bf16.msra.mxu1 %v9695_v3 }
 0x4cd   : > { %3613 = vmatprep.mubr.bf16.mxu0 %v3483_v52  ;;  %3654 = vmatprep.mubr.bf16.mxu1 %v3483_v52  ;;  %v9712_v52 = vld [vmem:[#allocation109_spill] sm:$0xff] }
 0x4ce   : > { %3583 = vmatprep.subr.bf16.mxu0 %v9696_v34  ;;  %3624 = vmatprep.subr.bf16.mxu1 %v9697_v62 }
 0x4d0   : > { %3584 = vmatpush1.bf16.msra.mxu0 %v9698_v63  ;;  %3625 = vmatpush1.bf16.msra.mxu1 %v9699_v45 }
 0x4d1   : > { %3585 = vmatprep.subr.bf16.mxu0 %v9700_v15  ;;  %3626 = vmatprep.subr.bf16.mxu1 %v9701_v33 }
 0x4d4   : > { %3586 = vmatpush1.bf16.msra.mxu0 %v9702_v10  ;;  %3627 = vmatpush1.bf16.msra.mxu1 %v9703_v8  ;;  %v9714_v8 = vld [vmem:[#allocation111_spill] sm:$0xff] }
 0x4d5   : > { %3587 = vmatprep.subr.bf16.mxu0 %v9704_v46  ;;  %3628 = vmatprep.subr.bf16.mxu1 %v9705_v36  ;;  %v9715_v46 = vld [vmem:[#allocation112_spill] sm:$0xff]  ;;  %v9716_v36 = vld [vmem:[#allocation113_spill] sm:$0xff] }
 0x4d8   : > { %3588 = vmatpush1.bf16.msra.mxu0 %v9706_v60  ;;  %3629 = vmatpush1.bf16.msra.mxu1 %v9707_v19  ;;  %v9717_v60 = vld [vmem:[#allocation114_spill] sm:$0xff]  ;;  %v9718_v19 = vld [vmem:[#allocation115_spill] sm:$0xff] }
 0x4d9   : > { %3589 = vmatprep.subr.bf16.mxu0 %v9708_v25  ;;  %3630 = vmatprep.subr.bf16.mxu1 %v9709_v20  ;;  %v9719_v25 = vld [vmem:[#allocation116_spill] sm:$0xff]  ;;  %v9720_v20 = vld [vmem:[#allocation117_spill] sm:$0xff] }
 0x4dc   : > { %3590 = vmatpush1.bf16.msra.mxu0 %v9710_v50  ;;  %3631 = vmatpush1.bf16.msra.mxu1 %v9711_v39  ;;  %v9721_v50 = vld [vmem:[#allocation118_spill] sm:$0xff]  ;;  %v9722_v39 = vld [vmem:[#allocation119_spill] sm:$0xff] }
 0x4dd   : > { %3591 = vmatprep.subr.bf16.mxu0 %v9712_v52  ;;  %3632 = vmatprep.subr.bf16.mxu1 %v9713_v4  ;;  %v9723_v52 = vld [vmem:[#allocation120_spill] sm:$0xff]  ;;  %v9724_v4 = vld [vmem:[#allocation121_spill] sm:$0xff] }
 0x4e0   : > { %3592 = vmatpush1.bf16.msra.mxu0 %v9714_v8  ;;  %3633 = vmatpush1.bf16.msra.mxu1 %v9715_v46  ;;  %v9725_v8 = vld [vmem:[#allocation122_spill] sm:$0xff]  ;;  %v9726_v46 = vld [vmem:[#allocation123_spill] sm:$0xff] }
 0x4e1   : > { %3593 = vmatprep.subr.bf16.mxu0 %v9716_v36  ;;  %3634 = vmatprep.subr.bf16.mxu1 %v9717_v60  ;;  %v9727_v36 = vld [vmem:[#allocation124_spill] sm:$0xff]  ;;  %v9728_v60 = vld [vmem:[#allocation125_spill] sm:$0xff] }
 0x4e4   : > { %3594 = vmatpush1.bf16.msra.mxu0 %v9718_v19  ;;  %3635 = vmatpush1.bf16.msra.mxu1 %v9719_v25  ;;  %v9729_v19 = vld [vmem:[#allocation126_spill] sm:$0xff]  ;;  %v9730_v25 = vld [vmem:[#allocation127_spill] sm:$0xff] }
 0x4e5   : > { %3595 = vmatprep.subr.bf16.mxu0 %v9720_v20  ;;  %3636 = vmatprep.subr.bf16.mxu1 %v9721_v50  ;;  %v9731_v20 = vld [vmem:[#allocation128_spill] sm:$0xff]  ;;  %v9732_v50 = vld [vmem:[#allocation129_spill] sm:$0xff] }
 0x4e8   : > { %3596 = vmatpush1.bf16.msra.mxu0 %v9722_v39  ;;  %3637 = vmatpush1.bf16.msra.mxu1 %v9723_v52  ;;  %v9733_v39 = vld [vmem:[#allocation130_spill] sm:$0xff]  ;;  %v9734_v52 = vld [vmem:[#allocation131_spill] sm:$0xff] }
 0x4e9   : > { %3597 = vmatprep.subr.bf16.mxu0 %v9724_v4  ;;  %3638 = vmatprep.subr.bf16.mxu1 %v9725_v8  ;;  %v9735_v4 = vld [vmem:[#allocation132_spill] sm:$0xff]  ;;  %v9736_v8 = vld [vmem:[#allocation133_spill] sm:$0xff] }
 0x4ec   : > { %3598 = vmatpush2.bf16.msra.mxu0 %v9726_v46  ;;  %3639 = vmatpush2.bf16.msra.mxu1 %v9727_v36  ;;  %v9737_v46 = vld [vmem:[#allocation134_spill] sm:$0xff]  ;;  %v9738_v36 = vld [vmem:[#allocation135_spill] sm:$0xff] }
 0x4ed   : > { %3599 = vmatprep.subr.bf16.mxu0 %v9728_v60  ;;  %3640 = vmatprep.subr.bf16.mxu1 %v9729_v19  ;;  %v9739_v60 = vld [vmem:[#allocation136_spill] sm:$0xff]  ;;  %v9740_v19 = vld [vmem:[#allocation137_spill] sm:$0xff] }
 0x4f0   : > { %3600 = vmatpush2.bf16.msra.mxu0 %v9730_v25  ;;  %3641 = vmatpush2.bf16.msra.mxu1 %v9731_v20  ;;  %v9741_v25 = vld [vmem:[#allocation138_spill] sm:$0xff] }
 0x4f1   : > { %3601 = vmatprep.subr.bf16.mxu0 %v9732_v50  ;;  %3642 = vmatprep.subr.bf16.mxu1 %v9733_v39 }
 0x4f4   : > { %3602 = vmatpush2.bf16.msra.mxu0 %v9734_v52  ;;  %3643 = vmatpush2.bf16.msra.mxu1 %v9735_v4  ;;  %v9742_v52 = vld [vmem:[#allocation142_spill] sm:$0xff] }
 0x4f5   : > { %3603 = vmatprep.subr.bf16.mxu0 %v9736_v8  ;;  %3644 = vmatprep.subr.bf16.mxu1 %v9737_v46 }
 0x4f8   : > { %3604 = vmatpush2.bf16.msra.mxu0 %v9738_v36  ;;  %3645 = vmatpush2.bf16.msra.mxu1 %v9739_v60 }
 0x4f9   : > { %3605 = vmatprep.subr.bf16.mxu0 %v9740_v19  ;;  %3646 = vmatprep.subr.bf16.mxu1 %v9741_v25 }
 0x4fc   : > { %3606 = vmatpush2.bf16.msra.mxu0 %v8106_v38  ;;  %3647 = vmatpush2.bf16.msra.mxu1 %v8110_v48 }
 0x4fd   : > { %3607 = vmatprep.subr.bf16.mxu0 %v8112_v37  ;;  %3648 = vmatprep.subr.bf16.mxu1 %v9742_v52 }
 0x500   : > { %3608 = vmatpush2.bf16.msra.mxu0 %v8122_v18  ;;  %3649 = vmatpush2.bf16.msra.mxu1 %v8126_v7 }
 0x501   : > { %3609 = vmatprep.subr.bf16.mxu0 %v8128_v21  ;;  %3650 = vmatprep.subr.bf16.mxu1 %v8131_v6 }
 0x504   : > { %3610 = vmatpush2.bf16.msra.mxu0 %v8138_v23  ;;  %3651 = vmatpush2.bf16.msra.mxu1 %v8142_v53 }
 0x505   : > { %3611 = vmatprep.subr.bf16.mxu0 %v8144_v30  ;;  %3652 = vmatprep.subr.bf16.mxu1 %v8147_v12 }
 0x508   : > { %3612 = vmatpush2.bf16.msra.mxu0 %v8150_v27  ;;  %3653 = vmatpush2.bf16.msra.mxu1 %v8154_v5 }
 0x509   : > { %3736 = vmatprep.subr.bf16.mxu0 %v7644_v54  ;;  %3777 = vmatprep.subr.bf16.mxu1 %v7653_v13 }
 0x50b   : > { %3614 = vmatmul.mubr.bf16.vlgmr.msra.gmra.mxu0 %v8233_v24  ;;  %3655 = vmatmul.mubr.bf16.vlgmr.msra.gmra.mxu1 %v8233_v24  ;;  %v9743_v24 = vld [vmem:[#allocation53_spill] sm:$0xff] }
 0x50c   : > { %3737 = vmatpush1.bf16.msra.mxu0 %v7647_v2  ;;  %3778 = vmatpush1.bf16.msra.mxu1 %v7655_v14 }
 0x50d   : > { %3738 = vmatprep.subr.bf16.mxu0 %v7657_v0  ;;  %3779 = vmatprep.subr.bf16.mxu1 %v7663_v22 }
 0x510   : > { %3739 = vmatpush1.bf16.msra.mxu0 %v7670_v28  ;;  %3780 = vmatpush1.bf16.msra.mxu1 %v7674_v16 }
 0x511   : > { %3740 = vmatprep.subr.bf16.mxu0 %v7676_v17  ;;  %3781 = vmatprep.subr.bf16.mxu1 %v7679_v32 }
 0x514   : > { %3741 = vmatpush1.bf16.msra.mxu0 %v7686_v11  ;;  %3782 = vmatpush1.bf16.msra.mxu1 %v7690_v31 }
 0x515   : > { %3742 = vmatprep.subr.bf16.mxu0 %v7692_v9  ;;  %3783 = vmatprep.subr.bf16.mxu1 %v7695_v35  ;;  %v3492_v35 = vld [vmem:[#allocation3 + $0x30] sm:$0xff] }
 0x518   : > { %3743 = vmatpush1.bf16.msra.mxu0 %v7702_v40  ;;  %3784 = vmatpush1.bf16.msra.mxu1 %v7706_v42  ;;  %v3491_v40 = vld [vmem:[#allocation3 + $0xd8] sm:$0xff] }
 0x519   : > { %3744 = vmatprep.subr.bf16.mxu0 %v7708_v43  ;;  %3785 = vmatprep.subr.bf16.mxu1 %v7711_v44 }
 0x51c   : > { %3745 = vmatpush1.bf16.msra.mxu0 %v7718_v49  ;;  %3786 = vmatpush1.bf16.msra.mxu1 %v7722_v51  ;;  %v9744_v49 = vld [vmem:[#allocation54_spill] sm:$0xff]  ;;  %v9745_v51 = vld [vmem:[#allocation55_spill] sm:$0xff] }
 0x51d   : > { %3746 = vmatprep.subr.bf16.mxu0 %v7724_v41  ;;  %3787 = vmatprep.subr.bf16.mxu1 %v7727_v61  ;;  %v9746_v41 = vld [vmem:[#allocation56_spill] sm:$0xff]  ;;  %v9747_v61 = vld [vmem:[#allocation57_spill] sm:$0xff] }
 0x520   : > { %3747 = vmatpush1.bf16.msra.mxu0 %v7734_v56  ;;  %3788 = vmatpush1.bf16.msra.mxu1 %v7738_v57  ;;  %v9748_v56 = vld [vmem:[#allocation58_spill] sm:$0xff]  ;;  %v9749_v57 = vld [vmem:[#allocation59_spill] sm:$0xff] }
 0x521   : > { %3748 = vmatprep.subr.bf16.mxu0 %v7740_v58  ;;  %3789 = vmatprep.subr.bf16.mxu1 %v7743_v59  ;;  %v9750_v58 = vld [vmem:[#allocation60_spill] sm:$0xff]  ;;  %v9751_v59 = vld [vmem:[#allocation61_spill] sm:$0xff] }
 0x524   : > { %3749 = vmatpush1.bf16.msra.mxu0 %v7750_v29  ;;  %3790 = vmatpush1.bf16.msra.mxu1 %v7754_v55  ;;  %v9752_v29 = vld [vmem:[#allocation62_spill] sm:$0xff]  ;;  %v9753_v55 = vld [vmem:[#allocation63_spill] sm:$0xff] }
 0x525   : > { %3750 = vmatprep.subr.bf16.mxu0 %v9743_v24  ;;  %3791 = vmatprep.subr.bf16.mxu1 %v9744_v49  ;;  %v9754_v24 = vld [vmem:[#allocation64_spill] sm:$0xff]  ;;  %v9755_v49 = vld [vmem:[#allocation65_spill] sm:$0xff] }
 0x528   : > { %3751 = vmatpush1.bf16.msra.mxu0 %v9745_v51  ;;  %3792 = vmatpush1.bf16.msra.mxu1 %v9746_v41  ;;  %v9756_v51 = vld [vmem:[#allocation66_spill] sm:$0xff]  ;;  %v9757_v41 = vld [vmem:[#allocation67_spill] sm:$0xff] }
 0x529   : > { %3752 = vmatprep.subr.bf16.mxu0 %v9747_v61  ;;  %3793 = vmatprep.subr.bf16.mxu1 %v9748_v56  ;;  %v9758_v61 = vld [vmem:[#allocation68_spill] sm:$0xff]  ;;  %v9759_v56 = vld [vmem:[#allocation69_spill] sm:$0xff] }
 0x52c   : > { %3753 = vmatpush2.bf16.msra.mxu0 %v9749_v57  ;;  %3794 = vmatpush2.bf16.msra.mxu1 %v9750_v58  ;;  %v9760_v57 = vld [vmem:[#allocation70_spill] sm:$0xff]  ;;  %v9761_v58 = vld [vmem:[#allocation71_spill] sm:$0xff] }
 0x52d   : > { %3754 = vmatprep.subr.bf16.mxu0 %v9751_v59  ;;  %3795 = vmatprep.subr.bf16.mxu1 %v9752_v29  ;;  %v9762_v59 = vld [vmem:[#allocation72_spill] sm:$0xff]  ;;  %v9763_v29 = vld [vmem:[#allocation73_spill] sm:$0xff] }
 0x530   : > { %3755 = vmatpush2.bf16.msra.mxu0 %v9753_v55  ;;  %3796 = vmatpush2.bf16.msra.mxu1 %v9754_v24  ;;  %v9764_v55 = vld [vmem:[#allocation74_spill] sm:$0xff]  ;;  %v9765_v24 = vld [vmem:[#allocation75_spill] sm:$0xff] }
 0x531   : > { %3756 = vmatprep.subr.bf16.mxu0 %v9755_v49  ;;  %3797 = vmatprep.subr.bf16.mxu1 %v9756_v51  ;;  %v9766_v49 = vld [vmem:[#allocation76_spill] sm:$0xff]  ;;  %v9767_v51 = vld [vmem:[#allocation77_spill] sm:$0xff] }
 0x534   : > { %3757 = vmatpush2.bf16.msra.mxu0 %v9757_v41  ;;  %3798 = vmatpush2.bf16.msra.mxu1 %v9758_v61  ;;  %v9768_v41 = vld [vmem:[#allocation78_spill] sm:$0xff]  ;;  %v9769_v61 = vld [vmem:[#allocation79_spill] sm:$0xff] }
 0x535   : > { %3758 = vmatprep.subr.bf16.mxu0 %v9759_v56  ;;  %3799 = vmatprep.subr.bf16.mxu1 %v9760_v57  ;;  %v9770_v56 = vld [vmem:[#allocation80_spill] sm:$0xff]  ;;  %v9771_v57 = vld [vmem:[#allocation81_spill] sm:$0xff] }
 0x538   : > { %3759 = vmatpush2.bf16.msra.mxu0 %v9761_v58  ;;  %3800 = vmatpush2.bf16.msra.mxu1 %v9762_v59  ;;  %v9772_v58 = vld [vmem:[#allocation82_spill] sm:$0xff]  ;;  %v9773_v59 = vld [vmem:[#allocation83_spill] sm:$0xff] }
 0x539   : > { %3760 = vmatprep.subr.bf16.mxu0 %v9763_v29  ;;  %3801 = vmatprep.subr.bf16.mxu1 %v9764_v55  ;;  %v9774_v29 = vld [vmem:[#allocation84_spill] sm:$0xff]  ;;  %v9775_v55 = vld [vmem:[#allocation85_spill] sm:$0xff] }
 0x53c   : > { %3761 = vmatpush2.bf16.msra.mxu0 %v9765_v24  ;;  %3802 = vmatpush2.bf16.msra.mxu1 %v9766_v49  ;;  %v9776_v24 = vld [vmem:[#allocation86_spill] sm:$0xff]  ;;  %v9777_v49 = vld [vmem:[#allocation87_spill] sm:$0xff] }
 0x53d   : > { %3762 = vmatprep.subr.bf16.mxu0 %v9767_v51  ;;  %3803 = vmatprep.subr.bf16.mxu1 %v9768_v41  ;;  %v9778_v51 = vld [vmem:[#allocation88_spill] sm:$0xff]  ;;  %v9779_v41 = vld [vmem:[#allocation89_spill] sm:$0xff] }
 0x540   : > { %3763 = vmatpush2.bf16.msra.mxu0 %v9769_v61  ;;  %3804 = vmatpush2.bf16.msra.mxu1 %v9770_v56  ;;  %v9780_v61 = vld [vmem:[#allocation90_spill] sm:$0xff] }
 0x541   : > { %3764 = vmatprep.subr.bf16.mxu0 %v9771_v57  ;;  %3805 = vmatprep.subr.bf16.mxu1 %v9772_v58 }
 0x544   : > { %3765 = vmatpush2.bf16.msra.mxu0 %v9773_v59  ;;  %3806 = vmatpush2.bf16.msra.mxu1 %v9774_v29 }
 0x545   : > { %3766 = vmatprep.subr.bf16.mxu0 %v9775_v55  ;;  %3807 = vmatprep.subr.bf16.mxu1 %v9776_v24  ;;  %v3493_v55 = vld [vmem:[#allocation3 + $0xb0] sm:$0xff] }
 0x548   : > { %3767 = vmatpush2.bf16.msra.mxu0 %v9777_v49  ;;  %3808 = vmatpush2.bf16.msra.mxu1 %v9778_v51  ;;  %v3494_v49 = vld [vmem:[#allocation3 + $0x158] sm:$0xff] }
 0x549   : > { %3818 = vmatprep.subr.bf16.mxu0 %v9779_v41  ;;  %3859 = vmatprep.subr.bf16.mxu1 %v9780_v61 }
 0x58b   : > { %v3533_v56 = vpop.f32.mrf.mxu0  ;;  %v3574_v57 = vpop.f32.mrf.mxu1 }
 0x58c   : > { %v3663_v24 = vadd.f32 %v3533_v56, %v3491_v40  ;;  %v3665_v9 = vadd.f32 %v3574_v57, %v3493_v55  ;;  %v3495_v40 = vld [vmem:[#allocation3 + $0x108] sm:$0xff]  ;;  %v3497_v56 = vld [vmem:[#allocation3 + $0x1f8] sm:$0xff] }
 0x58d   : > { %v3535_v44 = vpop.f32.mrf.mxu0  ;;  %v3576_v58 = vpop.f32.mrf.mxu1 }
 0x58e   : > { %v3664_v31 = vadd.f32 %v3535_v44, %v3492_v35  ;;  %v6027_v51 = vmul.f32 -1.442695, %v3663_v24  ;;  %v3666_v11 = vadd.f32 %v3576_v58, %v3494_v49  ;;  %v6029_v41 = vmul.f32 -1.442695, %v3665_v9  ;;  %v3496_v9 = vld [vmem:[#allocation3 + $0x110] sm:$0xff] }
 0x58f   : > { %v3537_v43 = vpop.f32.mrf.mxu0  ;;  %v3578_v59 = vpop.f32.mrf.mxu1 }
 0x590   : > { %v6028_v32 = vmul.f32 -1.442695, %v3664_v31  ;;  %6352 = vpow2.f32 %v6027_v51  ;;  %v6030_v61 = vmul.f32 -1.442695, %v3666_v11  ;;  %v3498_v31 = vld [vmem:[#allocation3 + $0xb8] sm:$0xff] }
 0x591   : > { %v3538_v42 = vpop.f32.mrf.mxu0  ;;  %v3579_v29 = vpop.f32.mrf.mxu1  ;;  %6354 = vpow2.f32 %v6029_v41 }
 0x592   : > { %6356 = vpow2.f32 %v6028_v32 }
 0x593   : > { %6358 = vpow2.f32 %v6030_v61 }
 0x59d   : > { %v6353_v43 = vpop.eup %6352 }
 0x59e   : > { %v6355_v59 = vpop.eup %6354  ;;  %v3677_v29 = vadd.f32 1.0, %v6353_v43 }
 0x59f   : > { %v6357_v42 = vpop.eup %6356  ;;  %v3689_v16 = vadd.f32 1.0, %v6355_v59 }
 0x5a0   : > { %v6359_v17 = vpop.eup %6358  ;;  %v3678_v28 = vadd.f32 1.0, %v6357_v42  ;;  %6360 = vrcp.f32 %v3677_v29 }
 0x5a1   : > { %v3690_v35 = vadd.f32 1.0, %v6359_v17  ;;  %6362 = vrcp.f32 %v3689_v16 }
 0x5a2   : > { %6364 = vrcp.f32 %v3678_v28 }
 0x5ad   : > { %v6361_v42 = vpop.eup %6360 }
 0x5ae   : > { %v6363_v16 = vpop.eup %6362 }
 0x5af   : > { %v6365_v29 = vpop.eup %6364 }
 0x5cb   : > { %v3615_v44 = vpop.f32.mrf.mxu0  ;;  %v3656_v49 = vpop.f32.mrf.mxu1 }
 0x5cc   : > { %v3667_v11 = vadd.f32 %v3615_v44, %v3495_v40  ;;  %v3669_v51 = vadd.f32 %v3656_v49, %v3497_v56  ;;  %v3709_v56 = vmul.f32 %v6363_v16, %v8227_v26  ;;  %v9782_v16 = vld [vmem:[#allocation101_spill] sm:$0xff] }
 0x5cd   : > { %v3617_v32 = vpop.f32.mrf.mxu0  ;;  %v3658_v41 = vpop.f32.mrf.mxu1 }
 0x5ce   : > { %6366 = vtanh.f32 %v3667_v11  ;;  %v6031_v61 = vmul.f32 -1.442695, %v3669_v51  ;;  %v3668_v57 = vadd.f32 %v3617_v32, %v3496_v9  ;;  %v3670_v58 = vadd.f32 %v3658_v41, %v3498_v31 }
 0x5cf   : > { %6368 = vrcp.f32 %v3690_v35  ;;  %v3619_v55 = vpop.f32.mrf.mxu0  ;;  %v3660_v24 = vpop.f32.mrf.mxu1 }
 0x5d0   : > { %6370 = vpow2.f32 %v6031_v61  ;;  %v6032_v43 = vmul.f32 -1.442695, %v3670_v58 }
 0x5d1   : > { %6372 = vtanh.f32 %v3668_v57  ;;  %v3620_v17 = vpop.f32.mrf.mxu0  ;;  %v3661_v59 = vpop.f32.mrf.mxu1 }
 0x5d2   : > { %6374 = vpow2.f32 %v6032_v43 }
 0x5db   : > { %v6367_v40 = vpop.eup %6366 }
 0x5dc   : > { %v6369_v28 = vpop.eup %6368  ;;  %v3711_v44 = vmul.f32 %v6367_v40, %v6361_v42  ;;  %v9784_v40 = vld [vmem:[#allocation103_spill] sm:$0xff] }
 0x5dd   : > { %v6371_v49 = vpop.eup %6370  ;;  %v3710_v51 = vmul.f32 %v6369_v28, %v8230_v47  ;;  %v9781_v47 = vld [vmem:[#allocation100_spill] sm:$0xff] }
 0x5de   : > { %v6373_v9 = vpop.eup %6372  ;;  %v8368_v31 = vadd.f32 %v3711_v44, %v3709_v56  ;;  %v3703_v35 = vadd.f32 1.0, %v6371_v49  ;;  %v9785_v28 = vld [vmem:[#allocation104_spill] sm:$0xff]  ;;  %v9786_v56 = vld [vmem:[#allocation105_spill] sm:$0xff]  ;;  %v9787_v44 = vld [vmem:[#allocation106_spill] sm:$0xff] }
 0x5df   : > { %v6375_v11 = vpop.eup %6374  ;;  %v3712_v32 = vmul.f32 %v6373_v9, %v6365_v29  ;;  %v9783_v29 = vld [vmem:[#allocation102_spill] sm:$0xff]  ;;  %v9788_v49 = vld [vmem:[#allocation107_spill] sm:$0xff]  ;;  %v9789_v9 = vld [vmem:[#allocation108_spill] sm:$0xff] }
 0x5e0   : > { %6376 = vtanh.f32 %v8368_v31  ;;  %v3704_v41 = vadd.f32 1.0, %v6375_v11  ;;  %v9791_v11 = vld [vmem:[#allocation110_spill] sm:$0xff] }
 0x5e1   : > { %6378 = vrcp.f32 %v3703_v35  ;;  %v8372_v61 = vadd.f32 %v3712_v32, %v3710_v51  ;;  %v9790_v35 = vld [vmem:[#allocation109_spill] sm:$0xff]  ;;  %v9792_v51 = vld [vmem:[#allocation111_spill] sm:$0xff]  ;;  %v9793_v32 = vld [vmem:[#allocation112_spill] sm:$0xff] }
 0x5e2   : > { %6380 = vrcp.f32 %v3704_v41  ;;  %v9794_v41 = vld [vmem:[#allocation113_spill] sm:$0xff] }
 0x5e3   : > { %6382 = vtanh.f32 %v8372_v61 }
 0x5ed   : > { %v6377_v26 = vpop.eup %6376 }
 0x5ee   : > { %v6379_v57 = vpop.eup %6378 }
 0x5ef   : > { %v6381_v58 = vpop.eup %6380  ;;  %v3717_v24 = vmul.f32 %v6379_v57, %v6377_v26  ;;  %v9795_v26 = vld [vmem:[#allocation114_spill] sm:$0xff]  ;;  %v9796_v57 = vld [vmem:[#allocation115_spill] sm:$0xff] }
 0x5f0   : > { %v6383_v55 = vpop.eup %6382 }
 0x5f1   : > { %v3718_v43 = vmul.f32 %v6383_v55, %v6381_v58  ;;  %v8375_v42 = vpack.c.bf16 %v3717_v24, %v3717_v24  ;;  %v9797_v58 = vld [vmem:[#allocation116_spill] sm:$0xff]  ;;  %v9798_v55 = vld [vmem:[#allocation117_spill] sm:$0xff] }
 0x5f3   : > { %v3720_v17 = vpack.c.bf16 %v3718_v43, %v3718_v43  ;;  %v6110_v59 = vpack.c.bf16 %v3718_v43, %v3717_v24  ;;  %v9799_v24 = vld [vmem:[#allocation118_spill] sm:$0xff]  ;;  %v9800_v43 = vld [vmem:[#allocation119_spill] sm:$0xff] }
 0x5f5   : > { %3768 = vmatprep.mubr.bf16.mxu0 %v3720_v17  ;;  %3809 = vmatprep.mubr.bf16.mxu1 %v3720_v17  ;;  %3727 = vst [vmem:[#allocation2] sm:$0xff] %v6110_v59  ;;  %v9802_v59 = vld [vmem:[#allocation121_spill] sm:$0xff] }
 0x5f6   : > { %3769 = vmatmul.mubr.bf16.vlgmr.msra.gmra.mxu0 %v8375_v42  ;;  %3810 = vmatmul.mubr.bf16.vlgmr.msra.gmra.mxu1 %v8375_v42 }
 0x5f7   : > { %3819 = vmatpush1.bf16.msra.mxu0 %v9694_v1  ;;  %3860 = vmatpush1.bf16.msra.mxu1 %v9695_v3 }
 0x5f8   : > { %3850 = vmatprep.mubr.bf16.mxu0 %v3720_v17  ;;  %3891 = vmatprep.mubr.bf16.mxu1 %v3720_v17  ;;  %v9801_v17 = vld [vmem:[#allocation120_spill] sm:$0xff] }
 0x5f9   : > { %3820 = vmatprep.subr.bf16.mxu0 %v9696_v34  ;;  %3861 = vmatprep.subr.bf16.mxu1 %v9697_v62 }
 0x5fb   : > { %3821 = vmatpush1.bf16.msra.mxu0 %v9698_v63  ;;  %3862 = vmatpush1.bf16.msra.mxu1 %v9699_v45 }
 0x5fc   : > { %3822 = vmatprep.subr.bf16.mxu0 %v9700_v15  ;;  %3863 = vmatprep.subr.bf16.mxu1 %v9701_v33 }
 0x5ff   : > { %3823 = vmatpush1.bf16.msra.mxu0 %v9702_v10  ;;  %3864 = vmatpush1.bf16.msra.mxu1 %v9781_v47 }
 0x600   : > { %3824 = vmatprep.subr.bf16.mxu0 %v9782_v16  ;;  %3865 = vmatprep.subr.bf16.mxu1 %v9783_v29 }
 0x603   : > { %3825 = vmatpush1.bf16.msra.mxu0 %v9784_v40  ;;  %3866 = vmatpush1.bf16.msra.mxu1 %v9785_v28 }
 0x604   : > { %3826 = vmatprep.subr.bf16.mxu0 %v9786_v56  ;;  %3867 = vmatprep.subr.bf16.mxu1 %v9787_v44 }
 0x607   : > { %3827 = vmatpush1.bf16.msra.mxu0 %v9788_v49  ;;  %3868 = vmatpush1.bf16.msra.mxu1 %v9789_v9 }
 0x608   : > { %3828 = vmatprep.subr.bf16.mxu0 %v9790_v35  ;;  %3869 = vmatprep.subr.bf16.mxu1 %v9791_v11 }
 0x60b   : > { %3829 = vmatpush1.bf16.msra.mxu0 %v9792_v51  ;;  %3870 = vmatpush1.bf16.msra.mxu1 %v9793_v32  ;;  %v9803_v51 = vld [vmem:[#allocation122_spill] sm:$0xff]  ;;  %v9804_v32 = vld [vmem:[#allocation123_spill] sm:$0xff] }
 0x60c   : > { %3830 = vmatprep.subr.bf16.mxu0 %v9794_v41  ;;  %3871 = vmatprep.subr.bf16.mxu1 %v9795_v26  ;;  %v9805_v41 = vld [vmem:[#allocation124_spill] sm:$0xff]  ;;  %v9806_v26 = vld [vmem:[#allocation125_spill] sm:$0xff] }
 0x60f   : > { %3831 = vmatpush1.bf16.msra.mxu0 %v9796_v57  ;;  %3872 = vmatpush1.bf16.msra.mxu1 %v9797_v58  ;;  %v9807_v57 = vld [vmem:[#allocation126_spill] sm:$0xff]  ;;  %v9808_v58 = vld [vmem:[#allocation127_spill] sm:$0xff] }
 0x610   : > { %3832 = vmatprep.subr.bf16.mxu0 %v9798_v55  ;;  %3873 = vmatprep.subr.bf16.mxu1 %v9799_v24 }
 0x613   : > { %3833 = vmatpush1.bf16.msra.mxu0 %v9800_v43  ;;  %3874 = vmatpush1.bf16.msra.mxu1 %v9801_v17  ;;  %v9809_v17 = vld [vmem:[#allocation131_spill] sm:$0xff] }
 0x614   : > { %3834 = vmatprep.subr.bf16.mxu0 %v9802_v59  ;;  %3875 = vmatprep.subr.bf16.mxu1 %v9803_v51 }
 0x617   : > { %3835 = vmatpush2.bf16.msra.mxu0 %v9804_v32  ;;  %3876 = vmatpush2.bf16.msra.mxu1 %v9805_v41 }
 0x618   : > { %3836 = vmatprep.subr.bf16.mxu0 %v9806_v26  ;;  %3877 = vmatprep.subr.bf16.mxu1 %v9807_v57 }
 0x61b   : > { %3837 = vmatpush2.bf16.msra.mxu0 %v9808_v58  ;;  %3878 = vmatpush2.bf16.msra.mxu1 %v9731_v20 }
 0x61c   : > { %3838 = vmatprep.subr.bf16.mxu0 %v9732_v50  ;;  %3879 = vmatprep.subr.bf16.mxu1 %v9733_v39 }
 0x61f   : > { %3839 = vmatpush2.bf16.msra.mxu0 %v9809_v17  ;;  %3880 = vmatpush2.bf16.msra.mxu1 %v9735_v4 }
 0x620   : > { %3840 = vmatprep.subr.bf16.mxu0 %v9736_v8  ;;  %3881 = vmatprep.subr.bf16.mxu1 %v9737_v46 }
 0x623   : > { %3841 = vmatpush2.bf16.msra.mxu0 %v9738_v36  ;;  %3882 = vmatpush2.bf16.msra.mxu1 %v9739_v60 }
 0x624   : > { %3842 = vmatprep.subr.bf16.mxu0 %v9740_v19  ;;  %3883 = vmatprep.subr.bf16.mxu1 %v9741_v25 }
 0x627   : > { %3843 = vmatpush2.bf16.msra.mxu0 %v8106_v38  ;;  %3884 = vmatpush2.bf16.msra.mxu1 %v8110_v48 }
 0x628   : > { %3844 = vmatprep.subr.bf16.mxu0 %v8112_v37  ;;  %3885 = vmatprep.subr.bf16.mxu1 %v9742_v52 }
 0x62b   : > { %3845 = vmatpush2.bf16.msra.mxu0 %v8122_v18  ;;  %3886 = vmatpush2.bf16.msra.mxu1 %v8126_v7  ;;  %v3729_v7 = vld [vmem:[#allocation3 + $0x190] sm:$0xff] }
 0x62c   : > { %3846 = vmatprep.subr.bf16.mxu0 %v8128_v21  ;;  %3887 = vmatprep.subr.bf16.mxu1 %v8131_v6  ;;  %v3728_v21 = vld [vmem:[#allocation3 + $0x180] sm:$0xff] }
 0x62f   : > { %3847 = vmatpush2.bf16.msra.mxu0 %v8138_v23  ;;  %3888 = vmatpush2.bf16.msra.mxu1 %v8142_v53 }
 0x630   : > { %3848 = vmatprep.subr.bf16.mxu0 %v8144_v30  ;;  %3889 = vmatprep.subr.bf16.mxu1 %v8147_v12  ;;  %v9810_v12 = vld [vmem:[#allocation31_spill] sm:$0xff]  ;;  %v9815_v30 = vld [vmem:[#allocation36_spill] sm:$0xff] }
 0x633   : > { %3849 = vmatpush2.bf16.msra.mxu0 %v8150_v27  ;;  %3890 = vmatpush2.bf16.msra.mxu1 %v8154_v5  ;;  %v9811_v27 = vld [vmem:[#allocation32_spill] sm:$0xff]  ;;  %v9812_v5 = vld [vmem:[#allocation33_spill] sm:$0xff] }
 0x634   : > { %3973 = vmatprep.subr.bf16.mxu0 %v7644_v54  ;;  %4014 = vmatprep.subr.bf16.mxu1 %v7653_v13  ;;  %v9813_v54 = vld [vmem:[#allocation34_spill] sm:$0xff]  ;;  %v9814_v13 = vld [vmem:[#allocation35_spill] sm:$0xff] }
 0x636   : > { %3851 = vmatmul.mubr.bf16.vlgmr.msra.gmra.mxu0 %v8375_v42  ;;  %3892 = vmatmul.mubr.bf16.vlgmr.msra.gmra.mxu1 %v8375_v42  ;;  %v9816_v42 = vld [vmem:[#allocation37_spill] sm:$0xff] }
 0x637   : > { %3974 = vmatpush1.bf16.msra.mxu0 %v7647_v2  ;;  %4015 = vmatpush1.bf16.msra.mxu1 %v7655_v14  ;;  %v9817_v2 = vld [vmem:[#allocation38_spill] sm:$0xff]  ;;  %v9818_v14 = vld [vmem:[#allocation39_spill] sm:$0xff] }
 0x638   : > { %3975 = vmatprep.subr.bf16.mxu0 %v7657_v0  ;;  %4016 = vmatprep.subr.bf16.mxu1 %v7663_v22  ;;  %v9819_v0 = vld [vmem:[#allocation40_spill] sm:$0xff]  ;;  %v9820_v22 = vld [vmem:[#allocation41_spill] sm:$0xff] }
 0x63b   : > { %3976 = vmatpush1.bf16.msra.mxu0 %v9810_v12  ;;  %4017 = vmatpush1.bf16.msra.mxu1 %v9811_v27  ;;  %v9821_v12 = vld [vmem:[#allocation42_spill] sm:$0xff]  ;;  %v9822_v27 = vld [vmem:[#allocation43_spill] sm:$0xff] }
 0x63c   : > { %3977 = vmatprep.subr.bf16.mxu0 %v9812_v5  ;;  %4018 = vmatprep.subr.bf16.mxu1 %v9813_v54  ;;  %v9823_v5 = vld [vmem:[#allocation44_spill] sm:$0xff]  ;;  %v9824_v54 = vld [vmem:[#allocation45_spill] sm:$0xff] }
 0x63f   : > { %3978 = vmatpush1.bf16.msra.mxu0 %v9814_v13  ;;  %4019 = vmatpush1.bf16.msra.mxu1 %v9815_v30  ;;  %v9825_v13 = vld [vmem:[#allocation46_spill] sm:$0xff]  ;;  %v9826_v30 = vld [vmem:[#allocation47_spill] sm:$0xff] }
 0x640   : > { %3979 = vmatprep.subr.bf16.mxu0 %v9816_v42  ;;  %4020 = vmatprep.subr.bf16.mxu1 %v9817_v2  ;;  %v9827_v42 = vld [vmem:[#allocation48_spill] sm:$0xff]  ;;  %v9828_v2 = vld [vmem:[#allocation49_spill] sm:$0xff] }
 0x643   : > { %3980 = vmatpush1.bf16.msra.mxu0 %v9818_v14  ;;  %4021 = vmatpush1.bf16.msra.mxu1 %v9819_v0  ;;  %v9829_v14 = vld [vmem:[#allocation50_spill] sm:$0xff]  ;;  %v9830_v0 = vld [vmem:[#allocation51_spill] sm:$0xff] }
 0x644   : > { %3981 = vmatprep.subr.bf16.mxu0 %v9820_v22  ;;  %4022 = vmatprep.subr.bf16.mxu1 %v9821_v12  ;;  %v9831_v22 = vld [vmem:[#allocation52_spill] sm:$0xff]  ;;  %v9832_v12 = vld [vmem:[#allocation53_spill] sm:$0xff] }
 0x647   : > { %3982 = vmatpush1.bf16.msra.mxu0 %v9822_v27  ;;  %4023 = vmatpush1.bf16.msra.mxu1 %v9823_v5  ;;  %v9833_v27 = vld [vmem:[#allocation54_spill] sm:$0xff]  ;;  %v9834_v5 = vld [vmem:[#allocation55_spill] sm:$0xff] }
 0x648   : > { %3983 = vmatprep.subr.bf16.mxu0 %v9824_v54  ;;  %4024 = vmatprep.subr.bf16.mxu1 %v9825_v13  ;;  %v9835_v54 = vld [vmem:[#allocation56_spill] sm:$0xff]  ;;  %v9836_v13 = vld [vmem:[#allocation57_spill] sm:$0xff] }
 0x64b   : > { %3984 = vmatpush1.bf16.msra.mxu0 %v9826_v30  ;;  %4025 = vmatpush1.bf16.msra.mxu1 %v9827_v42  ;;  %v9837_v30 = vld [vmem:[#allocation58_spill] sm:$0xff]  ;;  %v9838_v42 = vld [vmem:[#allocation59_spill] sm:$0xff] }
 0x64c   : > { %3985 = vmatprep.subr.bf16.mxu0 %v9828_v2  ;;  %4026 = vmatprep.subr.bf16.mxu1 %v9829_v14  ;;  %v9839_v2 = vld [vmem:[#allocation60_spill] sm:$0xff]  ;;  %v9840_v14 = vld [vmem:[#allocation61_spill] sm:$0xff] }
 0x64f   : > { %3986 = vmatpush1.bf16.msra.mxu0 %v9830_v0  ;;  %4027 = vmatpush1.bf16.msra.mxu1 %v9831_v22  ;;  %v9841_v0 = vld [vmem:[#allocation62_spill] sm:$0xff]  ;;  %v9842_v22 = vld [vmem:[#allocation63_spill] sm:$0xff] }
 0x650   : > { %3987 = vmatprep.subr.bf16.mxu0 %v9832_v12  ;;  %4028 = vmatprep.subr.bf16.mxu1 %v9833_v27  ;;  %v9843_v12 = vld [vmem:[#allocation64_spill] sm:$0xff]  ;;  %v9844_v27 = vld [vmem:[#allocation65_spill] sm:$0xff] }
 0x653   : > { %3988 = vmatpush1.bf16.msra.mxu0 %v9834_v5  ;;  %4029 = vmatpush1.bf16.msra.mxu1 %v9835_v54  ;;  %v9845_v5 = vld [vmem:[#allocation66_spill] sm:$0xff]  ;;  %v9846_v54 = vld [vmem:[#allocation67_spill] sm:$0xff] }
 0x654   : > { %3989 = vmatprep.subr.bf16.mxu0 %v9836_v13  ;;  %4030 = vmatprep.subr.bf16.mxu1 %v9837_v30  ;;  %v9847_v13 = vld [vmem:[#allocation68_spill] sm:$0xff]  ;;  %v9848_v30 = vld [vmem:[#allocation69_spill] sm:$0xff] }
 0x657   : > { %3990 = vmatpush2.bf16.msra.mxu0 %v9838_v42  ;;  %4031 = vmatpush2.bf16.msra.mxu1 %v9839_v2  ;;  %v9849_v42 = vld [vmem:[#allocation70_spill] sm:$0xff]  ;;  %v9850_v2 = vld [vmem:[#allocation71_spill] sm:$0xff] }
 0x658   : > { %3991 = vmatprep.subr.bf16.mxu0 %v9840_v14  ;;  %4032 = vmatprep.subr.bf16.mxu1 %v9841_v0  ;;  %v9851_v14 = vld [vmem:[#allocation72_spill] sm:$0xff]  ;;  %v9852_v0 = vld [vmem:[#allocation73_spill] sm:$0xff] }
 0x65b   : > { %3992 = vmatpush2.bf16.msra.mxu0 %v9842_v22  ;;  %4033 = vmatpush2.bf16.msra.mxu1 %v9843_v12  ;;  %v9853_v22 = vld [vmem:[#allocation74_spill] sm:$0xff]  ;;  %v9854_v12 = vld [vmem:[#allocation75_spill] sm:$0xff] }
 0x65c   : > { %3993 = vmatprep.subr.bf16.mxu0 %v9844_v27  ;;  %4034 = vmatprep.subr.bf16.mxu1 %v9845_v5  ;;  %v9855_v27 = vld [vmem:[#allocation76_spill] sm:$0xff]  ;;  %v9856_v5 = vld [vmem:[#allocation77_spill] sm:$0xff] }
 0x65f   : > { %3994 = vmatpush2.bf16.msra.mxu0 %v9846_v54  ;;  %4035 = vmatpush2.bf16.msra.mxu1 %v9847_v13  ;;  %v9857_v54 = vld [vmem:[#allocation78_spill] sm:$0xff]  ;;  %v9858_v13 = vld [vmem:[#allocation79_spill] sm:$0xff] }
 0x660   : > { %3995 = vmatprep.subr.bf16.mxu0 %v9848_v30  ;;  %4036 = vmatprep.subr.bf16.mxu1 %v9849_v42  ;;  %v9859_v30 = vld [vmem:[#allocation80_spill] sm:$0xff]  ;;  %v9860_v42 = vld [vmem:[#allocation81_spill] sm:$0xff] }
 0x663   : > { %3996 = vmatpush2.bf16.msra.mxu0 %v9850_v2  ;;  %4037 = vmatpush2.bf16.msra.mxu1 %v9851_v14  ;;  %v9861_v2 = vld [vmem:[#allocation82_spill] sm:$0xff]  ;;  %v9862_v14 = vld [vmem:[#allocation83_spill] sm:$0xff] }
 0x664   : > { %3997 = vmatprep.subr.bf16.mxu0 %v9852_v0  ;;  %4038 = vmatprep.subr.bf16.mxu1 %v9853_v22  ;;  %v9863_v0 = vld [vmem:[#allocation84_spill] sm:$0xff]  ;;  %v9864_v22 = vld [vmem:[#allocation85_spill] sm:$0xff] }
 0x667   : > { %3998 = vmatpush2.bf16.msra.mxu0 %v9854_v12  ;;  %4039 = vmatpush2.bf16.msra.mxu1 %v9855_v27  ;;  %v9865_v12 = vld [vmem:[#allocation86_spill] sm:$0xff]  ;;  %v9866_v27 = vld [vmem:[#allocation87_spill] sm:$0xff] }
 0x668   : > { %3999 = vmatprep.subr.bf16.mxu0 %v9856_v5  ;;  %4040 = vmatprep.subr.bf16.mxu1 %v9857_v54  ;;  %v9867_v5 = vld [vmem:[#allocation88_spill] sm:$0xff]  ;;  %v9868_v54 = vld [vmem:[#allocation89_spill] sm:$0xff] }
 0x66b   : > { %4000 = vmatpush2.bf16.msra.mxu0 %v9858_v13  ;;  %4041 = vmatpush2.bf16.msra.mxu1 %v9859_v30  ;;  %v9869_v13 = vld [vmem:[#allocation90_spill] sm:$0xff] }
 0x66c   : > { %4001 = vmatprep.subr.bf16.mxu0 %v9860_v42  ;;  %4042 = vmatprep.subr.bf16.mxu1 %v9861_v2 }
 0x66f   : > { %4002 = vmatpush2.bf16.msra.mxu0 %v9862_v14  ;;  %4043 = vmatpush2.bf16.msra.mxu1 %v9863_v0 }
 0x670   : > { %4003 = vmatprep.subr.bf16.mxu0 %v9864_v22  ;;  %4044 = vmatprep.subr.bf16.mxu1 %v9865_v12  ;;  %v3730_v22 = vld [vmem:[#allocation3 + $0x140] sm:$0xff] }
 0x673   : > { %4004 = vmatpush2.bf16.msra.mxu0 %v9866_v27  ;;  %4045 = vmatpush2.bf16.msra.mxu1 %v9867_v5  ;;  %v3731_v27 = vld [vmem:[#allocation3 + $0x1c0] sm:$0xff] }
 0x674   : > { %4055 = vmatprep.subr.bf16.mxu0 %v9868_v54  ;;  %4096 = vmatprep.subr.bf16.mxu1 %v9869_v13 }
 0x6b6   : > { %v3770_v30 = vpop.f32.mrf.mxu0  ;;  %v3811_v42 = vpop.f32.mrf.mxu1 }
 0x6b7   : > { %v3900_v12 = vadd.f32 %v3770_v30, %v3728_v21  ;;  %v3902_v18 = vadd.f32 %v3811_v42, %v3730_v22  ;;  %v3732_v21 = vld [vmem:[#allocation3 + $0xd0] sm:$0xff]  ;;  %v3734_v22 = vld [vmem:[#allocation3 + $0x60] sm:$0xff] }
 0x6b8   : > { %v3772_v53 = vpop.f32.mrf.mxu0  ;;  %v3813_v2 = vpop.f32.mrf.mxu1 }
 0x6b9   : > { %v3901_v52 = vadd.f32 %v3772_v53, %v3729_v7  ;;  %v6034_v5 = vmul.f32 -1.442695, %v3900_v12  ;;  %v3903_v37 = vadd.f32 %v3813_v2, %v3731_v27  ;;  %v6036_v54 = vmul.f32 -1.442695, %v3902_v18  ;;  %v3733_v27 = vld [vmem:[#allocation3 + $0x138] sm:$0xff] }
 0x6ba   : > { %v3774_v23 = vpop.f32.mrf.mxu0  ;;  %v3815_v14 = vpop.f32.mrf.mxu1  ;;  %v3735_v18 = vld [vmem:[#allocation3 + $0x1b8] sm:$0xff] }
 0x6bb   : > { %v6035_v48 = vmul.f32 -1.442695, %v3901_v52  ;;  %6384 = vpow2.f32 %v6034_v5  ;;  %v6037_v13 = vmul.f32 -1.442695, %v3903_v37 }
 0x6bc   : > { %v3775_v6 = vpop.f32.mrf.mxu0  ;;  %v3816_v0 = vpop.f32.mrf.mxu1  ;;  %6386 = vpow2.f32 %v6036_v54 }
 0x6bd   : > { %6388 = vpow2.f32 %v6035_v48 }
 0x6be   : > { %6390 = vpow2.f32 %v6037_v13 }
 0x6c8   : > { %v6385_v23 = vpop.eup %6384 }
 0x6c9   : > { %v6387_v14 = vpop.eup %6386  ;;  %v3914_v0 = vadd.f32 1.0, %v6385_v23 }
 0x6ca   : > { %v6389_v6 = vpop.eup %6388  ;;  %v3926_v25 = vadd.f32 1.0, %v6387_v14 }
 0x6cb   : > { %v6391_v38 = vpop.eup %6390  ;;  %v3915_v19 = vadd.f32 1.0, %v6389_v6  ;;  %6392 = vrcp.f32 %v3914_v0 }
 0x6cc   : > { %v3927_v7 = vadd.f32 1.0, %v6391_v38  ;;  %6394 = vrcp.f32 %v3926_v25 }
 0x6cd   : > { %6396 = vrcp.f32 %v3915_v19 }
 0x6d8   : > { %v6393_v6 = vpop.eup %6392 }
 0x6d9   : > { %v6395_v25 = vpop.eup %6394 }
 0x6da   : > { %v6397_v0 = vpop.eup %6396 }
 0x6f6   : > { %v3852_v53 = vpop.f32.mrf.mxu0  ;;  %v3893_v2 = vpop.f32.mrf.mxu1 }
 0x6f7   : > { %v3904_v37 = vadd.f32 %v3852_v53, %v3732_v21  ;;  %v3906_v54 = vadd.f32 %v3893_v2, %v3734_v22  ;;  %v3946_v22 = vmul.f32 %v6395_v25, %v8368_v31  ;;  %v9871_v25 = vld [vmem:[#allocation112_spill] sm:$0xff] }
 0x6f8   : > { %v3854_v13 = vpop.f32.mrf.mxu0  ;;  %v3895_v48 = vpop.f32.mrf.mxu1 }
 0x6f9   : > { %6398 = vtanh.f32 %v3904_v37  ;;  %v6038_v30 = vmul.f32 -1.442695, %v3906_v54  ;;  %v3905_v12 = vadd.f32 %v3854_v13, %v3733_v27  ;;  %v3907_v5 = vadd.f32 %v3895_v48, %v3735_v18 }
 0x6fa   : > { %6400 = vrcp.f32 %v3927_v7  ;;  %v3856_v52 = vpop.f32.mrf.mxu0  ;;  %v3897_v42 = vpop.f32.mrf.mxu1 }
 0x6fb   : > { %6402 = vpow2.f32 %v6038_v30  ;;  %v6039_v23 = vmul.f32 -1.442695, %v3907_v5 }
 0x6fc   : > { %6404 = vtanh.f32 %v3905_v12  ;;  %v3857_v38 = vpop.f32.mrf.mxu0  ;;  %v3898_v14 = vpop.f32.mrf.mxu1 }
 0x6fd   : > { %6406 = vpow2.f32 %v6039_v23 }
 0x706   : > { %v6399_v21 = vpop.eup %6398 }
 0x707   : > { %v6401_v19 = vpop.eup %6400  ;;  %v3948_v53 = vmul.f32 %v6399_v21, %v6393_v6  ;;  %v9873_v21 = vld [vmem:[#allocation114_spill] sm:$0xff] }
 0x708   : > { %v6403_v2 = vpop.eup %6402  ;;  %v3947_v54 = vmul.f32 %v6401_v19, %v8372_v61  ;;  %v9870_v61 = vld [vmem:[#allocation111_spill] sm:$0xff] }
 0x709   : > { %v6405_v27 = vpop.eup %6404  ;;  %v8510_v18 = vadd.f32 %v3948_v53, %v3946_v22  ;;  %v3940_v7 = vadd.f32 1.0, %v6403_v2  ;;  %v9874_v19 = vld [vmem:[#allocation115_spill] sm:$0xff]  ;;  %v9875_v22 = vld [vmem:[#allocation116_spill] sm:$0xff]  ;;  %v9877_v2 = vld [vmem:[#allocation137_spill] sm:$0xff] }
 0x70a   : > { %v6407_v37 = vpop.eup %6406  ;;  %v3949_v13 = vmul.f32 %v6405_v27, %v6397_v0  ;;  %v9872_v0 = vld [vmem:[#allocation113_spill] sm:$0xff]  ;;  %v9876_v53 = vld [vmem:[#allocation120_spill] sm:$0xff]  ;;  %v9878_v27 = vld [vmem:[#allocation138_spill] sm:$0xff] }
 0x70b   : > { %6408 = vtanh.f32 %v8510_v18  ;;  %v3941_v48 = vadd.f32 1.0, %v6407_v37  ;;  %v9880_v37 = vld [vmem:[#allocation140_spill] sm:$0xff] }
 0x70c   : > { %6410 = vrcp.f32 %v3940_v7  ;;  %v8514_v30 = vadd.f32 %v3949_v13, %v3947_v54  ;;  %v9879_v7 = vld [vmem:[#allocation139_spill] sm:$0xff]  ;;  %v9881_v54 = vld [vmem:[#allocation141_spill] sm:$0xff]  ;;  %v9882_v13 = vld [vmem:[#allocation142_spill] sm:$0xff] }
 0x70d   : > { %6412 = vrcp.f32 %v3941_v48  ;;  %v9883_v48 = vld [vmem:[#allocation143_spill] sm:$0xff] }
 0x70e   : > { %6414 = vtanh.f32 %v8514_v30 }
 0x718   : > { %v6409_v31 = vpop.eup %6408 }
 0x719   : > { %v6411_v12 = vpop.eup %6410 }
 0x71a   : > { %v6413_v5 = vpop.eup %6412  ;;  %v3954_v42 = vmul.f32 %v6411_v12, %v6409_v31  ;;  %v9884_v31 = vld [vmem:[#allocation144_spill] sm:$0xff]  ;;  %v9885_v12 = vld [vmem:[#allocation145_spill] sm:$0xff] }
 0x71b   : > { %v6415_v52 = vpop.eup %6414 }
 0x71c   : > { %v3955_v23 = vmul.f32 %v6415_v52, %v6413_v5  ;;  %v8517_v6 = vpack.c.bf16 %v3954_v42, %v3954_v42  ;;  %v9886_v5 = vld [vmem:[#allocation146_spill] sm:$0xff]  ;;  %v9887_v52 = vld [vmem:[#allocation147_spill] sm:$0xff] }
 0x71e   : > { %v3957_v38 = vpack.c.bf16 %v3955_v23, %v3955_v23  ;;  %v6111_v14 = vpack.c.bf16 %v3955_v23, %v3954_v42  ;;  %v9888_v42 = vld [vmem:[#allocation148_spill] sm:$0xff]  ;;  %v9889_v23 = vld [vmem:[#allocation149_spill] sm:$0xff] }
 0x720   : > { %4005 = vmatprep.mubr.bf16.mxu0 %v3957_v38  ;;  %4046 = vmatprep.mubr.bf16.mxu1 %v3957_v38  ;;  %3964 = vst [vmem:[#allocation2 + $0x18] sm:$0xff] %v6111_v14  ;;  %v9891_v14 = vld [vmem:[#allocation151_spill] sm:$0xff] }
 0x721   : > { %4006 = vmatmul.mubr.bf16.vlgmr.msra.gmra.mxu0 %v8517_v6  ;;  %4047 = vmatmul.mubr.bf16.vlgmr.msra.gmra.mxu1 %v8517_v6 }
 0x722   : > { %4056 = vmatpush1.bf16.msra.mxu0 %v9694_v1  ;;  %4097 = vmatpush1.bf16.msra.mxu1 %v9695_v3 }
 0x723   : > { %4087 = vmatprep.mubr.bf16.mxu0 %v3957_v38  ;;  %4128 = vmatprep.mubr.bf16.mxu1 %v3957_v38  ;;  %v9890_v38 = vld [vmem:[#allocation150_spill] sm:$0xff] }
 0x724   : > { %4057 = vmatprep.subr.bf16.mxu0 %v9696_v34  ;;  %4098 = vmatprep.subr.bf16.mxu1 %v9697_v62 }
 0x726   : > { %4058 = vmatpush1.bf16.msra.mxu0 %v9698_v63  ;;  %4099 = vmatpush1.bf16.msra.mxu1 %v9699_v45 }
 0x727   : > { %4059 = vmatprep.subr.bf16.mxu0 %v9700_v15  ;;  %4100 = vmatprep.subr.bf16.mxu1 %v9701_v33 }
 0x72a   : > { %4060 = vmatpush1.bf16.msra.mxu0 %v9702_v10  ;;  %4101 = vmatpush1.bf16.msra.mxu1 %v9781_v47 }
 0x72b   : > { %4061 = vmatprep.subr.bf16.mxu0 %v9782_v16  ;;  %4102 = vmatprep.subr.bf16.mxu1 %v9783_v29 }
 0x72e   : > { %4062 = vmatpush1.bf16.msra.mxu0 %v9784_v40  ;;  %4103 = vmatpush1.bf16.msra.mxu1 %v9785_v28 }
 0x72f   : > { %4063 = vmatprep.subr.bf16.mxu0 %v9786_v56  ;;  %4104 = vmatprep.subr.bf16.mxu1 %v9787_v44 }
 0x732   : > { %4064 = vmatpush1.bf16.msra.mxu0 %v9788_v49  ;;  %4105 = vmatpush1.bf16.msra.mxu1 %v9789_v9 }
 0x733   : > { %4065 = vmatprep.subr.bf16.mxu0 %v9790_v35  ;;  %4106 = vmatprep.subr.bf16.mxu1 %v9791_v11 }
 0x736   : > { %4066 = vmatpush1.bf16.msra.mxu0 %v9870_v61  ;;  %4107 = vmatpush1.bf16.msra.mxu1 %v9871_v25 }
 0x737   : > { %4067 = vmatprep.subr.bf16.mxu0 %v9872_v0  ;;  %4108 = vmatprep.subr.bf16.mxu1 %v9873_v21 }
 0x73a   : > { %4068 = vmatpush1.bf16.msra.mxu0 %v9874_v19  ;;  %4109 = vmatpush1.bf16.msra.mxu1 %v9875_v22 }
 0x73b   : > { %4069 = vmatprep.subr.bf16.mxu0 %v9798_v55  ;;  %4110 = vmatprep.subr.bf16.mxu1 %v9799_v24 }
 0x73e   : > { %4070 = vmatpush1.bf16.msra.mxu0 %v9800_v43  ;;  %4111 = vmatpush1.bf16.msra.mxu1 %v9876_v53 }
 0x73f   : > { %4071 = vmatprep.subr.bf16.mxu0 %v9802_v59  ;;  %4112 = vmatprep.subr.bf16.mxu1 %v9803_v51 }
 0x742   : > { %4072 = vmatpush2.bf16.msra.mxu0 %v9804_v32  ;;  %4113 = vmatpush2.bf16.msra.mxu1 %v9805_v41 }
 0x743   : > { %4073 = vmatprep.subr.bf16.mxu0 %v9806_v26  ;;  %4114 = vmatprep.subr.bf16.mxu1 %v9807_v57 }
 0x746   : > { %4074 = vmatpush2.bf16.msra.mxu0 %v9808_v58  ;;  %4115 = vmatpush2.bf16.msra.mxu1 %v9731_v20 }
 0x747   : > { %4075 = vmatprep.subr.bf16.mxu0 %v9732_v50  ;;  %4116 = vmatprep.subr.bf16.mxu1 %v9733_v39 }
 0x74a   : > { %4076 = vmatpush2.bf16.msra.mxu0 %v9809_v17  ;;  %4117 = vmatpush2.bf16.msra.mxu1 %v9735_v4 }
 0x74b   : > { %4077 = vmatprep.subr.bf16.mxu0 %v9736_v8  ;;  %4118 = vmatprep.subr.bf16.mxu1 %v9737_v46 }
 0x74e   : > { %4078 = vmatpush2.bf16.msra.mxu0 %v9738_v36  ;;  %4119 = vmatpush2.bf16.msra.mxu1 %v9739_v60 }
 0x74f   : > { %4079 = vmatprep.subr.bf16.mxu0 %v9877_v2  ;;  %4120 = vmatprep.subr.bf16.mxu1 %v9878_v27  ;;  %v3965_v27 = vld [vmem:[#allocation3 + $0x88] sm:$0xff] }
 0x750   : > { %v3966_v2 = vld [vmem:[#allocation3 + $0xc8] sm:$0xff] }
 0x752   : > { %4080 = vmatpush2.bf16.msra.mxu0 %v9879_v7  ;;  %4121 = vmatpush2.bf16.msra.mxu1 %v9880_v37 }
 0x753   : > { %4081 = vmatprep.subr.bf16.mxu0 %v9881_v54  ;;  %4122 = vmatprep.subr.bf16.mxu1 %v9882_v13  ;;  %v9892_v54 = vld [vmem:[#allocation152_spill] sm:$0xff]  ;;  %v9893_v13 = vld [vmem:[#allocation25_spill] sm:$0xff] }
 0x756   : > { %4082 = vmatpush2.bf16.msra.mxu0 %v9883_v48  ;;  %4123 = vmatpush2.bf16.msra.mxu1 %v9884_v31  ;;  %v9894_v48 = vld [vmem:[#allocation27_spill] sm:$0xff] }
 0x757   : > { %4083 = vmatprep.subr.bf16.mxu0 %v9885_v12  ;;  %4124 = vmatprep.subr.bf16.mxu1 %v9886_v5  ;;  %v9895_v5 = vld [vmem:[#allocation26_spill] sm:$0xff]  ;;  %v9904_v12 = vld [vmem:[#allocation36_spill] sm:$0xff] }
 0x75a   : > { %4084 = vmatpush2.bf16.msra.mxu0 %v9887_v52  ;;  %4125 = vmatpush2.bf16.msra.mxu1 %v9888_v42  ;;  %v9896_v52 = vld [vmem:[#allocation28_spill] sm:$0xff]  ;;  %v9897_v42 = vld [vmem:[#allocation29_spill] sm:$0xff] }
 0x75b   : > { %4085 = vmatprep.subr.bf16.mxu0 %v9889_v23  ;;  %4126 = vmatprep.subr.bf16.mxu1 %v9890_v38  ;;  %v9898_v23 = vld [vmem:[#allocation30_spill] sm:$0xff]  ;;  %v9899_v38 = vld [vmem:[#allocation31_spill] sm:$0xff] }
 0x75e   : > { %4086 = vmatpush2.bf16.msra.mxu0 %v9891_v14  ;;  %4127 = vmatpush2.bf16.msra.mxu1 %v9892_v54  ;;  %v9900_v14 = vld [vmem:[#allocation32_spill] sm:$0xff]  ;;  %v9901_v54 = vld [vmem:[#allocation33_spill] sm:$0xff] }
 0x75f   : > { %4210 = vmatprep.subr.bf16.mxu0 %v9893_v13  ;;  %4251 = vmatprep.subr.bf16.mxu1 %v9894_v48  ;;  %v9902_v13 = vld [vmem:[#allocation34_spill] sm:$0xff]  ;;  %v9903_v48 = vld [vmem:[#allocation35_spill] sm:$0xff] }
 0x761   : > { %4088 = vmatmul.mubr.bf16.vlgmr.msra.gmra.mxu0 %v8517_v6  ;;  %4129 = vmatmul.mubr.bf16.vlgmr.msra.gmra.mxu1 %v8517_v6  ;;  %v9905_v6 = vld [vmem:[#allocation37_spill] sm:$0xff] }
 0x762   : > { %4211 = vmatpush1.bf16.msra.mxu0 %v9895_v5  ;;  %4252 = vmatpush1.bf16.msra.mxu1 %v9896_v52  ;;  %v9906_v5 = vld [vmem:[#allocation38_spill] sm:$0xff]  ;;  %v9907_v52 = vld [vmem:[#allocation39_spill] sm:$0xff] }
 0x763   : > { %4212 = vmatprep.subr.bf16.mxu0 %v9897_v42  ;;  %4253 = vmatprep.subr.bf16.mxu1 %v9898_v23  ;;  %v9908_v42 = vld [vmem:[#allocation40_spill] sm:$0xff]  ;;  %v9909_v23 = vld [vmem:[#allocation41_spill] sm:$0xff] }
 0x766   : > { %4213 = vmatpush1.bf16.msra.mxu0 %v9899_v38  ;;  %4254 = vmatpush1.bf16.msra.mxu1 %v9900_v14  ;;  %v9910_v38 = vld [vmem:[#allocation42_spill] sm:$0xff]  ;;  %v9911_v14 = vld [vmem:[#allocation43_spill] sm:$0xff] }
 0x767   : > { %4214 = vmatprep.subr.bf16.mxu0 %v9901_v54  ;;  %4255 = vmatprep.subr.bf16.mxu1 %v9902_v13  ;;  %v9912_v54 = vld [vmem:[#allocation44_spill] sm:$0xff]  ;;  %v9913_v13 = vld [vmem:[#allocation45_spill] sm:$0xff] }
 0x76a   : > { %4215 = vmatpush1.bf16.msra.mxu0 %v9903_v48  ;;  %4256 = vmatpush1.bf16.msra.mxu1 %v9904_v12  ;;  %v9914_v48 = vld [vmem:[#allocation46_spill] sm:$0xff]  ;;  %v9915_v12 = vld [vmem:[#allocation47_spill] sm:$0xff] }
 0x76b   : > { %4216 = vmatprep.subr.bf16.mxu0 %v9905_v6  ;;  %4257 = vmatprep.subr.bf16.mxu1 %v9906_v5  ;;  %v9916_v6 = vld [vmem:[#allocation48_spill] sm:$0xff]  ;;  %v9917_v5 = vld [vmem:[#allocation49_spill] sm:$0xff] }
 0x76e   : > { %4217 = vmatpush1.bf16.msra.mxu0 %v9907_v52  ;;  %4258 = vmatpush1.bf16.msra.mxu1 %v9908_v42  ;;  %v9918_v52 = vld [vmem:[#allocation50_spill] sm:$0xff]  ;;  %v9919_v42 = vld [vmem:[#allocation51_spill] sm:$0xff] }
 0x76f   : > { %4218 = vmatprep.subr.bf16.mxu0 %v9909_v23  ;;  %4259 = vmatprep.subr.bf16.mxu1 %v9910_v38  ;;  %v9920_v23 = vld [vmem:[#allocation52_spill] sm:$0xff]  ;;  %v9921_v38 = vld [vmem:[#allocation53_spill] sm:$0xff] }
 0x772   : > { %4219 = vmatpush1.bf16.msra.mxu0 %v9911_v14  ;;  %4260 = vmatpush1.bf16.msra.mxu1 %v9912_v54  ;;  %v9922_v14 = vld [vmem:[#allocation54_spill] sm:$0xff]  ;;  %v9923_v54 = vld [vmem:[#allocation55_spill] sm:$0xff] }
 0x773   : > { %4220 = vmatprep.subr.bf16.mxu0 %v9913_v13  ;;  %4261 = vmatprep.subr.bf16.mxu1 %v9914_v48  ;;  %v9924_v13 = vld [vmem:[#allocation56_spill] sm:$0xff]  ;;  %v9925_v48 = vld [vmem:[#allocation57_spill] sm:$0xff] }
 0x776   : > { %4221 = vmatpush1.bf16.msra.mxu0 %v9915_v12  ;;  %4262 = vmatpush1.bf16.msra.mxu1 %v9916_v6  ;;  %v9926_v12 = vld [vmem:[#allocation58_spill] sm:$0xff]  ;;  %v9927_v6 = vld [vmem:[#allocation59_spill] sm:$0xff] }
 0x777   : > { %4222 = vmatprep.subr.bf16.mxu0 %v9917_v5  ;;  %4263 = vmatprep.subr.bf16.mxu1 %v9918_v52  ;;  %v9928_v5 = vld [vmem:[#allocation60_spill] sm:$0xff]  ;;  %v9929_v52 = vld [vmem:[#allocation61_spill] sm:$0xff] }
 0x77a   : > { %4223 = vmatpush1.bf16.msra.mxu0 %v9919_v42  ;;  %4264 = vmatpush1.bf16.msra.mxu1 %v9920_v23  ;;  %v9930_v42 = vld [vmem:[#allocation62_spill] sm:$0xff]  ;;  %v9931_v23 = vld [vmem:[#allocation63_spill] sm:$0xff] }
 0x77b   : > { %4224 = vmatprep.subr.bf16.mxu0 %v9921_v38  ;;  %4265 = vmatprep.subr.bf16.mxu1 %v9922_v14  ;;  %v9932_v38 = vld [vmem:[#allocation64_spill] sm:$0xff]  ;;  %v9933_v14 = vld [vmem:[#allocation65_spill] sm:$0xff] }
 0x77e   : > { %4225 = vmatpush1.bf16.msra.mxu0 %v9923_v54  ;;  %4266 = vmatpush1.bf16.msra.mxu1 %v9924_v13  ;;  %v9934_v54 = vld [vmem:[#allocation66_spill] sm:$0xff]  ;;  %v9935_v13 = vld [vmem:[#allocation67_spill] sm:$0xff] }
 0x77f   : > { %4226 = vmatprep.subr.bf16.mxu0 %v9925_v48  ;;  %4267 = vmatprep.subr.bf16.mxu1 %v9926_v12  ;;  %v9936_v48 = vld [vmem:[#allocation68_spill] sm:$0xff]  ;;  %v9937_v12 = vld [vmem:[#allocation69_spill] sm:$0xff] }
 0x782   : > { %4227 = vmatpush2.bf16.msra.mxu0 %v9927_v6  ;;  %4268 = vmatpush2.bf16.msra.mxu1 %v9928_v5  ;;  %v9938_v6 = vld [vmem:[#allocation70_spill] sm:$0xff]  ;;  %v9939_v5 = vld [vmem:[#allocation71_spill] sm:$0xff] }
 0x783   : > { %4228 = vmatprep.subr.bf16.mxu0 %v9929_v52  ;;  %4269 = vmatprep.subr.bf16.mxu1 %v9930_v42  ;;  %v9940_v52 = vld [vmem:[#allocation72_spill] sm:$0xff]  ;;  %v9941_v42 = vld [vmem:[#allocation73_spill] sm:$0xff] }
 0x786   : > { %4229 = vmatpush2.bf16.msra.mxu0 %v9931_v23  ;;  %4270 = vmatpush2.bf16.msra.mxu1 %v9932_v38  ;;  %v9942_v23 = vld [vmem:[#allocation74_spill] sm:$0xff]  ;;  %v9943_v38 = vld [vmem:[#allocation75_spill] sm:$0xff] }
 0x787   : > { %4230 = vmatprep.subr.bf16.mxu0 %v9933_v14  ;;  %4271 = vmatprep.subr.bf16.mxu1 %v9934_v54  ;;  %v9944_v14 = vld [vmem:[#allocation76_spill] sm:$0xff]  ;;  %v9945_v54 = vld [vmem:[#allocation77_spill] sm:$0xff] }
 0x78a   : > { %4231 = vmatpush2.bf16.msra.mxu0 %v9935_v13  ;;  %4272 = vmatpush2.bf16.msra.mxu1 %v9936_v48  ;;  %v9946_v13 = vld [vmem:[#allocation78_spill] sm:$0xff]  ;;  %v9947_v48 = vld [vmem:[#allocation79_spill] sm:$0xff] }
 0x78b   : > { %4232 = vmatprep.subr.bf16.mxu0 %v9937_v12  ;;  %4273 = vmatprep.subr.bf16.mxu1 %v9938_v6  ;;  %v9948_v12 = vld [vmem:[#allocation80_spill] sm:$0xff]  ;;  %v9949_v6 = vld [vmem:[#allocation81_spill] sm:$0xff] }
 0x78e   : > { %4233 = vmatpush2.bf16.msra.mxu0 %v9939_v5  ;;  %4274 = vmatpush2.bf16.msra.mxu1 %v9940_v52  ;;  %v9950_v5 = vld [vmem:[#allocation82_spill] sm:$0xff]  ;;  %v9951_v52 = vld [vmem:[#allocation83_spill] sm:$0xff] }
 0x78f   : > { %4234 = vmatprep.subr.bf16.mxu0 %v9941_v42  ;;  %4275 = vmatprep.subr.bf16.mxu1 %v9942_v23  ;;  %v9952_v42 = vld [vmem:[#allocation84_spill] sm:$0xff]  ;;  %v9953_v23 = vld [vmem:[#allocation85_spill] sm:$0xff] }
 0x792   : > { %4235 = vmatpush2.bf16.msra.mxu0 %v9943_v38  ;;  %4276 = vmatpush2.bf16.msra.mxu1 %v9944_v14  ;;  %v9954_v38 = vld [vmem:[#allocation86_spill] sm:$0xff]  ;;  %v9955_v14 = vld [vmem:[#allocation87_spill] sm:$0xff] }
 0x793   : > { %4236 = vmatprep.subr.bf16.mxu0 %v9945_v54  ;;  %4277 = vmatprep.subr.bf16.mxu1 %v9946_v13  ;;  %v9956_v54 = vld [vmem:[#allocation88_spill] sm:$0xff]  ;;  %v9957_v13 = vld [vmem:[#allocation89_spill] sm:$0xff] }
 0x796   : > { %4237 = vmatpush2.bf16.msra.mxu0 %v9947_v48  ;;  %4278 = vmatpush2.bf16.msra.mxu1 %v9948_v12  ;;  %v9958_v48 = vld [vmem:[#allocation90_spill] sm:$0xff] }
 0x797   : > { %4238 = vmatprep.subr.bf16.mxu0 %v9949_v6  ;;  %4279 = vmatprep.subr.bf16.mxu1 %v9950_v5 }
 0x79a   : > { %4239 = vmatpush2.bf16.msra.mxu0 %v9951_v52  ;;  %4280 = vmatpush2.bf16.msra.mxu1 %v9952_v42 }
 0x79b   : > { %4240 = vmatprep.subr.bf16.mxu0 %v9953_v23  ;;  %4281 = vmatprep.subr.bf16.mxu1 %v9954_v38  ;;  %v3967_v23 = vld [vmem:[#allocation3 + $0x188] sm:$0xff] }
 0x79e   : > { %4241 = vmatpush2.bf16.msra.mxu0 %v9955_v14  ;;  %4282 = vmatpush2.bf16.msra.mxu1 %v9956_v54  ;;  %v3968_v14 = vld [vmem:[#allocation3 + $0x38] sm:$0xff] }
 0x79f   : > { %4292 = vmatprep.subr.bf16.mxu0 %v9957_v13  ;;  %4333 = vmatprep.subr.bf16.mxu1 %v9958_v48 }
 0x7e1   : > { %v4007_v12 = vpop.f32.mrf.mxu0  ;;  %v4048_v6 = vpop.f32.mrf.mxu1 }
 0x7e2   : > { %v4137_v38 = vadd.f32 %v4007_v12, %v3965_v27  ;;  %v4139_v60 = vadd.f32 %v4048_v6, %v3967_v23  ;;  %v3969_v27 = vld [vmem:[#allocation3 + $0x1a8] sm:$0xff]  ;;  %v3971_v12 = vld [vmem:[#allocation3 + $0x98] sm:$0xff] }
 0x7e3   : > { %v4009_v31 = vpop.f32.mrf.mxu0  ;;  %v4050_v5 = vpop.f32.mrf.mxu1 }
 0x7e4   : > { %v4138_v36 = vadd.f32 %v4009_v31, %v3966_v2  ;;  %v6041_v54 = vmul.f32 -1.442695, %v4137_v38  ;;  %v4140_v46 = vadd.f32 %v4050_v5, %v3968_v14  ;;  %v6043_v13 = vmul.f32 -1.442695, %v4139_v60  ;;  %v3970_v60 = vld [vmem:[#allocation3 + $0x1e0] sm:$0xff] }
 0x7e5   : > { %v4011_v37 = vpop.f32.mrf.mxu0  ;;  %v4052_v52 = vpop.f32.mrf.mxu1 }
 0x7e6   : > { %v6042_v8 = vmul.f32 -1.442695, %v4138_v36  ;;  %6416 = vpow2.f32 %v6041_v54  ;;  %v6044_v48 = vmul.f32 -1.442695, %v4140_v46  ;;  %v3972_v36 = vld [vmem:[#allocation3 + $0x178] sm:$0xff] }
 0x7e7   : > { %v4012_v7 = vpop.f32.mrf.mxu0  ;;  %v4053_v42 = vpop.f32.mrf.mxu1  ;;  %6418 = vpow2.f32 %v6043_v13 }
 0x7e8   : > { %6420 = vpow2.f32 %v6042_v8 }
 0x7e9   : > { %6422 = vpow2.f32 %v6044_v48 }
 0x7f3   : > { %v6417_v37 = vpop.eup %6416 }
 0x7f4   : > { %v6419_v52 = vpop.eup %6418  ;;  %v4151_v42 = vadd.f32 1.0, %v6417_v37 }
 0x7f5   : > { %v6421_v7 = vpop.eup %6420  ;;  %v4163_v17 = vadd.f32 1.0, %v6419_v52 }
 0x7f6   : > { %v6423_v4 = vpop.eup %6422  ;;  %v4152_v39 = vadd.f32 1.0, %v6421_v7  ;;  %6424 = vrcp.f32 %v4151_v42 }
 0x7f7   : > { %v4164_v2 = vadd.f32 1.0, %v6423_v4  ;;  %6426 = vrcp.f32 %v4163_v17 }
 0x7f8   : > { %6428 = vrcp.f32 %v4152_v39 }
 0x803   : > { %v6425_v7 = vpop.eup %6424 }
 0x804   : > { %v6427_v17 = vpop.eup %6426 }
 0x805   : > { %v6429_v42 = vpop.eup %6428 }
 0x821   : > { %v4089_v31 = vpop.f32.mrf.mxu0  ;;  %v4130_v5 = vpop.f32.mrf.mxu1 }
 0x822   : > { %v4141_v46 = vadd.f32 %v4089_v31, %v3969_v27  ;;  %v4143_v54 = vadd.f32 %v4130_v5, %v3971_v12  ;;  %v4183_v12 = vmul.f32 %v6427_v17, %v8510_v18  ;;  %v9960_v17 = vld [vmem:[#allocation131_spill] sm:$0xff] }
 0x823   : > { %v4091_v8 = vpop.f32.mrf.mxu0  ;;  %v4132_v13 = vpop.f32.mrf.mxu1 }
 0x824   : > { %6430 = vtanh.f32 %v4141_v46  ;;  %v6045_v48 = vmul.f32 -1.442695, %v4143_v54  ;;  %v4142_v23 = vadd.f32 %v4091_v8, %v3970_v60  ;;  %v4144_v38 = vadd.f32 %v4132_v13, %v3972_v36 }
 0x825   : > { %6432 = vrcp.f32 %v4164_v2  ;;  %v4093_v14 = vpop.f32.mrf.mxu0  ;;  %v4134_v6 = vpop.f32.mrf.mxu1 }
 0x826   : > { %6434 = vpow2.f32 %v6045_v48  ;;  %v6046_v37 = vmul.f32 -1.442695, %v4144_v38 }
 0x827   : > { %6436 = vtanh.f32 %v4142_v23  ;;  %v4094_v4 = vpop.f32.mrf.mxu0  ;;  %v4135_v52 = vpop.f32.mrf.mxu1 }
 0x828   : > { %6438 = vpow2.f32 %v6046_v37 }
 0x831   : > { %v6431_v27 = vpop.eup %6430 }
 0x832   : > { %v6433_v39 = vpop.eup %6432  ;;  %v4185_v31 = vmul.f32 %v6431_v27, %v6425_v7  ;;  %v9962_v27 = vld [vmem:[#allocation133_spill] sm:$0xff] }
 0x833   : > { %v6435_v5 = vpop.eup %6434  ;;  %v4184_v54 = vmul.f32 %v6433_v39, %v8514_v30  ;;  %v9959_v30 = vld [vmem:[#allocation130_spill] sm:$0xff] }
 0x834   : > { %v6437_v60 = vpop.eup %6436  ;;  %v8652_v36 = vadd.f32 %v4185_v31, %v4183_v12  ;;  %v4177_v2 = vadd.f32 1.0, %v6435_v5  ;;  %v9963_v39 = vld [vmem:[#allocation134_spill] sm:$0xff]  ;;  %v9964_v12 = vld [vmem:[#allocation135_spill] sm:$0xff]  ;;  %v9965_v31 = vld [vmem:[#allocation136_spill] sm:$0xff] }
 0x835   : > { %v6439_v46 = vpop.eup %6438  ;;  %v4186_v8 = vmul.f32 %v6437_v60, %v6429_v42  ;;  %v9961_v42 = vld [vmem:[#allocation132_spill] sm:$0xff]  ;;  %v9966_v5 = vld [vmem:[#allocation137_spill] sm:$0xff]  ;;  %v9967_v60 = vld [vmem:[#allocation138_spill] sm:$0xff] }
 0x836   : > { %6440 = vtanh.f32 %v8652_v36  ;;  %v4178_v13 = vadd.f32 1.0, %v6439_v46  ;;  %v9969_v46 = vld [vmem:[#allocation140_spill] sm:$0xff] }
 0x837   : > { %6442 = vrcp.f32 %v4177_v2  ;;  %v8656_v48 = vadd.f32 %v4186_v8, %v4184_v54  ;;  %v9968_v2 = vld [vmem:[#allocation139_spill] sm:$0xff]  ;;  %v9970_v54 = vld [vmem:[#allocation141_spill] sm:$0xff]  ;;  %v9971_v8 = vld [vmem:[#allocation142_spill] sm:$0xff] }
 0x838   : > { %6444 = vrcp.f32 %v4178_v13  ;;  %v9972_v13 = vld [vmem:[#allocation143_spill] sm:$0xff] }
 0x839   : > { %6446 = vtanh.f32 %v8656_v48 }
 0x843   : > { %v6441_v18 = vpop.eup %6440 }
 0x844   : > { %v6443_v23 = vpop.eup %6442 }
 0x845   : > { %v6445_v38 = vpop.eup %6444  ;;  %v4191_v6 = vmul.f32 %v6443_v23, %v6441_v18  ;;  %v9973_v18 = vld [vmem:[#allocation144_spill] sm:$0xff]  ;;  %v9974_v23 = vld [vmem:[#allocation145_spill] sm:$0xff] }
 0x846   : > { %v6447_v14 = vpop.eup %6446 }
 0x847   : > { %v4192_v37 = vmul.f32 %v6447_v14, %v6445_v38  ;;  %v8659_v7 = vpack.c.bf16 %v4191_v6, %v4191_v6  ;;  %v9975_v38 = vld [vmem:[#allocation146_spill] sm:$0xff]  ;;  %v9976_v14 = vld [vmem:[#allocation147_spill] sm:$0xff] }
 0x849   : > { %v4194_v4 = vpack.c.bf16 %v4192_v37, %v4192_v37  ;;  %v6112_v52 = vpack.c.bf16 %v4192_v37, %v4191_v6  ;;  %v9977_v6 = vld [vmem:[#allocation148_spill] sm:$0xff]  ;;  %v9978_v37 = vld [vmem:[#allocation149_spill] sm:$0xff] }
 0x84b   : > { %4242 = vmatprep.mubr.bf16.mxu0 %v4194_v4  ;;  %4283 = vmatprep.mubr.bf16.mxu1 %v4194_v4  ;;  %4201 = vst [vmem:[#allocation2 + $0x10] sm:$0xff] %v6112_v52  ;;  %v9980_v52 = vld [vmem:[#allocation151_spill] sm:$0xff] }
 0x84c   : > { %4243 = vmatmul.mubr.bf16.vlgmr.msra.gmra.mxu0 %v8659_v7  ;;  %4284 = vmatmul.mubr.bf16.vlgmr.msra.gmra.mxu1 %v8659_v7 }
 0x84d   : > { %4293 = vmatpush1.bf16.msra.mxu0 %v9694_v1  ;;  %4334 = vmatpush1.bf16.msra.mxu1 %v9695_v3 }
 0x84e   : > { %4324 = vmatprep.mubr.bf16.mxu0 %v4194_v4  ;;  %4365 = vmatprep.mubr.bf16.mxu1 %v4194_v4  ;;  %v9979_v4 = vld [vmem:[#allocation150_spill] sm:$0xff] }
 0x84f   : > { %4294 = vmatprep.subr.bf16.mxu0 %v9696_v34  ;;  %4335 = vmatprep.subr.bf16.mxu1 %v9697_v62 }
 0x851   : > { %4295 = vmatpush1.bf16.msra.mxu0 %v9698_v63  ;;  %4336 = vmatpush1.bf16.msra.mxu1 %v9699_v45 }
 0x852   : > { %4296 = vmatprep.subr.bf16.mxu0 %v9700_v15  ;;  %4337 = vmatprep.subr.bf16.mxu1 %v9701_v33 }
 0x855   : > { %4297 = vmatpush1.bf16.msra.mxu0 %v9702_v10  ;;  %4338 = vmatpush1.bf16.msra.mxu1 %v9781_v47 }
 0x856   : > { %4298 = vmatprep.subr.bf16.mxu0 %v9782_v16  ;;  %4339 = vmatprep.subr.bf16.mxu1 %v9783_v29 }
 0x859   : > { %4299 = vmatpush1.bf16.msra.mxu0 %v9784_v40  ;;  %4340 = vmatpush1.bf16.msra.mxu1 %v9785_v28 }
 0x85a   : > { %4300 = vmatprep.subr.bf16.mxu0 %v9786_v56  ;;  %4341 = vmatprep.subr.bf16.mxu1 %v9787_v44 }
 0x85d   : > { %4301 = vmatpush1.bf16.msra.mxu0 %v9788_v49  ;;  %4342 = vmatpush1.bf16.msra.mxu1 %v9789_v9 }
 0x85e   : > { %4302 = vmatprep.subr.bf16.mxu0 %v9790_v35  ;;  %4343 = vmatprep.subr.bf16.mxu1 %v9791_v11 }
 0x861   : > { %4303 = vmatpush1.bf16.msra.mxu0 %v9870_v61  ;;  %4344 = vmatpush1.bf16.msra.mxu1 %v9871_v25 }
 0x862   : > { %4304 = vmatprep.subr.bf16.mxu0 %v9872_v0  ;;  %4345 = vmatprep.subr.bf16.mxu1 %v9873_v21 }
 0x865   : > { %4305 = vmatpush1.bf16.msra.mxu0 %v9874_v19  ;;  %4346 = vmatpush1.bf16.msra.mxu1 %v9875_v22 }
 0x866   : > { %4306 = vmatprep.subr.bf16.mxu0 %v9798_v55  ;;  %4347 = vmatprep.subr.bf16.mxu1 %v9799_v24 }
 0x869   : > { %4307 = vmatpush1.bf16.msra.mxu0 %v9800_v43  ;;  %4348 = vmatpush1.bf16.msra.mxu1 %v9876_v53 }
 0x86a   : > { %4308 = vmatprep.subr.bf16.mxu0 %v9802_v59  ;;  %4349 = vmatprep.subr.bf16.mxu1 %v9803_v51 }
 0x86d   : > { %4309 = vmatpush2.bf16.msra.mxu0 %v9804_v32  ;;  %4350 = vmatpush2.bf16.msra.mxu1 %v9805_v41 }
 0x86e   : > { %4310 = vmatprep.subr.bf16.mxu0 %v9806_v26  ;;  %4351 = vmatprep.subr.bf16.mxu1 %v9807_v57 }
 0x871   : > { %4311 = vmatpush2.bf16.msra.mxu0 %v9808_v58  ;;  %4352 = vmatpush2.bf16.msra.mxu1 %v9731_v20 }
 0x872   : > { %4312 = vmatprep.subr.bf16.mxu0 %v9732_v50  ;;  %4353 = vmatprep.subr.bf16.mxu1 %v9959_v30 }
 0x875   : > { %4313 = vmatpush2.bf16.msra.mxu0 %v9960_v17  ;;  %4354 = vmatpush2.bf16.msra.mxu1 %v9961_v42 }
 0x876   : > { %4314 = vmatprep.subr.bf16.mxu0 %v9962_v27  ;;  %4355 = vmatprep.subr.bf16.mxu1 %v9963_v39 }
 0x879   : > { %4315 = vmatpush2.bf16.msra.mxu0 %v9964_v12  ;;  %4356 = vmatpush2.bf16.msra.mxu1 %v9965_v31 }
 0x87a   : > { %4316 = vmatprep.subr.bf16.mxu0 %v9966_v5  ;;  %4357 = vmatprep.subr.bf16.mxu1 %v9967_v60  ;;  %v4202_v60 = vld [vmem:[#allocation3 + $0x48] sm:$0xff]  ;;  %v4203_v5 = vld [vmem:[#allocation3 + $0x20] sm:$0xff] }
 0x87d   : > { %4317 = vmatpush2.bf16.msra.mxu0 %v9968_v2  ;;  %4358 = vmatpush2.bf16.msra.mxu1 %v9969_v46 }
 0x87e   : > { %4318 = vmatprep.subr.bf16.mxu0 %v9970_v54  ;;  %4359 = vmatprep.subr.bf16.mxu1 %v9971_v8  ;;  %v9981_v54 = vld [vmem:[#allocation152_spill] sm:$0xff]  ;;  %v9982_v8 = vld [vmem:[#allocation25_spill] sm:$0xff] }
 0x881   : > { %4319 = vmatpush2.bf16.msra.mxu0 %v9972_v13  ;;  %4360 = vmatpush2.bf16.msra.mxu1 %v9973_v18  ;;  %v9983_v13 = vld [vmem:[#allocation27_spill] sm:$0xff] }
 0x882   : > { %4320 = vmatprep.subr.bf16.mxu0 %v9974_v23  ;;  %4361 = vmatprep.subr.bf16.mxu1 %v9975_v38  ;;  %v9984_v38 = vld [vmem:[#allocation26_spill] sm:$0xff]  ;;  %v9993_v23 = vld [vmem:[#allocation36_spill] sm:$0xff] }
 0x885   : > { %4321 = vmatpush2.bf16.msra.mxu0 %v9976_v14  ;;  %4362 = vmatpush2.bf16.msra.mxu1 %v9977_v6  ;;  %v9985_v14 = vld [vmem:[#allocation28_spill] sm:$0xff]  ;;  %v9986_v6 = vld [vmem:[#allocation29_spill] sm:$0xff] }
 0x886   : > { %4322 = vmatprep.subr.bf16.mxu0 %v9978_v37  ;;  %4363 = vmatprep.subr.bf16.mxu1 %v9979_v4  ;;  %v9987_v37 = vld [vmem:[#allocation30_spill] sm:$0xff]  ;;  %v9988_v4 = vld [vmem:[#allocation31_spill] sm:$0xff] }
 0x889   : > { %4323 = vmatpush2.bf16.msra.mxu0 %v9980_v52  ;;  %4364 = vmatpush2.bf16.msra.mxu1 %v9981_v54  ;;  %v9989_v52 = vld [vmem:[#allocation32_spill] sm:$0xff]  ;;  %v9990_v54 = vld [vmem:[#allocation33_spill] sm:$0xff] }
 0x88a   : > { %4447 = vmatprep.subr.bf16.mxu0 %v9982_v8  ;;  %4488 = vmatprep.subr.bf16.mxu1 %v9983_v13  ;;  %v9991_v8 = vld [vmem:[#allocation34_spill] sm:$0xff]  ;;  %v9992_v13 = vld [vmem:[#allocation35_spill] sm:$0xff] }
 0x88c   : > { %4325 = vmatmul.mubr.bf16.vlgmr.msra.gmra.mxu0 %v8659_v7  ;;  %4366 = vmatmul.mubr.bf16.vlgmr.msra.gmra.mxu1 %v8659_v7  ;;  %v9994_v7 = vld [vmem:[#allocation37_spill] sm:$0xff] }
 0x88d   : > { %4448 = vmatpush1.bf16.msra.mxu0 %v9984_v38  ;;  %4489 = vmatpush1.bf16.msra.mxu1 %v9985_v14  ;;  %v9995_v38 = vld [vmem:[#allocation38_spill] sm:$0xff]  ;;  %v9996_v14 = vld [vmem:[#allocation39_spill] sm:$0xff] }
 0x88e   : > { %4449 = vmatprep.subr.bf16.mxu0 %v9986_v6  ;;  %4490 = vmatprep.subr.bf16.mxu1 %v9987_v37  ;;  %v9997_v6 = vld [vmem:[#allocation40_spill] sm:$0xff]  ;;  %v9998_v37 = vld [vmem:[#allocation41_spill] sm:$0xff] }
 0x891   : > { %4450 = vmatpush1.bf16.msra.mxu0 %v9988_v4  ;;  %4491 = vmatpush1.bf16.msra.mxu1 %v9989_v52  ;;  %v9999_v4 = vld [vmem:[#allocation42_spill] sm:$0xff]  ;;  %v10000_v52 = vld [vmem:[#allocation43_spill] sm:$0xff] }
 0x892   : > { %4451 = vmatprep.subr.bf16.mxu0 %v9990_v54  ;;  %4492 = vmatprep.subr.bf16.mxu1 %v9991_v8  ;;  %v10001_v54 = vld [vmem:[#allocation44_spill] sm:$0xff]  ;;  %v10002_v8 = vld [vmem:[#allocation45_spill] sm:$0xff] }
 0x895   : > { %4452 = vmatpush1.bf16.msra.mxu0 %v9992_v13  ;;  %4493 = vmatpush1.bf16.msra.mxu1 %v9993_v23  ;;  %v10003_v13 = vld [vmem:[#allocation46_spill] sm:$0xff]  ;;  %v10004_v23 = vld [vmem:[#allocation47_spill] sm:$0xff] }
 0x896   : > { %4453 = vmatprep.subr.bf16.mxu0 %v9994_v7  ;;  %4494 = vmatprep.subr.bf16.mxu1 %v9995_v38  ;;  %v10005_v7 = vld [vmem:[#allocation48_spill] sm:$0xff]  ;;  %v10006_v38 = vld [vmem:[#allocation49_spill] sm:$0xff] }
 0x899   : > { %4454 = vmatpush1.bf16.msra.mxu0 %v9996_v14  ;;  %4495 = vmatpush1.bf16.msra.mxu1 %v9997_v6  ;;  %v10007_v14 = vld [vmem:[#allocation50_spill] sm:$0xff]  ;;  %v10008_v6 = vld [vmem:[#allocation51_spill] sm:$0xff] }
 0x89a   : > { %4455 = vmatprep.subr.bf16.mxu0 %v9998_v37  ;;  %4496 = vmatprep.subr.bf16.mxu1 %v9999_v4  ;;  %v10009_v37 = vld [vmem:[#allocation52_spill] sm:$0xff]  ;;  %v10010_v4 = vld [vmem:[#allocation53_spill] sm:$0xff] }
 0x89d   : > { %4456 = vmatpush1.bf16.msra.mxu0 %v10000_v52  ;;  %4497 = vmatpush1.bf16.msra.mxu1 %v10001_v54  ;;  %v10011_v52 = vld [vmem:[#allocation54_spill] sm:$0xff]  ;;  %v10012_v54 = vld [vmem:[#allocation55_spill] sm:$0xff] }
 0x89e   : > { %4457 = vmatprep.subr.bf16.mxu0 %v10002_v8  ;;  %4498 = vmatprep.subr.bf16.mxu1 %v10003_v13  ;;  %v10013_v8 = vld [vmem:[#allocation56_spill] sm:$0xff]  ;;  %v10014_v13 = vld [vmem:[#allocation57_spill] sm:$0xff] }
 0x8a1   : > { %4458 = vmatpush1.bf16.msra.mxu0 %v10004_v23  ;;  %4499 = vmatpush1.bf16.msra.mxu1 %v10005_v7  ;;  %v10015_v23 = vld [vmem:[#allocation58_spill] sm:$0xff]  ;;  %v10016_v7 = vld [vmem:[#allocation59_spill] sm:$0xff] }
 0x8a2   : > { %4459 = vmatprep.subr.bf16.mxu0 %v10006_v38  ;;  %4500 = vmatprep.subr.bf16.mxu1 %v10007_v14  ;;  %v10017_v38 = vld [vmem:[#allocation60_spill] sm:$0xff]  ;;  %v10018_v14 = vld [vmem:[#allocation61_spill] sm:$0xff] }
 0x8a5   : > { %4460 = vmatpush1.bf16.msra.mxu0 %v10008_v6  ;;  %4501 = vmatpush1.bf16.msra.mxu1 %v10009_v37  ;;  %v10019_v6 = vld [vmem:[#allocation62_spill] sm:$0xff]  ;;  %v10020_v37 = vld [vmem:[#allocation63_spill] sm:$0xff] }
 0x8a6   : > { %4461 = vmatprep.subr.bf16.mxu0 %v10010_v4  ;;  %4502 = vmatprep.subr.bf16.mxu1 %v10011_v52  ;;  %v10021_v4 = vld [vmem:[#allocation64_spill] sm:$0xff]  ;;  %v10022_v52 = vld [vmem:[#allocation65_spill] sm:$0xff] }
 0x8a9   : > { %4462 = vmatpush1.bf16.msra.mxu0 %v10012_v54  ;;  %4503 = vmatpush1.bf16.msra.mxu1 %v10013_v8  ;;  %v10023_v54 = vld [vmem:[#allocation66_spill] sm:$0xff]  ;;  %v10024_v8 = vld [vmem:[#allocation67_spill] sm:$0xff] }
 0x8aa   : > { %4463 = vmatprep.subr.bf16.mxu0 %v10014_v13  ;;  %4504 = vmatprep.subr.bf16.mxu1 %v10015_v23  ;;  %v10025_v13 = vld [vmem:[#allocation68_spill] sm:$0xff]  ;;  %v10026_v23 = vld [vmem:[#allocation69_spill] sm:$0xff] }
 0x8ad   : > { %4464 = vmatpush2.bf16.msra.mxu0 %v10016_v7  ;;  %4505 = vmatpush2.bf16.msra.mxu1 %v10017_v38  ;;  %v10027_v7 = vld [vmem:[#allocation70_spill] sm:$0xff]  ;;  %v10028_v38 = vld [vmem:[#allocation71_spill] sm:$0xff] }
 0x8ae   : > { %4465 = vmatprep.subr.bf16.mxu0 %v10018_v14  ;;  %4506 = vmatprep.subr.bf16.mxu1 %v10019_v6  ;;  %v10029_v14 = vld [vmem:[#allocation72_spill] sm:$0xff]  ;;  %v10030_v6 = vld [vmem:[#allocation73_spill] sm:$0xff] }
 0x8b1   : > { %4466 = vmatpush2.bf16.msra.mxu0 %v10020_v37  ;;  %4507 = vmatpush2.bf16.msra.mxu1 %v10021_v4  ;;  %v10031_v37 = vld [vmem:[#allocation74_spill] sm:$0xff]  ;;  %v10032_v4 = vld [vmem:[#allocation75_spill] sm:$0xff] }
 0x8b2   : > { %4467 = vmatprep.subr.bf16.mxu0 %v10022_v52  ;;  %4508 = vmatprep.subr.bf16.mxu1 %v10023_v54  ;;  %v10033_v52 = vld [vmem:[#allocation76_spill] sm:$0xff]  ;;  %v10034_v54 = vld [vmem:[#allocation77_spill] sm:$0xff] }
 0x8b5   : > { %4468 = vmatpush2.bf16.msra.mxu0 %v10024_v8  ;;  %4509 = vmatpush2.bf16.msra.mxu1 %v10025_v13  ;;  %v10035_v8 = vld [vmem:[#allocation78_spill] sm:$0xff]  ;;  %v10036_v13 = vld [vmem:[#allocation79_spill] sm:$0xff] }
 0x8b6   : > { %4469 = vmatprep.subr.bf16.mxu0 %v10026_v23  ;;  %4510 = vmatprep.subr.bf16.mxu1 %v10027_v7  ;;  %v10037_v23 = vld [vmem:[#allocation80_spill] sm:$0xff]  ;;  %v10038_v7 = vld [vmem:[#allocation81_spill] sm:$0xff] }
 0x8b9   : > { %4470 = vmatpush2.bf16.msra.mxu0 %v10028_v38  ;;  %4511 = vmatpush2.bf16.msra.mxu1 %v10029_v14  ;;  %v10039_v38 = vld [vmem:[#allocation82_spill] sm:$0xff]  ;;  %v10040_v14 = vld [vmem:[#allocation83_spill] sm:$0xff] }
 0x8ba   : > { %4471 = vmatprep.subr.bf16.mxu0 %v10030_v6  ;;  %4512 = vmatprep.subr.bf16.mxu1 %v10031_v37  ;;  %v10041_v6 = vld [vmem:[#allocation84_spill] sm:$0xff]  ;;  %v10042_v37 = vld [vmem:[#allocation85_spill] sm:$0xff] }
 0x8bd   : > { %4472 = vmatpush2.bf16.msra.mxu0 %v10032_v4  ;;  %4513 = vmatpush2.bf16.msra.mxu1 %v10033_v52  ;;  %v10043_v4 = vld [vmem:[#allocation86_spill] sm:$0xff]  ;;  %v10044_v52 = vld [vmem:[#allocation87_spill] sm:$0xff] }
 0x8be   : > { %4473 = vmatprep.subr.bf16.mxu0 %v10034_v54  ;;  %4514 = vmatprep.subr.bf16.mxu1 %v10035_v8  ;;  %v10045_v54 = vld [vmem:[#allocation88_spill] sm:$0xff]  ;;  %v10046_v8 = vld [vmem:[#allocation89_spill] sm:$0xff] }
 0x8c1   : > { %4474 = vmatpush2.bf16.msra.mxu0 %v10036_v13  ;;  %4515 = vmatpush2.bf16.msra.mxu1 %v10037_v23  ;;  %v10047_v13 = vld [vmem:[#allocation90_spill] sm:$0xff] }
 0x8c2   : > { %4475 = vmatprep.subr.bf16.mxu0 %v10038_v7  ;;  %4516 = vmatprep.subr.bf16.mxu1 %v10039_v38 }
 0x8c5   : > { %4476 = vmatpush2.bf16.msra.mxu0 %v10040_v14  ;;  %4517 = vmatpush2.bf16.msra.mxu1 %v10041_v6 }
 0x8c6   : > { %4477 = vmatprep.subr.bf16.mxu0 %v10042_v37  ;;  %4518 = vmatprep.subr.bf16.mxu1 %v10043_v4  ;;  %v4204_v37 = vld [vmem:[#allocation3 + $0x170] sm:$0xff] }
 0x8c9   : > { %4478 = vmatpush2.bf16.msra.mxu0 %v10044_v52  ;;  %4519 = vmatpush2.bf16.msra.mxu1 %v10045_v54  ;;  %v4205_v52 = vld [vmem:[#allocation3] sm:$0xff] }
 0x8ca   : > { %4529 = vmatprep.subr.bf16.mxu0 %v10046_v8  ;;  %4570 = vmatprep.subr.bf16.mxu1 %v10047_v13 }
 0x90c   : > { %v4244_v23 = vpop.f32.mrf.mxu0  ;;  %v4285_v7 = vpop.f32.mrf.mxu1 }
 0x90d   : > { %v4374_v4 = vadd.f32 %v4244_v23, %v4202_v60  ;;  %v4376_v31 = vadd.f32 %v4285_v7, %v4204_v37  ;;  %v4206_v60 = vld [vmem:[#allocation3 + $0xa0] sm:$0xff] }
 0x90e   : > { %v4246_v18 = vpop.f32.mrf.mxu0  ;;  %v4287_v38 = vpop.f32.mrf.mxu1  ;;  %v4208_v23 = vld [vmem:[#allocation3 + $0x1a0] sm:$0xff] }
 0x90f   : > { %v4375_v12 = vadd.f32 %v4246_v18, %v4203_v5  ;;  %v6048_v54 = vmul.f32 -1.442695, %v4374_v4  ;;  %v4377_v39 = vadd.f32 %v4287_v38, %v4205_v52  ;;  %v6050_v8 = vmul.f32 -1.442695, %v4376_v31  ;;  %v4207_v31 = vld [vmem:[#allocation3 + $0x10] sm:$0xff] }
 0x910   : > { %v4248_v46 = vpop.f32.mrf.mxu0  ;;  %v4289_v14 = vpop.f32.mrf.mxu1 }
 0x911   : > { %v6049_v27 = vmul.f32 -1.442695, %v4375_v12  ;;  %6448 = vpow2.f32 %v6048_v54  ;;  %v6051_v13 = vmul.f32 -1.442695, %v4377_v39  ;;  %v4209_v12 = vld [vmem:[#allocation3 + $0x1c8] sm:$0xff] }
 0x912   : > { %v4249_v2 = vpop.f32.mrf.mxu0  ;;  %v4290_v6 = vpop.f32.mrf.mxu1  ;;  %6450 = vpow2.f32 %v6050_v8 }
 0x913   : > { %6452 = vpow2.f32 %v6049_v27 }
 0x914   : > { %6454 = vpow2.f32 %v6051_v13 }
 0x91e   : > { %v6449_v46 = vpop.eup %6448 }
 0x91f   : > { %v6451_v14 = vpop.eup %6450  ;;  %v4388_v6 = vadd.f32 1.0, %v6449_v46 }
 0x920   : > { %v6453_v2 = vpop.eup %6452  ;;  %v4400_v17 = vadd.f32 1.0, %v6451_v14 }
 0x921   : > { %v6455_v42 = vpop.eup %6454  ;;  %v4389_v30 = vadd.f32 1.0, %v6453_v2  ;;  %6456 = vrcp.f32 %v4388_v6 }
 0x922   : > { %v4401_v5 = vadd.f32 1.0, %v6455_v42  ;;  %6458 = vrcp.f32 %v4400_v17 }
 0x923   : > { %6460 = vrcp.f32 %v4389_v30 }
 0x92e   : > { %v6457_v2 = vpop.eup %6456 }
 0x92f   : > { %v6459_v17 = vpop.eup %6458 }
 0x930   : > { %v6461_v6 = vpop.eup %6460 }
 0x94c   : > { %v4326_v18 = vpop.f32.mrf.mxu0  ;;  %v4367_v38 = vpop.f32.mrf.mxu1 }
 0x94d   : > { %v4378_v39 = vadd.f32 %v4326_v18, %v4206_v60  ;;  %v4380_v54 = vadd.f32 %v4367_v38, %v4208_v23  ;;  %v4420_v23 = vmul.f32 %v6459_v17, %v8652_v36  ;;  %v10049_v17 = vld [vmem:[#allocation131_spill] sm:$0xff] }
 0x94e   : > { %v4328_v27 = vpop.f32.mrf.mxu0  ;;  %v4369_v8 = vpop.f32.mrf.mxu1 }
 0x94f   : > { %6462 = vtanh.f32 %v4378_v39  ;;  %v6052_v13 = vmul.f32 -1.442695, %v4380_v54  ;;  %v4379_v37 = vadd.f32 %v4328_v27, %v4207_v31  ;;  %v4381_v4 = vadd.f32 %v4369_v8, %v4209_v12 }
 0x950   : > { %6464 = vrcp.f32 %v4401_v5  ;;  %v4330_v52 = vpop.f32.mrf.mxu0  ;;  %v4371_v7 = vpop.f32.mrf.mxu1 }
 0x951   : > { %6466 = vpow2.f32 %v6052_v13  ;;  %v6053_v46 = vmul.f32 -1.442695, %v4381_v4 }
 0x952   : > { %6468 = vtanh.f32 %v4379_v37  ;;  %v4331_v42 = vpop.f32.mrf.mxu0  ;;  %v4372_v14 = vpop.f32.mrf.mxu1 }
 0x953   : > { %6470 = vpow2.f32 %v6053_v46 }
 0x95c   : > { %v6463_v60 = vpop.eup %6462 }
 0x95d   : > { %v6465_v30 = vpop.eup %6464  ;;  %v4422_v18 = vmul.f32 %v6463_v60, %v6457_v2  ;;  %v10051_v60 = vld [vmem:[#allocation133_spill] sm:$0xff] }
 0x95e   : > { %v6467_v38 = vpop.eup %6466  ;;  %v4421_v54 = vmul.f32 %v6465_v30, %v8656_v48  ;;  %v10048_v48 = vld [vmem:[#allocation130_spill] sm:$0xff] }
 0x95f   : > { %v6469_v31 = vpop.eup %6468  ;;  %v8794_v12 = vadd.f32 %v4422_v18, %v4420_v23  ;;  %v4414_v5 = vadd.f32 1.0, %v6467_v38  ;;  %v10052_v30 = vld [vmem:[#allocation134_spill] sm:$0xff]  ;;  %v10053_v23 = vld [vmem:[#allocation135_spill] sm:$0xff]  ;;  %v10054_v18 = vld [vmem:[#allocation136_spill] sm:$0xff] }
 0x960   : > { %v6471_v39 = vpop.eup %6470  ;;  %v4423_v27 = vmul.f32 %v6469_v31, %v6461_v6  ;;  %v10050_v6 = vld [vmem:[#allocation132_spill] sm:$0xff]  ;;  %v10055_v38 = vld [vmem:[#allocation137_spill] sm:$0xff]  ;;  %v10056_v31 = vld [vmem:[#allocation138_spill] sm:$0xff] }
 0x961   : > { %6472 = vtanh.f32 %v8794_v12  ;;  %v4415_v8 = vadd.f32 1.0, %v6471_v39  ;;  %v10058_v39 = vld [vmem:[#allocation140_spill] sm:$0xff] }
 0x962   : > { %6474 = vrcp.f32 %v4414_v5  ;;  %v8798_v13 = vadd.f32 %v4423_v27, %v4421_v54  ;;  %v10057_v5 = vld [vmem:[#allocation139_spill] sm:$0xff]  ;;  %v10059_v54 = vld [vmem:[#allocation141_spill] sm:$0xff]  ;;  %v10060_v27 = vld [vmem:[#allocation142_spill] sm:$0xff] }
 0x963   : > { %6476 = vrcp.f32 %v4415_v8  ;;  %v10061_v8 = vld [vmem:[#allocation143_spill] sm:$0xff] }
 0x964   : > { %6478 = vtanh.f32 %v8798_v13 }
 0x96e   : > { %v6473_v36 = vpop.eup %6472 }
 0x96f   : > { %v6475_v37 = vpop.eup %6474 }
 0x970   : > { %v6477_v4 = vpop.eup %6476  ;;  %v4428_v7 = vmul.f32 %v6475_v37, %v6473_v36  ;;  %v10062_v36 = vld [vmem:[#allocation144_spill] sm:$0xff]  ;;  %v10063_v37 = vld [vmem:[#allocation145_spill] sm:$0xff] }
 0x971   : > { %v6479_v52 = vpop.eup %6478 }
 0x972   : > { %v4429_v46 = vmul.f32 %v6479_v52, %v6477_v4  ;;  %v8801_v2 = vpack.c.bf16 %v4428_v7, %v4428_v7  ;;  %v10064_v4 = vld [vmem:[#allocation146_spill] sm:$0xff]  ;;  %v10065_v52 = vld [vmem:[#allocation147_spill] sm:$0xff] }
 0x974   : > { %v4431_v42 = vpack.c.bf16 %v4429_v46, %v4429_v46  ;;  %v6113_v14 = vpack.c.bf16 %v4429_v46, %v4428_v7  ;;  %v10066_v7 = vld [vmem:[#allocation148_spill] sm:$0xff]  ;;  %v10067_v46 = vld [vmem:[#allocation149_spill] sm:$0xff] }
 0x976   : > { %4479 = vmatprep.mubr.bf16.mxu0 %v4431_v42  ;;  %4520 = vmatprep.mubr.bf16.mxu1 %v4431_v42  ;;  %4438 = vst [vmem:[#allocation2 + $0x8] sm:$0xff] %v6113_v14  ;;  %v10069_v14 = vld [vmem:[#allocation151_spill] sm:$0xff] }
 0x977   : > { %4480 = vmatmul.mubr.bf16.vlgmr.msra.gmra.mxu0 %v8801_v2  ;;  %4521 = vmatmul.mubr.bf16.vlgmr.msra.gmra.mxu1 %v8801_v2 }
 0x978   : > { %4530 = vmatpush1.bf16.msra.mxu0 %v9694_v1  ;;  %4571 = vmatpush1.bf16.msra.mxu1 %v9695_v3 }
 0x979   : > { %4561 = vmatprep.mubr.bf16.mxu0 %v4431_v42  ;;  %4602 = vmatprep.mubr.bf16.mxu1 %v4431_v42  ;;  %v10068_v42 = vld [vmem:[#allocation150_spill] sm:$0xff] }
 0x97a   : > { %4531 = vmatprep.subr.bf16.mxu0 %v9696_v34  ;;  %4572 = vmatprep.subr.bf16.mxu1 %v9697_v62 }
 0x97c   : > { %4532 = vmatpush1.bf16.msra.mxu0 %v9698_v63  ;;  %4573 = vmatpush1.bf16.msra.mxu1 %v9699_v45 }
 0x97d   : > { %4533 = vmatprep.subr.bf16.mxu0 %v9700_v15  ;;  %4574 = vmatprep.subr.bf16.mxu1 %v9701_v33 }
 0x980   : > { %4534 = vmatpush1.bf16.msra.mxu0 %v9702_v10  ;;  %4575 = vmatpush1.bf16.msra.mxu1 %v9781_v47 }
 0x981   : > { %4535 = vmatprep.subr.bf16.mxu0 %v9782_v16  ;;  %4576 = vmatprep.subr.bf16.mxu1 %v9783_v29 }
 0x984   : > { %4536 = vmatpush1.bf16.msra.mxu0 %v9784_v40  ;;  %4577 = vmatpush1.bf16.msra.mxu1 %v9785_v28 }
 0x985   : > { %4537 = vmatprep.subr.bf16.mxu0 %v9786_v56  ;;  %4578 = vmatprep.subr.bf16.mxu1 %v9787_v44 }
 0x988   : > { %4538 = vmatpush1.bf16.msra.mxu0 %v9788_v49  ;;  %4579 = vmatpush1.bf16.msra.mxu1 %v9789_v9 }
 0x989   : > { %4539 = vmatprep.subr.bf16.mxu0 %v9790_v35  ;;  %4580 = vmatprep.subr.bf16.mxu1 %v9791_v11 }
 0x98c   : > { %4540 = vmatpush1.bf16.msra.mxu0 %v9870_v61  ;;  %4581 = vmatpush1.bf16.msra.mxu1 %v9871_v25 }
 0x98d   : > { %4541 = vmatprep.subr.bf16.mxu0 %v9872_v0  ;;  %4582 = vmatprep.subr.bf16.mxu1 %v9873_v21 }
 0x990   : > { %4542 = vmatpush1.bf16.msra.mxu0 %v9874_v19  ;;  %4583 = vmatpush1.bf16.msra.mxu1 %v9875_v22 }
 0x991   : > { %4543 = vmatprep.subr.bf16.mxu0 %v9798_v55  ;;  %4584 = vmatprep.subr.bf16.mxu1 %v9799_v24 }
 0x994   : > { %4544 = vmatpush1.bf16.msra.mxu0 %v9800_v43  ;;  %4585 = vmatpush1.bf16.msra.mxu1 %v9876_v53 }
 0x995   : > { %4545 = vmatprep.subr.bf16.mxu0 %v9802_v59  ;;  %4586 = vmatprep.subr.bf16.mxu1 %v9803_v51 }
 0x998   : > { %4546 = vmatpush2.bf16.msra.mxu0 %v9804_v32  ;;  %4587 = vmatpush2.bf16.msra.mxu1 %v9805_v41 }
 0x999   : > { %4547 = vmatprep.subr.bf16.mxu0 %v9806_v26  ;;  %4588 = vmatprep.subr.bf16.mxu1 %v9807_v57 }
 0x99c   : > { %4548 = vmatpush2.bf16.msra.mxu0 %v9808_v58  ;;  %4589 = vmatpush2.bf16.msra.mxu1 %v9731_v20 }
 0x99d   : > { %4549 = vmatprep.subr.bf16.mxu0 %v9732_v50  ;;  %4590 = vmatprep.subr.bf16.mxu1 %v10048_v48 }
 0x9a0   : > { %4550 = vmatpush2.bf16.msra.mxu0 %v10049_v17  ;;  %4591 = vmatpush2.bf16.msra.mxu1 %v10050_v6 }
 0x9a1   : > { %4551 = vmatprep.subr.bf16.mxu0 %v10051_v60  ;;  %4592 = vmatprep.subr.bf16.mxu1 %v10052_v30 }
 0x9a4   : > { %4552 = vmatpush2.bf16.msra.mxu0 %v10053_v23  ;;  %4593 = vmatpush2.bf16.msra.mxu1 %v10054_v18 }
 0x9a5   : > { %4553 = vmatprep.subr.bf16.mxu0 %v10055_v38  ;;  %4594 = vmatprep.subr.bf16.mxu1 %v10056_v31  ;;  %v4439_v31 = vld [vmem:[#allocation3 + $0x8] sm:$0xff]  ;;  %v4440_v38 = vld [vmem:[#allocation3 + $0x130] sm:$0xff] }
 0x9a8   : > { %4554 = vmatpush2.bf16.msra.mxu0 %v10057_v5  ;;  %4595 = vmatpush2.bf16.msra.mxu1 %v10058_v39 }
 0x9a9   : > { %4555 = vmatprep.subr.bf16.mxu0 %v10059_v54  ;;  %4596 = vmatprep.subr.bf16.mxu1 %v10060_v27  ;;  %v10070_v54 = vld [vmem:[#allocation152_spill] sm:$0xff]  ;;  %v10071_v27 = vld [vmem:[#allocation25_spill] sm:$0xff] }
 0x9ac   : > { %4556 = vmatpush2.bf16.msra.mxu0 %v10061_v8  ;;  %4597 = vmatpush2.bf16.msra.mxu1 %v10062_v36  ;;  %v10072_v8 = vld [vmem:[#allocation27_spill] sm:$0xff] }
 0x9ad   : > { %4557 = vmatprep.subr.bf16.mxu0 %v10063_v37  ;;  %4598 = vmatprep.subr.bf16.mxu1 %v10064_v4  ;;  %v10073_v4 = vld [vmem:[#allocation26_spill] sm:$0xff]  ;;  %v10082_v37 = vld [vmem:[#allocation36_spill] sm:$0xff] }
 0x9b0   : > { %4558 = vmatpush2.bf16.msra.mxu0 %v10065_v52  ;;  %4599 = vmatpush2.bf16.msra.mxu1 %v10066_v7  ;;  %v10074_v52 = vld [vmem:[#allocation28_spill] sm:$0xff]  ;;  %v10075_v7 = vld [vmem:[#allocation29_spill] sm:$0xff] }
 0x9b1   : > { %4559 = vmatprep.subr.bf16.mxu0 %v10067_v46  ;;  %4600 = vmatprep.subr.bf16.mxu1 %v10068_v42  ;;  %v10076_v46 = vld [vmem:[#allocation30_spill] sm:$0xff]  ;;  %v10077_v42 = vld [vmem:[#allocation31_spill] sm:$0xff] }
 0x9b4   : > { %4560 = vmatpush2.bf16.msra.mxu0 %v10069_v14  ;;  %4601 = vmatpush2.bf16.msra.mxu1 %v10070_v54  ;;  %v10078_v14 = vld [vmem:[#allocation32_spill] sm:$0xff]  ;;  %v10079_v54 = vld [vmem:[#allocation33_spill] sm:$0xff] }
 0x9b5   : > { %4684 = vmatprep.subr.bf16.mxu0 %v10071_v27  ;;  %4725 = vmatprep.subr.bf16.mxu1 %v10072_v8  ;;  %v10080_v27 = vld [vmem:[#allocation34_spill] sm:$0xff]  ;;  %v10081_v8 = vld [vmem:[#allocation35_spill] sm:$0xff] }
 0x9b7   : > { %4562 = vmatmul.mubr.bf16.vlgmr.msra.gmra.mxu0 %v8801_v2  ;;  %4603 = vmatmul.mubr.bf16.vlgmr.msra.gmra.mxu1 %v8801_v2  ;;  %v10083_v2 = vld [vmem:[#allocation37_spill] sm:$0xff] }
 0x9b8   : > { %4685 = vmatpush1.bf16.msra.mxu0 %v10073_v4  ;;  %4726 = vmatpush1.bf16.msra.mxu1 %v10074_v52  ;;  %v10084_v4 = vld [vmem:[#allocation38_spill] sm:$0xff]  ;;  %v10085_v52 = vld [vmem:[#allocation39_spill] sm:$0xff] }
 0x9b9   : > { %4686 = vmatprep.subr.bf16.mxu0 %v10075_v7  ;;  %4727 = vmatprep.subr.bf16.mxu1 %v10076_v46  ;;  %v10086_v7 = vld [vmem:[#allocation40_spill] sm:$0xff]  ;;  %v10087_v46 = vld [vmem:[#allocation41_spill] sm:$0xff] }
 0x9bc   : > { %4687 = vmatpush1.bf16.msra.mxu0 %v10077_v42  ;;  %4728 = vmatpush1.bf16.msra.mxu1 %v10078_v14  ;;  %v10088_v42 = vld [vmem:[#allocation42_spill] sm:$0xff]  ;;  %v10089_v14 = vld [vmem:[#allocation43_spill] sm:$0xff] }
 0x9bd   : > { %4688 = vmatprep.subr.bf16.mxu0 %v10079_v54  ;;  %4729 = vmatprep.subr.bf16.mxu1 %v10080_v27  ;;  %v10090_v54 = vld [vmem:[#allocation44_spill] sm:$0xff]  ;;  %v10091_v27 = vld [vmem:[#allocation45_spill] sm:$0xff] }
 0x9c0   : > { %4689 = vmatpush1.bf16.msra.mxu0 %v10081_v8  ;;  %4730 = vmatpush1.bf16.msra.mxu1 %v10082_v37  ;;  %v10092_v8 = vld [vmem:[#allocation46_spill] sm:$0xff]  ;;  %v10093_v37 = vld [vmem:[#allocation47_spill] sm:$0xff] }
 0x9c1   : > { %4690 = vmatprep.subr.bf16.mxu0 %v10083_v2  ;;  %4731 = vmatprep.subr.bf16.mxu1 %v10084_v4  ;;  %v10094_v2 = vld [vmem:[#allocation48_spill] sm:$0xff]  ;;  %v10095_v4 = vld [vmem:[#allocation49_spill] sm:$0xff] }
 0x9c4   : > { %4691 = vmatpush1.bf16.msra.mxu0 %v10085_v52  ;;  %4732 = vmatpush1.bf16.msra.mxu1 %v10086_v7  ;;  %v10096_v52 = vld [vmem:[#allocation50_spill] sm:$0xff]  ;;  %v10097_v7 = vld [vmem:[#allocation51_spill] sm:$0xff] }
 0x9c5   : > { %4692 = vmatprep.subr.bf16.mxu0 %v10087_v46  ;;  %4733 = vmatprep.subr.bf16.mxu1 %v10088_v42  ;;  %v10098_v46 = vld [vmem:[#allocation52_spill] sm:$0xff]  ;;  %v10099_v42 = vld [vmem:[#allocation53_spill] sm:$0xff] }
 0x9c8   : > { %4693 = vmatpush1.bf16.msra.mxu0 %v10089_v14  ;;  %4734 = vmatpush1.bf16.msra.mxu1 %v10090_v54  ;;  %v10100_v14 = vld [vmem:[#allocation54_spill] sm:$0xff]  ;;  %v10101_v54 = vld [vmem:[#allocation55_spill] sm:$0xff] }
 0x9c9   : > { %4694 = vmatprep.subr.bf16.mxu0 %v10091_v27  ;;  %4735 = vmatprep.subr.bf16.mxu1 %v10092_v8  ;;  %v10102_v27 = vld [vmem:[#allocation56_spill] sm:$0xff]  ;;  %v10103_v8 = vld [vmem:[#allocation57_spill] sm:$0xff] }
 0x9cc   : > { %4695 = vmatpush1.bf16.msra.mxu0 %v10093_v37  ;;  %4736 = vmatpush1.bf16.msra.mxu1 %v10094_v2  ;;  %v10104_v37 = vld [vmem:[#allocation58_spill] sm:$0xff]  ;;  %v10105_v2 = vld [vmem:[#allocation59_spill] sm:$0xff] }
 0x9cd   : > { %4696 = vmatprep.subr.bf16.mxu0 %v10095_v4  ;;  %4737 = vmatprep.subr.bf16.mxu1 %v10096_v52  ;;  %v10106_v4 = vld [vmem:[#allocation60_spill] sm:$0xff]  ;;  %v10107_v52 = vld [vmem:[#allocation61_spill] sm:$0xff] }
 0x9d0   : > { %4697 = vmatpush1.bf16.msra.mxu0 %v10097_v7  ;;  %4738 = vmatpush1.bf16.msra.mxu1 %v10098_v46  ;;  %v10108_v7 = vld [vmem:[#allocation62_spill] sm:$0xff]  ;;  %v10109_v46 = vld [vmem:[#allocation63_spill] sm:$0xff] }
 0x9d1   : > { %4698 = vmatprep.subr.bf16.mxu0 %v10099_v42  ;;  %4739 = vmatprep.subr.bf16.mxu1 %v10100_v14  ;;  %v10110_v42 = vld [vmem:[#allocation64_spill] sm:$0xff]  ;;  %v10111_v14 = vld [vmem:[#allocation65_spill] sm:$0xff] }
 0x9d4   : > { %4699 = vmatpush1.bf16.msra.mxu0 %v10101_v54  ;;  %4740 = vmatpush1.bf16.msra.mxu1 %v10102_v27  ;;  %v10112_v54 = vld [vmem:[#allocation66_spill] sm:$0xff]  ;;  %v10113_v27 = vld [vmem:[#allocation67_spill] sm:$0xff] }
 0x9d5   : > { %4700 = vmatprep.subr.bf16.mxu0 %v10103_v8  ;;  %4741 = vmatprep.subr.bf16.mxu1 %v10104_v37  ;;  %v10114_v8 = vld [vmem:[#allocation68_spill] sm:$0xff]  ;;  %v10115_v37 = vld [vmem:[#allocation69_spill] sm:$0xff] }
 0x9d8   : > { %4701 = vmatpush2.bf16.msra.mxu0 %v10105_v2  ;;  %4742 = vmatpush2.bf16.msra.mxu1 %v10106_v4  ;;  %v10116_v2 = vld [vmem:[#allocation70_spill] sm:$0xff]  ;;  %v10117_v4 = vld [vmem:[#allocation71_spill] sm:$0xff] }
 0x9d9   : > { %4702 = vmatprep.subr.bf16.mxu0 %v10107_v52  ;;  %4743 = vmatprep.subr.bf16.mxu1 %v10108_v7  ;;  %v10118_v52 = vld [vmem:[#allocation72_spill] sm:$0xff]  ;;  %v10119_v7 = vld [vmem:[#allocation73_spill] sm:$0xff] }
 0x9dc   : > { %4703 = vmatpush2.bf16.msra.mxu0 %v10109_v46  ;;  %4744 = vmatpush2.bf16.msra.mxu1 %v10110_v42  ;;  %v10120_v46 = vld [vmem:[#allocation74_spill] sm:$0xff]  ;;  %v10121_v42 = vld [vmem:[#allocation75_spill] sm:$0xff] }
 0x9dd   : > { %4704 = vmatprep.subr.bf16.mxu0 %v10111_v14  ;;  %4745 = vmatprep.subr.bf16.mxu1 %v10112_v54  ;;  %v10122_v14 = vld [vmem:[#allocation76_spill] sm:$0xff]  ;;  %v10123_v54 = vld [vmem:[#allocation77_spill] sm:$0xff] }
 0x9e0   : > { %4705 = vmatpush2.bf16.msra.mxu0 %v10113_v27  ;;  %4746 = vmatpush2.bf16.msra.mxu1 %v10114_v8  ;;  %v10124_v27 = vld [vmem:[#allocation78_spill] sm:$0xff]  ;;  %v10125_v8 = vld [vmem:[#allocation79_spill] sm:$0xff] }
 0x9e1   : > { %4706 = vmatprep.subr.bf16.mxu0 %v10115_v37  ;;  %4747 = vmatprep.subr.bf16.mxu1 %v10116_v2  ;;  %v10126_v37 = vld [vmem:[#allocation80_spill] sm:$0xff]  ;;  %v10127_v2 = vld [vmem:[#allocation81_spill] sm:$0xff] }
 0x9e4   : > { %4707 = vmatpush2.bf16.msra.mxu0 %v10117_v4  ;;  %4748 = vmatpush2.bf16.msra.mxu1 %v10118_v52  ;;  %v10128_v4 = vld [vmem:[#allocation82_spill] sm:$0xff]  ;;  %v10129_v52 = vld [vmem:[#allocation83_spill] sm:$0xff] }
 0x9e5   : > { %4708 = vmatprep.subr.bf16.mxu0 %v10119_v7  ;;  %4749 = vmatprep.subr.bf16.mxu1 %v10120_v46  ;;  %v10130_v7 = vld [vmem:[#allocation84_spill] sm:$0xff]  ;;  %v10131_v46 = vld [vmem:[#allocation85_spill] sm:$0xff] }
 0x9e8   : > { %4709 = vmatpush2.bf16.msra.mxu0 %v10121_v42  ;;  %4750 = vmatpush2.bf16.msra.mxu1 %v10122_v14  ;;  %v10132_v42 = vld [vmem:[#allocation86_spill] sm:$0xff]  ;;  %v10133_v14 = vld [vmem:[#allocation87_spill] sm:$0xff] }
 0x9e9   : > { %4710 = vmatprep.subr.bf16.mxu0 %v10123_v54  ;;  %4751 = vmatprep.subr.bf16.mxu1 %v10124_v27  ;;  %v10134_v54 = vld [vmem:[#allocation88_spill] sm:$0xff]  ;;  %v10135_v27 = vld [vmem:[#allocation89_spill] sm:$0xff] }
 0x9ec   : > { %4711 = vmatpush2.bf16.msra.mxu0 %v10125_v8  ;;  %4752 = vmatpush2.bf16.msra.mxu1 %v10126_v37  ;;  %v10136_v8 = vld [vmem:[#allocation90_spill] sm:$0xff] }
 0x9ed   : > { %4712 = vmatprep.subr.bf16.mxu0 %v10127_v2  ;;  %4753 = vmatprep.subr.bf16.mxu1 %v10128_v4 }
 0x9f0   : > { %4713 = vmatpush2.bf16.msra.mxu0 %v10129_v52  ;;  %4754 = vmatpush2.bf16.msra.mxu1 %v10130_v7 }
 0x9f1   : > { %4714 = vmatprep.subr.bf16.mxu0 %v10131_v46  ;;  %4755 = vmatprep.subr.bf16.mxu1 %v10132_v42  ;;  %v4441_v46 = vld [vmem:[#allocation3 + $0xa8] sm:$0xff] }
 0x9f4   : > { %4715 = vmatpush2.bf16.msra.mxu0 %v10133_v14  ;;  %4756 = vmatpush2.bf16.msra.mxu1 %v10134_v54  ;;  %v4442_v14 = vld [vmem:[#allocation3 + $0x1d8] sm:$0xff] }
 0x9f5   : > { %4766 = vmatprep.subr.bf16.mxu0 %v10135_v27  ;;  %4807 = vmatprep.subr.bf16.mxu1 %v10136_v8 }
 0xa37   : > { %v4481_v37 = vpop.f32.mrf.mxu0  ;;  %v4522_v2 = vpop.f32.mrf.mxu1 }
 0xa38   : > { %v4611_v42 = vadd.f32 %v4481_v37, %v4439_v31  ;;  %v4613_v18 = vadd.f32 %v4522_v2, %v4441_v46  ;;  %v4443_v31 = vld [vmem:[#allocation3 + $0x70] sm:$0xff]  ;;  %v4445_v37 = vld [vmem:[#allocation3 + $0xf8] sm:$0xff] }
 0xa39   : > { %v4483_v36 = vpop.f32.mrf.mxu0  ;;  %v4524_v4 = vpop.f32.mrf.mxu1 }
 0xa3a   : > { %v4612_v23 = vadd.f32 %v4483_v36, %v4440_v38  ;;  %v6055_v54 = vmul.f32 -1.442695, %v4611_v42  ;;  %v4614_v30 = vadd.f32 %v4524_v4, %v4442_v14  ;;  %v6057_v27 = vmul.f32 -1.442695, %v4613_v18  ;;  %v4444_v18 = vld [vmem:[#allocation3 + $0x50] sm:$0xff] }
 0xa3b   : > { %v4485_v39 = vpop.f32.mrf.mxu0  ;;  %v4526_v52 = vpop.f32.mrf.mxu1 }
 0xa3c   : > { %v6056_v60 = vmul.f32 -1.442695, %v4612_v23  ;;  %6480 = vpow2.f32 %v6055_v54  ;;  %v6058_v8 = vmul.f32 -1.442695, %v4614_v30  ;;  %v4446_v23 = vld [vmem:[#allocation3 + $0x168] sm:$0xff] }
 0xa3d   : > { %v4486_v5 = vpop.f32.mrf.mxu0  ;;  %v4527_v7 = vpop.f32.mrf.mxu1  ;;  %6482 = vpow2.f32 %v6057_v27 }
 0xa3e   : > { %6484 = vpow2.f32 %v6056_v60 }
 0xa3f   : > { %6486 = vpow2.f32 %v6058_v8 }
 0xa49   : > { %v6481_v39 = vpop.eup %6480 }
 0xa4a   : > { %v6483_v52 = vpop.eup %6482  ;;  %v4625_v7 = vadd.f32 1.0, %v6481_v39 }
 0xa4b   : > { %v6485_v5 = vpop.eup %6484  ;;  %v4637_v17 = vadd.f32 1.0, %v6483_v52 }
 0xa4c   : > { %v6487_v6 = vpop.eup %6486  ;;  %v4626_v48 = vadd.f32 1.0, %v6485_v5  ;;  %6488 = vrcp.f32 %v4625_v7 }
 0xa4d   : > { %v4638_v38 = vadd.f32 1.0, %v6487_v6  ;;  %6490 = vrcp.f32 %v4637_v17 }
 0xa4e   : > { %6492 = vrcp.f32 %v4626_v48 }
 0xa59   : > { %v6489_v5 = vpop.eup %6488 }
 0xa5a   : > { %v6491_v17 = vpop.eup %6490 }
 0xa5b   : > { %v6493_v7 = vpop.eup %6492 }
 0xa77   : > { %v4563_v36 = vpop.f32.mrf.mxu0  ;;  %v4604_v4 = vpop.f32.mrf.mxu1 }
 0xa78   : > { %v4615_v30 = vadd.f32 %v4563_v36, %v4443_v31  ;;  %v4617_v54 = vadd.f32 %v4604_v4, %v4445_v37  ;;  %v4657_v37 = vmul.f32 %v6491_v17, %v8794_v12  ;;  %v10138_v17 = vld [vmem:[#allocation131_spill] sm:$0xff] }
 0xa79   : > { %v4565_v60 = vpop.f32.mrf.mxu0  ;;  %v4606_v27 = vpop.f32.mrf.mxu1 }
 0xa7a   : > { %6494 = vtanh.f32 %v4615_v30  ;;  %v6059_v8 = vmul.f32 -1.442695, %v4617_v54  ;;  %v4616_v46 = vadd.f32 %v4565_v60, %v4444_v18  ;;  %v4618_v42 = vadd.f32 %v4606_v27, %v4446_v23 }
 0xa7b   : > { %6496 = vrcp.f32 %v4638_v38  ;;  %v4567_v14 = vpop.f32.mrf.mxu0  ;;  %v4608_v2 = vpop.f32.mrf.mxu1 }
 0xa7c   : > { %6498 = vpow2.f32 %v6059_v8  ;;  %v6060_v39 = vmul.f32 -1.442695, %v4618_v42 }
 0xa7d   : > { %6500 = vtanh.f32 %v4616_v46  ;;  %v4568_v6 = vpop.f32.mrf.mxu0  ;;  %v4609_v52 = vpop.f32.mrf.mxu1 }
 0xa7e   : > { %6502 = vpow2.f32 %v6060_v39 }
 0xa87   : > { %v6495_v31 = vpop.eup %6494 }
 0xa88   : > { %v6497_v48 = vpop.eup %6496  ;;  %v4659_v36 = vmul.f32 %v6495_v31, %v6489_v5  ;;  %v10140_v31 = vld [vmem:[#allocation133_spill] sm:$0xff] }
 0xa89   : > { %v6499_v4 = vpop.eup %6498  ;;  %v4658_v54 = vmul.f32 %v6497_v48, %v8798_v13  ;;  %v10137_v13 = vld [vmem:[#allocation130_spill] sm:$0xff] }
 0xa8a   : > { %v6501_v18 = vpop.eup %6500  ;;  %v8936_v23 = vadd.f32 %v4659_v36, %v4657_v37  ;;  %v4651_v38 = vadd.f32 1.0, %v6499_v4  ;;  %v10141_v48 = vld [vmem:[#allocation134_spill] sm:$0xff]  ;;  %v10142_v37 = vld [vmem:[#allocation135_spill] sm:$0xff]  ;;  %v10143_v36 = vld [vmem:[#allocation136_spill] sm:$0xff] }
 0xa8b   : > { %v6503_v30 = vpop.eup %6502  ;;  %v4660_v60 = vmul.f32 %v6501_v18, %v6493_v7  ;;  %v10139_v7 = vld [vmem:[#allocation132_spill] sm:$0xff]  ;;  %v10144_v4 = vld [vmem:[#allocation137_spill] sm:$0xff]  ;;  %v10145_v18 = vld [vmem:[#allocation138_spill] sm:$0xff] }
 0xa8c   : > { %6504 = vtanh.f32 %v8936_v23  ;;  %v4652_v27 = vadd.f32 1.0, %v6503_v30  ;;  %v10147_v30 = vld [vmem:[#allocation140_spill] sm:$0xff] }
 0xa8d   : > { %6506 = vrcp.f32 %v4651_v38  ;;  %v8940_v8 = vadd.f32 %v4660_v60, %v4658_v54  ;;  %v10146_v38 = vld [vmem:[#allocation139_spill] sm:$0xff]  ;;  %v10148_v54 = vld [vmem:[#allocation141_spill] sm:$0xff]  ;;  %v10149_v60 = vld [vmem:[#allocation142_spill] sm:$0xff] }
 0xa8e   : > { %6508 = vrcp.f32 %v4652_v27  ;;  %v10150_v27 = vld [vmem:[#allocation143_spill] sm:$0xff] }
 0xa8f   : > { %6510 = vtanh.f32 %v8940_v8 }
 0xa99   : > { %v6505_v12 = vpop.eup %6504 }
 0xa9a   : > { %v6507_v46 = vpop.eup %6506 }
 0xa9b   : > { %v6509_v42 = vpop.eup %6508  ;;  %v4665_v2 = vmul.f32 %v6507_v46, %v6505_v12  ;;  %v10151_v12 = vld [vmem:[#allocation144_spill] sm:$0xff]  ;;  %v10152_v46 = vld [vmem:[#allocation145_spill] sm:$0xff] }
 0xa9c   : > { %v6511_v14 = vpop.eup %6510 }
 0xa9d   : > { %v4666_v39 = vmul.f32 %v6511_v14, %v6509_v42  ;;  %v8943_v5 = vpack.c.bf16 %v4665_v2, %v4665_v2  ;;  %v10153_v42 = vld [vmem:[#allocation146_spill] sm:$0xff]  ;;  %v10154_v14 = vld [vmem:[#allocation147_spill] sm:$0xff] }
 0xa9f   : > { %v4668_v6 = vpack.c.bf16 %v4666_v39, %v4666_v39  ;;  %v6114_v52 = vpack.c.bf16 %v4666_v39, %v4665_v2  ;;  %v10155_v2 = vld [vmem:[#allocation148_spill] sm:$0xff]  ;;  %v10156_v39 = vld [vmem:[#allocation149_spill] sm:$0xff] }
 0xaa1   : > { %4716 = vmatprep.mubr.bf16.mxu0 %v4668_v6  ;;  %4757 = vmatprep.mubr.bf16.mxu1 %v4668_v6  ;;  %4675 = vst [vmem:[#allocation2 + $0x20] sm:$0xff] %v6114_v52  ;;  %v10158_v52 = vld [vmem:[#allocation151_spill] sm:$0xff] }
 0xaa2   : > { %4717 = vmatmul.mubr.bf16.vlgmr.msra.gmra.mxu0 %v8943_v5  ;;  %4758 = vmatmul.mubr.bf16.vlgmr.msra.gmra.mxu1 %v8943_v5 }
 0xaa3   : > { %4767 = vmatpush1.bf16.msra.mxu0 %v9694_v1  ;;  %4808 = vmatpush1.bf16.msra.mxu1 %v9695_v3 }
 0xaa4   : > { %4798 = vmatprep.mubr.bf16.mxu0 %v4668_v6  ;;  %4839 = vmatprep.mubr.bf16.mxu1 %v4668_v6  ;;  %v10157_v6 = vld [vmem:[#allocation150_spill] sm:$0xff] }
 0xaa5   : > { %4768 = vmatprep.subr.bf16.mxu0 %v9696_v34  ;;  %4809 = vmatprep.subr.bf16.mxu1 %v9697_v62 }
 0xaa7   : > { %4769 = vmatpush1.bf16.msra.mxu0 %v9698_v63  ;;  %4810 = vmatpush1.bf16.msra.mxu1 %v9699_v45 }
 0xaa8   : > { %4770 = vmatprep.subr.bf16.mxu0 %v9700_v15  ;;  %4811 = vmatprep.subr.bf16.mxu1 %v9701_v33 }
 0xaab   : > { %4771 = vmatpush1.bf16.msra.mxu0 %v9702_v10  ;;  %4812 = vmatpush1.bf16.msra.mxu1 %v9781_v47 }
 0xaac   : > { %4772 = vmatprep.subr.bf16.mxu0 %v9782_v16  ;;  %4813 = vmatprep.subr.bf16.mxu1 %v9783_v29 }
 0xaaf   : > { %4773 = vmatpush1.bf16.msra.mxu0 %v9784_v40  ;;  %4814 = vmatpush1.bf16.msra.mxu1 %v9785_v28 }
 0xab0   : > { %4774 = vmatprep.subr.bf16.mxu0 %v9786_v56  ;;  %4815 = vmatprep.subr.bf16.mxu1 %v9787_v44 }
 0xab3   : > { %4775 = vmatpush1.bf16.msra.mxu0 %v9788_v49  ;;  %4816 = vmatpush1.bf16.msra.mxu1 %v9789_v9 }
 0xab4   : > { %4776 = vmatprep.subr.bf16.mxu0 %v9790_v35  ;;  %4817 = vmatprep.subr.bf16.mxu1 %v9791_v11 }
 0xab7   : > { %4777 = vmatpush1.bf16.msra.mxu0 %v9870_v61  ;;  %4818 = vmatpush1.bf16.msra.mxu1 %v9871_v25 }
 0xab8   : > { %4778 = vmatprep.subr.bf16.mxu0 %v9872_v0  ;;  %4819 = vmatprep.subr.bf16.mxu1 %v9873_v21 }
 0xabb   : > { %4779 = vmatpush1.bf16.msra.mxu0 %v9874_v19  ;;  %4820 = vmatpush1.bf16.msra.mxu1 %v9875_v22 }
 0xabc   : > { %4780 = vmatprep.subr.bf16.mxu0 %v9798_v55  ;;  %4821 = vmatprep.subr.bf16.mxu1 %v9799_v24 }
 0xabf   : > { %4781 = vmatpush1.bf16.msra.mxu0 %v9800_v43  ;;  %4822 = vmatpush1.bf16.msra.mxu1 %v9876_v53 }
 0xac0   : > { %4782 = vmatprep.subr.bf16.mxu0 %v9802_v59  ;;  %4823 = vmatprep.subr.bf16.mxu1 %v9803_v51 }
 0xac3   : > { %4783 = vmatpush2.bf16.msra.mxu0 %v9804_v32  ;;  %4824 = vmatpush2.bf16.msra.mxu1 %v9805_v41 }
 0xac4   : > { %4784 = vmatprep.subr.bf16.mxu0 %v9806_v26  ;;  %4825 = vmatprep.subr.bf16.mxu1 %v9807_v57 }
 0xac7   : > { %4785 = vmatpush2.bf16.msra.mxu0 %v9808_v58  ;;  %4826 = vmatpush2.bf16.msra.mxu1 %v9731_v20 }
 0xac8   : > { %4786 = vmatprep.subr.bf16.mxu0 %v9732_v50  ;;  %4827 = vmatprep.subr.bf16.mxu1 %v10137_v13 }
 0xacb   : > { %4787 = vmatpush2.bf16.msra.mxu0 %v10138_v17  ;;  %4828 = vmatpush2.bf16.msra.mxu1 %v10139_v7 }
 0xacc   : > { %4788 = vmatprep.subr.bf16.mxu0 %v10140_v31  ;;  %4829 = vmatprep.subr.bf16.mxu1 %v10141_v48 }
 0xacf   : > { %4789 = vmatpush2.bf16.msra.mxu0 %v10142_v37  ;;  %4830 = vmatpush2.bf16.msra.mxu1 %v10143_v36 }
 0xad0   : > { %4790 = vmatprep.subr.bf16.mxu0 %v10144_v4  ;;  %4831 = vmatprep.subr.bf16.mxu1 %v10145_v18  ;;  %v4676_v18 = vld [vmem:[#allocation3 + $0x1e8] sm:$0xff] }
 0xad1   : > { %v4677_v4 = vld [vmem:[#allocation3 + $0x28] sm:$0xff] }
 0xad3   : > { %4791 = vmatpush2.bf16.msra.mxu0 %v10146_v38  ;;  %4832 = vmatpush2.bf16.msra.mxu1 %v10147_v30 }
 0xad4   : > { %4792 = vmatprep.subr.bf16.mxu0 %v10148_v54  ;;  %4833 = vmatprep.subr.bf16.mxu1 %v10149_v60  ;;  %v10159_v54 = vld [vmem:[#allocation152_spill] sm:$0xff]  ;;  %v10160_v60 = vld [vmem:[#allocation25_spill] sm:$0xff] }
 0xad7   : > { %4793 = vmatpush2.bf16.msra.mxu0 %v10150_v27  ;;  %4834 = vmatpush2.bf16.msra.mxu1 %v10151_v12  ;;  %v10161_v27 = vld [vmem:[#allocation27_spill] sm:$0xff] }
 0xad8   : > { %4794 = vmatprep.subr.bf16.mxu0 %v10152_v46  ;;  %4835 = vmatprep.subr.bf16.mxu1 %v10153_v42  ;;  %v10162_v42 = vld [vmem:[#allocation26_spill] sm:$0xff]  ;;  %v10171_v46 = vld [vmem:[#allocation36_spill] sm:$0xff] }
 0xadb   : > { %4795 = vmatpush2.bf16.msra.mxu0 %v10154_v14  ;;  %4836 = vmatpush2.bf16.msra.mxu1 %v10155_v2  ;;  %v10163_v14 = vld [vmem:[#allocation28_spill] sm:$0xff]  ;;  %v10164_v2 = vld [vmem:[#allocation29_spill] sm:$0xff] }
 0xadc   : > { %4796 = vmatprep.subr.bf16.mxu0 %v10156_v39  ;;  %4837 = vmatprep.subr.bf16.mxu1 %v10157_v6  ;;  %v10165_v39 = vld [vmem:[#allocation30_spill] sm:$0xff]  ;;  %v10166_v6 = vld [vmem:[#allocation31_spill] sm:$0xff] }
 0xadf   : > { %4797 = vmatpush2.bf16.msra.mxu0 %v10158_v52  ;;  %4838 = vmatpush2.bf16.msra.mxu1 %v10159_v54  ;;  %v10167_v52 = vld [vmem:[#allocation32_spill] sm:$0xff]  ;;  %v10168_v54 = vld [vmem:[#allocation33_spill] sm:$0xff] }
 0xae0   : > { %4921 = vmatprep.subr.bf16.mxu0 %v10160_v60  ;;  %4962 = vmatprep.subr.bf16.mxu1 %v10161_v27  ;;  %v10169_v60 = vld [vmem:[#allocation34_spill] sm:$0xff]  ;;  %v10170_v27 = vld [vmem:[#allocation35_spill] sm:$0xff] }
 0xae2   : > { %4799 = vmatmul.mubr.bf16.vlgmr.msra.gmra.mxu0 %v8943_v5  ;;  %4840 = vmatmul.mubr.bf16.vlgmr.msra.gmra.mxu1 %v8943_v5  ;;  %v10172_v5 = vld [vmem:[#allocation37_spill] sm:$0xff] }
 0xae3   : > { %4922 = vmatpush1.bf16.msra.mxu0 %v10162_v42  ;;  %4963 = vmatpush1.bf16.msra.mxu1 %v10163_v14  ;;  %v10173_v42 = vld [vmem:[#allocation38_spill] sm:$0xff]  ;;  %v10174_v14 = vld [vmem:[#allocation39_spill] sm:$0xff] }
 0xae4   : > { %4923 = vmatprep.subr.bf16.mxu0 %v10164_v2  ;;  %4964 = vmatprep.subr.bf16.mxu1 %v10165_v39  ;;  %v10175_v2 = vld [vmem:[#allocation40_spill] sm:$0xff]  ;;  %v10176_v39 = vld [vmem:[#allocation41_spill] sm:$0xff] }
 0xae7   : > { %4924 = vmatpush1.bf16.msra.mxu0 %v10166_v6  ;;  %4965 = vmatpush1.bf16.msra.mxu1 %v10167_v52  ;;  %v10177_v6 = vld [vmem:[#allocation42_spill] sm:$0xff]  ;;  %v10178_v52 = vld [vmem:[#allocation43_spill] sm:$0xff] }
 0xae8   : > { %4925 = vmatprep.subr.bf16.mxu0 %v10168_v54  ;;  %4966 = vmatprep.subr.bf16.mxu1 %v10169_v60  ;;  %v10179_v54 = vld [vmem:[#allocation44_spill] sm:$0xff]  ;;  %v10180_v60 = vld [vmem:[#allocation45_spill] sm:$0xff] }
 0xaeb   : > { %4926 = vmatpush1.bf16.msra.mxu0 %v10170_v27  ;;  %4967 = vmatpush1.bf16.msra.mxu1 %v10171_v46  ;;  %v10181_v27 = vld [vmem:[#allocation46_spill] sm:$0xff]  ;;  %v10182_v46 = vld [vmem:[#allocation47_spill] sm:$0xff] }
 0xaec   : > { %4927 = vmatprep.subr.bf16.mxu0 %v10172_v5  ;;  %4968 = vmatprep.subr.bf16.mxu1 %v10173_v42  ;;  %v10183_v5 = vld [vmem:[#allocation48_spill] sm:$0xff]  ;;  %v10184_v42 = vld [vmem:[#allocation49_spill] sm:$0xff] }
 0xaef   : > { %4928 = vmatpush1.bf16.msra.mxu0 %v10174_v14  ;;  %4969 = vmatpush1.bf16.msra.mxu1 %v10175_v2  ;;  %v10185_v14 = vld [vmem:[#allocation50_spill] sm:$0xff]  ;;  %v10186_v2 = vld [vmem:[#allocation51_spill] sm:$0xff] }
 0xaf0   : > { %4929 = vmatprep.subr.bf16.mxu0 %v10176_v39  ;;  %4970 = vmatprep.subr.bf16.mxu1 %v10177_v6  ;;  %v10187_v39 = vld [vmem:[#allocation52_spill] sm:$0xff]  ;;  %v10188_v6 = vld [vmem:[#allocation53_spill] sm:$0xff] }
 0xaf3   : > { %4930 = vmatpush1.bf16.msra.mxu0 %v10178_v52  ;;  %4971 = vmatpush1.bf16.msra.mxu1 %v10179_v54  ;;  %v10189_v52 = vld [vmem:[#allocation54_spill] sm:$0xff]  ;;  %v10190_v54 = vld [vmem:[#allocation55_spill] sm:$0xff] }
 0xaf4   : > { %4931 = vmatprep.subr.bf16.mxu0 %v10180_v60  ;;  %4972 = vmatprep.subr.bf16.mxu1 %v10181_v27  ;;  %v10191_v60 = vld [vmem:[#allocation56_spill] sm:$0xff]  ;;  %v10192_v27 = vld [vmem:[#allocation57_spill] sm:$0xff] }
 0xaf7   : > { %4932 = vmatpush1.bf16.msra.mxu0 %v10182_v46  ;;  %4973 = vmatpush1.bf16.msra.mxu1 %v10183_v5  ;;  %v10193_v46 = vld [vmem:[#allocation58_spill] sm:$0xff]  ;;  %v10194_v5 = vld [vmem:[#allocation59_spill] sm:$0xff] }
 0xaf8   : > { %4933 = vmatprep.subr.bf16.mxu0 %v10184_v42  ;;  %4974 = vmatprep.subr.bf16.mxu1 %v10185_v14  ;;  %v10195_v42 = vld [vmem:[#allocation60_spill] sm:$0xff]  ;;  %v10196_v14 = vld [vmem:[#allocation61_spill] sm:$0xff] }
 0xafb   : > { %4934 = vmatpush1.bf16.msra.mxu0 %v10186_v2  ;;  %4975 = vmatpush1.bf16.msra.mxu1 %v10187_v39  ;;  %v10197_v2 = vld [vmem:[#allocation62_spill] sm:$0xff]  ;;  %v10198_v39 = vld [vmem:[#allocation63_spill] sm:$0xff] }
 0xafc   : > { %4935 = vmatprep.subr.bf16.mxu0 %v10188_v6  ;;  %4976 = vmatprep.subr.bf16.mxu1 %v10189_v52  ;;  %v10199_v6 = vld [vmem:[#allocation64_spill] sm:$0xff]  ;;  %v10200_v52 = vld [vmem:[#allocation65_spill] sm:$0xff] }
 0xaff   : > { %4936 = vmatpush1.bf16.msra.mxu0 %v10190_v54  ;;  %4977 = vmatpush1.bf16.msra.mxu1 %v10191_v60  ;;  %v10201_v54 = vld [vmem:[#allocation66_spill] sm:$0xff]  ;;  %v10202_v60 = vld [vmem:[#allocation67_spill] sm:$0xff] }
 0xb00   : > { %4937 = vmatprep.subr.bf16.mxu0 %v10192_v27  ;;  %4978 = vmatprep.subr.bf16.mxu1 %v10193_v46  ;;  %v10203_v27 = vld [vmem:[#allocation68_spill] sm:$0xff]  ;;  %v10204_v46 = vld [vmem:[#allocation69_spill] sm:$0xff] }
 0xb03   : > { %4938 = vmatpush2.bf16.msra.mxu0 %v10194_v5  ;;  %4979 = vmatpush2.bf16.msra.mxu1 %v10195_v42  ;;  %v10205_v5 = vld [vmem:[#allocation70_spill] sm:$0xff]  ;;  %v10206_v42 = vld [vmem:[#allocation71_spill] sm:$0xff] }
 0xb04   : > { %4939 = vmatprep.subr.bf16.mxu0 %v10196_v14  ;;  %4980 = vmatprep.subr.bf16.mxu1 %v10197_v2  ;;  %v10207_v14 = vld [vmem:[#allocation72_spill] sm:$0xff]  ;;  %v10208_v2 = vld [vmem:[#allocation73_spill] sm:$0xff] }
 0xb07   : > { %4940 = vmatpush2.bf16.msra.mxu0 %v10198_v39  ;;  %4981 = vmatpush2.bf16.msra.mxu1 %v10199_v6  ;;  %v10209_v39 = vld [vmem:[#allocation74_spill] sm:$0xff]  ;;  %v10210_v6 = vld [vmem:[#allocation75_spill] sm:$0xff] }
 0xb08   : > { %4941 = vmatprep.subr.bf16.mxu0 %v10200_v52  ;;  %4982 = vmatprep.subr.bf16.mxu1 %v10201_v54  ;;  %v10211_v52 = vld [vmem:[#allocation76_spill] sm:$0xff]  ;;  %v10212_v54 = vld [vmem:[#allocation77_spill] sm:$0xff] }
 0xb0b   : > { %4942 = vmatpush2.bf16.msra.mxu0 %v10202_v60  ;;  %4983 = vmatpush2.bf16.msra.mxu1 %v10203_v27  ;;  %v10213_v60 = vld [vmem:[#allocation78_spill] sm:$0xff]  ;;  %v10214_v27 = vld [vmem:[#allocation79_spill] sm:$0xff] }
 0xb0c   : > { %4943 = vmatprep.subr.bf16.mxu0 %v10204_v46  ;;  %4984 = vmatprep.subr.bf16.mxu1 %v10205_v5  ;;  %v10215_v46 = vld [vmem:[#allocation80_spill] sm:$0xff]  ;;  %v10216_v5 = vld [vmem:[#allocation81_spill] sm:$0xff] }
 0xb0f   : > { %4944 = vmatpush2.bf16.msra.mxu0 %v10206_v42  ;;  %4985 = vmatpush2.bf16.msra.mxu1 %v10207_v14  ;;  %v10217_v42 = vld [vmem:[#allocation82_spill] sm:$0xff]  ;;  %v10218_v14 = vld [vmem:[#allocation83_spill] sm:$0xff] }
 0xb10   : > { %4945 = vmatprep.subr.bf16.mxu0 %v10208_v2  ;;  %4986 = vmatprep.subr.bf16.mxu1 %v10209_v39  ;;  %v10219_v2 = vld [vmem:[#allocation84_spill] sm:$0xff]  ;;  %v10220_v39 = vld [vmem:[#allocation85_spill] sm:$0xff] }
 0xb13   : > { %4946 = vmatpush2.bf16.msra.mxu0 %v10210_v6  ;;  %4987 = vmatpush2.bf16.msra.mxu1 %v10211_v52  ;;  %v10221_v6 = vld [vmem:[#allocation86_spill] sm:$0xff]  ;;  %v10222_v52 = vld [vmem:[#allocation87_spill] sm:$0xff] }
 0xb14   : > { %4947 = vmatprep.subr.bf16.mxu0 %v10212_v54  ;;  %4988 = vmatprep.subr.bf16.mxu1 %v10213_v60  ;;  %v10223_v54 = vld [vmem:[#allocation88_spill] sm:$0xff]  ;;  %v10224_v60 = vld [vmem:[#allocation89_spill] sm:$0xff] }
 0xb17   : > { %4948 = vmatpush2.bf16.msra.mxu0 %v10214_v27  ;;  %4989 = vmatpush2.bf16.msra.mxu1 %v10215_v46  ;;  %v10225_v27 = vld [vmem:[#allocation90_spill] sm:$0xff] }
 0xb18   : > { %4949 = vmatprep.subr.bf16.mxu0 %v10216_v5  ;;  %4990 = vmatprep.subr.bf16.mxu1 %v10217_v42 }
 0xb1b   : > { %4950 = vmatpush2.bf16.msra.mxu0 %v10218_v14  ;;  %4991 = vmatpush2.bf16.msra.mxu1 %v10219_v2 }
 0xb1c   : > { %4951 = vmatprep.subr.bf16.mxu0 %v10220_v39  ;;  %4992 = vmatprep.subr.bf16.mxu1 %v10221_v6  ;;  %v4678_v39 = vld [vmem:[#allocation3 + $0x90] sm:$0xff] }
 0xb1f   : > { %4952 = vmatpush2.bf16.msra.mxu0 %v10222_v52  ;;  %4993 = vmatpush2.bf16.msra.mxu1 %v10223_v54  ;;  %v4679_v52 = vld [vmem:[#allocation3 + $0x148] sm:$0xff] }
 0xb20   : > { %5003 = vmatprep.subr.bf16.mxu0 %v10224_v60  ;;  %5044 = vmatprep.subr.bf16.mxu1 %v10225_v27 }
 0xb62   : > { %v4718_v46 = vpop.f32.mrf.mxu0  ;;  %v4759_v5 = vpop.f32.mrf.mxu1 }
 0xb63   : > { %v4848_v6 = vadd.f32 %v4718_v46, %v4676_v18  ;;  %v4850_v36 = vadd.f32 %v4759_v5, %v4678_v39  ;;  %v4680_v18 = vld [vmem:[#allocation3 + $0x58] sm:$0xff]  ;;  %v4682_v46 = vld [vmem:[#allocation3 + $0x128] sm:$0xff] }
 0xb64   : > { %v4720_v12 = vpop.f32.mrf.mxu0  ;;  %v4761_v42 = vpop.f32.mrf.mxu1 }
 0xb65   : > { %v4849_v37 = vadd.f32 %v4720_v12, %v4677_v4  ;;  %v6062_v54 = vmul.f32 -1.442695, %v4848_v6  ;;  %v4851_v48 = vadd.f32 %v4761_v42, %v4679_v52  ;;  %v6064_v60 = vmul.f32 -1.442695, %v4850_v36  ;;  %v4681_v36 = vld [vmem:[#allocation3 + $0x1d0] sm:$0xff] }
 0xb66   : > { %v4722_v30 = vpop.f32.mrf.mxu0  ;;  %v4763_v14 = vpop.f32.mrf.mxu1 }
 0xb67   : > { %v6063_v31 = vmul.f32 -1.442695, %v4849_v37  ;;  %6512 = vpow2.f32 %v6062_v54  ;;  %v6065_v27 = vmul.f32 -1.442695, %v4851_v48  ;;  %v4683_v37 = vld [vmem:[#allocation3 + $0x1f0] sm:$0xff] }
 0xb68   : > { %v4723_v38 = vpop.f32.mrf.mxu0  ;;  %v4764_v2 = vpop.f32.mrf.mxu1  ;;  %6514 = vpow2.f32 %v6064_v60 }
 0xb69   : > { %6516 = vpow2.f32 %v6063_v31 }
 0xb6a   : > { %6518 = vpow2.f32 %v6065_v27 }
 0xb74   : > { %v6513_v30 = vpop.eup %6512 }
 0xb75   : > { %v6515_v14 = vpop.eup %6514  ;;  %v4862_v2 = vadd.f32 1.0, %v6513_v30 }
 0xb76   : > { %v6517_v38 = vpop.eup %6516  ;;  %v4874_v17 = vadd.f32 1.0, %v6515_v14 }
 0xb77   : > { %v6519_v7 = vpop.eup %6518  ;;  %v4863_v13 = vadd.f32 1.0, %v6517_v38  ;;  %6520 = vrcp.f32 %v4862_v2 }
 0xb78   : > { %v4875_v4 = vadd.f32 1.0, %v6519_v7  ;;  %6522 = vrcp.f32 %v4874_v17 }
 0xb79   : > { %6524 = vrcp.f32 %v4863_v13 }
 0xb84   : > { %v6521_v38 = vpop.eup %6520 }
 0xb85   : > { %v6523_v17 = vpop.eup %6522 }
 0xb86   : > { %v6525_v2 = vpop.eup %6524 }
 0xba2   : > { %v4800_v12 = vpop.f32.mrf.mxu0  ;;  %v4841_v5 = vpop.f32.mrf.mxu1 }
 0xba3   : > { %v4852_v48 = vadd.f32 %v4800_v12, %v4680_v18  ;;  %v4854_v42 = vadd.f32 %v4841_v5, %v4682_v46  ;;  %v4894_v46 = vmul.f32 %v6523_v17, %v8936_v23 }
 0xba4   : > { %v4802_v31 = vpop.f32.mrf.mxu0  ;;  %v4843_v39 = vpop.f32.mrf.mxu1 }
 0xba5   : > { %6526 = vtanh.f32 %v4852_v48  ;;  %v6066_v6 = vmul.f32 -1.442695, %v4854_v42  ;;  %v4853_v52 = vadd.f32 %v4802_v31, %v4681_v36  ;;  %v4855_v54 = vadd.f32 %v4843_v39, %v4683_v37 }
 0xba6   : > { %6528 = vrcp.f32 %v4875_v4  ;;  %v4804_v60 = vpop.f32.mrf.mxu0  ;;  %v4845_v27 = vpop.f32.mrf.mxu1 }
 0xba7   : > { %6530 = vpow2.f32 %v6066_v6  ;;  %v6067_v30 = vmul.f32 -1.442695, %v4855_v54 }
 0xba8   : > { %6532 = vtanh.f32 %v4853_v52  ;;  %v4805_v7 = vpop.f32.mrf.mxu0  ;;  %v4846_v14 = vpop.f32.mrf.mxu1 }
 0xba9   : > { %6534 = vpow2.f32 %v6067_v30 }
 0xbb2   : > { %v6527_v18 = vpop.eup %6526 }
 0xbb3   : > { %v6529_v13 = vpop.eup %6528  ;;  %v4896_v12 = vmul.f32 %v6527_v18, %v6521_v38 }
 0xbb4   : > { %v6531_v5 = vpop.eup %6530  ;;  %v4895_v42 = vmul.f32 %v6529_v13, %v8940_v8 }
 0xbb5   : > { %v6533_v36 = vpop.eup %6532  ;;  %v9078_v37 = vadd.f32 %v4896_v12, %v4894_v46  ;;  %v4888_v4 = vadd.f32 1.0, %v6531_v5 }
 0xbb6   : > { %v6535_v48 = vpop.eup %6534  ;;  %v4897_v31 = vmul.f32 %v6533_v36, %v6525_v2 }
 0xbb7   : > { %6536 = vtanh.f32 %v9078_v37  ;;  %v4889_v39 = vadd.f32 1.0, %v6535_v48 }
 0xbb8   : > { %6538 = vrcp.f32 %v4888_v4  ;;  %v9082_v6 = vadd.f32 %v4897_v31, %v4895_v42  ;;  %v4917_v42 = vld [vmem:[#allocation3 + $0x78] sm:$0xff]  ;;  %v4919_v31 = vld [vmem:[#allocation3 + $0xc0] sm:$0xff] }
 0xbb9   : > { %6540 = vrcp.f32 %v4889_v39 }
 0xbba   : > { %6542 = vtanh.f32 %v9082_v6 }
 0xbc4   : > { %v6537_v23 = vpop.eup %6536 }
 0xbc5   : > { %v6539_v52 = vpop.eup %6538 }
 0xbc6   : > { %v6541_v54 = vpop.eup %6540  ;;  %v4902_v27 = vmul.f32 %v6539_v52, %v6537_v23 }
 0xbc7   : > { %v6543_v60 = vpop.eup %6542 }
 0xbc8   : > { %v4903_v30 = vmul.f32 %v6543_v60, %v6541_v54  ;;  %v9085_v38 = vpack.c.bf16 %v4902_v27, %v4902_v27  ;;  %v4918_v54 = vld [vmem:[#allocation3 + $0x80] sm:$0xff]  ;;  %v4920_v60 = vld [vmem:[#allocation3 + $0x198] sm:$0xff] }
 0xbca   : > { %v4905_v7 = vpack.c.bf16 %v4903_v30, %v4903_v30  ;;  %v6115_v14 = vpack.c.bf16 %v4903_v30, %v4902_v27 }
 0xbcc   : > { %4953 = vmatprep.mubr.bf16.mxu0 %v4905_v7  ;;  %4994 = vmatprep.mubr.bf16.mxu1 %v4905_v7  ;;  %4912 = vst [vmem:[#allocation2 + $0x28] sm:$0xff] %v6115_v14 }
 0xbcd   : > { %4954 = vmatmul.mubr.bf16.vlgmr.msra.gmra.mxu0 %v9085_v38  ;;  %4995 = vmatmul.mubr.bf16.vlgmr.msra.gmra.mxu1 %v9085_v38 }
 0xbce   : > { %5004 = vmatpush1.bf16.msra.mxu0 %v9694_v1  ;;  %5045 = vmatpush1.bf16.msra.mxu1 %v9695_v3  ;;  %v10226_v1 = vld [vmem:[#allocation130_spill] sm:$0xff]  ;;  %v10227_v3 = vld [vmem:[#allocation131_spill] sm:$0xff] }
 0xbcf   : > { %5035 = vmatprep.mubr.bf16.mxu0 %v4905_v7  ;;  %5076 = vmatprep.mubr.bf16.mxu1 %v4905_v7 }
 0xbd0   : > { %5005 = vmatprep.subr.bf16.mxu0 %v9696_v34  ;;  %5046 = vmatprep.subr.bf16.mxu1 %v9697_v62  ;;  %v10228_v34 = vld [vmem:[#allocation132_spill] sm:$0xff]  ;;  %v10229_v62 = vld [vmem:[#allocation133_spill] sm:$0xff] }
 0xbd2   : > { %5006 = vmatpush1.bf16.msra.mxu0 %v9698_v63  ;;  %5047 = vmatpush1.bf16.msra.mxu1 %v9699_v45  ;;  %v10230_v63 = vld [vmem:[#allocation134_spill] sm:$0xff]  ;;  %v10231_v45 = vld [vmem:[#allocation135_spill] sm:$0xff] }
 0xbd3   : > { %5007 = vmatprep.subr.bf16.mxu0 %v9700_v15  ;;  %5048 = vmatprep.subr.bf16.mxu1 %v9701_v33  ;;  %v10232_v15 = vld [vmem:[#allocation136_spill] sm:$0xff]  ;;  %v10233_v33 = vld [vmem:[#allocation137_spill] sm:$0xff] }
 0xbd6   : > { %5008 = vmatpush1.bf16.msra.mxu0 %v9702_v10  ;;  %5049 = vmatpush1.bf16.msra.mxu1 %v9781_v47  ;;  %v10234_v10 = vld [vmem:[#allocation138_spill] sm:$0xff]  ;;  %v10237_v47 = vld [vmem:[#allocation141_spill] sm:$0xff] }
 0xbd7   : > { %5009 = vmatprep.subr.bf16.mxu0 %v9782_v16  ;;  %5050 = vmatprep.subr.bf16.mxu1 %v9783_v29  ;;  %v10238_v16 = vld [vmem:[#allocation142_spill] sm:$0xff]  ;;  %v10239_v29 = vld [vmem:[#allocation143_spill] sm:$0xff] }
 0xbda   : > { %5010 = vmatpush1.bf16.msra.mxu0 %v9784_v40  ;;  %5051 = vmatpush1.bf16.msra.mxu1 %v9785_v28  ;;  %v10240_v40 = vld [vmem:[#allocation144_spill] sm:$0xff]  ;;  %v10241_v28 = vld [vmem:[#allocation145_spill] sm:$0xff] }
 0xbdb   : > { %5011 = vmatprep.subr.bf16.mxu0 %v9786_v56  ;;  %5052 = vmatprep.subr.bf16.mxu1 %v9787_v44  ;;  %v10242_v56 = vld [vmem:[#allocation146_spill] sm:$0xff]  ;;  %v10243_v44 = vld [vmem:[#allocation147_spill] sm:$0xff] }
 0xbde   : > { %5012 = vmatpush1.bf16.msra.mxu0 %v9788_v49  ;;  %5053 = vmatpush1.bf16.msra.mxu1 %v9789_v9  ;;  %v10244_v49 = vld [vmem:[#allocation148_spill] sm:$0xff]  ;;  %v10245_v9 = vld [vmem:[#allocation149_spill] sm:$0xff] }
 0xbdf   : > { %5013 = vmatprep.subr.bf16.mxu0 %v9790_v35  ;;  %5054 = vmatprep.subr.bf16.mxu1 %v9791_v11  ;;  %v10246_v35 = vld [vmem:[#allocation150_spill] sm:$0xff]  ;;  %v10247_v11 = vld [vmem:[#allocation151_spill] sm:$0xff] }
 0xbe2   : > { %5014 = vmatpush1.bf16.msra.mxu0 %v9870_v61  ;;  %5055 = vmatpush1.bf16.msra.mxu1 %v9871_v25  ;;  %v4915_v61 = vld [vmem:[#allocation3 + $0x160] sm:$0xff]  ;;  %v4914_v25 = vld [vmem:[#allocation3 + $0x1b0] sm:$0xff] }
 0xbe3   : > { %5015 = vmatprep.subr.bf16.mxu0 %v9872_v0  ;;  %5056 = vmatprep.subr.bf16.mxu1 %v9873_v21 }
 0xbe6   : > { %5016 = vmatpush1.bf16.msra.mxu0 %v9874_v19  ;;  %5057 = vmatpush1.bf16.msra.mxu1 %v9875_v22  ;;  %v4916_v19 = vld [vmem:[#allocation3 + $0x118] sm:$0xff] }
 0xbe7   : > { %5017 = vmatprep.subr.bf16.mxu0 %v9798_v55  ;;  %5058 = vmatprep.subr.bf16.mxu1 %v9799_v24 }
 0xbea   : > { %5018 = vmatpush1.bf16.msra.mxu0 %v9800_v43  ;;  %5059 = vmatpush1.bf16.msra.mxu1 %v9876_v53 }
 0xbeb   : > { %5019 = vmatprep.subr.bf16.mxu0 %v9802_v59  ;;  %5060 = vmatprep.subr.bf16.mxu1 %v9803_v51  ;;  %v10248_v51 = vld [vmem:[#allocation152_spill] sm:$0xff]  ;;  %v4913_v59 = vld [vmem:[#allocation3 + $0x40] sm:$0xff] }
 0xbee   : > { %5020 = vmatpush2.bf16.msra.mxu0 %v9804_v32  ;;  %5061 = vmatpush2.bf16.msra.mxu1 %v9805_v41 }
 0xbef   : > { %5021 = vmatprep.subr.bf16.mxu0 %v9806_v26  ;;  %5062 = vmatprep.subr.bf16.mxu1 %v9807_v57 }
 0xbf2   : > { %5022 = vmatpush2.bf16.msra.mxu0 %v9808_v58  ;;  %5063 = vmatpush2.bf16.msra.mxu1 %v9731_v20  ;;  %v10235_v20 = vld [vmem:[#allocation139_spill] sm:$0xff] }
 0xbf3   : > { %5023 = vmatprep.subr.bf16.mxu0 %v9732_v50  ;;  %5064 = vmatprep.subr.bf16.mxu1 %v10226_v1  ;;  %v10236_v50 = vld [vmem:[#allocation140_spill] sm:$0xff] }
 0xbf6   : > { %5024 = vmatpush2.bf16.msra.mxu0 %v10227_v3  ;;  %5065 = vmatpush2.bf16.msra.mxu1 %v10228_v34 }
 0xbf7   : > { %5025 = vmatprep.subr.bf16.mxu0 %v10229_v62  ;;  %5066 = vmatprep.subr.bf16.mxu1 %v10230_v63 }
 0xbfa   : > { %5026 = vmatpush2.bf16.msra.mxu0 %v10231_v45  ;;  %5067 = vmatpush2.bf16.msra.mxu1 %v10232_v15 }
 0xbfb   : > { %5027 = vmatprep.subr.bf16.mxu0 %v10233_v33  ;;  %5068 = vmatprep.subr.bf16.mxu1 %v10234_v10 }
 0xbfe   : > { %5028 = vmatpush2.bf16.msra.mxu0 %v10235_v20  ;;  %5069 = vmatpush2.bf16.msra.mxu1 %v10236_v50 }
 0xbff   : > { %5029 = vmatprep.subr.bf16.mxu0 %v10237_v47  ;;  %5070 = vmatprep.subr.bf16.mxu1 %v10238_v16 }
 0xc02   : > { %5030 = vmatpush2.bf16.msra.mxu0 %v10239_v29  ;;  %5071 = vmatpush2.bf16.msra.mxu1 %v10240_v40 }
 0xc03   : > { %5031 = vmatprep.subr.bf16.mxu0 %v10241_v28  ;;  %5072 = vmatprep.subr.bf16.mxu1 %v10242_v56 }
 0xc06   : > { %5032 = vmatpush2.bf16.msra.mxu0 %v10243_v44  ;;  %5073 = vmatpush2.bf16.msra.mxu1 %v10244_v49 }
 0xc07   : > { %5033 = vmatprep.subr.bf16.mxu0 %v10245_v9  ;;  %5074 = vmatprep.subr.bf16.mxu1 %v10246_v35 }
 0xc0a   : > { %5034 = vmatpush2.bf16.msra.mxu0 %v10247_v11  ;;  %5075 = vmatpush2.bf16.msra.mxu1 %v10248_v51 }
 0xc0d   : > { %5036 = vmatmul.mubr.bf16.vlgmr.msra.gmra.mxu0 %v9085_v38  ;;  %5077 = vmatmul.mubr.bf16.vlgmr.msra.gmra.mxu1 %v9085_v38 }
 0xc8d   : > { %v4955_v32 = vpop.f32.mrf.mxu0  ;;  %v4996_v41 = vpop.f32.mrf.mxu1 }
 0xc8e   : > { %v5085_v0 = vadd.f32 %v4955_v32, %v4913_v59  ;;  %v5087_v21 = vadd.f32 %v4996_v41, %v4915_v61 }
 0xc8f   : > { %v4957_v26 = vpop.f32.mrf.mxu0  ;;  %v4998_v57 = vpop.f32.mrf.mxu1 }
 0xc90   : > { %v5086_v22 = vadd.f32 %v4957_v26, %v4914_v25  ;;  %v6069_v53 = vmul.f32 -1.442695, %v5085_v0  ;;  %v5088_v8 = vadd.f32 %v4998_v57, %v4916_v19  ;;  %v6071_v17 = vmul.f32 -1.442695, %v5087_v21 }
 0xc91   : > { %v4959_v58 = vpop.f32.mrf.mxu0  ;;  %v5000_v55 = vpop.f32.mrf.mxu1 }
 0xc92   : > { %v6070_v2 = vmul.f32 -1.442695, %v5086_v22  ;;  %6544 = vpow2.f32 %v6069_v53  ;;  %v6072_v18 = vmul.f32 -1.442695, %v5088_v8 }
 0xc93   : > { %v4960_v24 = vpop.f32.mrf.mxu0  ;;  %v5001_v43 = vpop.f32.mrf.mxu1  ;;  %6546 = vpow2.f32 %v6071_v17 }
 0xc94   : > { %6548 = vpow2.f32 %v6070_v2 }
 0xc95   : > { %6550 = vpow2.f32 %v6072_v18 }
 0xc9f   : > { %v6545_v13 = vpop.eup %6544 }
 0xca0   : > { %v6547_v46 = vpop.eup %6546  ;;  %v5099_v5 = vadd.f32 1.0, %v6545_v13 }
 0xca1   : > { %v6549_v12 = vpop.eup %6548  ;;  %v5111_v4 = vadd.f32 1.0, %v6547_v46 }
 0xca2   : > { %v6551_v36 = vpop.eup %6550  ;;  %v5100_v48 = vadd.f32 1.0, %v6549_v12  ;;  %6552 = vrcp.f32 %v5099_v5 }
 0xca3   : > { %v5112_v39 = vadd.f32 1.0, %v6551_v36  ;;  %6554 = vrcp.f32 %v5111_v4 }
 0xca4   : > { %6556 = vrcp.f32 %v5100_v48 }
 0xcaf   : > { %v6553_v33 = vpop.eup %6552 }
 0xcb0   : > { %v6555_v10 = vpop.eup %6554 }
 0xcb1   : > { %v6557_v20 = vpop.eup %6556  ;;  %v5131_v16 = vmul.f32 %v6555_v10, %v9078_v37 }
 0xccd   : > { %v5037_v23 = vpop.f32.mrf.mxu0  ;;  %v5078_v52 = vpop.f32.mrf.mxu1 }
 0xcce   : > { %v5089_v27 = vadd.f32 %v5037_v23, %v4917_v42  ;;  %v5091_v30 = vadd.f32 %v5078_v52, %v4919_v31 }
 0xccf   : > { %v5039_v7 = vpop.f32.mrf.mxu0  ;;  %v5080_v14 = vpop.f32.mrf.mxu1 }
 0xcd0   : > { %6558 = vtanh.f32 %v5089_v27  ;;  %v6073_v38 = vmul.f32 -1.442695, %v5091_v30  ;;  %v5090_v1 = vadd.f32 %v5039_v7, %v4918_v54  ;;  %v5092_v3 = vadd.f32 %v5080_v14, %v4920_v60 }
 0xcd1   : > { %6560 = vrcp.f32 %v5112_v39  ;;  %v5041_v34 = vpop.f32.mrf.mxu0  ;;  %v5082_v62 = vpop.f32.mrf.mxu1 }
 0xcd2   : > { %6562 = vpow2.f32 %v6073_v38  ;;  %v6074_v63 = vmul.f32 -1.442695, %v5092_v3 }
 0xcd3   : > { %6564 = vtanh.f32 %v5090_v1  ;;  %v5042_v45 = vpop.f32.mrf.mxu0  ;;  %v5083_v15 = vpop.f32.mrf.mxu1 }
 0xcd4   : > { %6566 = vpow2.f32 %v6074_v63 }
 0xcdd   : > { %v6559_v50 = vpop.eup %6558 }
 0xcde   : > { %v6561_v47 = vpop.eup %6560  ;;  %v5133_v29 = vmul.f32 %v6559_v50, %v6553_v33 }
 0xcdf   : > { %v6563_v40 = vpop.eup %6562  ;;  %v5132_v9 = vmul.f32 %v6561_v47, %v9082_v6 }
 0xce0   : > { %v6565_v28 = vpop.eup %6564  ;;  %v5135_v56 = vadd.f32 %v5133_v29, %v5131_v16  ;;  %v5125_v44 = vadd.f32 1.0, %v6563_v40 }
 0xce1   : > { %v6567_v49 = vpop.eup %6566  ;;  %v5134_v35 = vmul.f32 %v6565_v28, %v6557_v20 }
 0xce2   : > { %6568 = vtanh.f32 %v5135_v56  ;;  %v5126_v11 = vadd.f32 1.0, %v6567_v49 }
 0xce3   : > { %6570 = vrcp.f32 %v5125_v44  ;;  %v5136_v51 = vadd.f32 %v5134_v35, %v5132_v9 }
 0xce4   : > { %6572 = vrcp.f32 %v5126_v11 }
 0xce5   : > { %6574 = vtanh.f32 %v5136_v51 }
 0xcef   : > { %v6569_v32 = vpop.eup %6568 }
 0xcf0   : > { %v6571_v41 = vpop.eup %6570 }
 0xcf1   : > { %v6573_v26 = vpop.eup %6572  ;;  %v5139_v37 = vmul.f32 %v6571_v41, %v6569_v32 }
 0xcf2   : > { %v6575_v57 = vpop.eup %6574 }
 0xcf3   : > { %v5140_v58 = vmul.f32 %v6575_v57, %v6573_v26  ;;  %5153 = sbr.rel (%p6076_p9) target bundleno = 3669 (0xe55), region = 92 }
 0xcf5   : > { %v6116_v55 = vpack.c.bf16 %v5140_v58, %v5139_v37 }
 0xcf7   : > { %5149 = vst [vmem:[#allocation2 + $0x38] sm:$0xff] %v6116_v55 }
 0xcf8   : > { %v5166_v6 = vld [vmem:[%s10249_s1 + $0x10] sm:$0xf]  ;;  %v5162_v24 = vld [vmem:[%s10249_s1] sm:$0xf]  ;;  %v6578_v43 = vld [vmem:[#allocation12 + $0x78] sm:$0xff]   ;;  %v6903_v59 = vmov 0   ;;  %v5178_v54 = vlaneseq }
 0xcf9   : > { %6577 = vset.pattern.permute.xlu1 %v6903_v59  ;;  %6576 = vset.pattern.permute.xlu0 %v6903_v59  ;;  %v5167_v61 = vld [vmem:[%s10249_s1 + $0x14] sm:$0xf]  ;;  %v5163_v25 = vld [vmem:[%s10249_s1 + $0x4] sm:$0xf]  ;;  %v6579_v0 = vld [vmem:[#allocation12 + $0x38] sm:$0xff]  }
 0xcfa   : > { %5220 = vperm.xlu1 %6577, %v5166_v6   ;;  %5172 = vperm.xlu0 %6576, %v5162_v24   ;;  %v5165_v21 = vld [vmem:[%s10249_s1 + $0xc] sm:$0xf]  ;;  %v6580_v19 = vld [vmem:[#allocation12 + $0x70] sm:$0xff]   ;;  %v5164_v22 = vld [vmem:[%s10249_s1 + $0x8] sm:$0xf]  ;;  %v5179_v27 = vshrl.u32 %v5178_v54, 7 }
 0xcfb   : > { %6117 = vmatprep.subr.bf16.mxu0 %v6578_v43  ;;  %6157 = vmatprep.subr.bf16.mxu1 %v6578_v43  ;;  %v6581_v53 = vld [vmem:[#allocation12 + $0x30] sm:$0xff]   ;;  %v6582_v8 = vld [vmem:[#allocation12 + $0x68] sm:$0xff]   ;;  %v6584_v13 = vld [vmem:[#allocation12 + $0x60] sm:$0xff]   ;;  %v6904_v23 = vmov 839922192  }
 0xcfc   : > { %6118 = vmatpush3.bf16.msra.mxu0 %v6579_v0  ;;  %6165 = vmatpush3.bf16.msra.mxu1 %v6579_v0  ;;  %v5169_v17 = vld [vmem:[%s10249_s1 + $0x1c] sm:$0xf]  ;;  %v5168_v2 = vld [vmem:[%s10249_s1 + $0x18] sm:$0xf]  ;;  %v6585_v46 = vld [vmem:[#allocation12 + $0x20] sm:$0xff]   ;;  %v5176_v52 = vunpack.c.l.s4 %v6904_v23 }
 0xcfd   : > { %6119 = vmatprep.subr.bf16.mxu0 %v6580_v19  ;;  %6158 = vmatprep.subr.bf16.mxu1 %v6580_v19  ;;  %v6583_v18 = vld [vmem:[#allocation12 + $0x28] sm:$0xff]   ;;  %v6586_v12 = vld [vmem:[#allocation12 + $0x58] sm:$0xff]   ;;  %v6588_v36 = vld [vmem:[#allocation12 + $0x50] sm:$0xff]  }
 0xcfe   : > { %5232 = vperm.xlu1 %6577, %v5167_v61   ;;  %5184 = vperm.xlu0 %6576, %v5163_v25   ;;  %v6587_v5 = vld [vmem:[#allocation12 + $0x18] sm:$0xff]   ;;  %v6589_v4 = vld [vmem:[#allocation12 + $0x10] sm:$0xff]   ;;  %v6590_v48 = vld [vmem:[#allocation12 + $0x48] sm:$0xff]   ;;  %v5177_v60 = vunpack.c.0.s8 %v5176_v52 }
 0xcff   : > { %v6591_v42 = vld [vmem:[#allocation12 + $0x8] sm:$0xff]   ;;  %v6592_v31 = vld [vmem:[#allocation12 + $0x40] sm:$0xff]   ;;  %v5155_v63 = vld [vmem:[#allocation2] sm:$0xff] }
 0xd00   : > { %6120 = vmatpush3.bf16.msra.mxu0 %v6581_v53  ;;  %6166 = vmatpush3.bf16.msra.mxu1 %v6581_v53  ;;  %v6593_v39 = vld [vmem:[#allocation12] sm:$0xff]   ;;  %v5180_v30 = vsub.s32 %v5177_v60, %v5179_v27  ;;  %v5158_v45 = vld [vmem:[#allocation2 + $0x8] sm:$0xff]  ;;  %v5159_v15 = vld [vmem:[#allocation2 + $0x20] sm:$0xff] }
 0xd01   : > { %6121 = vmatprep.subr.bf16.mxu0 %v6582_v8  ;;  %6159 = vmatprep.subr.bf16.mxu1 %v6582_v8  ;;  %v5154_v3 = vld [vmem:[#allocation2 + $0x30] sm:$0xff]  ;;  %v5156_v56 = vld [vmem:[#allocation2 + $0x18] sm:$0xff]  ;;  %v5160_v58 = vld [vmem:[#allocation2 + $0x28] sm:$0xff] }
 0xd02   : > { %5208 = vperm.xlu1 %6577, %v5165_v21   ;;  %5196 = vperm.xlu0 %6576, %v5164_v22   ;;  %v5157_v40 = vld [vmem:[#allocation2 + $0x10] sm:$0xff]  ;;  %v5161_v57 = vld [vmem:[#allocation2 + $0x38] sm:$0xff] }
 0xd03   : > { %v6077_v22 = vld [vmem:[#allocation13] ss:$0 sm:$0xff] }
 0xd04   : > { %6122 = vmatpush3.bf16.msra.mxu0 %v6583_v18  ;;  %6167 = vmatpush3.bf16.msra.mxu1 %v6583_v18 }
 0xd05   : > { %6123 = vmatprep.subr.bf16.mxu0 %v6584_v13  ;;  %6160 = vmatprep.subr.bf16.mxu1 %v6584_v13 }
 0xd06   : > { %5256 = vperm.xlu1 %6577, %v5169_v17   ;;  %5244 = vperm.xlu0 %6576, %v5168_v2  }
 0xd08   : > { %6124 = vmatpush3.bf16.msra.mxu0 %v6585_v46  ;;  %6168 = vmatpush3.bf16.msra.mxu1 %v6585_v46 }
 0xd09   : > { %6125 = vmatprep.subr.bf16.mxu0 %v6586_v12  ;;  %6161 = vmatprep.subr.bf16.mxu1 %v6586_v12 }
 0xd0c   : > { %6126 = vmatpush3.bf16.msra.mxu0 %v6587_v5  ;;  %6169 = vmatpush3.bf16.msra.mxu1 %v6587_v5 }
 0xd0d   : > { %6127 = vmatprep.subr.bf16.mxu0 %v6588_v36  ;;  %6162 = vmatprep.subr.bf16.mxu1 %v6588_v36 }
 0xd10   : > { %6128 = vmatpush3.bf16.msra.mxu0 %v6589_v4  ;;  %6170 = vmatpush3.bf16.msra.mxu1 %v6589_v4 }
 0xd11   : > { %6129 = vmatprep.subr.bf16.mxu0 %v6590_v48  ;;  %6163 = vmatprep.subr.bf16.mxu1 %v6590_v48 }
 0xd14   : > { %6130 = vmatpush3.bf16.msra.mxu0 %v6591_v42  ;;  %6171 = vmatpush3.bf16.msra.mxu1 %v6591_v42 }
 0xd15   : > { %6131 = vmatprep.subr.bf16.mxu0 %v6592_v31  ;;  %6164 = vmatprep.subr.bf16.mxu1 %v6592_v31 }
 0xd18   : > { %6132 = vmatpush3.bf16.msra.mxu0 %v6593_v39  ;;  %6172 = vmatpush3.bf16.msra.mxu1 %v6593_v39 }
 0xd75   : > { %v5221_v7 = vpop.permute.xlu1 %5220  ;;  %v5173_v14 = vpop.permute.xlu0 %5172 }
 0xd76   : > { %v5229_v38 = vrot.slane %v5221_v7, %v5180_v30  ;;  %v5181_v1 = vrot.slane %v5173_v14, %v5180_v30 }
 0xd78   : > { %v5266_v20 = vmul.bf16 %v5181_v1, %v5154_v3  ;;  %v5270_v47 = vmul.bf16 %v5229_v38, %v5158_v45 }
 0xd79   : > { %v5233_v34 = vpop.permute.xlu1 %5232  ;;  %v5185_v62 = vpop.permute.xlu0 %5184 }
 0xd7a   : > { %v5241_v33 = vrot.slane %v5233_v34, %v5180_v30  ;;  %v5193_v10 = vrot.slane %v5185_v62, %v5180_v30 }
 0xd7c   : > { %v5267_v50 = vmul.bf16 %v5193_v10, %v5155_v63  ;;  %v5271_v16 = vmul.bf16 %v5241_v33, %v5159_v15 }
 0xd7d   : > { %v5209_v29 = vpop.permute.xlu1 %5208  ;;  %v5197_v28 = vpop.permute.xlu0 %5196 }
 0xd7e   : > { %v5217_v44 = vrot.slane %v5209_v29, %v5180_v30  ;;  %v5205_v49 = vrot.slane %v5197_v28, %v5180_v30  ;;  %v6079_v9 = vcombine.high %v5266_v20, %v5267_v50  ;;  %v6083_v35 = vcombine.high %v5270_v47, %v5271_v16 }
 0xd7f   : > { %v6078_v11 = vcombine.low %v5266_v20, %v5267_v50  ;;  %v6082_v51 = vcombine.low %v5270_v47, %v5271_v16 }
 0xd80   : > { %v5269_v32 = vmul.bf16 %v5217_v44, %v5157_v40  ;;  %v5268_v41 = vmul.bf16 %v5205_v49, %v5156_v56  ;;  %5481 = vmatprep.mubr.bf16.mxu0 %v6079_v9  ;;  %5497 = vmatprep.mubr.bf16.mxu1 %v6083_v35 }
 0xd81   : > { %v5257_v26 = vpop.permute.xlu1 %5256  ;;  %v5245_v37 = vpop.permute.xlu0 %5244  ;;  %5482 = vmatmul.mubr.bf16.vlgmr.msra.gmra.mxu0 %v6078_v11  ;;  %5498 = vmatmul.mubr.bf16.vlgmr.msra.gmra.mxu1 %v6082_v51 }
 0xd82   : > { %v5265_v55 = vrot.slane %v5257_v26, %v5180_v30  ;;  %v5253_v6 = vrot.slane %v5245_v37, %v5180_v30  ;;  %v6081_v24 = vcombine.high %v5268_v41, %v5269_v32  ;;  %v6080_v0 = vcombine.low %v5268_v41, %v5269_v32 }
 0xd84   : > { %v5273_v43 = vmul.bf16 %v5265_v55, %v5161_v57  ;;  %v5272_v59 = vmul.bf16 %v5253_v6, %v5160_v58  ;;  %5489 = vmatprep.mubr.bf16.mxu0 %v6081_v24 }
 0xd86   : > { %v6085_v61 = vcombine.high %v5272_v59, %v5273_v43  ;;  %v6084_v25 = vcombine.low %v5272_v59, %v5273_v43 }
 0xd88   : > { %5505 = vmatprep.mubr.bf16.mxu1 %v6085_v61 }
 0xd89   : > { %5490 = vmatmul.mubr.bf16.gmra.mxu0 %v6080_v0  ;;  %5506 = vmatmul.mubr.bf16.gmra.mxu1 %v6084_v25 }
 0xe41   : > { %v6133_v21 = vpop.f32.mrf.mxu0  ;;  %v6145_v19 = vpop.f32.mrf.mxu1 }
 0xe43   : > { %v6134_v53 = vpop.f32.mrf.mxu0  ;;  %v6146_v8 = vpop.f32.mrf.mxu1 }
 0xe44   : > { %v6135_v17 = vadd.f32 %v6134_v53, %v6133_v21  ;;  %v6147_v2 = vadd.f32 %v6146_v8, %v6145_v19 }
 0xe45   : > { %v6136_v18 = vpop.f32.mrf.mxu0  ;;  %v6148_v13 = vpop.f32.mrf.mxu1 }
 0xe46   : > { %v5484_v46 = vadd.f32 %v6135_v17, %v6077_v22  ;;  %v5500_v12 = vadd.f32 %v6147_v2, %v6077_v22 }
 0xe47   : > { %v6137_v5 = vpop.f32.mrf.mxu0  ;;  %v6149_v36 = vpop.f32.mrf.mxu1 }
 0xe48   : > { %5514 = vst [vmem:[#allocation15] sm:$0xff] %v5484_v46  ;;  %5518 = vst [vmem:[#allocation15 + $0x20] sm:$0xff] %v5500_v12  ;;  %v6138_v4 = vadd.f32 %v6137_v5, %v6136_v18  ;;  %v6150_v48 = vadd.f32 %v6149_v36, %v6148_v13 }
 0xe49   : > { %v6139_v42 = vpop.f32.mrf.mxu0  ;;  %v6151_v31 = vpop.f32.mrf.mxu1 }
 0xe4a   : > { %v5487_v39 = vadd.f32 %v6138_v4, %v6077_v22  ;;  %v5503_v23 = vadd.f32 %v6150_v48, %v6077_v22 }
 0xe4b   : > { %v6140_v52 = vpop.f32.mrf.mxu0  ;;  %v6152_v54 = vpop.f32.mrf.mxu1 }
 0xe4c   : > { %5515 = vst [vmem:[#allocation15 + $0x8] sm:$0xff] %v5487_v39  ;;  %5519 = vst [vmem:[#allocation15 + $0x28] sm:$0xff] %v5503_v23  ;;  %v6141_v60 = vadd.f32 %v6140_v52, %v6139_v42  ;;  %v6153_v27 = vadd.f32 %v6152_v54, %v6151_v31 }
 0xe4d   : > { %v6142_v30 = vpop.f32.mrf.mxu0  ;;  %v6154_v7 = vpop.f32.mrf.mxu1 }
 0xe4e   : > { %v5492_v14 = vadd.f32 %v6141_v60, %v6077_v22  ;;  %v5508_v38 = vadd.f32 %v6153_v27, %v6077_v22 }
 0xe4f   : > { %v6143_v1 = vpop.f32.mrf.mxu0  ;;  %v6155_v3 = vpop.f32.mrf.mxu1 }
 0xe50   : > { %5516 = vst [vmem:[#allocation15 + $0x10] sm:$0xff] %v5492_v14  ;;  %5520 = vst [vmem:[#allocation15 + $0x30] sm:$0xff] %v5508_v38  ;;  %v6144_v34 = vadd.f32 %v6143_v1, %v6142_v30  ;;  %v6156_v62 = vadd.f32 %v6155_v3, %v6154_v7 }
 0xe52   : > { %v5495_v63 = vadd.f32 %v6144_v34, %v6077_v22  ;;  %v5511_v45 = vadd.f32 %v6156_v62, %v6077_v22 }
 0xe54   : > { %5517 = vst [vmem:[#allocation15 + $0x18] sm:$0xff] %v5495_v63  ;;  %5521 = vst [vmem:[#allocation15 + $0x38] sm:$0xff] %v5511_v45 }
 0xe55 PF: > { %p6231_p0 = scmp.eq.s32.totalorder %s6985_s12, 3  ;;  %s6905_s18 = smov [#allocation15]  }
 0xe56   : > { %s5528_s22 = sshll.u32 %s6905_s18, 4  ;;  %s5529_s22 = int_to_ptr.vmem [resolvable:$true] %s5528_s22 }
 0xe57   : > { %s6782_s13 = scalar_lea.vmem %s5529_s22, 1024  ;;  %p6789_p10 = scmp.lt.s32.totalorder %s5529_s22, %s5529_s22 }
 0xe58   : > { %p6783_p5 = scmp.ne.s32.totalorder %s5529_s22, %s6782_s13  ;;  %p6790_p1 = scmp.lt.s32.totalorder %s6782_s13, %s6782_s13 }
 0xe5a   : > { %p6784_p7 = pnand %p6783_p5, %p6231_p0  ;;  %p6791_p13 = por %p6790_p1, %p6789_p10 }
 0xe5c   : > { %p6785_p6 = pneg %p6784_p7 }
 0xe5e   : > { %p6792_p11 = pnand %p6791_p13, %p6785_p6 }
 0xe60   : > { %6795 = shalt.err (!%p6792_p11)
}
 0xe61   : > { %s6906_s14 = smov 128   ;;  %s6907_s16 = smov 8  }
 0xe62   : > { %s10250_s25 = sld [smem:[#allocation155_spill]] }
 0xe68   : > { %6196 = dma.vmem_to_hbm [thread:$0]  (%p6231_p0), %s5529_s22, 1024, %s10250_s25, [#allocation6], %s6906_s14, %s6906_s14, %s6907_s16  }
 0xe69   : > { %6859 = dma.done.wait (%p6231_p0), [#allocation6], 1024  }
 0xe6a   : > { %6861 = vsyncadd (%p6231_p0), [#allocation6], 4294966272 }
 0xe6b PF: > { %s10251_s17 = sld [smem:[#allocation23_spill]]  ;;  %p19_p3 = scmp.ge.s32.totalorder %s7018_s19, 6  }
 0xe6c   : > { %s10252_s10 = sld [smem:[#allocation24_spill]]  ;;  %s10253_s27 = smov %s6868_s28 }
 0xe6d   : > { %s10254_s28 = smov %s6872_s29  ;;  %s10255_s29 = smov %s7111_s30 }
 0xe6e   : > { %s10256_s30 = smov %s6880_s9  ;;  %s10258_s11 = smov %s7018_s19 }
 0xe6f   :  { %21 = sbr.rel (!%p19_p3) target bundleno = 11 (0xb), region = 138 }
 0xe71   : > { %s10257_s9 = smov %s10251_s17 }
 0xe74   :  { %5544 = vsyncpa [#allocation5], 1 }
 0xe75   :  { %5546 = vsyncpa [#allocation5 + $0x1], 1 }
 0xe76   :  { %5547 = vsyncpa [#allocation8], 1 }
 0xe77   :  { %5548 = vsyncpa [#allocation14], 1 }
 0xe78   :  { %5549 = vsyncpa [#allocation6], 1 }
 0xe79   :  { %5551 = vsyncpa [#allocation6 + $0x1], 1 }

</bundles_post_ra>
